<compile_context>
chip_gen: v7x
topology: tpu7x:2x2x1
jax: 0.10.0
libtpu: 0.0.40
codegen_flags: <defaults>
</compile_context>

<pallas_src>
import functools

import jax
import jax.numpy as jnp
from jax.experimental import pallas as pl
from jax.experimental.pallas import tpu as pltpu


def _ru(x, m):
    return (x + m - 1) // m * m


def _pick_tile(d, max_t, align=8):
    """Pad d up to `align`, then pick a tile <= max_t that divides the padded dim."""
    dp = _ru(d, align)
    if dp <= max_t:
        return dp, dp
    t = max_t
    while dp % t:
        t -= align
    return dp, t


def _pick_ntile(n):
    """Output-channel dim: keep full if <=128 (valid full-dim block), else 128-pad."""
    if n <= 128:
        return n, n
    np_ = _ru(n, 128)
    for t in (256, 128):
        if np_ % t == 0:
            return np_, t
    return np_, 128


# ----------------------------- Pallas kernels -----------------------------

def _gmm_kernel(a_ref, b_ref, s_ref, c_ref, o_ref, acc_ref, *, relu):
    """acc += a[g] @ b[g]; at last g: out = opt_relu(acc * scale + bias)."""
    g = pl.program_id(2)

    @pl.when(g == 0)
    def _init():
        acc_ref[...] = jnp.zeros_like(acc_ref)

    acc_ref[...] += jnp.dot(a_ref[0], b_ref[0],
                            preferred_element_type=jnp.float32)

    @pl.when(g == pl.num_programs(2) - 1)
    def _done():
        y = acc_ref[...] * s_ref[...] + c_ref[...]
        if relu:
            y = jnp.maximum(y, 0.0)
        o_ref[...] = y


def _gmm_res_kernel(a_ref, b_ref, s_ref, c_ref, r_ref, o_ref, acc_ref, *, relu):
    """Same as _gmm_kernel but fuses the residual add into the epilogue."""
    g = pl.program_id(2)

    @pl.when(g == 0)
    def _init():
        acc_ref[...] = jnp.zeros_like(acc_ref)

    acc_ref[...] += jnp.dot(a_ref[0], b_ref[0],
                            preferred_element_type=jnp.float32)

    @pl.when(g == pl.num_programs(2) - 1)
    def _done():
        y = acc_ref[...] * s_ref[...] + c_ref[...] + r_ref[...]
        if relu:
            y = jnp.maximum(y, 0.0)
        o_ref[...] = y


def _maxpool_kernel(p_ref, o_ref):
    o_ref[...] = jnp.max(p_ref[...], axis=0)


def _gap_kernel(x_ref, o_ref):
    o_ref[...] = jnp.mean(x_ref[...], axis=1)


# ------------------------------ wrappers -----------------------------------

def grouped_matmul(taps, wgt, scale, bias, relu, shortcut=None):
    """out = opt_relu((sum_g taps[g] @ wgt[g]) * scale + bias [+ shortcut]).

    taps: (G, M, K) activations, wgt: (G, K, N) weights, scale/bias: (N,),
    shortcut: optional (M, N) residual added in the epilogue.
    """
    G, M, K = taps.shape
    _, _, N = wgt.shape
    Mp, tm = _pick_tile(M, 512, 8)
    Np, tn = _pick_ntile(N)
    Kp = K if K % 8 == 0 else _ru(K, 128)  # only the 7x7 stem (K=147) pads

    a = taps.astype(jnp.bfloat16)
    b = wgt.astype(jnp.bfloat16)
    if (Mp, Kp) != (M, K):
        a = jnp.pad(a, ((0, 0), (0, Mp - M), (0, Kp - K)))
    if (Kp, Np) != (K, N):
        b = jnp.pad(b, ((0, 0), (0, Kp - K), (0, Np - N)))
    s = (scale if Np == N else jnp.pad(scale, (0, Np - N))).reshape(1, Np)
    c = (bias if Np == N else jnp.pad(bias, (0, Np - N))).reshape(1, Np)

    in_specs = [
        pl.BlockSpec((1, tm, Kp), lambda i, j, g: (g, i, 0)),
        pl.BlockSpec((1, Kp, tn), lambda i, j, g: (g, 0, j)),
        pl.BlockSpec((1, tn), lambda i, j, g: (0, j)),
        pl.BlockSpec((1, tn), lambda i, j, g: (0, j)),
    ]
    args = [a, b, s, c]
    if shortcut is not None:
        r = shortcut
        if (Mp, Np) != r.shape:
            r = jnp.pad(r, ((0, Mp - M), (0, Np - N)))
        in_specs.append(pl.BlockSpec((tm, tn), lambda i, j, g: (i, j)))
        args.append(r)
        kern = functools.partial(_gmm_res_kernel, relu=relu)
    else:
        kern = functools.partial(_gmm_kernel, relu=relu)

    out = pl.pallas_call(
        kern,
        out_shape=jax.ShapeDtypeStruct((Mp, Np), jnp.float32),
        grid=(Mp // tm, Np // tn, G),
        in_specs=in_specs,
        out_specs=pl.BlockSpec((tm, tn), lambda i, j, g: (i, j)),
        scratch_shapes=[pltpu.VMEM((tm, tn), jnp.float32)],
        compiler_params=pltpu.CompilerParams(
            dimension_semantics=("parallel", "parallel", "arbitrary")),
    )(*args)
    if (Mp, Np) != (M, N):
        out = out[:M, :N]
    return out


def _extract_patches(xp, KH, KW, Ho, Wo, stride):
    """Strided shifted views of an already-padded NHWC tensor (one per tap)."""
    N = xp.shape[0]
    C = xp.shape[-1]
    cols = []
    for kh in range(KH):
        for kw in range(KW):
            cols.append(
                jax.lax.slice(
                    xp,
                    (0, kh, kw, 0),
                    (N, kh + (Ho - 1) * stride + 1, kw + (Wo - 1) * stride + 1, C),
                    (1, stride, stride, 1),
                )
            )
    return cols


def conv2d(x, w, scale, bias, stride, padding, relu, shortcut=None):
    """x: (N,H,W,Cin) NHWC, w: (KH,KW,Cin,Cout). Conv + BN affine (+res) (+ReLU)."""
    N, H, W, Cin = x.shape
    KH, KW, _, Cout = w.shape
    Ho = (H + 2 * padding - KH) // stride + 1
    Wo = (W + 2 * padding - KW) // stride + 1
    xp = x if padding == 0 else jnp.pad(
        x, ((0, 0), (padding, padding), (padding, padding), (0, 0)))
    cols = _extract_patches(xp, KH, KW, Ho, Wo, stride)
    M = N * Ho * Wo
    if Cin % 8 != 0:
        # Tiny-Cin stem: fold all taps into one K group for a sane MXU shape.
        taps = jnp.concatenate(cols, axis=-1).reshape(1, M, KH * KW * Cin)
        wg = w.reshape(1, KH * KW * Cin, Cout)
    else:
        taps = jnp.stack([col.reshape(M, Cin) for col in cols], axis=0)
        wg = w.reshape(KH * KW, Cin, Cout)
    sc2d = None if shortcut is None else shortcut.reshape(M, Cout)
    out = grouped_matmul(taps, wg, scale, bias, relu, shortcut=sc2d)
    return out.reshape(N, Ho, Wo, Cout)


def maxpool2d(x, ksize=3, stride=2, padding=1):
    N, H, W, C = x.shape
    Ho = (H + 2 * padding - ksize) // stride + 1
    Wo = (W + 2 * padding - ksize) // stride + 1
    xp = jnp.pad(
        x, ((0, 0), (padding, padding), (padding, padding), (0, 0)),
        constant_values=-jnp.inf)
    cols = _extract_patches(xp, ksize, ksize, Ho, Wo, stride)
    M = N * Ho * Wo
    P = ksize * ksize
    patches = jnp.stack([col.reshape(M, C) for col in cols], axis=0)  # (P, M, C)
    Mp, tm = _pick_tile(M, 512, 8)
    if Mp != M:
        patches = jnp.pad(patches, ((0, 0), (0, Mp - M), (0, 0)))
    out = pl.pallas_call(
        _maxpool_kernel,
        out_shape=jax.ShapeDtypeStruct((Mp, C), jnp.float32),
        grid=(Mp // tm,),
        in_specs=[pl.BlockSpec((P, tm, C), lambda i: (0, i, 0))],
        out_specs=pl.BlockSpec((tm, C), lambda i: (i, 0)),
        compiler_params=pltpu.CompilerParams(
            dimension_semantics=("parallel",)),
    )(patches)
    if Mp != M:
        out = out[:M]
    return out.reshape(N, Ho, Wo, C)


def global_avg_pool(x):
    """x: (N, HW, C) -> (N, C) mean over spatial (AdaptiveAvgPool2d((1,1)))."""
    N, HW, C = x.shape
    nb = 8
    Npad = _ru(N, nb)
    if Npad != N:
        x = jnp.pad(x, ((0, Npad - N), (0, 0), (0, 0)))
    out = pl.pallas_call(
        _gap_kernel,
        out_shape=jax.ShapeDtypeStruct((Npad, C), jnp.float32),
        grid=(Npad // nb,),
        in_specs=[pl.BlockSpec((nb, HW, C), lambda i: (i, 0, 0))],
        out_specs=pl.BlockSpec((nb, C), lambda i: (i, 0)),
        compiler_params=pltpu.CompilerParams(
            dimension_semantics=("parallel",)),
    )(x)
    return out[:N]


# --------------------------- parameters (synthetic) ------------------------

def _bn_fold(gamma, beta, mean, var, eps=1e-5):
    scale = gamma / jnp.sqrt(var + eps)
    return scale, beta - mean * scale


def _init_conv(key, kh, kw, cin, cout):
    fan_in = kh * kw * cin
    return jax.random.normal(key, (kh, kw, cin, cout), jnp.float32) * jnp.sqrt(
        2.0 / fan_in)


def _init_bn(key, c):
    k1, k2, k3, k4 = jax.random.split(key, 4)
    gamma = 1.0 + 0.1 * jax.random.normal(k1, (c,), jnp.float32)
    beta = 0.1 * jax.random.normal(k2, (c,), jnp.float32)
    mean = 0.1 * jax.random.normal(k3, (c,), jnp.float32)
    var = 1.0 + 0.1 * jax.random.uniform(k4, (c,), jnp.float32)
    return _bn_fold(gamma, beta, mean, var)


BLOCK_CFG = (
    [(64, 64, 1)] * 3
    + [(64, 128, 2)]
    + [(128, 128, 1)] * 3
    + [(128, 256, 2)]
    + [(256, 256, 1)] * 5
    + [(256, 512, 2)]
    + [(512, 512, 1)] * 2
)  # 16 residual blocks, matching the PyTorch layer list


def init_params(key, num_classes=1000):
    keys = iter(jax.random.split(key, 256))
    params = {
        "conv1_w": _init_conv(next(keys), 7, 7, 3, 64),
        "bn1": _init_bn(next(keys), 64),
        "blocks": [],
    }
    for cin, cout, s in BLOCK_CFG:
        blk = {
            "w1": _init_conv(next(keys), 3, 3, cin, cout),
            "bn1": _init_bn(next(keys), cout),
            "w2": _init_conv(next(keys), 3, 3, cout, cout),
            "bn2": _init_bn(next(keys), cout),
        }
        if s == 2:
            # nn.Conv2d(ins, outs, 1, 2) has bias=True by default (no BN on it).
            blk["wind"] = _init_conv(next(keys), 1, 1, cin, cout)
            blk["bind"] = 0.01 * jax.random.normal(next(keys), (cout,), jnp.float32)
        params["blocks"].append(blk)
    params["fc_w"] = jax.random.normal(
        next(keys), (512, num_classes), jnp.float32) * jnp.sqrt(1.0 / 512)
    params["fc_b"] = 0.01 * jax.random.normal(next(keys), (num_classes,), jnp.float32)
    return params


# ------------------------------- forward ----------------------------------

def _resblock(x, blk):
    cout = blk["w1"].shape[-1]
    stride = 2 if "wind" in blk else 1   # static: dict structure, not a traced leaf
    f = conv2d(x, blk["w1"], blk["bn1"][0], blk["bn1"][1], stride, 1, relu=True)
    if stride == 2:
        sc = conv2d(x, blk["wind"], jnp.ones((cout,), jnp.float32), blk["bind"],
                    2, 0, relu=False)
    else:
        sc = x
    # residual add + ReLU fused into the second conv's matmul epilogue
    return conv2d(f, blk["w2"], blk["bn2"][0], blk["bn2"][1], 1, 1, relu=True,
                  shortcut=sc)


@jax.jit
def resnet34_forward(params, x_nchw):
    # PyTorch-style NCHW in; internal NHWC.
    x = jnp.transpose(x_nchw, (0, 2, 3, 1)).astype(jnp.float32)
    x = conv2d(x, params["conv1_w"], params["bn1"][0], params["bn1"][1], 2, 3,
               relu=True)
    x = maxpool2d(x, 3, 2, 1)
    for blk in params["blocks"]:
        x = _resblock(x, blk)
    N, H, W, C = x.shape
    feature = global_avg_pool(x.reshape(N, H * W, C))  # == avgpool(...).squeeze()
    num_classes = params["fc_w"].shape[1]
    logits = grouped_matmul(
        feature[None, :, :],
        params["fc_w"][None, :, :],
        jnp.ones((num_classes,), jnp.float32),
        params["fc_b"],
        relu=False,
    )
    return logits, feature


# --------------------------------- main ------------------------------------

if __name__ == "__main__":
    key = jax.random.PRNGKey(0)
    kp, kx = jax.random.split(key)
    params = init_params(kp, num_classes=1000)
    # Small input consistent with the module: batch=2, 3 channels, 32x32 spatial.
    x = jax.random.normal(kx, (2, 3, 32, 32), jnp.float32)
    logits, feature = resnet34_forward(params, x)
    jax.block_until_ready((logits, feature))
    assert logits.shape == (2, 1000), logits.shape
    assert feature.shape == (2, 512), feature.shape
    assert bool(jnp.all(jnp.isfinite(logits))) and bool(jnp.all(jnp.isfinite(feature)))
    print("KERNEL_OK")
</pallas_src>

<mosaic_0001>
module attributes {stable_mosaic.version = 11 : i64} {
  func.func @_gmm_kernel(%arg0: i32, %arg1: i32, %arg2: i32, %arg3: memref<1x512x256xbf16, #tpu.memory_space<vmem>>, %arg4: memref<1x256x64xbf16, #tpu.memory_space<vmem>>, %arg5: memref<1x64xf32, #tpu.memory_space<vmem>>, %arg6: memref<1x64xf32, #tpu.memory_space<vmem>>, %arg7: memref<512x64xf32, #tpu.memory_space<vmem>>, %arg8: memref<512x64xf32, #tpu.memory_space<vmem>>) attributes {dimension_semantics = [#tpu.dimension_semantics<parallel>, #tpu.dimension_semantics<parallel>, #tpu.dimension_semantics<arbitrary>], iteration_bounds = array<i64: 1, 1, 1>, scalar_prefetch = 0 : i64, scratch_operands = 1 : i64, tpu.core_type = #tpu.core_type<tc>, window_params = [{transform_indices = @transform_0, window_bounds = array<i64: 1, 512, 256>}, {transform_indices = @transform_1, window_bounds = array<i64: 1, 256, 64>}, {transform_indices = @transform_2, window_bounds = array<i64: 1, 64>}, {transform_indices = @transform_3, window_bounds = array<i64: 1, 64>}, {transform_indices = @transform_4, window_bounds = array<i64: 512, 64>}]} {
    %c0_i32 = arith.constant 0 : i32
    %0 = arith.cmpi eq, %arg2, %c0_i32 : i32
    %1 = arith.extui %0 : i1 to i32
    %c0_i32_0 = arith.constant 0 : i32
    %2 = arith.cmpi ne, %1, %c0_i32_0 : i32
    scf.if %2 {
      %cst_12 = arith.constant 0.000000e+00 : f32
      %14 = vector.broadcast %cst_12 : f32 to vector<512x64xf32>
      %c0_13 = arith.constant 0 : index
      %c0_14 = arith.constant 0 : index
      %15 = vector.load %arg8[%c0_13, %c0_14] : memref<512x64xf32, #tpu.memory_space<vmem>>, vector<512x64xf32>
      tpu.vector_store %arg8[%c0_13, %c0_14], %14 {strides = array<i32>} : memref<512x64xf32, #tpu.memory_space<vmem>>, vector<512x64xf32>,
    } else {
    }
    %c0 = arith.constant 0 : index
    %c0_1 = arith.constant 0 : index
    %3 = vector.load %arg8[%c0, %c0_1] : memref<512x64xf32, #tpu.memory_space<vmem>>, vector<512x64xf32>
    %c0_2 = arith.constant 0 : index
    %c0_3 = arith.constant 0 : index
    %c0_4 = arith.constant 0 : index
    %4 = vector.load %arg3[%c0_2, %c0_3, %c0_4] : memref<1x512x256xbf16, #tpu.memory_space<vmem>>, vector<1x512x256xbf16>
    %5 = vector.shape_cast %4 : vector<1x512x256xbf16> to vector<512x256xbf16>
    %c0_5 = arith.constant 0 : index
    %c0_6 = arith.constant 0 : index
    %c0_7 = arith.constant 0 : index
    %6 = vector.load %arg4[%c0_5, %c0_6, %c0_7] : memref<1x256x64xbf16, #tpu.memory_space<vmem>>, vector<1x256x64xbf16>
    %7 = vector.shape_cast %6 : vector<1x256x64xbf16> to vector<256x64xbf16>
    %cst = arith.constant dense<0.000000e+00> : vector<512x64xf32>
    %8 = tpu.matmul %5, %7, %cst {dimension_numbers = #tpu.dot_dimension_numbers<[1], [0], [0], [1], [0, 0, 1, 1], [], []>} : vector<512x256xbf16>, vector<256x64xbf16>, vector<512x64xf32> -> vector<512x64xf32>
    %9 = arith.addf %3, %8 : vector<512x64xf32>
    %c0_8 = arith.constant 0 : index
    %c0_9 = arith.constant 0 : index
    %10 = vector.load %arg8[%c0_8, %c0_9] : memref<512x64xf32, #tpu.memory_space<vmem>>, vector<512x64xf32>
    tpu.vector_store %arg8[%c0_8, %c0_9], %9 {strides = array<i32>} : memref<512x64xf32, #tpu.memory_space<vmem>>, vector<512x64xf32>,
    %c0_i32_10 = arith.constant 0 : i32
    %11 = arith.cmpi eq, %arg2, %c0_i32_10 : i32
    %12 = arith.extui %11 : i1 to i32
    %c0_i32_11 = arith.constant 0 : i32
    %13 = arith.cmpi ne, %12, %c0_i32_11 : i32
    scf.if %13 {
      %c0_12 = arith.constant 0 : index
      %c0_13 = arith.constant 0 : index
      %14 = vector.load %arg8[%c0_12, %c0_13] : memref<512x64xf32, #tpu.memory_space<vmem>>, vector<512x64xf32>
      %c0_14 = arith.constant 0 : index
      %c0_15 = arith.constant 0 : index
      %15 = vector.load %arg5[%c0_14, %c0_15] : memref<1x64xf32, #tpu.memory_space<vmem>>, vector<1x64xf32>
      %16 = vector.broadcast %15 : vector<1x64xf32> to vector<512x64xf32>
      %17 = arith.mulf %14, %16 : vector<512x64xf32>
      %c0_16 = arith.constant 0 : index
      %c0_17 = arith.constant 0 : index
      %18 = vector.load %arg6[%c0_16, %c0_17] : memref<1x64xf32, #tpu.memory_space<vmem>>, vector<1x64xf32>
      %19 = vector.broadcast %18 : vector<1x64xf32> to vector<512x64xf32>
      %20 = arith.addf %17, %19 : vector<512x64xf32>
      %cst_18 = arith.constant 0.000000e+00 : f32
      %21 = vector.broadcast %cst_18 : f32 to vector<512x64xf32>
      %22 = arith.maximumf %20, %21 : vector<512x64xf32>
      %c0_19 = arith.constant 0 : index
      %c0_20 = arith.constant 0 : index
      %23 = vector.load %arg7[%c0_19, %c0_20] : memref<512x64xf32, #tpu.memory_space<vmem>>, vector<512x64xf32>
      tpu.vector_store %arg7[%c0_19, %c0_20], %22 {strides = array<i32>} : memref<512x64xf32, #tpu.memory_space<vmem>>, vector<512x64xf32>,
    } else {
    }
    return
  }
  func.func @transform_0(%arg0: i32, %arg1: i32, %arg2: i32) -> (i32, i32, i32) {
    %c0_i32 = arith.constant 0 : i32
    %c0_i32_0 = arith.constant 0 : i32
    return %arg2, %arg0, %c0_i32 : i32, i32, i32
  }
  func.func @transform_1(%arg0: i32, %arg1: i32, %arg2: i32) -> (i32, i32, i32) {
    %c0_i32 = arith.constant 0 : i32
    %c0_i32_0 = arith.constant 0 : i32
    return %arg2, %c0_i32, %arg1 : i32, i32, i32
  }
  func.func @transform_2(%arg0: i32, %arg1: i32, %arg2: i32) -> (i32, i32) {
    %c0_i32 = arith.constant 0 : i32
    %c0_i32_0 = arith.constant 0 : i32
    return %c0_i32, %arg1 : i32, i32
  }
  func.func @transform_3(%arg0: i32, %arg1: i32, %arg2: i32) -> (i32, i32) {
    %c0_i32 = arith.constant 0 : i32
    %c0_i32_0 = arith.constant 0 : i32
    return %c0_i32, %arg1 : i32, i32
  }
  func.func @transform_4(%arg0: i32, %arg1: i32, %arg2: i32) -> (i32, i32) {
    %c0_i32 = arith.constant 0 : i32
    return %arg0, %arg1 : i32, i32
  }
}

module attributes {stable_mosaic.version = 11 : i64} {
  func.func @_maxpool_kernel(%arg0: i32, %arg1: memref<9x128x64xf32, #tpu.memory_space<vmem>>, %arg2: memref<128x64xf32, #tpu.memory_space<vmem>>) attributes {dimension_semantics = [#tpu.dimension_semantics<parallel>], iteration_bounds = array<i64: 1>, scalar_prefetch = 0 : i64, scratch_operands = 0 : i64, tpu.core_type = #tpu.core_type<tc>, window_params = [{transform_indices = @transform_0, window_bounds = array<i64: 9, 128, 64>}, {transform_indices = @transform_1, window_bounds = array<i64: 128, 64>}]} {
    %c0 = arith.constant 0 : index
    %c0_0 = arith.constant 0 : index
    %c0_1 = arith.constant 0 : index
    %0 = vector.load %arg1[%c0, %c0_0, %c0_1] : memref<9x128x64xf32, #tpu.memory_space<vmem>>, vector<9x128x64xf32>
    %cst = arith.constant dense<0xFF800000> : vector<128x64xf32>
    %1 = vector.multi_reduction <maximumf>, %0, %cst [0] : vector<9x128x64xf32> to vector<128x64xf32>
    %c0_2 = arith.constant 0 : index
    %c0_3 = arith.constant 0 : index
    %2 = vector.load %arg2[%c0_2, %c0_3] : memref<128x64xf32, #tpu.memory_space<vmem>>, vector<128x64xf32>
    tpu.vector_store %arg2[%c0_2, %c0_3], %1 {strides = array<i32>} : memref<128x64xf32, #tpu.memory_space<vmem>>, vector<128x64xf32>,
    return
  }
  func.func @transform_0(%arg0: i32) -> (i32, i32, i32) {
    %c0_i32 = arith.constant 0 : i32
    %c0_i32_0 = arith.constant 0 : i32
    %c0_i32_1 = arith.constant 0 : i32
    return %c0_i32, %arg0, %c0_i32_0 : i32, i32, i32
  }
  func.func @transform_1(%arg0: i32) -> (i32, i32) {
    %c0_i32 = arith.constant 0 : i32
    %c0_i32_0 = arith.constant 0 : i32
    return %arg0, %c0_i32 : i32, i32
  }
}

module attributes {stable_mosaic.version = 11 : i64} {
  func.func @_gmm_kernel(%arg0: i32, %arg1: i32, %arg2: i32, %arg3: memref<1x128x64xbf16, #tpu.memory_space<vmem>>, %arg4: memref<1x64x64xbf16, #tpu.memory_space<vmem>>, %arg5: memref<1x64xf32, #tpu.memory_space<vmem>>, %arg6: memref<1x64xf32, #tpu.memory_space<vmem>>, %arg7: memref<128x64xf32, #tpu.memory_space<vmem>>, %arg8: memref<128x64xf32, #tpu.memory_space<vmem>>) attributes {dimension_semantics = [#tpu.dimension_semantics<parallel>, #tpu.dimension_semantics<parallel>, #tpu.dimension_semantics<arbitrary>], iteration_bounds = array<i64: 1, 1, 9>, scalar_prefetch = 0 : i64, scratch_operands = 1 : i64, tpu.core_type = #tpu.core_type<tc>, window_params = [{transform_indices = @transform_0, window_bounds = array<i64: 1, 128, 64>}, {transform_indices = @transform_1, window_bounds = array<i64: 1, 64, 64>}, {transform_indices = @transform_2, window_bounds = array<i64: 1, 64>}, {transform_indices = @transform_3, window_bounds = array<i64: 1, 64>}, {transform_indices = @transform_4, window_bounds = array<i64: 128, 64>}]} {
    %c0_i32 = arith.constant 0 : i32
    %0 = arith.cmpi eq, %arg2, %c0_i32 : i32
    %1 = arith.extui %0 : i1 to i32
    %c0_i32_0 = arith.constant 0 : i32
    %2 = arith.cmpi ne, %1, %c0_i32_0 : i32
    scf.if %2 {
      %cst_11 = arith.constant 0.000000e+00 : f32
      %14 = vector.broadcast %cst_11 : f32 to vector<128x64xf32>
      %c0_12 = arith.constant 0 : index
      %c0_13 = arith.constant 0 : index
      %15 = vector.load %arg8[%c0_12, %c0_13] : memref<128x64xf32, #tpu.memory_space<vmem>>, vector<128x64xf32>
      tpu.vector_store %arg8[%c0_12, %c0_13], %14 {strides = array<i32>} : memref<128x64xf32, #tpu.memory_space<vmem>>, vector<128x64xf32>,
    } else {
    }
    %c0 = arith.constant 0 : index
    %c0_1 = arith.constant 0 : index
    %3 = vector.load %arg8[%c0, %c0_1] : memref<128x64xf32, #tpu.memory_space<vmem>>, vector<128x64xf32>
    %c0_2 = arith.constant 0 : index
    %c0_3 = arith.constant 0 : index
    %c0_4 = arith.constant 0 : index
    %4 = vector.load %arg3[%c0_2, %c0_3, %c0_4] : memref<1x128x64xbf16, #tpu.memory_space<vmem>>, vector<1x128x64xbf16>
    %5 = vector.shape_cast %4 : vector<1x128x64xbf16> to vector<128x64xbf16>
    %c0_5 = arith.constant 0 : index
    %c0_6 = arith.constant 0 : index
    %c0_7 = arith.constant 0 : index
    %6 = vector.load %arg4[%c0_5, %c0_6, %c0_7] : memref<1x64x64xbf16, #tpu.memory_space<vmem>>, vector<1x64x64xbf16>
    %7 = vector.shape_cast %6 : vector<1x64x64xbf16> to vector<64x64xbf16>
    %cst = arith.constant dense<0.000000e+00> : vector<128x64xf32>
    %8 = tpu.matmul %5, %7, %cst {dimension_numbers = #tpu.dot_dimension_numbers<[1], [0], [0], [1], [0, 0, 1, 1], [], []>} : vector<128x64xbf16>, vector<64x64xbf16>, vector<128x64xf32> -> vector<128x64xf32>
    %9 = arith.addf %3, %8 : vector<128x64xf32>
    %c0_8 = arith.constant 0 : index
    %c0_9 = arith.constant 0 : index
    %10 = vector.load %arg8[%c0_8, %c0_9] : memref<128x64xf32, #tpu.memory_space<vmem>>, vector<128x64xf32>
    tpu.vector_store %arg8[%c0_8, %c0_9], %9 {strides = array<i32>} : memref<128x64xf32, #tpu.memory_space<vmem>>, vector<128x64xf32>,
    %c8_i32 = arith.constant 8 : i32
    %11 = arith.cmpi eq, %arg2, %c8_i32 : i32
    %12 = arith.extui %11 : i1 to i32
    %c0_i32_10 = arith.constant 0 : i32
    %13 = arith.cmpi ne, %12, %c0_i32_10 : i32
    scf.if %13 {
      %c0_11 = arith.constant 0 : index
      %c0_12 = arith.constant 0 : index
      %14 = vector.load %arg8[%c0_11, %c0_12] : memref<128x64xf32, #tpu.memory_space<vmem>>, vector<128x64xf32>
      %c0_13 = arith.constant 0 : index
      %c0_14 = arith.constant 0 : index
      %15 = vector.load %arg5[%c0_13, %c0_14] : memref<1x64xf32, #tpu.memory_space<vmem>>, vector<1x64xf32>
      %16 = vector.broadcast %15 : vector<1x64xf32> to vector<128x64xf32>
      %17 = arith.mulf %14, %16 : vector<128x64xf32>
      %c0_15 = arith.constant 0 : index
      %c0_16 = arith.constant 0 : index
      %18 = vector.load %arg6[%c0_15, %c0_16] : memref<1x64xf32, #tpu.memory_space<vmem>>, vector<1x64xf32>
      %19 = vector.broadcast %18 : vector<1x64xf32> to vector<128x64xf32>
      %20 = arith.addf %17, %19 : vector<128x64xf32>
      %cst_17 = arith.constant 0.000000e+00 : f32
      %21 = vector.broadcast %cst_17 : f32 to vector<128x64xf32>
      %22 = arith.maximumf %20, %21 : vector<128x64xf32>
      %c0_18 = arith.constant 0 : index
      %c0_19 = arith.constant 0 : index
      %23 = vector.load %arg7[%c0_18, %c0_19] : memref<128x64xf32, #tpu.memory_space<vmem>>, vector<128x64xf32>
      tpu.vector_store %arg7[%c0_18, %c0_19], %22 {strides = array<i32>} : memref<128x64xf32, #tpu.memory_space<vmem>>, vector<128x64xf32>,
    } else {
    }
    return
  }
  func.func @transform_0(%arg0: i32, %arg1: i32, %arg2: i32) -> (i32, i32, i32) {
    %c0_i32 = arith.constant 0 : i32
    %c0_i32_0 = arith.constant 0 : i32
    return %arg2, %arg0, %c0_i32 : i32, i32, i32
  }
  func.func @transform_1(%arg0: i32, %arg1: i32, %arg2: i32) -> (i32, i32, i32) {
    %c0_i32 = arith.constant 0 : i32
    %c0_i32_0 = arith.constant 0 : i32
    return %arg2, %c0_i32, %arg1 : i32, i32, i32
  }
  func.func @transform_2(%arg0: i32, %arg1: i32, %arg2: i32) -> (i32, i32) {
    %c0_i32 = arith.constant 0 : i32
    %c0_i32_0 = arith.constant 0 : i32
    return %c0_i32, %arg1 : i32, i32
  }
  func.func @transform_3(%arg0: i32, %arg1: i32, %arg2: i32) -> (i32, i32) {
    %c0_i32 = arith.constant 0 : i32
    %c0_i32_0 = arith.constant 0 : i32
    return %c0_i32, %arg1 : i32, i32
  }
  func.func @transform_4(%arg0: i32, %arg1: i32, %arg2: i32) -> (i32, i32) {
    %c0_i32 = arith.constant 0 : i32
    return %arg0, %arg1 : i32, i32
  }
}

module attributes {stable_mosaic.version = 11 : i64} {
  func.func @_gmm_res_kernel(%arg0: i32, %arg1: i32, %arg2: i32, %arg3: memref<1x128x64xbf16, #tpu.memory_space<vmem>>, %arg4: memref<1x64x64xbf16, #tpu.memory_space<vmem>>, %arg5: memref<1x64xf32, #tpu.memory_space<vmem>>, %arg6: memref<1x64xf32, #tpu.memory_space<vmem>>, %arg7: memref<128x64xf32, #tpu.memory_space<vmem>>, %arg8: memref<128x64xf32, #tpu.memory_space<vmem>>, %arg9: memref<128x64xf32, #tpu.memory_space<vmem>>) attributes {dimension_semantics = [#tpu.dimension_semantics<parallel>, #tpu.dimension_semantics<parallel>, #tpu.dimension_semantics<arbitrary>], iteration_bounds = array<i64: 1, 1, 9>, scalar_prefetch = 0 : i64, scratch_operands = 1 : i64, tpu.core_type = #tpu.core_type<tc>, window_params = [{transform_indices = @transform_0, window_bounds = array<i64: 1, 128, 64>}, {transform_indices = @transform_1, window_bounds = array<i64: 1, 64, 64>}, {transform_indices = @transform_2, window_bounds = array<i64: 1, 64>}, {transform_indices = @transform_3, window_bounds = array<i64: 1, 64>}, {transform_indices = @transform_4, window_bounds = array<i64: 128, 64>}, {transform_indices = @transform_5, window_bounds = array<i64: 128, 64>}]} {
    %c0_i32 = arith.constant 0 : i32
    %0 = arith.cmpi eq, %arg2, %c0_i32 : i32
    %1 = arith.extui %0 : i1 to i32
    %c0_i32_0 = arith.constant 0 : i32
    %2 = arith.cmpi ne, %1, %c0_i32_0 : i32
    scf.if %2 {
      %cst_11 = arith.constant 0.000000e+00 : f32
      %14 = vector.broadcast %cst_11 : f32 to vector<128x64xf32>
      %c0_12 = arith.constant 0 : index
      %c0_13 = arith.constant 0 : index
      %15 = vector.load %arg9[%c0_12, %c0_13] : memref<128x64xf32, #tpu.memory_space<vmem>>, vector<128x64xf32>
      tpu.vector_store %arg9[%c0_12, %c0_13], %14 {strides = array<i32>} : memref<128x64xf32, #tpu.memory_space<vmem>>, vector<128x64xf32>,
    } else {
    }
    %c0 = arith.constant 0 : index
    %c0_1 = arith.constant 0 : index
    %3 = vector.load %arg9[%c0, %c0_1] : memref<128x64xf32, #tpu.memory_space<vmem>>, vector<128x64xf32>
    %c0_2 = arith.constant 0 : index
    %c0_3 = arith.constant 0 : index
    %c0_4 = arith.constant 0 : index
    %4 = vector.load %arg3[%c0_2, %c0_3, %c0_4] : memref<1x128x64xbf16, #tpu.memory_space<vmem>>, vector<1x128x64xbf16>
    %5 = vector.shape_cast %4 : vector<1x128x64xbf16> to vector<128x64xbf16>
    %c0_5 = arith.constant 0 : index
    %c0_6 = arith.constant 0 : index
    %c0_7 = arith.constant 0 : index
    %6 = vector.load %arg4[%c0_5, %c0_6, %c0_7] : memref<1x64x64xbf16, #tpu.memory_space<vmem>>, vector<1x64x64xbf16>
    %7 = vector.shape_cast %6 : vector<1x64x64xbf16> to vector<64x64xbf16>
    %cst = arith.constant dense<0.000000e+00> : vector<128x64xf32>
    %8 = tpu.matmul %5, %7, %cst {dimension_numbers = #tpu.dot_dimension_numbers<[1], [0], [0], [1], [0, 0, 1, 1], [], []>} : vector<128x64xbf16>, vector<64x64xbf16>, vector<128x64xf32> -> vector<128x64xf32>
    %9 = arith.addf %3, %8 : vector<128x64xf32>
    %c0_8 = arith.constant 0 : index
    %c0_9 = arith.constant 0 : index
    %10 = vector.load %arg9[%c0_8, %c0_9] : memref<128x64xf32, #tpu.memory_space<vmem>>, vector<128x64xf32>
    tpu.vector_store %arg9[%c0_8, %c0_9], %9 {strides = array<i32>} : memref<128x64xf32, #tpu.memory_space<vmem>>, vector<128x64xf32>,
    %c8_i32 = arith.constant 8 : i32
    %11 = arith.cmpi eq, %arg2, %c8_i32 : i32
    %12 = arith.extui %11 : i1 to i32
    %c0_i32_10 = arith.constant 0 : i32
    %13 = arith.cmpi ne, %12, %c0_i32_10 : i32
    scf.if %13 {
      %c0_11 = arith.constant 0 : index
      %c0_12 = arith.constant 0 : index
      %14 = vector.load %arg9[%c0_11, %c0_12] : memref<128x64xf32, #tpu.memory_space<vmem>>, vector<128x64xf32>
      %c0_13 = arith.constant 0 : index
      %c0_14 = arith.constant 0 : index
      %15 = vector.load %arg5[%c0_13, %c0_14] : memref<1x64xf32, #tpu.memory_space<vmem>>, vector<1x64xf32>
      %16 = vector.broadcast %15 : vector<1x64xf32> to vector<128x64xf32>
      %17 = arith.mulf %14, %16 : vector<128x64xf32>
      %c0_15 = arith.constant 0 : index
      %c0_16 = arith.constant 0 : index
      %18 = vector.load %arg6[%c0_15, %c0_16] : memref<1x64xf32, #tpu.memory_space<vmem>>, vector<1x64xf32>
      %19 = vector.broadcast %18 : vector<1x64xf32> to vector<128x64xf32>
      %20 = arith.addf %17, %19 : vector<128x64xf32>
      %c0_17 = arith.constant 0 : index
      %c0_18 = arith.constant 0 : index
      %21 = vector.load %arg7[%c0_17, %c0_18] : memref<128x64xf32, #tpu.memory_space<vmem>>, vector<128x64xf32>
      %22 = arith.addf %20, %21 : vector<128x64xf32>
      %cst_19 = arith.constant 0.000000e+00 : f32
      %23 = vector.broadcast %cst_19 : f32 to vector<128x64xf32>
      %24 = arith.maximumf %22, %23 : vector<128x64xf32>
      %c0_20 = arith.constant 0 : index
      %c0_21 = arith.constant 0 : index
      %25 = vector.load %arg8[%c0_20, %c0_21] : memref<128x64xf32, #tpu.memory_space<vmem>>, vector<128x64xf32>
      tpu.vector_store %arg8[%c0_20, %c0_21], %24 {strides = array<i32>} : memref<128x64xf32, #tpu.memory_space<vmem>>, vector<128x64xf32>,
    } else {
    }
    return
  }
  func.func @transform_0(%arg0: i32, %arg1: i32, %arg2: i32) -> (i32, i32, i32) {
    %c0_i32 = arith.constant 0 : i32
    %c0_i32_0 = arith.constant 0 : i32
    return %arg2, %arg0, %c0_i32 : i32, i32, i32
  }
  func.func @transform_1(%arg0: i32, %arg1: i32, %arg2: i32) -> (i32, i32, i32) {
    %c0_i32 = arith.constant 0 : i32
    %c0_i32_0 = arith.constant 0 : i32
    return %arg2, %c0_i32, %arg1 : i32, i32, i32
  }
  func.func @transform_2(%arg0: i32, %arg1: i32, %arg2: i32) -> (i32, i32) {
    %c0_i32 = arith.constant 0 : i32
    %c0_i32_0 = arith.constant 0 : i32
    return %c0_i32, %arg1 : i32, i32
  }
  func.func @transform_3(%arg0: i32, %arg1: i32, %arg2: i32) -> (i32, i32) {
    %c0_i32 = arith.constant 0 : i32
    %c0_i32_0 = arith.constant 0 : i32
    return %c0_i32, %arg1 : i32, i32
  }
  func.func @transform_4(%arg0: i32, %arg1: i32, %arg2: i32) -> (i32, i32) {
    %c0_i32 = arith.constant 0 : i32
    return %arg0, %arg1 : i32, i32
  }
  func.func @transform_5(%arg0: i32, %arg1: i32, %arg2: i32) -> (i32, i32) {
    %c0_i32 = arith.constant 0 : i32
    return %arg0, %arg1 : i32, i32
  }
}

module attributes {stable_mosaic.version = 11 : i64} {
  func.func @_gmm_kernel(%arg0: i32, %arg1: i32, %arg2: i32, %arg3: memref<1x32x64xbf16, #tpu.memory_space<vmem>>, %arg4: memref<1x64x128xbf16, #tpu.memory_space<vmem>>, %arg5: memref<1x128xf32, #tpu.memory_space<vmem>>, %arg6: memref<1x128xf32, #tpu.memory_space<vmem>>, %arg7: memref<32x128xf32, #tpu.memory_space<vmem>>, %arg8: memref<32x128xf32, #tpu.memory_space<vmem>>) attributes {dimension_semantics = [#tpu.dimension_semantics<parallel>, #tpu.dimension_semantics<parallel>, #tpu.dimension_semantics<arbitrary>], iteration_bounds = array<i64: 1, 1, 9>, scalar_prefetch = 0 : i64, scratch_operands = 1 : i64, tpu.core_type = #tpu.core_type<tc>, window_params = [{transform_indices = @transform_0, window_bounds = array<i64: 1, 32, 64>}, {transform_indices = @transform_1, window_bounds = array<i64: 1, 64, 128>}, {transform_indices = @transform_2, window_bounds = array<i64: 1, 128>}, {transform_indices = @transform_3, window_bounds = array<i64: 1, 128>}, {transform_indices = @transform_4, window_bounds = array<i64: 32, 128>}]} {
    %c0_i32 = arith.constant 0 : i32
    %0 = arith.cmpi eq, %arg2, %c0_i32 : i32
    %1 = arith.extui %0 : i1 to i32
    %c0_i32_0 = arith.constant 0 : i32
    %2 = arith.cmpi ne, %1, %c0_i32_0 : i32
    scf.if %2 {
      %cst_11 = arith.constant 0.000000e+00 : f32
      %14 = vector.broadcast %cst_11 : f32 to vector<32x128xf32>
      %c0_12 = arith.constant 0 : index
      %c0_13 = arith.constant 0 : index
      %15 = vector.load %arg8[%c0_12, %c0_13] : memref<32x128xf32, #tpu.memory_space<vmem>>, vector<32x128xf32>
      tpu.vector_store %arg8[%c0_12, %c0_13], %14 {strides = array<i32>} : memref<32x128xf32, #tpu.memory_space<vmem>>, vector<32x128xf32>,
    } else {
    }
    %c0 = arith.constant 0 : index
    %c0_1 = arith.constant 0 : index
    %3 = vector.load %arg8[%c0, %c0_1] : memref<32x128xf32, #tpu.memory_space<vmem>>, vector<32x128xf32>
    %c0_2 = arith.constant 0 : index
    %c0_3 = arith.constant 0 : index
    %c0_4 = arith.constant 0 : index
    %4 = vector.load %arg3[%c0_2, %c0_3, %c0_4] : memref<1x32x64xbf16, #tpu.memory_space<vmem>>, vector<1x32x64xbf16>
    %5 = vector.shape_cast %4 : vector<1x32x64xbf16> to vector<32x64xbf16>
    %c0_5 = arith.constant 0 : index
    %c0_6 = arith.constant 0 : index
    %c0_7 = arith.constant 0 : index
    %6 = vector.load %arg4[%c0_5, %c0_6, %c0_7] : memref<1x64x128xbf16, #tpu.memory_space<vmem>>, vector<1x64x128xbf16>
    %7 = vector.shape_cast %6 : vector<1x64x128xbf16> to vector<64x128xbf16>
    %cst = arith.constant dense<0.000000e+00> : vector<32x128xf32>
    %8 = tpu.matmul %5, %7, %cst {dimension_numbers = #tpu.dot_dimension_numbers<[1], [0], [0], [1], [0, 0, 1, 1], [], []>} : vector<32x64xbf16>, vector<64x128xbf16>, vector<32x128xf32> -> vector<32x128xf32>
    %9 = arith.addf %3, %8 : vector<32x128xf32>
    %c0_8 = arith.constant 0 : index
    %c0_9 = arith.constant 0 : index
    %10 = vector.load %arg8[%c0_8, %c0_9] : memref<32x128xf32, #tpu.memory_space<vmem>>, vector<32x128xf32>
    tpu.vector_store %arg8[%c0_8, %c0_9], %9 {strides = array<i32>} : memref<32x128xf32, #tpu.memory_space<vmem>>, vector<32x128xf32>,
    %c8_i32 = arith.constant 8 : i32
    %11 = arith.cmpi eq, %arg2, %c8_i32 : i32
    %12 = arith.extui %11 : i1 to i32
    %c0_i32_10 = arith.constant 0 : i32
    %13 = arith.cmpi ne, %12, %c0_i32_10 : i32
    scf.if %13 {
      %c0_11 = arith.constant 0 : index
      %c0_12 = arith.constant 0 : index
      %14 = vector.load %arg8[%c0_11, %c0_12] : memref<32x128xf32, #tpu.memory_space<vmem>>, vector<32x128xf32>
      %c0_13 = arith.constant 0 : index
      %c0_14 = arith.constant 0 : index
      %15 = vector.load %arg5[%c0_13, %c0_14] : memref<1x128xf32, #tpu.memory_space<vmem>>, vector<1x128xf32>
      %16 = vector.broadcast %15 : vector<1x128xf32> to vector<32x128xf32>
      %17 = arith.mulf %14, %16 : vector<32x128xf32>
      %c0_15 = arith.constant 0 : index
      %c0_16 = arith.constant 0 : index
      %18 = vector.load %arg6[%c0_15, %c0_16] : memref<1x128xf32, #tpu.memory_space<vmem>>, vector<1x128xf32>
      %19 = vector.broadcast %18 : vector<1x128xf32> to vector<32x128xf32>
      %20 = arith.addf %17, %19 : vector<32x128xf32>
      %cst_17 = arith.constant 0.000000e+00 : f32
      %21 = vector.broadcast %cst_17 : f32 to vector<32x128xf32>
      %22 = arith.maximumf %20, %21 : vector<32x128xf32>
      %c0_18 = arith.constant 0 : index
      %c0_19 = arith.constant 0 : index
      %23 = vector.load %arg7[%c0_18, %c0_19] : memref<32x128xf32, #tpu.memory_space<vmem>>, vector<32x128xf32>
      tpu.vector_store %arg7[%c0_18, %c0_19], %22 {strides = array<i32>} : memref<32x128xf32, #tpu.memory_space<vmem>>, vector<32x128xf32>,
    } else {
    }
    return
  }
  func.func @transform_0(%arg0: i32, %arg1: i32, %arg2: i32) -> (i32, i32, i32) {
    %c0_i32 = arith.constant 0 : i32
    %c0_i32_0 = arith.constant 0 : i32
    return %arg2, %arg0, %c0_i32 : i32, i32, i32
  }
  func.func @transform_1(%arg0: i32, %arg1: i32, %arg2: i32) -> (i32, i32, i32) {
    %c0_i32 = arith.constant 0 : i32
    %c0_i32_0 = arith.constant 0 : i32
    return %arg2, %c0_i32, %arg1 : i32, i32, i32
  }
  func.func @transform_2(%arg0: i32, %arg1: i32, %arg2: i32) -> (i32, i32) {
    %c0_i32 = arith.constant 0 : i32
    %c0_i32_0 = arith.constant 0 : i32
    return %c0_i32, %arg1 : i32, i32
  }
  func.func @transform_3(%arg0: i32, %arg1: i32, %arg2: i32) -> (i32, i32) {
    %c0_i32 = arith.constant 0 : i32
    %c0_i32_0 = arith.constant 0 : i32
    return %c0_i32, %arg1 : i32, i32
  }
  func.func @transform_4(%arg0: i32, %arg1: i32, %arg2: i32) -> (i32, i32) {
    %c0_i32 = arith.constant 0 : i32
    return %arg0, %arg1 : i32, i32
  }
}

module attributes {stable_mosaic.version = 11 : i64} {
  func.func @_gmm_res_kernel(%arg0: i32, %arg1: i32, %arg2: i32, %arg3: memref<1x32x128xbf16, #tpu.memory_space<vmem>>, %arg4: memref<1x128x128xbf16, #tpu.memory_space<vmem>>, %arg5: memref<1x128xf32, #tpu.memory_space<vmem>>, %arg6: memref<1x128xf32, #tpu.memory_space<vmem>>, %arg7: memref<32x128xf32, #tpu.memory_space<vmem>>, %arg8: memref<32x128xf32, #tpu.memory_space<vmem>>, %arg9: memref<32x128xf32, #tpu.memory_space<vmem>>) attributes {dimension_semantics = [#tpu.dimension_semantics<parallel>, #tpu.dimension_semantics<parallel>, #tpu.dimension_semantics<arbitrary>], iteration_bounds = array<i64: 1, 1, 9>, scalar_prefetch = 0 : i64, scratch_operands = 1 : i64, tpu.core_type = #tpu.core_type<tc>, window_params = [{transform_indices = @transform_0, window_bounds = array<i64: 1, 32, 128>}, {transform_indices = @transform_1, window_bounds = array<i64: 1, 128, 128>}, {transform_indices = @transform_2, window_bounds = array<i64: 1, 128>}, {transform_indices = @transform_3, window_bounds = array<i64: 1, 128>}, {transform_indices = @transform_4, window_bounds = array<i64: 32, 128>}, {transform_indices = @transform_5, window_bounds = array<i64: 32, 128>}]} {
    %c0_i32 = arith.constant 0 : i32
    %0 = arith.cmpi eq, %arg2, %c0_i32 : i32
    %1 = arith.extui %0 : i1 to i32
    %c0_i32_0 = arith.constant 0 : i32
    %2 = arith.cmpi ne, %1, %c0_i32_0 : i32
    scf.if %2 {
      %cst_11 = arith.constant 0.000000e+00 : f32
      %14 = vector.broadcast %cst_11 : f32 to vector<32x128xf32>
      %c0_12 = arith.constant 0 : index
      %c0_13 = arith.constant 0 : index
      %15 = vector.load %arg9[%c0_12, %c0_13] : memref<32x128xf32, #tpu.memory_space<vmem>>, vector<32x128xf32>
      tpu.vector_store %arg9[%c0_12, %c0_13], %14 {strides = array<i32>} : memref<32x128xf32, #tpu.memory_space<vmem>>, vector<32x128xf32>,
    } else {
    }
    %c0 = arith.constant 0 : index
    %c0_1 = arith.constant 0 : index
    %3 = vector.load %arg9[%c0, %c0_1] : memref<32x128xf32, #tpu.memory_space<vmem>>, vector<32x128xf32>
    %c0_2 = arith.constant 0 : index
    %c0_3 = arith.constant 0 : index
    %c0_4 = arith.constant 0 : index
    %4 = vector.load %arg3[%c0_2, %c0_3, %c0_4] : memref<1x32x128xbf16, #tpu.memory_space<vmem>>, vector<1x32x128xbf16>
    %5 = vector.shape_cast %4 : vector<1x32x128xbf16> to vector<32x128xbf16>
    %c0_5 = arith.constant 0 : index
    %c0_6 = arith.constant 0 : index
    %c0_7 = arith.constant 0 : index
    %6 = vector.load %arg4[%c0_5, %c0_6, %c0_7] : memref<1x128x128xbf16, #tpu.memory_space<vmem>>, vector<1x128x128xbf16>
    %7 = vector.shape_cast %6 : vector<1x128x128xbf16> to vector<128x128xbf16>
    %cst = arith.constant dense<0.000000e+00> : vector<32x128xf32>
    %8 = tpu.matmul %5, %7, %cst {dimension_numbers = #tpu.dot_dimension_numbers<[1], [0], [0], [1], [0, 0, 1, 1], [], []>} : vector<32x128xbf16>, vector<128x128xbf16>, vector<32x128xf32> -> vector<32x128xf32>
    %9 = arith.addf %3, %8 : vector<32x128xf32>
    %c0_8 = arith.constant 0 : index
    %c0_9 = arith.constant 0 : index
    %10 = vector.load %arg9[%c0_8, %c0_9] : memref<32x128xf32, #tpu.memory_space<vmem>>, vector<32x128xf32>
    tpu.vector_store %arg9[%c0_8, %c0_9], %9 {strides = array<i32>} : memref<32x128xf32, #tpu.memory_space<vmem>>, vector<32x128xf32>,
    %c8_i32 = arith.constant 8 : i32
    %11 = arith.cmpi eq, %arg2, %c8_i32 : i32
    %12 = arith.extui %11 : i1 to i32
    %c0_i32_10 = arith.constant 0 : i32
    %13 = arith.cmpi ne, %12, %c0_i32_10 : i32
    scf.if %13 {
      %c0_11 = arith.constant 0 : index
      %c0_12 = arith.constant 0 : index
      %14 = vector.load %arg9[%c0_11, %c0_12] : memref<32x128xf32, #tpu.memory_space<vmem>>, vector<32x128xf32>
      %c0_13 = arith.constant 0 : index
      %c0_14 = arith.constant 0 : index
      %15 = vector.load %arg5[%c0_13, %c0_14] : memref<1x128xf32, #tpu.memory_space<vmem>>, vector<1x128xf32>
      %16 = vector.broadcast %15 : vector<1x128xf32> to vector<32x128xf32>
      %17 = arith.mulf %14, %16 : vector<32x128xf32>
      %c0_15 = arith.constant 0 : index
      %c0_16 = arith.constant 0 : index
      %18 = vector.load %arg6[%c0_15, %c0_16] : memref<1x128xf32, #tpu.memory_space<vmem>>, vector<1x128xf32>
      %19 = vector.broadcast %18 : vector<1x128xf32> to vector<32x128xf32>
      %20 = arith.addf %17, %19 : vector<32x128xf32>
      %c0_17 = arith.constant 0 : index
      %c0_18 = arith.constant 0 : index
      %21 = vector.load %arg7[%c0_17, %c0_18] : memref<32x128xf32, #tpu.memory_space<vmem>>, vector<32x128xf32>
      %22 = arith.addf %20, %21 : vector<32x128xf32>
      %cst_19 = arith.constant 0.000000e+00 : f32
      %23 = vector.broadcast %cst_19 : f32 to vector<32x128xf32>
      %24 = arith.maximumf %22, %23 : vector<32x128xf32>
      %c0_20 = arith.constant 0 : index
      %c0_21 = arith.constant 0 : index
      %25 = vector.load %arg8[%c0_20, %c0_21] : memref<32x128xf32, #tpu.memory_space<vmem>>, vector<32x128xf32>
      tpu.vector_store %arg8[%c0_20, %c0_21], %24 {strides = array<i32>} : memref<32x128xf32, #tpu.memory_space<vmem>>, vector<32x128xf32>,
    } else {
    }
    return
  }
  func.func @transform_0(%arg0: i32, %arg1: i32, %arg2: i32) -> (i32, i32, i32) {
    %c0_i32 = arith.constant 0 : i32
    %c0_i32_0 = arith.constant 0 : i32
    return %arg2, %arg0, %c0_i32 : i32, i32, i32
  }
  func.func @transform_1(%arg0: i32, %arg1: i32, %arg2: i32) -> (i32, i32, i32) {
    %c0_i32 = arith.constant 0 : i32
    %c0_i32_0 = arith.constant 0 : i32
    return %arg2, %c0_i32, %arg1 : i32, i32, i32
  }
  func.func @transform_2(%arg0: i32, %arg1: i32, %arg2: i32) -> (i32, i32) {
    %c0_i32 = arith.constant 0 : i32
    %c0_i32_0 = arith.constant 0 : i32
    return %c0_i32, %arg1 : i32, i32
  }
  func.func @transform_3(%arg0: i32, %arg1: i32, %arg2: i32) -> (i32, i32) {
    %c0_i32 = arith.constant 0 : i32
    %c0_i32_0 = arith.constant 0 : i32
    return %c0_i32, %arg1 : i32, i32
  }
  func.func @transform_4(%arg0: i32, %arg1: i32, %arg2: i32) -> (i32, i32) {
    %c0_i32 = arith.constant 0 : i32
    return %arg0, %arg1 : i32, i32
  }
  func.func @transform_5(%arg0: i32, %arg1: i32, %arg2: i32) -> (i32, i32) {
    %c0_i32 = arith.constant 0 : i32
    return %arg0, %arg1 : i32, i32
  }
}

module attributes {stable_mosaic.version = 11 : i64} {
  func.func @_gmm_kernel(%arg0: i32, %arg1: i32, %arg2: i32, %arg3: memref<1x32x64xbf16, #tpu.memory_space<vmem>>, %arg4: memref<1x64x128xbf16, #tpu.memory_space<vmem>>, %arg5: memref<1x128xf32, #tpu.memory_space<vmem>>, %arg6: memref<1x128xf32, #tpu.memory_space<vmem>>, %arg7: memref<32x128xf32, #tpu.memory_space<vmem>>, %arg8: memref<32x128xf32, #tpu.memory_space<vmem>>) attributes {dimension_semantics = [#tpu.dimension_semantics<parallel>, #tpu.dimension_semantics<parallel>, #tpu.dimension_semantics<arbitrary>], iteration_bounds = array<i64: 1, 1, 1>, scalar_prefetch = 0 : i64, scratch_operands = 1 : i64, tpu.core_type = #tpu.core_type<tc>, window_params = [{transform_indices = @transform_0, window_bounds = array<i64: 1, 32, 64>}, {transform_indices = @transform_1, window_bounds = array<i64: 1, 64, 128>}, {transform_indices = @transform_2, window_bounds = array<i64: 1, 128>}, {transform_indices = @transform_3, window_bounds = array<i64: 1, 128>}, {transform_indices = @transform_4, window_bounds = array<i64: 32, 128>}]} {
    %c0_i32 = arith.constant 0 : i32
    %0 = arith.cmpi eq, %arg2, %c0_i32 : i32
    %1 = arith.extui %0 : i1 to i32
    %c0_i32_0 = arith.constant 0 : i32
    %2 = arith.cmpi ne, %1, %c0_i32_0 : i32
    scf.if %2 {
      %cst_12 = arith.constant 0.000000e+00 : f32
      %14 = vector.broadcast %cst_12 : f32 to vector<32x128xf32>
      %c0_13 = arith.constant 0 : index
      %c0_14 = arith.constant 0 : index
      %15 = vector.load %arg8[%c0_13, %c0_14] : memref<32x128xf32, #tpu.memory_space<vmem>>, vector<32x128xf32>
      tpu.vector_store %arg8[%c0_13, %c0_14], %14 {strides = array<i32>} : memref<32x128xf32, #tpu.memory_space<vmem>>, vector<32x128xf32>,
    } else {
    }
    %c0 = arith.constant 0 : index
    %c0_1 = arith.constant 0 : index
    %3 = vector.load %arg8[%c0, %c0_1] : memref<32x128xf32, #tpu.memory_space<vmem>>, vector<32x128xf32>
    %c0_2 = arith.constant 0 : index
    %c0_3 = arith.constant 0 : index
    %c0_4 = arith.constant 0 : index
    %4 = vector.load %arg3[%c0_2, %c0_3, %c0_4] : memref<1x32x64xbf16, #tpu.memory_space<vmem>>, vector<1x32x64xbf16>
    %5 = vector.shape_cast %4 : vector<1x32x64xbf16> to vector<32x64xbf16>
    %c0_5 = arith.constant 0 : index
    %c0_6 = arith.constant 0 : index
    %c0_7 = arith.constant 0 : index
    %6 = vector.load %arg4[%c0_5, %c0_6, %c0_7] : memref<1x64x128xbf16, #tpu.memory_space<vmem>>, vector<1x64x128xbf16>
    %7 = vector.shape_cast %6 : vector<1x64x128xbf16> to vector<64x128xbf16>
    %cst = arith.constant dense<0.000000e+00> : vector<32x128xf32>
    %8 = tpu.matmul %5, %7, %cst {dimension_numbers = #tpu.dot_dimension_numbers<[1], [0], [0], [1], [0, 0, 1, 1], [], []>} : vector<32x64xbf16>, vector<64x128xbf16>, vector<32x128xf32> -> vector<32x128xf32>
    %9 = arith.addf %3, %8 : vector<32x128xf32>
    %c0_8 = arith.constant 0 : index
    %c0_9 = arith.constant 0 : index
    %10 = vector.load %arg8[%c0_8, %c0_9] : memref<32x128xf32, #tpu.memory_space<vmem>>, vector<32x128xf32>
    tpu.vector_store %arg8[%c0_8, %c0_9], %9 {strides = array<i32>} : memref<32x128xf32, #tpu.memory_space<vmem>>, vector<32x128xf32>,
    %c0_i32_10 = arith.constant 0 : i32
    %11 = arith.cmpi eq, %arg2, %c0_i32_10 : i32
    %12 = arith.extui %11 : i1 to i32
    %c0_i32_11 = arith.constant 0 : i32
    %13 = arith.cmpi ne, %12, %c0_i32_11 : i32
    scf.if %13 {
      %c0_12 = arith.constant 0 : index
      %c0_13 = arith.constant 0 : index
      %14 = vector.load %arg8[%c0_12, %c0_13] : memref<32x128xf32, #tpu.memory_space<vmem>>, vector<32x128xf32>
      %c0_14 = arith.constant 0 : index
      %c0_15 = arith.constant 0 : index
      %15 = vector.load %arg5[%c0_14, %c0_15] : memref<1x128xf32, #tpu.memory_space<vmem>>, vector<1x128xf32>
      %16 = vector.broadcast %15 : vector<1x128xf32> to vector<32x128xf32>
      %17 = arith.mulf %14, %16 : vector<32x128xf32>
      %c0_16 = arith.constant 0 : index
      %c0_17 = arith.constant 0 : index
      %18 = vector.load %arg6[%c0_16, %c0_17] : memref<1x128xf32, #tpu.memory_space<vmem>>, vector<1x128xf32>
      %19 = vector.broadcast %18 : vector<1x128xf32> to vector<32x128xf32>
      %20 = arith.addf %17, %19 : vector<32x128xf32>
      %c0_18 = arith.constant 0 : index
      %c0_19 = arith.constant 0 : index
      %21 = vector.load %arg7[%c0_18, %c0_19] : memref<32x128xf32, #tpu.memory_space<vmem>>, vector<32x128xf32>
      tpu.vector_store %arg7[%c0_18, %c0_19], %20 {strides = array<i32>} : memref<32x128xf32, #tpu.memory_space<vmem>>, vector<32x128xf32>,
    } else {
    }
    return
  }
  func.func @transform_0(%arg0: i32, %arg1: i32, %arg2: i32) -> (i32, i32, i32) {
    %c0_i32 = arith.constant 0 : i32
    %c0_i32_0 = arith.constant 0 : i32
    return %arg2, %arg0, %c0_i32 : i32, i32, i32
  }
  func.func @transform_1(%arg0: i32, %arg1: i32, %arg2: i32) -> (i32, i32, i32) {
    %c0_i32 = arith.constant 0 : i32
    %c0_i32_0 = arith.constant 0 : i32
    return %arg2, %c0_i32, %arg1 : i32, i32, i32
  }
  func.func @transform_2(%arg0: i32, %arg1: i32, %arg2: i32) -> (i32, i32) {
    %c0_i32 = arith.constant 0 : i32
    %c0_i32_0 = arith.constant 0 : i32
    return %c0_i32, %arg1 : i32, i32
  }
  func.func @transform_3(%arg0: i32, %arg1: i32, %arg2: i32) -> (i32, i32) {
    %c0_i32 = arith.constant 0 : i32
    %c0_i32_0 = arith.constant 0 : i32
    return %c0_i32, %arg1 : i32, i32
  }
  func.func @transform_4(%arg0: i32, %arg1: i32, %arg2: i32) -> (i32, i32) {
    %c0_i32 = arith.constant 0 : i32
    return %arg0, %arg1 : i32, i32
  }
}

module attributes {stable_mosaic.version = 11 : i64} {
  func.func @_gmm_kernel(%arg0: i32, %arg1: i32, %arg2: i32, %arg3: memref<1x32x128xbf16, #tpu.memory_space<vmem>>, %arg4: memref<1x128x128xbf16, #tpu.memory_space<vmem>>, %arg5: memref<1x128xf32, #tpu.memory_space<vmem>>, %arg6: memref<1x128xf32, #tpu.memory_space<vmem>>, %arg7: memref<32x128xf32, #tpu.memory_space<vmem>>, %arg8: memref<32x128xf32, #tpu.memory_space<vmem>>) attributes {dimension_semantics = [#tpu.dimension_semantics<parallel>, #tpu.dimension_semantics<parallel>, #tpu.dimension_semantics<arbitrary>], iteration_bounds = array<i64: 1, 1, 9>, scalar_prefetch = 0 : i64, scratch_operands = 1 : i64, tpu.core_type = #tpu.core_type<tc>, window_params = [{transform_indices = @transform_0, window_bounds = array<i64: 1, 32, 128>}, {transform_indices = @transform_1, window_bounds = array<i64: 1, 128, 128>}, {transform_indices = @transform_2, window_bounds = array<i64: 1, 128>}, {transform_indices = @transform_3, window_bounds = array<i64: 1, 128>}, {transform_indices = @transform_4, window_bounds = array<i64: 32, 128>}]} {
    %c0_i32 = arith.constant 0 : i32
    %0 = arith.cmpi eq, %arg2, %c0_i32 : i32
    %1 = arith.extui %0 : i1 to i32
    %c0_i32_0 = arith.constant 0 : i32
    %2 = arith.cmpi ne, %1, %c0_i32_0 : i32
    scf.if %2 {
      %cst_11 = arith.constant 0.000000e+00 : f32
      %14 = vector.broadcast %cst_11 : f32 to vector<32x128xf32>
      %c0_12 = arith.constant 0 : index
      %c0_13 = arith.constant 0 : index
      %15 = vector.load %arg8[%c0_12, %c0_13] : memref<32x128xf32, #tpu.memory_space<vmem>>, vector<32x128xf32>
      tpu.vector_store %arg8[%c0_12, %c0_13], %14 {strides = array<i32>} : memref<32x128xf32, #tpu.memory_space<vmem>>, vector<32x128xf32>,
    } else {
    }
    %c0 = arith.constant 0 : index
    %c0_1 = arith.constant 0 : index
    %3 = vector.load %arg8[%c0, %c0_1] : memref<32x128xf32, #tpu.memory_space<vmem>>, vector<32x128xf32>
    %c0_2 = arith.constant 0 : index
    %c0_3 = arith.constant 0 : index
    %c0_4 = arith.constant 0 : index
    %4 = vector.load %arg3[%c0_2, %c0_3, %c0_4] : memref<1x32x128xbf16, #tpu.memory_space<vmem>>, vector<1x32x128xbf16>
    %5 = vector.shape_cast %4 : vector<1x32x128xbf16> to vector<32x128xbf16>
    %c0_5 = arith.constant 0 : index
    %c0_6 = arith.constant 0 : index
    %c0_7 = arith.constant 0 : index
    %6 = vector.load %arg4[%c0_5, %c0_6, %c0_7] : memref<1x128x128xbf16, #tpu.memory_space<vmem>>, vector<1x128x128xbf16>
    %7 = vector.shape_cast %6 : vector<1x128x128xbf16> to vector<128x128xbf16>
    %cst = arith.constant dense<0.000000e+00> : vector<32x128xf32>
    %8 = tpu.matmul %5, %7, %cst {dimension_numbers = #tpu.dot_dimension_numbers<[1], [0], [0], [1], [0, 0, 1, 1], [], []>} : vector<32x128xbf16>, vector<128x128xbf16>, vector<32x128xf32> -> vector<32x128xf32>
    %9 = arith.addf %3, %8 : vector<32x128xf32>
    %c0_8 = arith.constant 0 : index
    %c0_9 = arith.constant 0 : index
    %10 = vector.load %arg8[%c0_8, %c0_9] : memref<32x128xf32, #tpu.memory_space<vmem>>, vector<32x128xf32>
    tpu.vector_store %arg8[%c0_8, %c0_9], %9 {strides = array<i32>} : memref<32x128xf32, #tpu.memory_space<vmem>>, vector<32x128xf32>,
    %c8_i32 = arith.constant 8 : i32
    %11 = arith.cmpi eq, %arg2, %c8_i32 : i32
    %12 = arith.extui %11 : i1 to i32
    %c0_i32_10 = arith.constant 0 : i32
    %13 = arith.cmpi ne, %12, %c0_i32_10 : i32
    scf.if %13 {
      %c0_11 = arith.constant 0 : index
      %c0_12 = arith.constant 0 : index
      %14 = vector.load %arg8[%c0_11, %c0_12] : memref<32x128xf32, #tpu.memory_space<vmem>>, vector<32x128xf32>
      %c0_13 = arith.constant 0 : index
      %c0_14 = arith.constant 0 : index
      %15 = vector.load %arg5[%c0_13, %c0_14] : memref<1x128xf32, #tpu.memory_space<vmem>>, vector<1x128xf32>
      %16 = vector.broadcast %15 : vector<1x128xf32> to vector<32x128xf32>
      %17 = arith.mulf %14, %16 : vector<32x128xf32>
      %c0_15 = arith.constant 0 : index
      %c0_16 = arith.constant 0 : index
      %18 = vector.load %arg6[%c0_15, %c0_16] : memref<1x128xf32, #tpu.memory_space<vmem>>, vector<1x128xf32>
      %19 = vector.broadcast %18 : vector<1x128xf32> to vector<32x128xf32>
      %20 = arith.addf %17, %19 : vector<32x128xf32>
      %cst_17 = arith.constant 0.000000e+00 : f32
      %21 = vector.broadcast %cst_17 : f32 to vector<32x128xf32>
      %22 = arith.maximumf %20, %21 : vector<32x128xf32>
      %c0_18 = arith.constant 0 : index
      %c0_19 = arith.constant 0 : index
      %23 = vector.load %arg7[%c0_18, %c0_19] : memref<32x128xf32, #tpu.memory_space<vmem>>, vector<32x128xf32>
      tpu.vector_store %arg7[%c0_18, %c0_19], %22 {strides = array<i32>} : memref<32x128xf32, #tpu.memory_space<vmem>>, vector<32x128xf32>,
    } else {
    }
    return
  }
  func.func @transform_0(%arg0: i32, %arg1: i32, %arg2: i32) -> (i32, i32, i32) {
    %c0_i32 = arith.constant 0 : i32
    %c0_i32_0 = arith.constant 0 : i32
    return %arg2, %arg0, %c0_i32 : i32, i32, i32
  }
  func.func @transform_1(%arg0: i32, %arg1: i32, %arg2: i32) -> (i32, i32, i32) {
    %c0_i32 = arith.constant 0 : i32
    %c0_i32_0 = arith.constant 0 : i32
    return %arg2, %c0_i32, %arg1 : i32, i32, i32
  }
  func.func @transform_2(%arg0: i32, %arg1: i32, %arg2: i32) -> (i32, i32) {
    %c0_i32 = arith.constant 0 : i32
    %c0_i32_0 = arith.constant 0 : i32
    return %c0_i32, %arg1 : i32, i32
  }
  func.func @transform_3(%arg0: i32, %arg1: i32, %arg2: i32) -> (i32, i32) {
    %c0_i32 = arith.constant 0 : i32
    %c0_i32_0 = arith.constant 0 : i32
    return %c0_i32, %arg1 : i32, i32
  }
  func.func @transform_4(%arg0: i32, %arg1: i32, %arg2: i32) -> (i32, i32) {
    %c0_i32 = arith.constant 0 : i32
    return %arg0, %arg1 : i32, i32
  }
}

module attributes {stable_mosaic.version = 11 : i64} {
  func.func @_gmm_kernel(%arg0: i32, %arg1: i32, %arg2: i32, %arg3: memref<1x8x128xbf16, #tpu.memory_space<vmem>>, %arg4: memref<1x128x256xbf16, #tpu.memory_space<vmem>>, %arg5: memref<1x256xf32, #tpu.memory_space<vmem>>, %arg6: memref<1x256xf32, #tpu.memory_space<vmem>>, %arg7: memref<8x256xf32, #tpu.memory_space<vmem>>, %arg8: memref<8x256xf32, #tpu.memory_space<vmem>>) attributes {dimension_semantics = [#tpu.dimension_semantics<parallel>, #tpu.dimension_semantics<parallel>, #tpu.dimension_semantics<arbitrary>], iteration_bounds = array<i64: 1, 1, 9>, scalar_prefetch = 0 : i64, scratch_operands = 1 : i64, tpu.core_type = #tpu.core_type<tc>, window_params = [{transform_indices = @transform_0, window_bounds = array<i64: 1, 8, 128>}, {transform_indices = @transform_1, window_bounds = array<i64: 1, 128, 256>}, {transform_indices = @transform_2, window_bounds = array<i64: 1, 256>}, {transform_indices = @transform_3, window_bounds = array<i64: 1, 256>}, {transform_indices = @transform_4, window_bounds = array<i64: 8, 256>}]} {
    %c0_i32 = arith.constant 0 : i32
    %0 = arith.cmpi eq, %arg2, %c0_i32 : i32
    %1 = arith.extui %0 : i1 to i32
    %c0_i32_0 = arith.constant 0 : i32
    %2 = arith.cmpi ne, %1, %c0_i32_0 : i32
    scf.if %2 {
      %cst_11 = arith.constant 0.000000e+00 : f32
      %14 = vector.broadcast %cst_11 : f32 to vector<8x256xf32>
      %c0_12 = arith.constant 0 : index
      %c0_13 = arith.constant 0 : index
      %15 = vector.load %arg8[%c0_12, %c0_13] : memref<8x256xf32, #tpu.memory_space<vmem>>, vector<8x256xf32>
      tpu.vector_store %arg8[%c0_12, %c0_13], %14 {strides = array<i32>} : memref<8x256xf32, #tpu.memory_space<vmem>>, vector<8x256xf32>,
    } else {
    }
    %c0 = arith.constant 0 : index
    %c0_1 = arith.constant 0 : index
    %3 = vector.load %arg8[%c0, %c0_1] : memref<8x256xf32, #tpu.memory_space<vmem>>, vector<8x256xf32>
    %c0_2 = arith.constant 0 : index
    %c0_3 = arith.constant 0 : index
    %c0_4 = arith.constant 0 : index
    %4 = vector.load %arg3[%c0_2, %c0_3, %c0_4] : memref<1x8x128xbf16, #tpu.memory_space<vmem>>, vector<1x8x128xbf16>
    %5 = vector.shape_cast %4 : vector<1x8x128xbf16> to vector<8x128xbf16>
    %c0_5 = arith.constant 0 : index
    %c0_6 = arith.constant 0 : index
    %c0_7 = arith.constant 0 : index
    %6 = vector.load %arg4[%c0_5, %c0_6, %c0_7] : memref<1x128x256xbf16, #tpu.memory_space<vmem>>, vector<1x128x256xbf16>
    %7 = vector.shape_cast %6 : vector<1x128x256xbf16> to vector<128x256xbf16>
    %cst = arith.constant dense<0.000000e+00> : vector<8x256xf32>
    %8 = tpu.matmul %5, %7, %cst {dimension_numbers = #tpu.dot_dimension_numbers<[1], [0], [0], [1], [0, 0, 1, 1], [], []>} : vector<8x128xbf16>, vector<128x256xbf16>, vector<8x256xf32> -> vector<8x256xf32>
    %9 = arith.addf %3, %8 : vector<8x256xf32>
    %c0_8 = arith.constant 0 : index
    %c0_9 = arith.constant 0 : index
    %10 = vector.load %arg8[%c0_8, %c0_9] : memref<8x256xf32, #tpu.memory_space<vmem>>, vector<8x256xf32>
    tpu.vector_store %arg8[%c0_8, %c0_9], %9 {strides = array<i32>} : memref<8x256xf32, #tpu.memory_space<vmem>>, vector<8x256xf32>,
    %c8_i32 = arith.constant 8 : i32
    %11 = arith.cmpi eq, %arg2, %c8_i32 : i32
    %12 = arith.extui %11 : i1 to i32
    %c0_i32_10 = arith.constant 0 : i32
    %13 = arith.cmpi ne, %12, %c0_i32_10 : i32
    scf.if %13 {
      %c0_11 = arith.constant 0 : index
      %c0_12 = arith.constant 0 : index
      %14 = vector.load %arg8[%c0_11, %c0_12] : memref<8x256xf32, #tpu.memory_space<vmem>>, vector<8x256xf32>
      %c0_13 = arith.constant 0 : index
      %c0_14 = arith.constant 0 : index
      %15 = vector.load %arg5[%c0_13, %c0_14] : memref<1x256xf32, #tpu.memory_space<vmem>>, vector<1x256xf32>
      %16 = vector.broadcast %15 : vector<1x256xf32> to vector<8x256xf32>
      %17 = arith.mulf %14, %16 : vector<8x256xf32>
      %c0_15 = arith.constant 0 : index
      %c0_16 = arith.constant 0 : index
      %18 = vector.load %arg6[%c0_15, %c0_16] : memref<1x256xf32, #tpu.memory_space<vmem>>, vector<1x256xf32>
      %19 = vector.broadcast %18 : vector<1x256xf32> to vector<8x256xf32>
      %20 = arith.addf %17, %19 : vector<8x256xf32>
      %cst_17 = arith.constant 0.000000e+00 : f32
      %21 = vector.broadcast %cst_17 : f32 to vector<8x256xf32>
      %22 = arith.maximumf %20, %21 : vector<8x256xf32>
      %c0_18 = arith.constant 0 : index
      %c0_19 = arith.constant 0 : index
      %23 = vector.load %arg7[%c0_18, %c0_19] : memref<8x256xf32, #tpu.memory_space<vmem>>, vector<8x256xf32>
      tpu.vector_store %arg7[%c0_18, %c0_19], %22 {strides = array<i32>} : memref<8x256xf32, #tpu.memory_space<vmem>>, vector<8x256xf32>,
    } else {
    }
    return
  }
  func.func @transform_0(%arg0: i32, %arg1: i32, %arg2: i32) -> (i32, i32, i32) {
    %c0_i32 = arith.constant 0 : i32
    %c0_i32_0 = arith.constant 0 : i32
    return %arg2, %arg0, %c0_i32 : i32, i32, i32
  }
  func.func @transform_1(%arg0: i32, %arg1: i32, %arg2: i32) -> (i32, i32, i32) {
    %c0_i32 = arith.constant 0 : i32
    %c0_i32_0 = arith.constant 0 : i32
    return %arg2, %c0_i32, %arg1 : i32, i32, i32
  }
  func.func @transform_2(%arg0: i32, %arg1: i32, %arg2: i32) -> (i32, i32) {
    %c0_i32 = arith.constant 0 : i32
    %c0_i32_0 = arith.constant 0 : i32
    return %c0_i32, %arg1 : i32, i32
  }
  func.func @transform_3(%arg0: i32, %arg1: i32, %arg2: i32) -> (i32, i32) {
    %c0_i32 = arith.constant 0 : i32
    %c0_i32_0 = arith.constant 0 : i32
    return %c0_i32, %arg1 : i32, i32
  }
  func.func @transform_4(%arg0: i32, %arg1: i32, %arg2: i32) -> (i32, i32) {
    %c0_i32 = arith.constant 0 : i32
    return %arg0, %arg1 : i32, i32
  }
}

module attributes {stable_mosaic.version = 11 : i64} {
  func.func @_gmm_kernel(%arg0: i32, %arg1: i32, %arg2: i32, %arg3: memref<1x8x128xbf16, #tpu.memory_space<vmem>>, %arg4: memref<1x128x256xbf16, #tpu.memory_space<vmem>>, %arg5: memref<1x256xf32, #tpu.memory_space<vmem>>, %arg6: memref<1x256xf32, #tpu.memory_space<vmem>>, %arg7: memref<8x256xf32, #tpu.memory_space<vmem>>, %arg8: memref<8x256xf32, #tpu.memory_space<vmem>>) attributes {dimension_semantics = [#tpu.dimension_semantics<parallel>, #tpu.dimension_semantics<parallel>, #tpu.dimension_semantics<arbitrary>], iteration_bounds = array<i64: 1, 1, 1>, scalar_prefetch = 0 : i64, scratch_operands = 1 : i64, tpu.core_type = #tpu.core_type<tc>, window_params = [{transform_indices = @transform_0, window_bounds = array<i64: 1, 8, 128>}, {transform_indices = @transform_1, window_bounds = array<i64: 1, 128, 256>}, {transform_indices = @transform_2, window_bounds = array<i64: 1, 256>}, {transform_indices = @transform_3, window_bounds = array<i64: 1, 256>}, {transform_indices = @transform_4, window_bounds = array<i64: 8, 256>}]} {
    %c0_i32 = arith.constant 0 : i32
    %0 = arith.cmpi eq, %arg2, %c0_i32 : i32
    %1 = arith.extui %0 : i1 to i32
    %c0_i32_0 = arith.constant 0 : i32
    %2 = arith.cmpi ne, %1, %c0_i32_0 : i32
    scf.if %2 {
      %cst_12 = arith.constant 0.000000e+00 : f32
      %14 = vector.broadcast %cst_12 : f32 to vector<8x256xf32>
      %c0_13 = arith.constant 0 : index
      %c0_14 = arith.constant 0 : index
      %15 = vector.load %arg8[%c0_13, %c0_14] : memref<8x256xf32, #tpu.memory_space<vmem>>, vector<8x256xf32>
      tpu.vector_store %arg8[%c0_13, %c0_14], %14 {strides = array<i32>} : memref<8x256xf32, #tpu.memory_space<vmem>>, vector<8x256xf32>,
    } else {
    }
    %c0 = arith.constant 0 : index
    %c0_1 = arith.constant 0 : index
    %3 = vector.load %arg8[%c0, %c0_1] : memref<8x256xf32, #tpu.memory_space<vmem>>, vector<8x256xf32>
    %c0_2 = arith.constant 0 : index
    %c0_3 = arith.constant 0 : index
    %c0_4 = arith.constant 0 : index
    %4 = vector.load %arg3[%c0_2, %c0_3, %c0_4] : memref<1x8x128xbf16, #tpu.memory_space<vmem>>, vector<1x8x128xbf16>
    %5 = vector.shape_cast %4 : vector<1x8x128xbf16> to vector<8x128xbf16>
    %c0_5 = arith.constant 0 : index
    %c0_6 = arith.constant 0 : index
    %c0_7 = arith.constant 0 : index
    %6 = vector.load %arg4[%c0_5, %c0_6, %c0_7] : memref<1x128x256xbf16, #tpu.memory_space<vmem>>, vector<1x128x256xbf16>
    %7 = vector.shape_cast %6 : vector<1x128x256xbf16> to vector<128x256xbf16>
    %cst = arith.constant dense<0.000000e+00> : vector<8x256xf32>
    %8 = tpu.matmul %5, %7, %cst {dimension_numbers = #tpu.dot_dimension_numbers<[1], [0], [0], [1], [0, 0, 1, 1], [], []>} : vector<8x128xbf16>, vector<128x256xbf16>, vector<8x256xf32> -> vector<8x256xf32>
    %9 = arith.addf %3, %8 : vector<8x256xf32>
    %c0_8 = arith.constant 0 : index
    %c0_9 = arith.constant 0 : index
    %10 = vector.load %arg8[%c0_8, %c0_9] : memref<8x256xf32, #tpu.memory_space<vmem>>, vector<8x256xf32>
    tpu.vector_store %arg8[%c0_8, %c0_9], %9 {strides = array<i32>} : memref<8x256xf32, #tpu.memory_space<vmem>>, vector<8x256xf32>,
    %c0_i32_10 = arith.constant 0 : i32
    %11 = arith.cmpi eq, %arg2, %c0_i32_10 : i32
    %12 = arith.extui %11 : i1 to i32
    %c0_i32_11 = arith.constant 0 : i32
    %13 = arith.cmpi ne, %12, %c0_i32_11 : i32
    scf.if %13 {
      %c0_12 = arith.constant 0 : index
      %c0_13 = arith.constant 0 : index
      %14 = vector.load %arg8[%c0_12, %c0_13] : memref<8x256xf32, #tpu.memory_space<vmem>>, vector<8x256xf32>
      %c0_14 = arith.constant 0 : index
      %c0_15 = arith.constant 0 : index
      %15 = vector.load %arg5[%c0_14, %c0_15] : memref<1x256xf32, #tpu.memory_space<vmem>>, vector<1x256xf32>
      %16 = vector.broadcast %15 : vector<1x256xf32> to vector<8x256xf32>
      %17 = arith.mulf %14, %16 : vector<8x256xf32>
      %c0_16 = arith.constant 0 : index
      %c0_17 = arith.constant 0 : index
      %18 = vector.load %arg6[%c0_16, %c0_17] : memref<1x256xf32, #tpu.memory_space<vmem>>, vector<1x256xf32>
      %19 = vector.broadcast %18 : vector<1x256xf32> to vector<8x256xf32>
      %20 = arith.addf %17, %19 : vector<8x256xf32>
      %c0_18 = arith.constant 0 : index
      %c0_19 = arith.constant 0 : index
      %21 = vector.load %arg7[%c0_18, %c0_19] : memref<8x256xf32, #tpu.memory_space<vmem>>, vector<8x256xf32>
      tpu.vector_store %arg7[%c0_18, %c0_19], %20 {strides = array<i32>} : memref<8x256xf32, #tpu.memory_space<vmem>>, vector<8x256xf32>,
    } else {
    }
    return
  }
  func.func @transform_0(%arg0: i32, %arg1: i32, %arg2: i32) -> (i32, i32, i32) {
    %c0_i32 = arith.constant 0 : i32
    %c0_i32_0 = arith.constant 0 : i32
    return %arg2, %arg0, %c0_i32 : i32, i32, i32
  }
  func.func @transform_1(%arg0: i32, %arg1: i32, %arg2: i32) -> (i32, i32, i32) {
    %c0_i32 = arith.constant 0 : i32
    %c0_i32_0 = arith.constant 0 : i32
    return %arg2, %c0_i32, %arg1 : i32, i32, i32
  }
  func.func @transform_2(%arg0: i32, %arg1: i32, %arg2: i32) -> (i32, i32) {
    %c0_i32 = arith.constant 0 : i32
    %c0_i32_0 = arith.constant 0 : i32
    return %c0_i32, %arg1 : i32, i32
  }
  func.func @transform_3(%arg0: i32, %arg1: i32, %arg2: i32) -> (i32, i32) {
    %c0_i32 = arith.constant 0 : i32
    %c0_i32_0 = arith.constant 0 : i32
    return %c0_i32, %arg1 : i32, i32
  }
  func.func @transform_4(%arg0: i32, %arg1: i32, %arg2: i32) -> (i32, i32) {
    %c0_i32 = arith.constant 0 : i32
    return %arg0, %arg1 : i32, i32
  }
}

module attributes {stable_mosaic.version = 11 : i64} {
  func.func @_gmm_res_kernel(%arg0: i32, %arg1: i32, %arg2: i32, %arg3: memref<1x8x256xbf16, #tpu.memory_space<vmem>>, %arg4: memref<1x256x256xbf16, #tpu.memory_space<vmem>>, %arg5: memref<1x256xf32, #tpu.memory_space<vmem>>, %arg6: memref<1x256xf32, #tpu.memory_space<vmem>>, %arg7: memref<8x256xf32, #tpu.memory_space<vmem>>, %arg8: memref<8x256xf32, #tpu.memory_space<vmem>>, %arg9: memref<8x256xf32, #tpu.memory_space<vmem>>) attributes {dimension_semantics = [#tpu.dimension_semantics<parallel>, #tpu.dimension_semantics<parallel>, #tpu.dimension_semantics<arbitrary>], iteration_bounds = array<i64: 1, 1, 9>, scalar_prefetch = 0 : i64, scratch_operands = 1 : i64, tpu.core_type = #tpu.core_type<tc>, window_params = [{transform_indices = @transform_0, window_bounds = array<i64: 1, 8, 256>}, {transform_indices = @transform_1, window_bounds = array<i64: 1, 256, 256>}, {transform_indices = @transform_2, window_bounds = array<i64: 1, 256>}, {transform_indices = @transform_3, window_bounds = array<i64: 1, 256>}, {transform_indices = @transform_4, window_bounds = array<i64: 8, 256>}, {transform_indices = @transform_5, window_bounds = array<i64: 8, 256>}]} {
    %c0_i32 = arith.constant 0 : i32
    %0 = arith.cmpi eq, %arg2, %c0_i32 : i32
    %1 = arith.extui %0 : i1 to i32
    %c0_i32_0 = arith.constant 0 : i32
    %2 = arith.cmpi ne, %1, %c0_i32_0 : i32
    scf.if %2 {
      %cst_11 = arith.constant 0.000000e+00 : f32
      %14 = vector.broadcast %cst_11 : f32 to vector<8x256xf32>
      %c0_12 = arith.constant 0 : index
      %c0_13 = arith.constant 0 : index
      %15 = vector.load %arg9[%c0_12, %c0_13] : memref<8x256xf32, #tpu.memory_space<vmem>>, vector<8x256xf32>
      tpu.vector_store %arg9[%c0_12, %c0_13], %14 {strides = array<i32>} : memref<8x256xf32, #tpu.memory_space<vmem>>, vector<8x256xf32>,
    } else {
    }
    %c0 = arith.constant 0 : index
    %c0_1 = arith.constant 0 : index
    %3 = vector.load %arg9[%c0, %c0_1] : memref<8x256xf32, #tpu.memory_space<vmem>>, vector<8x256xf32>
    %c0_2 = arith.constant 0 : index
    %c0_3 = arith.constant 0 : index
    %c0_4 = arith.constant 0 : index
    %4 = vector.load %arg3[%c0_2, %c0_3, %c0_4] : memref<1x8x256xbf16, #tpu.memory_space<vmem>>, vector<1x8x256xbf16>
    %5 = vector.shape_cast %4 : vector<1x8x256xbf16> to vector<8x256xbf16>
    %c0_5 = arith.constant 0 : index
    %c0_6 = arith.constant 0 : index
    %c0_7 = arith.constant 0 : index
    %6 = vector.load %arg4[%c0_5, %c0_6, %c0_7] : memref<1x256x256xbf16, #tpu.memory_space<vmem>>, vector<1x256x256xbf16>
    %7 = vector.shape_cast %6 : vector<1x256x256xbf16> to vector<256x256xbf16>
    %cst = arith.constant dense<0.000000e+00> : vector<8x256xf32>
    %8 = tpu.matmul %5, %7, %cst {dimension_numbers = #tpu.dot_dimension_numbers<[1], [0], [0], [1], [0, 0, 1, 1], [], []>} : vector<8x256xbf16>, vector<256x256xbf16>, vector<8x256xf32> -> vector<8x256xf32>
    %9 = arith.addf %3, %8 : vector<8x256xf32>
    %c0_8 = arith.constant 0 : index
    %c0_9 = arith.constant 0 : index
    %10 = vector.load %arg9[%c0_8, %c0_9] : memref<8x256xf32, #tpu.memory_space<vmem>>, vector<8x256xf32>
    tpu.vector_store %arg9[%c0_8, %c0_9], %9 {strides = array<i32>} : memref<8x256xf32, #tpu.memory_space<vmem>>, vector<8x256xf32>,
    %c8_i32 = arith.constant 8 : i32
    %11 = arith.cmpi eq, %arg2, %c8_i32 : i32
    %12 = arith.extui %11 : i1 to i32
    %c0_i32_10 = arith.constant 0 : i32
    %13 = arith.cmpi ne, %12, %c0_i32_10 : i32
    scf.if %13 {
      %c0_11 = arith.constant 0 : index
      %c0_12 = arith.constant 0 : index
      %14 = vector.load %arg9[%c0_11, %c0_12] : memref<8x256xf32, #tpu.memory_space<vmem>>, vector<8x256xf32>
      %c0_13 = arith.constant 0 : index
      %c0_14 = arith.constant 0 : index
      %15 = vector.load %arg5[%c0_13, %c0_14] : memref<1x256xf32, #tpu.memory_space<vmem>>, vector<1x256xf32>
      %16 = vector.broadcast %15 : vector<1x256xf32> to vector<8x256xf32>
      %17 = arith.mulf %14, %16 : vector<8x256xf32>
      %c0_15 = arith.constant 0 : index
      %c0_16 = arith.constant 0 : index
      %18 = vector.load %arg6[%c0_15, %c0_16] : memref<1x256xf32, #tpu.memory_space<vmem>>, vector<1x256xf32>
      %19 = vector.broadcast %18 : vector<1x256xf32> to vector<8x256xf32>
      %20 = arith.addf %17, %19 : vector<8x256xf32>
      %c0_17 = arith.constant 0 : index
      %c0_18 = arith.constant 0 : index
      %21 = vector.load %arg7[%c0_17, %c0_18] : memref<8x256xf32, #tpu.memory_space<vmem>>, vector<8x256xf32>
      %22 = arith.addf %20, %21 : vector<8x256xf32>
      %cst_19 = arith.constant 0.000000e+00 : f32
      %23 = vector.broadcast %cst_19 : f32 to vector<8x256xf32>
      %24 = arith.maximumf %22, %23 : vector<8x256xf32>
      %c0_20 = arith.constant 0 : index
      %c0_21 = arith.constant 0 : index
      %25 = vector.load %arg8[%c0_20, %c0_21] : memref<8x256xf32, #tpu.memory_space<vmem>>, vector<8x256xf32>
      tpu.vector_store %arg8[%c0_20, %c0_21], %24 {strides = array<i32>} : memref<8x256xf32, #tpu.memory_space<vmem>>, vector<8x256xf32>,
    } else {
    }
    return
  }
  func.func @transform_0(%arg0: i32, %arg1: i32, %arg2: i32) -> (i32, i32, i32) {
    %c0_i32 = arith.constant 0 : i32
    %c0_i32_0 = arith.constant 0 : i32
    return %arg2, %arg0, %c0_i32 : i32, i32, i32
  }
  func.func @transform_1(%arg0: i32, %arg1: i32, %arg2: i32) -> (i32, i32, i32) {
    %c0_i32 = arith.constant 0 : i32
    %c0_i32_0 = arith.constant 0 : i32
    return %arg2, %c0_i32, %arg1 : i32, i32, i32
  }
  func.func @transform_2(%arg0: i32, %arg1: i32, %arg2: i32) -> (i32, i32) {
    %c0_i32 = arith.constant 0 : i32
    %c0_i32_0 = arith.constant 0 : i32
    return %c0_i32, %arg1 : i32, i32
  }
  func.func @transform_3(%arg0: i32, %arg1: i32, %arg2: i32) -> (i32, i32) {
    %c0_i32 = arith.constant 0 : i32
    %c0_i32_0 = arith.constant 0 : i32
    return %c0_i32, %arg1 : i32, i32
  }
  func.func @transform_4(%arg0: i32, %arg1: i32, %arg2: i32) -> (i32, i32) {
    %c0_i32 = arith.constant 0 : i32
    return %arg0, %arg1 : i32, i32
  }
  func.func @transform_5(%arg0: i32, %arg1: i32, %arg2: i32) -> (i32, i32) {
    %c0_i32 = arith.constant 0 : i32
    return %arg0, %arg1 : i32, i32
  }
}

module attributes {stable_mosaic.version = 11 : i64} {
  func.func @_gmm_kernel(%arg0: i32, %arg1: i32, %arg2: i32, %arg3: memref<1x8x256xbf16, #tpu.memory_space<vmem>>, %arg4: memref<1x256x256xbf16, #tpu.memory_space<vmem>>, %arg5: memref<1x256xf32, #tpu.memory_space<vmem>>, %arg6: memref<1x256xf32, #tpu.memory_space<vmem>>, %arg7: memref<8x256xf32, #tpu.memory_space<vmem>>, %arg8: memref<8x256xf32, #tpu.memory_space<vmem>>) attributes {dimension_semantics = [#tpu.dimension_semantics<parallel>, #tpu.dimension_semantics<parallel>, #tpu.dimension_semantics<arbitrary>], iteration_bounds = array<i64: 1, 1, 9>, scalar_prefetch = 0 : i64, scratch_operands = 1 : i64, tpu.core_type = #tpu.core_type<tc>, window_params = [{transform_indices = @transform_0, window_bounds = array<i64: 1, 8, 256>}, {transform_indices = @transform_1, window_bounds = array<i64: 1, 256, 256>}, {transform_indices = @transform_2, window_bounds = array<i64: 1, 256>}, {transform_indices = @transform_3, window_bounds = array<i64: 1, 256>}, {transform_indices = @transform_4, window_bounds = array<i64: 8, 256>}]} {
    %c0_i32 = arith.constant 0 : i32
    %0 = arith.cmpi eq, %arg2, %c0_i32 : i32
    %1 = arith.extui %0 : i1 to i32
    %c0_i32_0 = arith.constant 0 : i32
    %2 = arith.cmpi ne, %1, %c0_i32_0 : i32
    scf.if %2 {
      %cst_11 = arith.constant 0.000000e+00 : f32
      %14 = vector.broadcast %cst_11 : f32 to vector<8x256xf32>
      %c0_12 = arith.constant 0 : index
      %c0_13 = arith.constant 0 : index
      %15 = vector.load %arg8[%c0_12, %c0_13] : memref<8x256xf32, #tpu.memory_space<vmem>>, vector<8x256xf32>
      tpu.vector_store %arg8[%c0_12, %c0_13], %14 {strides = array<i32>} : memref<8x256xf32, #tpu.memory_space<vmem>>, vector<8x256xf32>,
    } else {
    }
    %c0 = arith.constant 0 : index
    %c0_1 = arith.constant 0 : index
    %3 = vector.load %arg8[%c0, %c0_1] : memref<8x256xf32, #tpu.memory_space<vmem>>, vector<8x256xf32>
    %c0_2 = arith.constant 0 : index
    %c0_3 = arith.constant 0 : index
    %c0_4 = arith.constant 0 : index
    %4 = vector.load %arg3[%c0_2, %c0_3, %c0_4] : memref<1x8x256xbf16, #tpu.memory_space<vmem>>, vector<1x8x256xbf16>
    %5 = vector.shape_cast %4 : vector<1x8x256xbf16> to vector<8x256xbf16>
    %c0_5 = arith.constant 0 : index
    %c0_6 = arith.constant 0 : index
    %c0_7 = arith.constant 0 : index
    %6 = vector.load %arg4[%c0_5, %c0_6, %c0_7] : memref<1x256x256xbf16, #tpu.memory_space<vmem>>, vector<1x256x256xbf16>
    %7 = vector.shape_cast %6 : vector<1x256x256xbf16> to vector<256x256xbf16>
    %cst = arith.constant dense<0.000000e+00> : vector<8x256xf32>
    %8 = tpu.matmul %5, %7, %cst {dimension_numbers = #tpu.dot_dimension_numbers<[1], [0], [0], [1], [0, 0, 1, 1], [], []>} : vector<8x256xbf16>, vector<256x256xbf16>, vector<8x256xf32> -> vector<8x256xf32>
    %9 = arith.addf %3, %8 : vector<8x256xf32>
    %c0_8 = arith.constant 0 : index
    %c0_9 = arith.constant 0 : index
    %10 = vector.load %arg8[%c0_8, %c0_9] : memref<8x256xf32, #tpu.memory_space<vmem>>, vector<8x256xf32>
    tpu.vector_store %arg8[%c0_8, %c0_9], %9 {strides = array<i32>} : memref<8x256xf32, #tpu.memory_space<vmem>>, vector<8x256xf32>,
    %c8_i32 = arith.constant 8 : i32
    %11 = arith.cmpi eq, %arg2, %c8_i32 : i32
    %12 = arith.extui %11 : i1 to i32
    %c0_i32_10 = arith.constant 0 : i32
    %13 = arith.cmpi ne, %12, %c0_i32_10 : i32
    scf.if %13 {
      %c0_11 = arith.constant 0 : index
      %c0_12 = arith.constant 0 : index
      %14 = vector.load %arg8[%c0_11, %c0_12] : memref<8x256xf32, #tpu.memory_space<vmem>>, vector<8x256xf32>
      %c0_13 = arith.constant 0 : index
      %c0_14 = arith.constant 0 : index
      %15 = vector.load %arg5[%c0_13, %c0_14] : memref<1x256xf32, #tpu.memory_space<vmem>>, vector<1x256xf32>
      %16 = vector.broadcast %15 : vector<1x256xf32> to vector<8x256xf32>
      %17 = arith.mulf %14, %16 : vector<8x256xf32>
      %c0_15 = arith.constant 0 : index
      %c0_16 = arith.constant 0 : index
      %18 = vector.load %arg6[%c0_15, %c0_16] : memref<1x256xf32, #tpu.memory_space<vmem>>, vector<1x256xf32>
      %19 = vector.broadcast %18 : vector<1x256xf32> to vector<8x256xf32>
      %20 = arith.addf %17, %19 : vector<8x256xf32>
      %cst_17 = arith.constant 0.000000e+00 : f32
      %21 = vector.broadcast %cst_17 : f32 to vector<8x256xf32>
      %22 = arith.maximumf %20, %21 : vector<8x256xf32>
      %c0_18 = arith.constant 0 : index
      %c0_19 = arith.constant 0 : index
      %23 = vector.load %arg7[%c0_18, %c0_19] : memref<8x256xf32, #tpu.memory_space<vmem>>, vector<8x256xf32>
      tpu.vector_store %arg7[%c0_18, %c0_19], %22 {strides = array<i32>} : memref<8x256xf32, #tpu.memory_space<vmem>>, vector<8x256xf32>,
    } else {
    }
    return
  }
  func.func @transform_0(%arg0: i32, %arg1: i32, %arg2: i32) -> (i32, i32, i32) {
    %c0_i32 = arith.constant 0 : i32
    %c0_i32_0 = arith.constant 0 : i32
    return %arg2, %arg0, %c0_i32 : i32, i32, i32
  }
  func.func @transform_1(%arg0: i32, %arg1: i32, %arg2: i32) -> (i32, i32, i32) {
    %c0_i32 = arith.constant 0 : i32
    %c0_i32_0 = arith.constant 0 : i32
    return %arg2, %c0_i32, %arg1 : i32, i32, i32
  }
  func.func @transform_2(%arg0: i32, %arg1: i32, %arg2: i32) -> (i32, i32) {
    %c0_i32 = arith.constant 0 : i32
    %c0_i32_0 = arith.constant 0 : i32
    return %c0_i32, %arg1 : i32, i32
  }
  func.func @transform_3(%arg0: i32, %arg1: i32, %arg2: i32) -> (i32, i32) {
    %c0_i32 = arith.constant 0 : i32
    %c0_i32_0 = arith.constant 0 : i32
    return %c0_i32, %arg1 : i32, i32
  }
  func.func @transform_4(%arg0: i32, %arg1: i32, %arg2: i32) -> (i32, i32) {
    %c0_i32 = arith.constant 0 : i32
    return %arg0, %arg1 : i32, i32
  }
}

module attributes {stable_mosaic.version = 11 : i64} {
  func.func @_gmm_kernel(%arg0: i32, %arg1: i32, %arg2: i32, %arg3: memref<1x8x256xbf16, #tpu.memory_space<vmem>>, %arg4: memref<1x256x256xbf16, #tpu.memory_space<vmem>>, %arg5: memref<1x256xf32, #tpu.memory_space<vmem>>, %arg6: memref<1x256xf32, #tpu.memory_space<vmem>>, %arg7: memref<8x256xf32, #tpu.memory_space<vmem>>, %arg8: memref<8x256xf32, #tpu.memory_space<vmem>>) attributes {dimension_semantics = [#tpu.dimension_semantics<parallel>, #tpu.dimension_semantics<parallel>, #tpu.dimension_semantics<arbitrary>], iteration_bounds = array<i64: 1, 2, 9>, scalar_prefetch = 0 : i64, scratch_operands = 1 : i64, tpu.core_type = #tpu.core_type<tc>, window_params = [{transform_indices = @transform_0, window_bounds = array<i64: 1, 8, 256>}, {transform_indices = @transform_1, window_bounds = array<i64: 1, 256, 256>}, {transform_indices = @transform_2, window_bounds = array<i64: 1, 256>}, {transform_indices = @transform_3, window_bounds = array<i64: 1, 256>}, {transform_indices = @transform_4, window_bounds = array<i64: 8, 256>}]} {
    %c0_i32 = arith.constant 0 : i32
    %0 = arith.cmpi eq, %arg2, %c0_i32 : i32
    %1 = arith.extui %0 : i1 to i32
    %c0_i32_0 = arith.constant 0 : i32
    %2 = arith.cmpi ne, %1, %c0_i32_0 : i32
    scf.if %2 {
      %cst_11 = arith.constant 0.000000e+00 : f32
      %14 = vector.broadcast %cst_11 : f32 to vector<8x256xf32>
      %c0_12 = arith.constant 0 : index
      %c0_13 = arith.constant 0 : index
      %15 = vector.load %arg8[%c0_12, %c0_13] : memref<8x256xf32, #tpu.memory_space<vmem>>, vector<8x256xf32>
      tpu.vector_store %arg8[%c0_12, %c0_13], %14 {strides = array<i32>} : memref<8x256xf32, #tpu.memory_space<vmem>>, vector<8x256xf32>,
    } else {
    }
    %c0 = arith.constant 0 : index
    %c0_1 = arith.constant 0 : index
    %3 = vector.load %arg8[%c0, %c0_1] : memref<8x256xf32, #tpu.memory_space<vmem>>, vector<8x256xf32>
    %c0_2 = arith.constant 0 : index
    %c0_3 = arith.constant 0 : index
    %c0_4 = arith.constant 0 : index
    %4 = vector.load %arg3[%c0_2, %c0_3, %c0_4] : memref<1x8x256xbf16, #tpu.memory_space<vmem>>, vector<1x8x256xbf16>
    %5 = vector.shape_cast %4 : vector<1x8x256xbf16> to vector<8x256xbf16>
    %c0_5 = arith.constant 0 : index
    %c0_6 = arith.constant 0 : index
    %c0_7 = arith.constant 0 : index
    %6 = vector.load %arg4[%c0_5, %c0_6, %c0_7] : memref<1x256x256xbf16, #tpu.memory_space<vmem>>, vector<1x256x256xbf16>
    %7 = vector.shape_cast %6 : vector<1x256x256xbf16> to vector<256x256xbf16>
    %cst = arith.constant dense<0.000000e+00> : vector<8x256xf32>
    %8 = tpu.matmul %5, %7, %cst {dimension_numbers = #tpu.dot_dimension_numbers<[1], [0], [0], [1], [0, 0, 1, 1], [], []>} : vector<8x256xbf16>, vector<256x256xbf16>, vector<8x256xf32> -> vector<8x256xf32>
    %9 = arith.addf %3, %8 : vector<8x256xf32>
    %c0_8 = arith.constant 0 : index
    %c0_9 = arith.constant 0 : index
    %10 = vector.load %arg8[%c0_8, %c0_9] : memref<8x256xf32, #tpu.memory_space<vmem>>, vector<8x256xf32>
    tpu.vector_store %arg8[%c0_8, %c0_9], %9 {strides = array<i32>} : memref<8x256xf32, #tpu.memory_space<vmem>>, vector<8x256xf32>,
    %c8_i32 = arith.constant 8 : i32
    %11 = arith.cmpi eq, %arg2, %c8_i32 : i32
    %12 = arith.extui %11 : i1 to i32
    %c0_i32_10 = arith.constant 0 : i32
    %13 = arith.cmpi ne, %12, %c0_i32_10 : i32
    scf.if %13 {
      %c0_11 = arith.constant 0 : index
      %c0_12 = arith.constant 0 : index
      %14 = vector.load %arg8[%c0_11, %c0_12] : memref<8x256xf32, #tpu.memory_space<vmem>>, vector<8x256xf32>
      %c0_13 = arith.constant 0 : index
      %c0_14 = arith.constant 0 : index
      %15 = vector.load %arg5[%c0_13, %c0_14] : memref<1x256xf32, #tpu.memory_space<vmem>>, vector<1x256xf32>
      %16 = vector.broadcast %15 : vector<1x256xf32> to vector<8x256xf32>
      %17 = arith.mulf %14, %16 : vector<8x256xf32>
      %c0_15 = arith.constant 0 : index
      %c0_16 = arith.constant 0 : index
      %18 = vector.load %arg6[%c0_15, %c0_16] : memref<1x256xf32, #tpu.memory_space<vmem>>, vector<1x256xf32>
      %19 = vector.broadcast %18 : vector<1x256xf32> to vector<8x256xf32>
      %20 = arith.addf %17, %19 : vector<8x256xf32>
      %cst_17 = arith.constant 0.000000e+00 : f32
      %21 = vector.broadcast %cst_17 : f32 to vector<8x256xf32>
      %22 = arith.maximumf %20, %21 : vector<8x256xf32>
      %c0_18 = arith.constant 0 : index
      %c0_19 = arith.constant 0 : index
      %23 = vector.load %arg7[%c0_18, %c0_19] : memref<8x256xf32, #tpu.memory_space<vmem>>, vector<8x256xf32>
      tpu.vector_store %arg7[%c0_18, %c0_19], %22 {strides = array<i32>} : memref<8x256xf32, #tpu.memory_space<vmem>>, vector<8x256xf32>,
    } else {
    }
    return
  }
  func.func @transform_0(%arg0: i32, %arg1: i32, %arg2: i32) -> (i32, i32, i32) {
    %c0_i32 = arith.constant 0 : i32
    %c0_i32_0 = arith.constant 0 : i32
    return %arg2, %arg0, %c0_i32 : i32, i32, i32
  }
  func.func @transform_1(%arg0: i32, %arg1: i32, %arg2: i32) -> (i32, i32, i32) {
    %c0_i32 = arith.constant 0 : i32
    %c0_i32_0 = arith.constant 0 : i32
    return %arg2, %c0_i32, %arg1 : i32, i32, i32
  }
  func.func @transform_2(%arg0: i32, %arg1: i32, %arg2: i32) -> (i32, i32) {
    %c0_i32 = arith.constant 0 : i32
    %c0_i32_0 = arith.constant 0 : i32
    return %c0_i32, %arg1 : i32, i32
  }
  func.func @transform_3(%arg0: i32, %arg1: i32, %arg2: i32) -> (i32, i32) {
    %c0_i32 = arith.constant 0 : i32
    %c0_i32_0 = arith.constant 0 : i32
    return %c0_i32, %arg1 : i32, i32
  }
  func.func @transform_4(%arg0: i32, %arg1: i32, %arg2: i32) -> (i32, i32) {
    %c0_i32 = arith.constant 0 : i32
    return %arg0, %arg1 : i32, i32
  }
}

module attributes {stable_mosaic.version = 11 : i64} {
  func.func @_gmm_kernel(%arg0: i32, %arg1: i32, %arg2: i32, %arg3: memref<1x8x256xbf16, #tpu.memory_space<vmem>>, %arg4: memref<1x256x256xbf16, #tpu.memory_space<vmem>>, %arg5: memref<1x256xf32, #tpu.memory_space<vmem>>, %arg6: memref<1x256xf32, #tpu.memory_space<vmem>>, %arg7: memref<8x256xf32, #tpu.memory_space<vmem>>, %arg8: memref<8x256xf32, #tpu.memory_space<vmem>>) attributes {dimension_semantics = [#tpu.dimension_semantics<parallel>, #tpu.dimension_semantics<parallel>, #tpu.dimension_semantics<arbitrary>], iteration_bounds = array<i64: 1, 2, 1>, scalar_prefetch = 0 : i64, scratch_operands = 1 : i64, tpu.core_type = #tpu.core_type<tc>, window_params = [{transform_indices = @transform_0, window_bounds = array<i64: 1, 8, 256>}, {transform_indices = @transform_1, window_bounds = array<i64: 1, 256, 256>}, {transform_indices = @transform_2, window_bounds = array<i64: 1, 256>}, {transform_indices = @transform_3, window_bounds = array<i64: 1, 256>}, {transform_indices = @transform_4, window_bounds = array<i64: 8, 256>}]} {
    %c0_i32 = arith.constant 0 : i32
    %0 = arith.cmpi eq, %arg2, %c0_i32 : i32
    %1 = arith.extui %0 : i1 to i32
    %c0_i32_0 = arith.constant 0 : i32
    %2 = arith.cmpi ne, %1, %c0_i32_0 : i32
    scf.if %2 {
      %cst_12 = arith.constant 0.000000e+00 : f32
      %14 = vector.broadcast %cst_12 : f32 to vector<8x256xf32>
      %c0_13 = arith.constant 0 : index
      %c0_14 = arith.constant 0 : index
      %15 = vector.load %arg8[%c0_13, %c0_14] : memref<8x256xf32, #tpu.memory_space<vmem>>, vector<8x256xf32>
      tpu.vector_store %arg8[%c0_13, %c0_14], %14 {strides = array<i32>} : memref<8x256xf32, #tpu.memory_space<vmem>>, vector<8x256xf32>,
    } else {
    }
    %c0 = arith.constant 0 : index
    %c0_1 = arith.constant 0 : index
    %3 = vector.load %arg8[%c0, %c0_1] : memref<8x256xf32, #tpu.memory_space<vmem>>, vector<8x256xf32>
    %c0_2 = arith.constant 0 : index
    %c0_3 = arith.constant 0 : index
    %c0_4 = arith.constant 0 : index
    %4 = vector.load %arg3[%c0_2, %c0_3, %c0_4] : memref<1x8x256xbf16, #tpu.memory_space<vmem>>, vector<1x8x256xbf16>
    %5 = vector.shape_cast %4 : vector<1x8x256xbf16> to vector<8x256xbf16>
    %c0_5 = arith.constant 0 : index
    %c0_6 = arith.constant 0 : index
    %c0_7 = arith.constant 0 : index
    %6 = vector.load %arg4[%c0_5, %c0_6, %c0_7] : memref<1x256x256xbf16, #tpu.memory_space<vmem>>, vector<1x256x256xbf16>
    %7 = vector.shape_cast %6 : vector<1x256x256xbf16> to vector<256x256xbf16>
    %cst = arith.constant dense<0.000000e+00> : vector<8x256xf32>
    %8 = tpu.matmul %5, %7, %cst {dimension_numbers = #tpu.dot_dimension_numbers<[1], [0], [0], [1], [0, 0, 1, 1], [], []>} : vector<8x256xbf16>, vector<256x256xbf16>, vector<8x256xf32> -> vector<8x256xf32>
    %9 = arith.addf %3, %8 : vector<8x256xf32>
    %c0_8 = arith.constant 0 : index
    %c0_9 = arith.constant 0 : index
    %10 = vector.load %arg8[%c0_8, %c0_9] : memref<8x256xf32, #tpu.memory_space<vmem>>, vector<8x256xf32>
    tpu.vector_store %arg8[%c0_8, %c0_9], %9 {strides = array<i32>} : memref<8x256xf32, #tpu.memory_space<vmem>>, vector<8x256xf32>,
    %c0_i32_10 = arith.constant 0 : i32
    %11 = arith.cmpi eq, %arg2, %c0_i32_10 : i32
    %12 = arith.extui %11 : i1 to i32
    %c0_i32_11 = arith.constant 0 : i32
    %13 = arith.cmpi ne, %12, %c0_i32_11 : i32
    scf.if %13 {
      %c0_12 = arith.constant 0 : index
      %c0_13 = arith.constant 0 : index
      %14 = vector.load %arg8[%c0_12, %c0_13] : memref<8x256xf32, #tpu.memory_space<vmem>>, vector<8x256xf32>
      %c0_14 = arith.constant 0 : index
      %c0_15 = arith.constant 0 : index
      %15 = vector.load %arg5[%c0_14, %c0_15] : memref<1x256xf32, #tpu.memory_space<vmem>>, vector<1x256xf32>
      %16 = vector.broadcast %15 : vector<1x256xf32> to vector<8x256xf32>
      %17 = arith.mulf %14, %16 : vector<8x256xf32>
      %c0_16 = arith.constant 0 : index
      %c0_17 = arith.constant 0 : index
      %18 = vector.load %arg6[%c0_16, %c0_17] : memref<1x256xf32, #tpu.memory_space<vmem>>, vector<1x256xf32>
      %19 = vector.broadcast %18 : vector<1x256xf32> to vector<8x256xf32>
      %20 = arith.addf %17, %19 : vector<8x256xf32>
      %c0_18 = arith.constant 0 : index
      %c0_19 = arith.constant 0 : index
      %21 = vector.load %arg7[%c0_18, %c0_19] : memref<8x256xf32, #tpu.memory_space<vmem>>, vector<8x256xf32>
      tpu.vector_store %arg7[%c0_18, %c0_19], %20 {strides = array<i32>} : memref<8x256xf32, #tpu.memory_space<vmem>>, vector<8x256xf32>,
    } else {
    }
    return
  }
  func.func @transform_0(%arg0: i32, %arg1: i32, %arg2: i32) -> (i32, i32, i32) {
    %c0_i32 = arith.constant 0 : i32
    %c0_i32_0 = arith.constant 0 : i32
    return %arg2, %arg0, %c0_i32 : i32, i32, i32
  }
  func.func @transform_1(%arg0: i32, %arg1: i32, %arg2: i32) -> (i32, i32, i32) {
    %c0_i32 = arith.constant 0 : i32
    %c0_i32_0 = arith.constant 0 : i32
    return %arg2, %c0_i32, %arg1 : i32, i32, i32
  }
  func.func @transform_2(%arg0: i32, %arg1: i32, %arg2: i32) -> (i32, i32) {
    %c0_i32 = arith.constant 0 : i32
    %c0_i32_0 = arith.constant 0 : i32
    return %c0_i32, %arg1 : i32, i32
  }
  func.func @transform_3(%arg0: i32, %arg1: i32, %arg2: i32) -> (i32, i32) {
    %c0_i32 = arith.constant 0 : i32
    %c0_i32_0 = arith.constant 0 : i32
    return %c0_i32, %arg1 : i32, i32
  }
  func.func @transform_4(%arg0: i32, %arg1: i32, %arg2: i32) -> (i32, i32) {
    %c0_i32 = arith.constant 0 : i32
    return %arg0, %arg1 : i32, i32
  }
}

module attributes {stable_mosaic.version = 11 : i64} {
  func.func @_gmm_res_kernel(%arg0: i32, %arg1: i32, %arg2: i32, %arg3: memref<1x8x512xbf16, #tpu.memory_space<vmem>>, %arg4: memref<1x512x256xbf16, #tpu.memory_space<vmem>>, %arg5: memref<1x256xf32, #tpu.memory_space<vmem>>, %arg6: memref<1x256xf32, #tpu.memory_space<vmem>>, %arg7: memref<8x256xf32, #tpu.memory_space<vmem>>, %arg8: memref<8x256xf32, #tpu.memory_space<vmem>>, %arg9: memref<8x256xf32, #tpu.memory_space<vmem>>) attributes {dimension_semantics = [#tpu.dimension_semantics<parallel>, #tpu.dimension_semantics<parallel>, #tpu.dimension_semantics<arbitrary>], iteration_bounds = array<i64: 1, 2, 9>, scalar_prefetch = 0 : i64, scratch_operands = 1 : i64, tpu.core_type = #tpu.core_type<tc>, window_params = [{transform_indices = @transform_0, window_bounds = array<i64: 1, 8, 512>}, {transform_indices = @transform_1, window_bounds = array<i64: 1, 512, 256>}, {transform_indices = @transform_2, window_bounds = array<i64: 1, 256>}, {transform_indices = @transform_3, window_bounds = array<i64: 1, 256>}, {transform_indices = @transform_4, window_bounds = array<i64: 8, 256>}, {transform_indices = @transform_5, window_bounds = array<i64: 8, 256>}]} {
    %c0_i32 = arith.constant 0 : i32
    %0 = arith.cmpi eq, %arg2, %c0_i32 : i32
    %1 = arith.extui %0 : i1 to i32
    %c0_i32_0 = arith.constant 0 : i32
    %2 = arith.cmpi ne, %1, %c0_i32_0 : i32
    scf.if %2 {
      %cst_11 = arith.constant 0.000000e+00 : f32
      %14 = vector.broadcast %cst_11 : f32 to vector<8x256xf32>
      %c0_12 = arith.constant 0 : index
      %c0_13 = arith.constant 0 : index
      %15 = vector.load %arg9[%c0_12, %c0_13] : memref<8x256xf32, #tpu.memory_space<vmem>>, vector<8x256xf32>
      tpu.vector_store %arg9[%c0_12, %c0_13], %14 {strides = array<i32>} : memref<8x256xf32, #tpu.memory_space<vmem>>, vector<8x256xf32>,
    } else {
    }
    %c0 = arith.constant 0 : index
    %c0_1 = arith.constant 0 : index
    %3 = vector.load %arg9[%c0, %c0_1] : memref<8x256xf32, #tpu.memory_space<vmem>>, vector<8x256xf32>
    %c0_2 = arith.constant 0 : index
    %c0_3 = arith.constant 0 : index
    %c0_4 = arith.constant 0 : index
    %4 = vector.load %arg3[%c0_2, %c0_3, %c0_4] : memref<1x8x512xbf16, #tpu.memory_space<vmem>>, vector<1x8x512xbf16>
    %5 = vector.shape_cast %4 : vector<1x8x512xbf16> to vector<8x512xbf16>
    %c0_5 = arith.constant 0 : index
    %c0_6 = arith.constant 0 : index
    %c0_7 = arith.constant 0 : index
    %6 = vector.load %arg4[%c0_5, %c0_6, %c0_7] : memref<1x512x256xbf16, #tpu.memory_space<vmem>>, vector<1x512x256xbf16>
    %7 = vector.shape_cast %6 : vector<1x512x256xbf16> to vector<512x256xbf16>
    %cst = arith.constant dense<0.000000e+00> : vector<8x256xf32>
    %8 = tpu.matmul %5, %7, %cst {dimension_numbers = #tpu.dot_dimension_numbers<[1], [0], [0], [1], [0, 0, 1, 1], [], []>} : vector<8x512xbf16>, vector<512x256xbf16>, vector<8x256xf32> -> vector<8x256xf32>
    %9 = arith.addf %3, %8 : vector<8x256xf32>
    %c0_8 = arith.constant 0 : index
    %c0_9 = arith.constant 0 : index
    %10 = vector.load %arg9[%c0_8, %c0_9] : memref<8x256xf32, #tpu.memory_space<vmem>>, vector<8x256xf32>
    tpu.vector_store %arg9[%c0_8, %c0_9], %9 {strides = array<i32>} : memref<8x256xf32, #tpu.memory_space<vmem>>, vector<8x256xf32>,
    %c8_i32 = arith.constant 8 : i32
    %11 = arith.cmpi eq, %arg2, %c8_i32 : i32
    %12 = arith.extui %11 : i1 to i32
    %c0_i32_10 = arith.constant 0 : i32
    %13 = arith.cmpi ne, %12, %c0_i32_10 : i32
    scf.if %13 {
      %c0_11 = arith.constant 0 : index
      %c0_12 = arith.constant 0 : index
      %14 = vector.load %arg9[%c0_11, %c0_12] : memref<8x256xf32, #tpu.memory_space<vmem>>, vector<8x256xf32>
      %c0_13 = arith.constant 0 : index
      %c0_14 = arith.constant 0 : index
      %15 = vector.load %arg5[%c0_13, %c0_14] : memref<1x256xf32, #tpu.memory_space<vmem>>, vector<1x256xf32>
      %16 = vector.broadcast %15 : vector<1x256xf32> to vector<8x256xf32>
      %17 = arith.mulf %14, %16 : vector<8x256xf32>
      %c0_15 = arith.constant 0 : index
      %c0_16 = arith.constant 0 : index
      %18 = vector.load %arg6[%c0_15, %c0_16] : memref<1x256xf32, #tpu.memory_space<vmem>>, vector<1x256xf32>
      %19 = vector.broadcast %18 : vector<1x256xf32> to vector<8x256xf32>
      %20 = arith.addf %17, %19 : vector<8x256xf32>
      %c0_17 = arith.constant 0 : index
      %c0_18 = arith.constant 0 : index
      %21 = vector.load %arg7[%c0_17, %c0_18] : memref<8x256xf32, #tpu.memory_space<vmem>>, vector<8x256xf32>
      %22 = arith.addf %20, %21 : vector<8x256xf32>
      %cst_19 = arith.constant 0.000000e+00 : f32
      %23 = vector.broadcast %cst_19 : f32 to vector<8x256xf32>
      %24 = arith.maximumf %22, %23 : vector<8x256xf32>
      %c0_20 = arith.constant 0 : index
      %c0_21 = arith.constant 0 : index
      %25 = vector.load %arg8[%c0_20, %c0_21] : memref<8x256xf32, #tpu.memory_space<vmem>>, vector<8x256xf32>
      tpu.vector_store %arg8[%c0_20, %c0_21], %24 {strides = array<i32>} : memref<8x256xf32, #tpu.memory_space<vmem>>, vector<8x256xf32>,
    } else {
    }
    return
  }
  func.func @transform_0(%arg0: i32, %arg1: i32, %arg2: i32) -> (i32, i32, i32) {
    %c0_i32 = arith.constant 0 : i32
    %c0_i32_0 = arith.constant 0 : i32
    return %arg2, %arg0, %c0_i32 : i32, i32, i32
  }
  func.func @transform_1(%arg0: i32, %arg1: i32, %arg2: i32) -> (i32, i32, i32) {
    %c0_i32 = arith.constant 0 : i32
    %c0_i32_0 = arith.constant 0 : i32
    return %arg2, %c0_i32, %arg1 : i32, i32, i32
  }
  func.func @transform_2(%arg0: i32, %arg1: i32, %arg2: i32) -> (i32, i32) {
    %c0_i32 = arith.constant 0 : i32
    %c0_i32_0 = arith.constant 0 : i32
    return %c0_i32, %arg1 : i32, i32
  }
  func.func @transform_3(%arg0: i32, %arg1: i32, %arg2: i32) -> (i32, i32) {
    %c0_i32 = arith.constant 0 : i32
    %c0_i32_0 = arith.constant 0 : i32
    return %c0_i32, %arg1 : i32, i32
  }
  func.func @transform_4(%arg0: i32, %arg1: i32, %arg2: i32) -> (i32, i32) {
    %c0_i32 = arith.constant 0 : i32
    return %arg0, %arg1 : i32, i32
  }
  func.func @transform_5(%arg0: i32, %arg1: i32, %arg2: i32) -> (i32, i32) {
    %c0_i32 = arith.constant 0 : i32
    return %arg0, %arg1 : i32, i32
  }
}

module attributes {stable_mosaic.version = 11 : i64} {
  func.func @_gmm_kernel(%arg0: i32, %arg1: i32, %arg2: i32, %arg3: memref<1x8x512xbf16, #tpu.memory_space<vmem>>, %arg4: memref<1x512x256xbf16, #tpu.memory_space<vmem>>, %arg5: memref<1x256xf32, #tpu.memory_space<vmem>>, %arg6: memref<1x256xf32, #tpu.memory_space<vmem>>, %arg7: memref<8x256xf32, #tpu.memory_space<vmem>>, %arg8: memref<8x256xf32, #tpu.memory_space<vmem>>) attributes {dimension_semantics = [#tpu.dimension_semantics<parallel>, #tpu.dimension_semantics<parallel>, #tpu.dimension_semantics<arbitrary>], iteration_bounds = array<i64: 1, 2, 9>, scalar_prefetch = 0 : i64, scratch_operands = 1 : i64, tpu.core_type = #tpu.core_type<tc>, window_params = [{transform_indices = @transform_0, window_bounds = array<i64: 1, 8, 512>}, {transform_indices = @transform_1, window_bounds = array<i64: 1, 512, 256>}, {transform_indices = @transform_2, window_bounds = array<i64: 1, 256>}, {transform_indices = @transform_3, window_bounds = array<i64: 1, 256>}, {transform_indices = @transform_4, window_bounds = array<i64: 8, 256>}]} {
    %c0_i32 = arith.constant 0 : i32
    %0 = arith.cmpi eq, %arg2, %c0_i32 : i32
    %1 = arith.extui %0 : i1 to i32
    %c0_i32_0 = arith.constant 0 : i32
    %2 = arith.cmpi ne, %1, %c0_i32_0 : i32
    scf.if %2 {
      %cst_11 = arith.constant 0.000000e+00 : f32
      %14 = vector.broadcast %cst_11 : f32 to vector<8x256xf32>
      %c0_12 = arith.constant 0 : index
      %c0_13 = arith.constant 0 : index
      %15 = vector.load %arg8[%c0_12, %c0_13] : memref<8x256xf32, #tpu.memory_space<vmem>>, vector<8x256xf32>
      tpu.vector_store %arg8[%c0_12, %c0_13], %14 {strides = array<i32>} : memref<8x256xf32, #tpu.memory_space<vmem>>, vector<8x256xf32>,
    } else {
    }
    %c0 = arith.constant 0 : index
    %c0_1 = arith.constant 0 : index
    %3 = vector.load %arg8[%c0, %c0_1] : memref<8x256xf32, #tpu.memory_space<vmem>>, vector<8x256xf32>
    %c0_2 = arith.constant 0 : index
    %c0_3 = arith.constant 0 : index
    %c0_4 = arith.constant 0 : index
    %4 = vector.load %arg3[%c0_2, %c0_3, %c0_4] : memref<1x8x512xbf16, #tpu.memory_space<vmem>>, vector<1x8x512xbf16>
    %5 = vector.shape_cast %4 : vector<1x8x512xbf16> to vector<8x512xbf16>
    %c0_5 = arith.constant 0 : index
    %c0_6 = arith.constant 0 : index
    %c0_7 = arith.constant 0 : index
    %6 = vector.load %arg4[%c0_5, %c0_6, %c0_7] : memref<1x512x256xbf16, #tpu.memory_space<vmem>>, vector<1x512x256xbf16>
    %7 = vector.shape_cast %6 : vector<1x512x256xbf16> to vector<512x256xbf16>
    %cst = arith.constant dense<0.000000e+00> : vector<8x256xf32>
    %8 = tpu.matmul %5, %7, %cst {dimension_numbers = #tpu.dot_dimension_numbers<[1], [0], [0], [1], [0, 0, 1, 1], [], []>} : vector<8x512xbf16>, vector<512x256xbf16>, vector<8x256xf32> -> vector<8x256xf32>
    %9 = arith.addf %3, %8 : vector<8x256xf32>
    %c0_8 = arith.constant 0 : index
    %c0_9 = arith.constant 0 : index
    %10 = vector.load %arg8[%c0_8, %c0_9] : memref<8x256xf32, #tpu.memory_space<vmem>>, vector<8x256xf32>
    tpu.vector_store %arg8[%c0_8, %c0_9], %9 {strides = array<i32>} : memref<8x256xf32, #tpu.memory_space<vmem>>, vector<8x256xf32>,
    %c8_i32 = arith.constant 8 : i32
    %11 = arith.cmpi eq, %arg2, %c8_i32 : i32
    %12 = arith.extui %11 : i1 to i32
    %c0_i32_10 = arith.constant 0 : i32
    %13 = arith.cmpi ne, %12, %c0_i32_10 : i32
    scf.if %13 {
      %c0_11 = arith.constant 0 : index
      %c0_12 = arith.constant 0 : index
      %14 = vector.load %arg8[%c0_11, %c0_12] : memref<8x256xf32, #tpu.memory_space<vmem>>, vector<8x256xf32>
      %c0_13 = arith.constant 0 : index
      %c0_14 = arith.constant 0 : index
      %15 = vector.load %arg5[%c0_13, %c0_14] : memref<1x256xf32, #tpu.memory_space<vmem>>, vector<1x256xf32>
      %16 = vector.broadcast %15 : vector<1x256xf32> to vector<8x256xf32>
      %17 = arith.mulf %14, %16 : vector<8x256xf32>
      %c0_15 = arith.constant 0 : index
      %c0_16 = arith.constant 0 : index
      %18 = vector.load %arg6[%c0_15, %c0_16] : memref<1x256xf32, #tpu.memory_space<vmem>>, vector<1x256xf32>
      %19 = vector.broadcast %18 : vector<1x256xf32> to vector<8x256xf32>
      %20 = arith.addf %17, %19 : vector<8x256xf32>
      %cst_17 = arith.constant 0.000000e+00 : f32
      %21 = vector.broadcast %cst_17 : f32 to vector<8x256xf32>
      %22 = arith.maximumf %20, %21 : vector<8x256xf32>
      %c0_18 = arith.constant 0 : index
      %c0_19 = arith.constant 0 : index
      %23 = vector.load %arg7[%c0_18, %c0_19] : memref<8x256xf32, #tpu.memory_space<vmem>>, vector<8x256xf32>
      tpu.vector_store %arg7[%c0_18, %c0_19], %22 {strides = array<i32>} : memref<8x256xf32, #tpu.memory_space<vmem>>, vector<8x256xf32>,
    } else {
    }
    return
  }
  func.func @transform_0(%arg0: i32, %arg1: i32, %arg2: i32) -> (i32, i32, i32) {
    %c0_i32 = arith.constant 0 : i32
    %c0_i32_0 = arith.constant 0 : i32
    return %arg2, %arg0, %c0_i32 : i32, i32, i32
  }
  func.func @transform_1(%arg0: i32, %arg1: i32, %arg2: i32) -> (i32, i32, i32) {
    %c0_i32 = arith.constant 0 : i32
    %c0_i32_0 = arith.constant 0 : i32
    return %arg2, %c0_i32, %arg1 : i32, i32, i32
  }
  func.func @transform_2(%arg0: i32, %arg1: i32, %arg2: i32) -> (i32, i32) {
    %c0_i32 = arith.constant 0 : i32
    %c0_i32_0 = arith.constant 0 : i32
    return %c0_i32, %arg1 : i32, i32
  }
  func.func @transform_3(%arg0: i32, %arg1: i32, %arg2: i32) -> (i32, i32) {
    %c0_i32 = arith.constant 0 : i32
    %c0_i32_0 = arith.constant 0 : i32
    return %c0_i32, %arg1 : i32, i32
  }
  func.func @transform_4(%arg0: i32, %arg1: i32, %arg2: i32) -> (i32, i32) {
    %c0_i32 = arith.constant 0 : i32
    return %arg0, %arg1 : i32, i32
  }
}

module attributes {stable_mosaic.version = 11 : i64} {
  func.func @_gap_kernel(%arg0: i32, %arg1: memref<8x1x512xf32, #tpu.memory_space<vmem>>, %arg2: memref<8x512xf32, #tpu.memory_space<vmem>>) attributes {dimension_semantics = [#tpu.dimension_semantics<parallel>], iteration_bounds = array<i64: 1>, scalar_prefetch = 0 : i64, scratch_operands = 0 : i64, tpu.core_type = #tpu.core_type<tc>, window_params = [{transform_indices = @transform_0, window_bounds = array<i64: 8, 1, 512>}, {transform_indices = @transform_1, window_bounds = array<i64: 8, 512>}]} {
    %c0 = arith.constant 0 : index
    %c0_0 = arith.constant 0 : index
    %c0_1 = arith.constant 0 : index
    %0 = vector.load %arg1[%c0, %c0_0, %c0_1] : memref<8x1x512xf32, #tpu.memory_space<vmem>>, vector<8x1x512xf32>
    %cst = arith.constant dense<0.000000e+00> : vector<8x512xf32>
    %1 = vector.multi_reduction <add>, %0, %cst [1] : vector<8x1x512xf32> to vector<8x512xf32>
    %cst_2 = arith.constant 1.000000e+00 : f32
    %2 = vector.broadcast %cst_2 : f32 to vector<8x512xf32>
    %3 = arith.divf %1, %2 : vector<8x512xf32>
    %c0_3 = arith.constant 0 : index
    %c0_4 = arith.constant 0 : index
    %4 = vector.load %arg2[%c0_3, %c0_4] : memref<8x512xf32, #tpu.memory_space<vmem>>, vector<8x512xf32>
    tpu.vector_store %arg2[%c0_3, %c0_4], %3 {strides = array<i32>} : memref<8x512xf32, #tpu.memory_space<vmem>>, vector<8x512xf32>,
    return
  }
  func.func @transform_0(%arg0: i32) -> (i32, i32, i32) {
    %c0_i32 = arith.constant 0 : i32
    %c0_i32_0 = arith.constant 0 : i32
    %c0_i32_1 = arith.constant 0 : i32
    return %arg0, %c0_i32, %c0_i32_0 : i32, i32, i32
  }
  func.func @transform_1(%arg0: i32) -> (i32, i32) {
    %c0_i32 = arith.constant 0 : i32
    %c0_i32_0 = arith.constant 0 : i32
    return %arg0, %c0_i32 : i32, i32
  }
}

module attributes {stable_mosaic.version = 11 : i64} {
  func.func @_gmm_kernel(%arg0: i32, %arg1: i32, %arg2: i32, %arg3: memref<1x8x512xbf16, #tpu.memory_space<vmem>>, %arg4: memref<1x512x256xbf16, #tpu.memory_space<vmem>>, %arg5: memref<1x256xf32, #tpu.memory_space<vmem>>, %arg6: memref<1x256xf32, #tpu.memory_space<vmem>>, %arg7: memref<8x256xf32, #tpu.memory_space<vmem>>, %arg8: memref<8x256xf32, #tpu.memory_space<vmem>>) attributes {dimension_semantics = [#tpu.dimension_semantics<parallel>, #tpu.dimension_semantics<parallel>, #tpu.dimension_semantics<arbitrary>], iteration_bounds = array<i64: 1, 4, 1>, scalar_prefetch = 0 : i64, scratch_operands = 1 : i64, tpu.core_type = #tpu.core_type<tc>, window_params = [{transform_indices = @transform_0, window_bounds = array<i64: 1, 8, 512>}, {transform_indices = @transform_1, window_bounds = array<i64: 1, 512, 256>}, {transform_indices = @transform_2, window_bounds = array<i64: 1, 256>}, {transform_indices = @transform_3, window_bounds = array<i64: 1, 256>}, {transform_indices = @transform_4, window_bounds = array<i64: 8, 256>}]} {
    %c0_i32 = arith.constant 0 : i32
    %0 = arith.cmpi eq, %arg2, %c0_i32 : i32
    %1 = arith.extui %0 : i1 to i32
    %c0_i32_0 = arith.constant 0 : i32
    %2 = arith.cmpi ne, %1, %c0_i32_0 : i32
    scf.if %2 {
      %cst_12 = arith.constant 0.000000e+00 : f32
      %14 = vector.broadcast %cst_12 : f32 to vector<8x256xf32>
      %c0_13 = arith.constant 0 : index
      %c0_14 = arith.constant 0 : index
      %15 = vector.load %arg8[%c0_13, %c0_14] : memref<8x256xf32, #tpu.memory_space<vmem>>, vector<8x256xf32>
      tpu.vector_store %arg8[%c0_13, %c0_14], %14 {strides = array<i32>} : memref<8x256xf32, #tpu.memory_space<vmem>>, vector<8x256xf32>,
    } else {
    }
    %c0 = arith.constant 0 : index
    %c0_1 = arith.constant 0 : index
    %3 = vector.load %arg8[%c0, %c0_1] : memref<8x256xf32, #tpu.memory_space<vmem>>, vector<8x256xf32>
    %c0_2 = arith.constant 0 : index
    %c0_3 = arith.constant 0 : index
    %c0_4 = arith.constant 0 : index
    %4 = vector.load %arg3[%c0_2, %c0_3, %c0_4] : memref<1x8x512xbf16, #tpu.memory_space<vmem>>, vector<1x8x512xbf16>
    %5 = vector.shape_cast %4 : vector<1x8x512xbf16> to vector<8x512xbf16>
    %c0_5 = arith.constant 0 : index
    %c0_6 = arith.constant 0 : index
    %c0_7 = arith.constant 0 : index
    %6 = vector.load %arg4[%c0_5, %c0_6, %c0_7] : memref<1x512x256xbf16, #tpu.memory_space<vmem>>, vector<1x512x256xbf16>
    %7 = vector.shape_cast %6 : vector<1x512x256xbf16> to vector<512x256xbf16>
    %cst = arith.constant dense<0.000000e+00> : vector<8x256xf32>
    %8 = tpu.matmul %5, %7, %cst {dimension_numbers = #tpu.dot_dimension_numbers<[1], [0], [0], [1], [0, 0, 1, 1], [], []>} : vector<8x512xbf16>, vector<512x256xbf16>, vector<8x256xf32> -> vector<8x256xf32>
    %9 = arith.addf %3, %8 : vector<8x256xf32>
    %c0_8 = arith.constant 0 : index
    %c0_9 = arith.constant 0 : index
    %10 = vector.load %arg8[%c0_8, %c0_9] : memref<8x256xf32, #tpu.memory_space<vmem>>, vector<8x256xf32>
    tpu.vector_store %arg8[%c0_8, %c0_9], %9 {strides = array<i32>} : memref<8x256xf32, #tpu.memory_space<vmem>>, vector<8x256xf32>,
    %c0_i32_10 = arith.constant 0 : i32
    %11 = arith.cmpi eq, %arg2, %c0_i32_10 : i32
    %12 = arith.extui %11 : i1 to i32
    %c0_i32_11 = arith.constant 0 : i32
    %13 = arith.cmpi ne, %12, %c0_i32_11 : i32
    scf.if %13 {
      %c0_12 = arith.constant 0 : index
      %c0_13 = arith.constant 0 : index
      %14 = vector.load %arg8[%c0_12, %c0_13] : memref<8x256xf32, #tpu.memory_space<vmem>>, vector<8x256xf32>
      %c0_14 = arith.constant 0 : index
      %c0_15 = arith.constant 0 : index
      %15 = vector.load %arg5[%c0_14, %c0_15] : memref<1x256xf32, #tpu.memory_space<vmem>>, vector<1x256xf32>
      %16 = vector.broadcast %15 : vector<1x256xf32> to vector<8x256xf32>
      %17 = arith.mulf %14, %16 : vector<8x256xf32>
      %c0_16 = arith.constant 0 : index
      %c0_17 = arith.constant 0 : index
      %18 = vector.load %arg6[%c0_16, %c0_17] : memref<1x256xf32, #tpu.memory_space<vmem>>, vector<1x256xf32>
      %19 = vector.broadcast %18 : vector<1x256xf32> to vector<8x256xf32>
      %20 = arith.addf %17, %19 : vector<8x256xf32>
      %c0_18 = arith.constant 0 : index
      %c0_19 = arith.constant 0 : index
      %21 = vector.load %arg7[%c0_18, %c0_19] : memref<8x256xf32, #tpu.memory_space<vmem>>, vector<8x256xf32>
      tpu.vector_store %arg7[%c0_18, %c0_19], %20 {strides = array<i32>} : memref<8x256xf32, #tpu.memory_space<vmem>>, vector<8x256xf32>,
    } else {
    }
    return
  }
  func.func @transform_0(%arg0: i32, %arg1: i32, %arg2: i32) -> (i32, i32, i32) {
    %c0_i32 = arith.constant 0 : i32
    %c0_i32_0 = arith.constant 0 : i32
    return %arg2, %arg0, %c0_i32 : i32, i32, i32
  }
  func.func @transform_1(%arg0: i32, %arg1: i32, %arg2: i32) -> (i32, i32, i32) {
    %c0_i32 = arith.constant 0 : i32
    %c0_i32_0 = arith.constant 0 : i32
    return %arg2, %c0_i32, %arg1 : i32, i32, i32
  }
  func.func @transform_2(%arg0: i32, %arg1: i32, %arg2: i32) -> (i32, i32) {
    %c0_i32 = arith.constant 0 : i32
    %c0_i32_0 = arith.constant 0 : i32
    return %c0_i32, %arg1 : i32, i32
  }
  func.func @transform_3(%arg0: i32, %arg1: i32, %arg2: i32) -> (i32, i32) {
    %c0_i32 = arith.constant 0 : i32
    %c0_i32_0 = arith.constant 0 : i32
    return %c0_i32, %arg1 : i32, i32
  }
  func.func @transform_4(%arg0: i32, %arg1: i32, %arg2: i32) -> (i32, i32) {
    %c0_i32 = arith.constant 0 : i32
    return %arg0, %arg1 : i32, i32
  }
}

</mosaic_0001>

<bundles_post_ra>
// kernel: resnet34_forward.39
= control target key start
LH: loop header
LB: loop body
LE: loop exit
PB: predicated region body
PF: predicated region fallthrough
CT: control target
= control target key end

     0   :  { %v1652_v0 = vmov 0   ;;  %vm22_vm0 = vcmask 523264   ;;  %v1653_v19 = vmov 0.0   ;;  %s2551_s1 = inlined_call_operand.vmem [shape: bf16[1,256,64], index: 1, kind: input, shape index: {}]   ;;  %s2552_s0 = inlined_call_operand.vmem [shape: bf16[1,512,256], index: 0, kind: input, shape index: {}]   ;;  %s2553_s2 = inlined_call_operand.vmem [shape: f32[1,64], index: 2, kind: input, shape index: {}]   ;;  %s2554_s3 = inlined_call_operand.vmem [shape: f32[1,64], index: 3, kind: input, shape index: {}]   ;;  %s2555_s4 = inlined_call_operand.vmem [shape: f32[512,64], index: 4, kind: output, shape index: {}]  }
   0x1   :  { %663 = vmatprep.subr.bf16.mxu0 %v1652_v0  ;;  %1504 = vmatprep.subr.bf16.mxu1 %v1652_v0  ;;  %v1538_v1 = vld [vmem:[%s2551_s1] sm:$0xff]   ;;  %v1539_v2 = vld [vmem:[%s2551_s1 + $0x8] sm:$0xff]   ;;  %v1540_v3 = vld [vmem:[%s2551_s1 + $0x10] sm:$0xff]   ;;  %23 = vst.msk [vmem:[#allocation2] sm:$0xff] %vm22_vm0, %v1653_v19 }
   0x2   :  { %664 = vmatpush1.bf16.msra.mxu0 %v1538_v1  ;;  %1520 = vmatpush1.bf16.msra.mxu1 %v1538_v1  ;;  %v1541_v4 = vld [vmem:[%s2551_s1 + $0x18] sm:$0xff]   ;;  %v1542_v5 = vld [vmem:[%s2551_s1 + $0x20] sm:$0xff]   ;;  %v1543_v7 = vld [vmem:[%s2551_s1 + $0x28] sm:$0xff]   ;;  %24 = vst.msk [vmem:[#allocation2 + $0x8] sm:$0xff] %vm22_vm0, %v1653_v19 }
   0x3   :  { %665 = vmatprep.subr.bf16.mxu0 %v1652_v0  ;;  %1505 = vmatprep.subr.bf16.mxu1 %v1652_v0  ;;  %v1556_v6 = vld [vmem:[%s2552_s0 + $0x4] ss:$8 sps:$4 sm:$0xff]   ;;  %v1544_v9 = vld [vmem:[%s2551_s1 + $0x30] sm:$0xff]   ;;  %v1545_v10 = vld [vmem:[%s2551_s1 + $0x38] sm:$0xff]   ;;  %25 = vst.msk [vmem:[#allocation2 + $0x10] sm:$0xff] %vm22_vm0, %v1653_v19 }
   0x4   :  { %v1559_v8 = vld [vmem:[%s2552_s0 + $0x104] ss:$8 sps:$4 sm:$0xff]   ;;  %695 = vmatprep.mubr.bf16.mxu0 %v1556_v6  ;;  %v1548_v13 = vld [vmem:[%s2551_s1 + $0x50] sm:$0xff]   ;;  %v1549_v14 = vld [vmem:[%s2551_s1 + $0x58] sm:$0xff]   ;;  %26 = vst.msk [vmem:[#allocation2 + $0x18] sm:$0xff] %vm22_vm0, %v1653_v19 }
   0x5   :  { %823 = vmatprep.mubr.bf16.mxu1 %v1559_v8  ;;  %v1546_v11 = vld [vmem:[%s2551_s1 + $0x40] sm:$0xff]   ;;  %v1547_v12 = vld [vmem:[%s2551_s1 + $0x48] sm:$0xff]   ;;  %v1552_v17 = vld [vmem:[%s2551_s1 + $0x70] sm:$0xff]   ;;  %27 = vst.msk [vmem:[#allocation2 + $0x20] sm:$0xff] %vm22_vm0, %v1653_v19 }
   0x6   :  { %666 = vmatpush1.bf16.msra.mxu0 %v1539_v2  ;;  %1521 = vmatpush1.bf16.msra.mxu1 %v1539_v2  ;;  %v1550_v15 = vld [vmem:[%s2551_s1 + $0x60] sm:$0xff]   ;;  %v1551_v16 = vld [vmem:[%s2551_s1 + $0x68] sm:$0xff]   ;;  %v1763_v18 = vld [vmem:[%s2551_s1 + $0x78] sm:$0xff]   ;;  %28 = vst.msk [vmem:[#allocation2 + $0x28] sm:$0xff] %vm22_vm0, %v1653_v19 }
   0x7   :  { %667 = vmatprep.subr.bf16.mxu0 %v1652_v0  ;;  %1506 = vmatprep.subr.bf16.mxu1 %v1652_v0  ;;  %29 = vst.msk [vmem:[#allocation2 + $0x30] sm:$0xff] %vm22_vm0, %v1653_v19  ;;  %30 = vst.msk [vmem:[#allocation2 + $0x38] sm:$0xff] %vm22_vm0, %v1653_v19  ;;  %v1554_v20 = vld [vmem:[%s2552_s0] ss:$8 sps:$4 sm:$0xff]   ;;  %v1560_v22 = vld [vmem:[%s2552_s0 + $0x14] ss:$8 sps:$4 sm:$0xff]  }
   0x8   :  { %31 = vst.msk [vmem:[#allocation2 + $0x40] sm:$0xff] %vm22_vm0, %v1653_v19  ;;  %32 = vst.msk [vmem:[#allocation2 + $0x48] sm:$0xff] %vm22_vm0, %v1653_v19  ;;  %v1557_v21 = vld [vmem:[%s2552_s0 + $0x100] ss:$8 sps:$4 sm:$0xff]   ;;  %v1562_v23 = vld [vmem:[%s2552_s0 + $0x114] ss:$8 sps:$4 sm:$0xff]  }
   0x9   :  { %33 = vst.msk [vmem:[#allocation2 + $0x50] sm:$0xff] %vm22_vm0, %v1653_v19  ;;  %34 = vst.msk [vmem:[#allocation2 + $0x58] sm:$0xff] %vm22_vm0, %v1653_v19  ;;  %v1564_v24 = vld [vmem:[%s2552_s0 + $0x10] ss:$8 sps:$4 sm:$0xff]   ;;  %v1566_v26 = vld [vmem:[%s2552_s0 + $0x24] ss:$8 sps:$4 sm:$0xff]  }
   0xa   :  { %668 = vmatpush1.bf16.msra.mxu0 %v1540_v3  ;;  %1522 = vmatpush1.bf16.msra.mxu1 %v1540_v3  ;;  %35 = vst.msk [vmem:[#allocation2 + $0x60] sm:$0xff] %vm22_vm0, %v1653_v19  ;;  %36 = vst.msk [vmem:[#allocation2 + $0x68] sm:$0xff] %vm22_vm0, %v1653_v19  ;;  %v1565_v25 = vld [vmem:[%s2552_s0 + $0x110] ss:$8 sps:$4 sm:$0xff]   ;;  %v1568_v27 = vld [vmem:[%s2552_s0 + $0x124] ss:$8 sps:$4 sm:$0xff]  }
   0xb   :  { %669 = vmatprep.subr.bf16.mxu0 %v1652_v0  ;;  %1507 = vmatprep.subr.bf16.mxu1 %v1652_v0  ;;  %37 = vst.msk [vmem:[#allocation2 + $0x70] sm:$0xff] %vm22_vm0, %v1653_v19  ;;  %38 = vst.msk [vmem:[#allocation2 + $0x78] sm:$0xff] %vm22_vm0, %v1653_v19  ;;  %v1570_v28 = vld [vmem:[%s2552_s0 + $0x20] ss:$8 sps:$4 sm:$0xff]   ;;  %v1572_v30 = vld [vmem:[%s2552_s0 + $0x34] ss:$8 sps:$4 sm:$0xff]  }
   0xc   :  { %39 = vst.msk [vmem:[#allocation2 + $0x80] sm:$0xff] %vm22_vm0, %v1653_v19  ;;  %40 = vst.msk [vmem:[#allocation2 + $0x88] sm:$0xff] %vm22_vm0, %v1653_v19  ;;  %v1571_v29 = vld [vmem:[%s2552_s0 + $0x120] ss:$8 sps:$4 sm:$0xff]   ;;  %v1574_v31 = vld [vmem:[%s2552_s0 + $0x134] ss:$8 sps:$4 sm:$0xff]  }
   0xd   :  { %41 = vst.msk [vmem:[#allocation2 + $0x90] sm:$0xff] %vm22_vm0, %v1653_v19  ;;  %42 = vst.msk [vmem:[#allocation2 + $0x98] sm:$0xff] %vm22_vm0, %v1653_v19  ;;  %v1576_v32 = vld [vmem:[%s2552_s0 + $0x30] ss:$8 sps:$4 sm:$0xff]   ;;  %v1578_v34 = vld [vmem:[%s2552_s0 + $0x44] ss:$8 sps:$4 sm:$0xff]  }
   0xe   :  { %670 = vmatpush1.bf16.msra.mxu0 %v1541_v4  ;;  %1523 = vmatpush1.bf16.msra.mxu1 %v1541_v4  ;;  %43 = vst.msk [vmem:[#allocation2 + $0xa0] sm:$0xff] %vm22_vm0, %v1653_v19  ;;  %44 = vst.msk [vmem:[#allocation2 + $0xa8] sm:$0xff] %vm22_vm0, %v1653_v19  ;;  %v1577_v33 = vld [vmem:[%s2552_s0 + $0x130] ss:$8 sps:$4 sm:$0xff]   ;;  %v1580_v35 = vld [vmem:[%s2552_s0 + $0x144] ss:$8 sps:$4 sm:$0xff]  }
   0xf   :  { %671 = vmatprep.subr.bf16.mxu0 %v1652_v0  ;;  %1508 = vmatprep.subr.bf16.mxu1 %v1652_v0  ;;  %45 = vst.msk [vmem:[#allocation2 + $0xb0] sm:$0xff] %vm22_vm0, %v1653_v19  ;;  %46 = vst.msk [vmem:[#allocation2 + $0xb8] sm:$0xff] %vm22_vm0, %v1653_v19  ;;  %v1582_v36 = vld [vmem:[%s2552_s0 + $0x40] ss:$8 sps:$4 sm:$0xff]   ;;  %v1584_v38 = vld [vmem:[%s2552_s0 + $0x54] ss:$8 sps:$4 sm:$0xff]  }
  0x10   :  { %47 = vst.msk [vmem:[#allocation2 + $0xc0] sm:$0xff] %vm22_vm0, %v1653_v19  ;;  %48 = vst.msk [vmem:[#allocation2 + $0xc8] sm:$0xff] %vm22_vm0, %v1653_v19  ;;  %v1583_v37 = vld [vmem:[%s2552_s0 + $0x140] ss:$8 sps:$4 sm:$0xff]   ;;  %v1586_v39 = vld [vmem:[%s2552_s0 + $0x154] ss:$8 sps:$4 sm:$0xff]  }
  0x11   :  { %49 = vst.msk [vmem:[#allocation2 + $0xd0] sm:$0xff] %vm22_vm0, %v1653_v19  ;;  %50 = vst.msk [vmem:[#allocation2 + $0xd8] sm:$0xff] %vm22_vm0, %v1653_v19  ;;  %v1588_v40 = vld [vmem:[%s2552_s0 + $0x50] ss:$8 sps:$4 sm:$0xff]   ;;  %v1590_v42 = vld [vmem:[%s2552_s0 + $0x64] ss:$8 sps:$4 sm:$0xff]  }
  0x12   :  { %672 = vmatpush1.bf16.msra.mxu0 %v1542_v5  ;;  %1524 = vmatpush1.bf16.msra.mxu1 %v1542_v5  ;;  %51 = vst.msk [vmem:[#allocation2 + $0xe0] sm:$0xff] %vm22_vm0, %v1653_v19  ;;  %52 = vst.msk [vmem:[#allocation2 + $0xe8] sm:$0xff] %vm22_vm0, %v1653_v19  ;;  %v1589_v41 = vld [vmem:[%s2552_s0 + $0x150] ss:$8 sps:$4 sm:$0xff]   ;;  %v1592_v43 = vld [vmem:[%s2552_s0 + $0x164] ss:$8 sps:$4 sm:$0xff]  }
  0x13   :  { %673 = vmatprep.subr.bf16.mxu0 %v1652_v0  ;;  %1509 = vmatprep.subr.bf16.mxu1 %v1652_v0  ;;  %53 = vst.msk [vmem:[#allocation2 + $0xf0] sm:$0xff] %vm22_vm0, %v1653_v19  ;;  %54 = vst.msk [vmem:[#allocation2 + $0xf8] sm:$0xff] %vm22_vm0, %v1653_v19  ;;  %v1594_v44 = vld [vmem:[%s2552_s0 + $0x60] ss:$8 sps:$4 sm:$0xff]   ;;  %v1596_v46 = vld [vmem:[%s2552_s0 + $0x74] ss:$8 sps:$4 sm:$0xff]  }
  0x14   :  { %55 = vst.msk [vmem:[#allocation2 + $0x100] sm:$0xff] %vm22_vm0, %v1653_v19  ;;  %56 = vst.msk [vmem:[#allocation2 + $0x108] sm:$0xff] %vm22_vm0, %v1653_v19  ;;  %v1595_v45 = vld [vmem:[%s2552_s0 + $0x160] ss:$8 sps:$4 sm:$0xff]   ;;  %v1598_v47 = vld [vmem:[%s2552_s0 + $0x174] ss:$8 sps:$4 sm:$0xff]  }
  0x15   :  { %57 = vst.msk [vmem:[#allocation2 + $0x110] sm:$0xff] %vm22_vm0, %v1653_v19  ;;  %58 = vst.msk [vmem:[#allocation2 + $0x118] sm:$0xff] %vm22_vm0, %v1653_v19  ;;  %v1600_v48 = vld [vmem:[%s2552_s0 + $0x70] ss:$8 sps:$4 sm:$0xff]   ;;  %v1602_v50 = vld [vmem:[%s2552_s0 + $0x84] ss:$8 sps:$4 sm:$0xff]  }
  0x16   :  { %674 = vmatpush1.bf16.msra.mxu0 %v1543_v7  ;;  %1525 = vmatpush1.bf16.msra.mxu1 %v1543_v7  ;;  %59 = vst.msk [vmem:[#allocation2 + $0x120] sm:$0xff] %vm22_vm0, %v1653_v19  ;;  %60 = vst.msk [vmem:[#allocation2 + $0x128] sm:$0xff] %vm22_vm0, %v1653_v19  ;;  %v1601_v49 = vld [vmem:[%s2552_s0 + $0x170] ss:$8 sps:$4 sm:$0xff]   ;;  %v1604_v51 = vld [vmem:[%s2552_s0 + $0x184] ss:$8 sps:$4 sm:$0xff]  }
  0x17   :  { %675 = vmatprep.subr.bf16.mxu0 %v1652_v0  ;;  %1510 = vmatprep.subr.bf16.mxu1 %v1652_v0  ;;  %61 = vst.msk [vmem:[#allocation2 + $0x130] sm:$0xff] %vm22_vm0, %v1653_v19  ;;  %62 = vst.msk [vmem:[#allocation2 + $0x138] sm:$0xff] %vm22_vm0, %v1653_v19  ;;  %v1606_v52 = vld [vmem:[%s2552_s0 + $0x80] ss:$8 sps:$4 sm:$0xff]   ;;  %v1608_v54 = vld [vmem:[%s2552_s0 + $0x94] ss:$8 sps:$4 sm:$0xff]  }
  0x18   :  { %63 = vst.msk [vmem:[#allocation2 + $0x140] sm:$0xff] %vm22_vm0, %v1653_v19  ;;  %64 = vst.msk [vmem:[#allocation2 + $0x148] sm:$0xff] %vm22_vm0, %v1653_v19  ;;  %v1607_v53 = vld [vmem:[%s2552_s0 + $0x180] ss:$8 sps:$4 sm:$0xff]   ;;  %v1610_v55 = vld [vmem:[%s2552_s0 + $0x194] ss:$8 sps:$4 sm:$0xff]  }
  0x19   :  { %65 = vst.msk [vmem:[#allocation2 + $0x150] sm:$0xff] %vm22_vm0, %v1653_v19  ;;  %66 = vst.msk [vmem:[#allocation2 + $0x158] sm:$0xff] %vm22_vm0, %v1653_v19  ;;  %v1612_v56 = vld [vmem:[%s2552_s0 + $0x90] ss:$8 sps:$4 sm:$0xff]   ;;  %v1614_v58 = vld [vmem:[%s2552_s0 + $0xa4] ss:$8 sps:$4 sm:$0xff]  }
  0x1a   :  { %676 = vmatpush1.bf16.msra.mxu0 %v1544_v9  ;;  %1526 = vmatpush1.bf16.msra.mxu1 %v1544_v9  ;;  %67 = vst.msk [vmem:[#allocation2 + $0x160] sm:$0xff] %vm22_vm0, %v1653_v19  ;;  %68 = vst.msk [vmem:[#allocation2 + $0x168] sm:$0xff] %vm22_vm0, %v1653_v19  ;;  %v1613_v57 = vld [vmem:[%s2552_s0 + $0x190] ss:$8 sps:$4 sm:$0xff]   ;;  %v1616_v59 = vld [vmem:[%s2552_s0 + $0x1a4] ss:$8 sps:$4 sm:$0xff]  }
  0x1b   :  { %677 = vmatprep.subr.bf16.mxu0 %v1652_v0  ;;  %1511 = vmatprep.subr.bf16.mxu1 %v1652_v0  ;;  %69 = vst.msk [vmem:[#allocation2 + $0x170] sm:$0xff] %vm22_vm0, %v1653_v19  ;;  %70 = vst.msk [vmem:[#allocation2 + $0x178] sm:$0xff] %vm22_vm0, %v1653_v19  ;;  %v1618_v60 = vld [vmem:[%s2552_s0 + $0xa0] ss:$8 sps:$4 sm:$0xff]   ;;  %v1620_v62 = vld [vmem:[%s2552_s0 + $0xb4] ss:$8 sps:$4 sm:$0xff]  }
  0x1c   :  { %71 = vst.msk [vmem:[#allocation2 + $0x180] sm:$0xff] %vm22_vm0, %v1653_v19  ;;  %72 = vst.msk [vmem:[#allocation2 + $0x188] sm:$0xff] %vm22_vm0, %v1653_v19  ;;  %v1619_v61 = vld [vmem:[%s2552_s0 + $0x1a0] ss:$8 sps:$4 sm:$0xff]   ;;  %v1622_v63 = vld [vmem:[%s2552_s0 + $0x1b4] ss:$8 sps:$4 sm:$0xff]  }
  0x1d   :  { %73 = vst.msk [vmem:[#allocation2 + $0x190] sm:$0xff] %vm22_vm0, %v1653_v19  ;;  %74 = vst.msk [vmem:[#allocation2 + $0x198] sm:$0xff] %vm22_vm0, %v1653_v19  ;;  %v1625_v1 = vld [vmem:[%s2552_s0 + $0x1b0] ss:$8 sps:$4 sm:$0xff]   ;;  %v1626_v2 = vld [vmem:[%s2552_s0 + $0xc4] ss:$8 sps:$4 sm:$0xff]  }
  0x1e   :  { %678 = vmatpush1.bf16.msra.mxu0 %v1545_v10  ;;  %1527 = vmatpush1.bf16.msra.mxu1 %v1545_v10  ;;  %75 = vst.msk [vmem:[#allocation2 + $0x1a0] sm:$0xff] %vm22_vm0, %v1653_v19  ;;  %76 = vst.msk [vmem:[#allocation2 + $0x1a8] sm:$0xff] %vm22_vm0, %v1653_v19  ;;  %v1628_v3 = vld [vmem:[%s2552_s0 + $0x1c4] ss:$8 sps:$4 sm:$0xff]   ;;  %v1630_v4 = vld [vmem:[%s2552_s0 + $0xc0] ss:$8 sps:$4 sm:$0xff]  }
  0x1f   :  { %679 = vmatprep.subr.bf16.mxu0 %v1652_v0  ;;  %1512 = vmatprep.subr.bf16.mxu1 %v1652_v0  ;;  %77 = vst.msk [vmem:[#allocation2 + $0x1b0] sm:$0xff] %vm22_vm0, %v1653_v19  ;;  %78 = vst.msk [vmem:[#allocation2 + $0x1b8] sm:$0xff] %vm22_vm0, %v1653_v19  ;;  %v1631_v5 = vld [vmem:[%s2552_s0 + $0x1c0] ss:$8 sps:$4 sm:$0xff]   ;;  %v1632_v6 = vld [vmem:[%s2552_s0 + $0xd4] ss:$8 sps:$4 sm:$0xff]  }
  0x20   :  { %79 = vst.msk [vmem:[#allocation2 + $0x1c0] sm:$0xff] %vm22_vm0, %v1653_v19  ;;  %80 = vst.msk [vmem:[#allocation2 + $0x1c8] sm:$0xff] %vm22_vm0, %v1653_v19  ;;  %v1634_v7 = vld [vmem:[%s2552_s0 + $0x1d4] ss:$8 sps:$4 sm:$0xff]   ;;  %v1636_v8 = vld [vmem:[%s2552_s0 + $0xd0] ss:$8 sps:$4 sm:$0xff]  }
  0x21   :  { %81 = vst.msk [vmem:[#allocation2 + $0x1d0] sm:$0xff] %vm22_vm0, %v1653_v19  ;;  %82 = vst.msk [vmem:[#allocation2 + $0x1d8] sm:$0xff] %vm22_vm0, %v1653_v19  ;;  %v1637_v9 = vld [vmem:[%s2552_s0 + $0x1d0] ss:$8 sps:$4 sm:$0xff]   ;;  %v1638_v10 = vld [vmem:[%s2552_s0 + $0xe4] ss:$8 sps:$4 sm:$0xff]  }
  0x22   :  { %680 = vmatpush1.bf16.msra.mxu0 %v1546_v11  ;;  %1528 = vmatpush1.bf16.msra.mxu1 %v1546_v11  ;;  %83 = vst.msk [vmem:[#allocation2 + $0x1e0] sm:$0xff] %vm22_vm0, %v1653_v19  ;;  %84 = vst.msk [vmem:[#allocation2 + $0x1e8] sm:$0xff] %vm22_vm0, %v1653_v19  ;;  %v1640_v11 = vld [vmem:[%s2552_s0 + $0x1e4] ss:$8 sps:$4 sm:$0xff]  }
  0x23   :  { %681 = vmatprep.subr.bf16.mxu0 %v1652_v0  ;;  %1513 = vmatprep.subr.bf16.mxu1 %v1652_v0  ;;  %85 = vst.msk [vmem:[#allocation2 + $0x1f0] sm:$0xff] %vm22_vm0, %v1653_v19  ;;  %86 = vst.msk [vmem:[#allocation2 + $0x1f8] sm:$0xff] %vm22_vm0, %v1653_v19  ;;  %v119_v19 = vld [vmem:[#allocation2 + $0x100] sm:$0xff] }
  0x26   :  { %682 = vmatpush1.bf16.msra.mxu0 %v1547_v12  ;;  %1529 = vmatpush1.bf16.msra.mxu1 %v1547_v12  ;;  %v1642_v12 = vld [vmem:[%s2552_s0 + $0xe0] ss:$8 sps:$4 sm:$0xff]  }
  0x27   :  { %683 = vmatprep.subr.bf16.mxu0 %v1652_v0  ;;  %1514 = vmatprep.subr.bf16.mxu1 %v1652_v0 }
  0x2a   :  { %684 = vmatpush1.bf16.msra.mxu0 %v1548_v13  ;;  %1530 = vmatpush1.bf16.msra.mxu1 %v1548_v13  ;;  %v1643_v13 = vld [vmem:[%s2552_s0 + $0x1e0] ss:$8 sps:$4 sm:$0xff]  }
  0x2b   :  { %685 = vmatprep.subr.bf16.mxu0 %v1652_v0  ;;  %1515 = vmatprep.subr.bf16.mxu1 %v1652_v0 }
  0x2e   :  { %686 = vmatpush1.bf16.msra.mxu0 %v1549_v14  ;;  %1531 = vmatpush1.bf16.msra.mxu1 %v1549_v14  ;;  %v1644_v14 = vld [vmem:[%s2552_s0 + $0xf4] ss:$8 sps:$4 sm:$0xff]  }
  0x2f   :  { %687 = vmatprep.subr.bf16.mxu0 %v1652_v0  ;;  %1516 = vmatprep.subr.bf16.mxu1 %v1652_v0 }
  0x32   :  { %688 = vmatpush1.bf16.msra.mxu0 %v1550_v15  ;;  %1532 = vmatpush1.bf16.msra.mxu1 %v1550_v15  ;;  %v1646_v15 = vld [vmem:[%s2552_s0 + $0x1f4] ss:$8 sps:$4 sm:$0xff]  }
  0x33   :  { %689 = vmatprep.subr.bf16.mxu0 %v1652_v0  ;;  %1517 = vmatprep.subr.bf16.mxu1 %v1652_v0 }
  0x36   :  { %690 = vmatpush1.bf16.msra.mxu0 %v1551_v16  ;;  %1533 = vmatpush1.bf16.msra.mxu1 %v1551_v16  ;;  %v1648_v16 = vld [vmem:[%s2552_s0 + $0xf0] ss:$8 sps:$4 sm:$0xff]  }
  0x37   :  { %691 = vmatprep.subr.bf16.mxu0 %v1652_v0  ;;  %1518 = vmatprep.subr.bf16.mxu1 %v1652_v0 }
  0x3a   :  { %692 = vmatpush1.bf16.msra.mxu0 %v1552_v17  ;;  %1534 = vmatpush1.bf16.msra.mxu1 %v1552_v17  ;;  %v1649_v17 = vld [vmem:[%s2552_s0 + $0x1f0] ss:$8 sps:$4 sm:$0xff]  }
  0x3b   :  { %693 = vmatprep.subr.bf16.mxu0 %v1652_v0  ;;  %1519 = vmatprep.subr.bf16.mxu1 %v1652_v0  ;;  %v1624_v0 = vld [vmem:[%s2552_s0 + $0xb0] ss:$8 sps:$4 sm:$0xff]  }
  0x3e   :  { %694 = vmatpush1.bf16.msra.mxu0 %v1763_v18  ;;  %1535 = vmatpush1.bf16.msra.mxu1 %v1763_v18  ;;  %v87_v18 = vld [vmem:[#allocation2] sm:$0xff] }
  0x41   :  { %696 = vmatmul.mubr.bf16.vlgmr.msra.gmra.mrb[0].mxu0 %v1554_v20  ;;  %824 = vmatmul.mubr.bf16.vlgmr.msra.gmra.mrb[0].mxu1 %v1557_v21 }
  0x42   :  { %703 = vmatprep.mubr.bf16.mxu0 %v1560_v22  ;;  %831 = vmatprep.mubr.bf16.mxu1 %v1562_v23  ;;  %v88_v22 = vld [vmem:[#allocation2 + $0x8] sm:$0xff] }
  0x43   :  { %v120_v23 = vld [vmem:[#allocation2 + $0x108] sm:$0xff] }
  0x49   :  { %704 = vmatmul.mubr.bf16.gmra.mrb[4].mxu0 %v1564_v24  ;;  %832 = vmatmul.mubr.bf16.gmra.mrb[4].mxu1 %v1565_v25 }
  0x4a   :  { %711 = vmatprep.mubr.bf16.mxu0 %v1566_v26  ;;  %839 = vmatprep.mubr.bf16.mxu1 %v1568_v27 }
  0x51   :  { %712 = vmatmul.mubr.bf16.gmra.mrb[8].mxu0 %v1570_v28  ;;  %840 = vmatmul.mubr.bf16.gmra.mrb[8].mxu1 %v1571_v29 }
  0x52   :  { %719 = vmatprep.mubr.bf16.mxu0 %v1572_v30  ;;  %847 = vmatprep.mubr.bf16.mxu1 %v1574_v31 }
  0x59   :  { %720 = vmatmul.mubr.bf16.gmra.mrb[12].mxu0 %v1576_v32  ;;  %848 = vmatmul.mubr.bf16.gmra.mrb[12].mxu1 %v1577_v33 }
  0x5a   :  { %727 = vmatprep.mubr.bf16.mxu0 %v1578_v34  ;;  %855 = vmatprep.mubr.bf16.mxu1 %v1580_v35  ;;  %v89_v34 = vld [vmem:[#allocation2 + $0x10] sm:$0xff] }
  0x5b   :  { %v121_v35 = vld [vmem:[#allocation2 + $0x110] sm:$0xff] }
  0x61   :  { %728 = vmatmul.mubr.bf16.gmra.mrb[16].mxu0 %v1582_v36  ;;  %856 = vmatmul.mubr.bf16.gmra.mrb[16].mxu1 %v1583_v37  ;;  %v2090_v36 = vld [vmem:[%s2553_s2] ss:$0 sm:$0xff] }
  0x62   :  { %735 = vmatprep.mubr.bf16.mxu0 %v1584_v38  ;;  %863 = vmatprep.mubr.bf16.mxu1 %v1586_v39  ;;  %v90_v39 = vld [vmem:[#allocation2 + $0x18] sm:$0xff] }
  0x69   :  { %736 = vmatmul.mubr.bf16.gmra.mrb[20].mxu0 %v1588_v40  ;;  %864 = vmatmul.mubr.bf16.gmra.mrb[20].mxu1 %v1589_v41  ;;  %v122_v40 = vld [vmem:[#allocation2 + $0x118] sm:$0xff] }
  0x6a   :  { %743 = vmatprep.mubr.bf16.mxu0 %v1590_v42  ;;  %871 = vmatprep.mubr.bf16.mxu1 %v1592_v43 }
  0x71   :  { %744 = vmatmul.mubr.bf16.gmra.mrb[24].mxu0 %v1594_v44  ;;  %872 = vmatmul.mubr.bf16.gmra.mrb[24].mxu1 %v1595_v45 }
  0x72   :  { %751 = vmatprep.mubr.bf16.mxu0 %v1596_v46  ;;  %879 = vmatprep.mubr.bf16.mxu1 %v1598_v47  ;;  %v2095_v46 = vld [vmem:[%s2554_s3] ss:$0 sm:$0xff] }
  0x79   :  { %752 = vmatmul.mubr.bf16.gmra.mrb[28].mxu0 %v1600_v48  ;;  %880 = vmatmul.mubr.bf16.gmra.mrb[28].mxu1 %v1601_v49 }
  0x7a   :  { %759 = vmatprep.mubr.bf16.mxu0 %v1602_v50  ;;  %887 = vmatprep.mubr.bf16.mxu1 %v1604_v51 }
  0x81   :  { %760 = vmatmul.mubr.bf16.gmra.mrb[32].mxu0 %v1606_v52  ;;  %888 = vmatmul.mubr.bf16.gmra.mrb[32].mxu1 %v1607_v53 }
  0x82   :  { %767 = vmatprep.mubr.bf16.mxu0 %v1608_v54  ;;  %895 = vmatprep.mubr.bf16.mxu1 %v1610_v55 }
  0x89   :  { %768 = vmatmul.mubr.bf16.gmra.mrb[36].mxu0 %v1612_v56  ;;  %896 = vmatmul.mubr.bf16.gmra.mrb[36].mxu1 %v1613_v57 }
  0x8a   :  { %775 = vmatprep.mubr.bf16.mxu0 %v1614_v58  ;;  %903 = vmatprep.mubr.bf16.mxu1 %v1616_v59 }
  0x91   :  { %776 = vmatmul.mubr.bf16.gmra.mrb[40].mxu0 %v1618_v60  ;;  %904 = vmatmul.mubr.bf16.gmra.mrb[40].mxu1 %v1619_v61 }
  0x92   :  { %783 = vmatprep.mubr.bf16.mxu0 %v1620_v62  ;;  %911 = vmatprep.mubr.bf16.mxu1 %v1622_v63  ;;  %v91_v62 = vld [vmem:[#allocation2 + $0x20] sm:$0xff] }
  0x93   :  { %v123_v63 = vld [vmem:[#allocation2 + $0x120] sm:$0xff] }
  0x99   :  { %784 = vmatmul.mubr.bf16.gmra.mrb[44].mxu0 %v1624_v0  ;;  %912 = vmatmul.mubr.bf16.gmra.mrb[44].mxu1 %v1625_v1 }
  0x9a   :  { %791 = vmatprep.mubr.bf16.mxu0 %v1626_v2  ;;  %919 = vmatprep.mubr.bf16.mxu1 %v1628_v3 }
  0xa1   :  { %792 = vmatmul.mubr.bf16.gmra.mrb[48].mxu0 %v1630_v4  ;;  %920 = vmatmul.mubr.bf16.gmra.mrb[48].mxu1 %v1631_v5 }
  0xa2   :  { %799 = vmatprep.mubr.bf16.mxu0 %v1632_v6  ;;  %927 = vmatprep.mubr.bf16.mxu1 %v1634_v7  ;;  %v92_v6 = vld [vmem:[#allocation2 + $0x28] sm:$0xff] }
  0xa3   :  { %v124_v7 = vld [vmem:[#allocation2 + $0x128] sm:$0xff] }
  0xa9   :  { %800 = vmatmul.mubr.bf16.gmra.mrb[52].mxu0 %v1636_v8  ;;  %928 = vmatmul.mubr.bf16.gmra.mrb[52].mxu1 %v1637_v9 }
  0xaa   :  { %807 = vmatprep.mubr.bf16.mxu0 %v1638_v10  ;;  %935 = vmatprep.mubr.bf16.mxu1 %v1640_v11 }
  0xb1   :  { %808 = vmatmul.mubr.bf16.gmra.mrb[56].mxu0 %v1642_v12  ;;  %936 = vmatmul.mubr.bf16.gmra.mrb[56].mxu1 %v1643_v13 }
  0xb2   :  { %815 = vmatprep.mubr.bf16.mxu0 %v1644_v14  ;;  %943 = vmatprep.mubr.bf16.mxu1 %v1646_v15 }
  0xb9   :  { %816 = vmatmul.mubr.bf16.gmra.mrb[60].mxu0 %v1648_v16  ;;  %944 = vmatmul.mubr.bf16.gmra.mrb[60].mxu1 %v1649_v17 }
 0x114   :  { %v697_v20 = vpop.f32.mrb[0].mxu0  ;;  %v825_v21 = vpop.f32.mrb[0].mxu1 }
 0x115   :  { %v952_v24 = vadd.f32 %v697_v20, %v87_v18  ;;  %v984_v25 = vadd.f32 %v825_v21, %v119_v19  ;;  %v699_v26 = vpop.f32.mrb[1].mxu0  ;;  %v827_v27 = vpop.f32.mrb[1].mxu1 }
 0x116   :  { %v700_v28 = vpop.f32.mrb[2].mxu0  ;;  %v828_v29 = vpop.f32.mrb[2].mxu1 }
 0x117   :  { %1017 = vst.msk [vmem:[#allocation2] sm:$0xff] %vm22_vm0, %v952_v24  ;;  %1049 = vst.msk [vmem:[#allocation2 + $0x100] sm:$0xff] %vm22_vm0, %v984_v25  ;;  %v953_v30 = vadd.f32 %v700_v28, %v88_v22  ;;  %v985_v31 = vadd.f32 %v828_v29, %v120_v23  ;;  %v702_v32 = vpop.f32.mrb[3].mxu0  ;;  %v830_v33 = vpop.f32.mrb[3].mxu1 }
 0x119   :  { %1018 = vst.msk [vmem:[#allocation2 + $0x8] sm:$0xff] %vm22_vm0, %v953_v30  ;;  %1050 = vst.msk [vmem:[#allocation2 + $0x108] sm:$0xff] %vm22_vm0, %v985_v31  ;;  %v93_v30 = vld [vmem:[#allocation2 + $0x30] sm:$0xff] }
 0x11a   :  { %v125_v31 = vld [vmem:[#allocation2 + $0x130] sm:$0xff] }
 0x11c   :  { %v705_v37 = vpop.f32.mrb[4].mxu0  ;;  %v833_v38 = vpop.f32.mrb[4].mxu1 }
 0x11d   :  { %v954_v41 = vadd.f32 %v705_v37, %v89_v34  ;;  %v986_v42 = vadd.f32 %v833_v38, %v121_v35  ;;  %v707_v43 = vpop.f32.mrb[5].mxu0  ;;  %v835_v44 = vpop.f32.mrb[5].mxu1 }
 0x11e   :  { %v1084_v45 = vld [vmem:[#allocation2] sm:$0xff]  ;;  %v708_v48 = vpop.f32.mrb[6].mxu0  ;;  %v836_v49 = vpop.f32.mrb[6].mxu1 }
 0x11f   :  { %v1116_v47 = vld [vmem:[#allocation2 + $0x100] sm:$0xff]  ;;  %v1155_v50 = vmul.f32 %v2090_v36, %v1084_v45  ;;  %1019 = vst.msk [vmem:[#allocation2 + $0x10] sm:$0xff] %vm22_vm0, %v954_v41  ;;  %1051 = vst.msk [vmem:[#allocation2 + $0x110] sm:$0xff] %vm22_vm0, %v986_v42  ;;  %v955_v52 = vadd.f32 %v708_v48, %v90_v39  ;;  %v987_v53 = vadd.f32 %v836_v49, %v122_v40  ;;  %v710_v54 = vpop.f32.mrb[7].mxu0  ;;  %v838_v55 = vpop.f32.mrb[7].mxu1  ;;  %v94_v39 = vld [vmem:[#allocation2 + $0x38] sm:$0xff] }
 0x120   :  { %v1187_v51 = vmul.f32 %v2090_v36, %v1116_v47  ;;  %v1085_v56 = vld [vmem:[#allocation2 + $0x8] sm:$0xff]  ;;  %v126_v40 = vld [vmem:[#allocation2 + $0x138] sm:$0xff] }
 0x121   :  { %v1117_v57 = vld [vmem:[#allocation2 + $0x108] sm:$0xff]  ;;  %v1226_v58 = vadd.f32 %v2095_v46, %v1155_v50  ;;  %v1156_v60 = vmul.f32 %v2090_v36, %v1085_v56  ;;  %1020 = vst.msk [vmem:[#allocation2 + $0x18] sm:$0xff] %vm22_vm0, %v955_v52  ;;  %1052 = vst.msk [vmem:[#allocation2 + $0x118] sm:$0xff] %vm22_vm0, %v987_v53 }
 0x122   :  { %v1258_v59 = vadd.f32 %v2095_v46, %v1187_v51  ;;  %v1188_v61 = vmul.f32 %v2090_v36, %v1117_v57 }
 0x123   :  { %v1290_v0 = vmax.f32 %v1226_v58, 0.0  ;;  %v1227_v2 = vadd.f32 %v2095_v46, %v1156_v60 }
 0x124   :  { %v1322_v1 = vmax.f32 %v1258_v59, 0.0  ;;  %v1259_v3 = vadd.f32 %v2095_v46, %v1188_v61  ;;  %v713_v4 = vpop.f32.mrb[8].mxu0  ;;  %v841_v5 = vpop.f32.mrb[8].mxu1 }
 0x125   :  { %1354 = vst.msk [vmem:[%s2555_s4] sm:$0xff] %vm22_vm0, %v1290_v0  ;;  %v1291_v8 = vmax.f32 %v1227_v2, 0.0  ;;  %v956_v10 = vadd.f32 %v713_v4, %v91_v62  ;;  %v988_v11 = vadd.f32 %v841_v5, %v123_v63  ;;  %v715_v12 = vpop.f32.mrb[9].mxu0  ;;  %v843_v13 = vpop.f32.mrb[9].mxu1  ;;  %v95_v0 = vld [vmem:[#allocation2 + $0x40] sm:$0xff] }
 0x126   :  { %1386 = vst.msk [vmem:[%s2555_s4 + $0x100] sm:$0xff] %vm22_vm0, %v1322_v1  ;;  %v1323_v9 = vmax.f32 %v1259_v3, 0.0  ;;  %v1086_v14 = vld [vmem:[#allocation2 + $0x10] sm:$0xff]  ;;  %v716_v16 = vpop.f32.mrb[10].mxu0  ;;  %v844_v17 = vpop.f32.mrb[10].mxu1  ;;  %v127_v1 = vld [vmem:[#allocation2 + $0x140] sm:$0xff] }
 0x127   :  { %v1118_v15 = vld [vmem:[#allocation2 + $0x110] sm:$0xff]  ;;  %1355 = vst.msk [vmem:[%s2555_s4 + $0x8] sm:$0xff] %vm22_vm0, %v1291_v8  ;;  %v1157_v18 = vmul.f32 %v2090_v36, %v1086_v14  ;;  %1021 = vst.msk [vmem:[#allocation2 + $0x20] sm:$0xff] %vm22_vm0, %v956_v10  ;;  %v957_v20 = vadd.f32 %v716_v16, %v92_v6  ;;  %v989_v21 = vadd.f32 %v844_v17, %v124_v7  ;;  %v718_v22 = vpop.f32.mrb[11].mxu0  ;;  %v846_v23 = vpop.f32.mrb[11].mxu1  ;;  %v96_v8 = vld [vmem:[#allocation2 + $0x48] sm:$0xff] }
 0x128   :  { %1387 = vst.msk [vmem:[%s2555_s4 + $0x108] sm:$0xff] %vm22_vm0, %v1323_v9  ;;  %v1189_v19 = vmul.f32 %v2090_v36, %v1118_v15  ;;  %1053 = vst.msk [vmem:[#allocation2 + $0x120] sm:$0xff] %vm22_vm0, %v988_v11  ;;  %v1087_v24 = vld [vmem:[#allocation2 + $0x18] sm:$0xff]  ;;  %v128_v9 = vld [vmem:[#allocation2 + $0x148] sm:$0xff] }
 0x129   :  { %v1119_v25 = vld [vmem:[#allocation2 + $0x118] sm:$0xff]  ;;  %v1228_v26 = vadd.f32 %v2095_v46, %v1157_v18  ;;  %v1158_v28 = vmul.f32 %v2090_v36, %v1087_v24  ;;  %1022 = vst.msk [vmem:[#allocation2 + $0x28] sm:$0xff] %vm22_vm0, %v957_v20  ;;  %1054 = vst.msk [vmem:[#allocation2 + $0x128] sm:$0xff] %vm22_vm0, %v989_v21 }
 0x12a   :  { %v1260_v27 = vadd.f32 %v2095_v46, %v1189_v19  ;;  %v1190_v29 = vmul.f32 %v2090_v36, %v1119_v25 }
 0x12b   :  { %v1292_v32 = vmax.f32 %v1228_v26, 0.0  ;;  %v1229_v34 = vadd.f32 %v2095_v46, %v1158_v28 }
 0x12c   :  { %v1324_v33 = vmax.f32 %v1260_v27, 0.0  ;;  %v1261_v35 = vadd.f32 %v2095_v46, %v1190_v29  ;;  %v721_v37 = vpop.f32.mrb[12].mxu0  ;;  %v849_v38 = vpop.f32.mrb[12].mxu1 }
 0x12d   :  { %1356 = vst.msk [vmem:[%s2555_s4 + $0x10] sm:$0xff] %vm22_vm0, %v1292_v32  ;;  %v1293_v41 = vmax.f32 %v1229_v34, 0.0  ;;  %v958_v43 = vadd.f32 %v721_v37, %v93_v30  ;;  %v990_v44 = vadd.f32 %v849_v38, %v125_v31  ;;  %v723_v45 = vpop.f32.mrb[13].mxu0  ;;  %v851_v47 = vpop.f32.mrb[13].mxu1  ;;  %v97_v32 = vld [vmem:[#allocation2 + $0x50] sm:$0xff] }
 0x12e   :  { %1388 = vst.msk [vmem:[%s2555_s4 + $0x110] sm:$0xff] %vm22_vm0, %v1324_v33  ;;  %v1325_v42 = vmax.f32 %v1261_v35, 0.0  ;;  %v1088_v48 = vld [vmem:[#allocation2 + $0x20] sm:$0xff]  ;;  %v724_v50 = vpop.f32.mrb[14].mxu0  ;;  %v852_v51 = vpop.f32.mrb[14].mxu1  ;;  %v129_v33 = vld [vmem:[#allocation2 + $0x150] sm:$0xff] }
 0x12f   :  { %v1120_v49 = vld [vmem:[#allocation2 + $0x120] sm:$0xff]  ;;  %1357 = vst.msk [vmem:[%s2555_s4 + $0x18] sm:$0xff] %vm22_vm0, %v1293_v41  ;;  %v1159_v52 = vmul.f32 %v2090_v36, %v1088_v48  ;;  %1023 = vst.msk [vmem:[#allocation2 + $0x30] sm:$0xff] %vm22_vm0, %v958_v43  ;;  %v959_v54 = vadd.f32 %v724_v50, %v94_v39  ;;  %v991_v55 = vadd.f32 %v852_v51, %v126_v40  ;;  %v726_v56 = vpop.f32.mrb[15].mxu0  ;;  %v854_v57 = vpop.f32.mrb[15].mxu1  ;;  %v98_v41 = vld [vmem:[#allocation2 + $0x58] sm:$0xff] }
 0x130   :  { %1389 = vst.msk [vmem:[%s2555_s4 + $0x118] sm:$0xff] %vm22_vm0, %v1325_v42  ;;  %v1191_v53 = vmul.f32 %v2090_v36, %v1120_v49  ;;  %1055 = vst.msk [vmem:[#allocation2 + $0x130] sm:$0xff] %vm22_vm0, %v990_v44  ;;  %v1089_v58 = vld [vmem:[#allocation2 + $0x28] sm:$0xff]  ;;  %v130_v42 = vld [vmem:[#allocation2 + $0x158] sm:$0xff] }
 0x131   :  { %v1121_v59 = vld [vmem:[#allocation2 + $0x128] sm:$0xff]  ;;  %v1230_v60 = vadd.f32 %v2095_v46, %v1159_v52  ;;  %v1160_v62 = vmul.f32 %v2090_v36, %v1089_v58  ;;  %1024 = vst.msk [vmem:[#allocation2 + $0x38] sm:$0xff] %vm22_vm0, %v959_v54  ;;  %1056 = vst.msk [vmem:[#allocation2 + $0x138] sm:$0xff] %vm22_vm0, %v991_v55 }
 0x132   :  { %v1262_v61 = vadd.f32 %v2095_v46, %v1191_v53  ;;  %v1192_v63 = vmul.f32 %v2090_v36, %v1121_v59 }
 0x133   :  { %v1294_v2 = vmax.f32 %v1230_v60, 0.0  ;;  %v1231_v4 = vadd.f32 %v2095_v46, %v1160_v62 }
 0x134   :  { %v1326_v3 = vmax.f32 %v1262_v61, 0.0  ;;  %v1263_v5 = vadd.f32 %v2095_v46, %v1192_v63  ;;  %v729_v6 = vpop.f32.mrb[16].mxu0  ;;  %v857_v7 = vpop.f32.mrb[16].mxu1 }
 0x135   :  { %1358 = vst.msk [vmem:[%s2555_s4 + $0x20] sm:$0xff] %vm22_vm0, %v1294_v2  ;;  %v1295_v10 = vmax.f32 %v1231_v4, 0.0  ;;  %v960_v12 = vadd.f32 %v729_v6, %v95_v0  ;;  %v992_v13 = vadd.f32 %v857_v7, %v127_v1  ;;  %v731_v14 = vpop.f32.mrb[17].mxu0  ;;  %v859_v15 = vpop.f32.mrb[17].mxu1  ;;  %v99_v2 = vld [vmem:[#allocation2 + $0x60] sm:$0xff] }
 0x136   :  { %1390 = vst.msk [vmem:[%s2555_s4 + $0x120] sm:$0xff] %vm22_vm0, %v1326_v3  ;;  %v1327_v11 = vmax.f32 %v1263_v5, 0.0  ;;  %v1090_v16 = vld [vmem:[#allocation2 + $0x30] sm:$0xff]  ;;  %v732_v18 = vpop.f32.mrb[18].mxu0  ;;  %v860_v19 = vpop.f32.mrb[18].mxu1  ;;  %v131_v3 = vld [vmem:[#allocation2 + $0x160] sm:$0xff] }
 0x137   :  { %v1122_v17 = vld [vmem:[#allocation2 + $0x130] sm:$0xff]  ;;  %1359 = vst.msk [vmem:[%s2555_s4 + $0x28] sm:$0xff] %vm22_vm0, %v1295_v10  ;;  %v1161_v20 = vmul.f32 %v2090_v36, %v1090_v16  ;;  %1025 = vst.msk [vmem:[#allocation2 + $0x40] sm:$0xff] %vm22_vm0, %v960_v12  ;;  %v961_v22 = vadd.f32 %v732_v18, %v96_v8  ;;  %v993_v23 = vadd.f32 %v860_v19, %v128_v9  ;;  %v734_v24 = vpop.f32.mrb[19].mxu0  ;;  %v862_v25 = vpop.f32.mrb[19].mxu1  ;;  %v100_v10 = vld [vmem:[#allocation2 + $0x68] sm:$0xff] }
 0x138   :  { %1391 = vst.msk [vmem:[%s2555_s4 + $0x128] sm:$0xff] %vm22_vm0, %v1327_v11  ;;  %v1193_v21 = vmul.f32 %v2090_v36, %v1122_v17  ;;  %1057 = vst.msk [vmem:[#allocation2 + $0x140] sm:$0xff] %vm22_vm0, %v992_v13  ;;  %v1091_v26 = vld [vmem:[#allocation2 + $0x38] sm:$0xff]  ;;  %v132_v11 = vld [vmem:[#allocation2 + $0x168] sm:$0xff] }
 0x139   :  { %v1123_v27 = vld [vmem:[#allocation2 + $0x138] sm:$0xff]  ;;  %v1232_v28 = vadd.f32 %v2095_v46, %v1161_v20  ;;  %v1162_v30 = vmul.f32 %v2090_v36, %v1091_v26  ;;  %1026 = vst.msk [vmem:[#allocation2 + $0x48] sm:$0xff] %vm22_vm0, %v961_v22  ;;  %1058 = vst.msk [vmem:[#allocation2 + $0x148] sm:$0xff] %vm22_vm0, %v993_v23 }
 0x13a   :  { %v1264_v29 = vadd.f32 %v2095_v46, %v1193_v21  ;;  %v1194_v31 = vmul.f32 %v2090_v36, %v1123_v27 }
 0x13b   :  { %v1296_v34 = vmax.f32 %v1232_v28, 0.0  ;;  %v1233_v37 = vadd.f32 %v2095_v46, %v1162_v30 }
 0x13c   :  { %v1328_v35 = vmax.f32 %v1264_v29, 0.0  ;;  %v1265_v38 = vadd.f32 %v2095_v46, %v1194_v31  ;;  %v737_v39 = vpop.f32.mrb[20].mxu0  ;;  %v865_v40 = vpop.f32.mrb[20].mxu1 }
 0x13d   :  { %1360 = vst.msk [vmem:[%s2555_s4 + $0x30] sm:$0xff] %vm22_vm0, %v1296_v34  ;;  %v1297_v43 = vmax.f32 %v1233_v37, 0.0  ;;  %v962_v45 = vadd.f32 %v737_v39, %v97_v32  ;;  %v994_v47 = vadd.f32 %v865_v40, %v129_v33  ;;  %v739_v48 = vpop.f32.mrb[21].mxu0  ;;  %v867_v49 = vpop.f32.mrb[21].mxu1  ;;  %v101_v34 = vld [vmem:[#allocation2 + $0x70] sm:$0xff] }
 0x13e   :  { %1392 = vst.msk [vmem:[%s2555_s4 + $0x130] sm:$0xff] %vm22_vm0, %v1328_v35  ;;  %v1329_v44 = vmax.f32 %v1265_v38, 0.0  ;;  %v1092_v50 = vld [vmem:[#allocation2 + $0x40] sm:$0xff]  ;;  %v740_v52 = vpop.f32.mrb[22].mxu0  ;;  %v868_v53 = vpop.f32.mrb[22].mxu1  ;;  %v133_v35 = vld [vmem:[#allocation2 + $0x170] sm:$0xff] }
 0x13f   :  { %v1124_v51 = vld [vmem:[#allocation2 + $0x140] sm:$0xff]  ;;  %1361 = vst.msk [vmem:[%s2555_s4 + $0x38] sm:$0xff] %vm22_vm0, %v1297_v43  ;;  %v1163_v54 = vmul.f32 %v2090_v36, %v1092_v50  ;;  %1027 = vst.msk [vmem:[#allocation2 + $0x50] sm:$0xff] %vm22_vm0, %v962_v45  ;;  %v963_v56 = vadd.f32 %v740_v52, %v98_v41  ;;  %v995_v57 = vadd.f32 %v868_v53, %v130_v42  ;;  %v742_v58 = vpop.f32.mrb[23].mxu0  ;;  %v870_v59 = vpop.f32.mrb[23].mxu1  ;;  %v102_v43 = vld [vmem:[#allocation2 + $0x78] sm:$0xff] }
 0x140   :  { %1393 = vst.msk [vmem:[%s2555_s4 + $0x138] sm:$0xff] %vm22_vm0, %v1329_v44  ;;  %v1195_v55 = vmul.f32 %v2090_v36, %v1124_v51  ;;  %1059 = vst.msk [vmem:[#allocation2 + $0x150] sm:$0xff] %vm22_vm0, %v994_v47  ;;  %v1093_v60 = vld [vmem:[#allocation2 + $0x48] sm:$0xff]  ;;  %v134_v44 = vld [vmem:[#allocation2 + $0x178] sm:$0xff] }
 0x141   :  { %v1125_v61 = vld [vmem:[#allocation2 + $0x148] sm:$0xff]  ;;  %v1234_v62 = vadd.f32 %v2095_v46, %v1163_v54  ;;  %v1164_v0 = vmul.f32 %v2090_v36, %v1093_v60  ;;  %1028 = vst.msk [vmem:[#allocation2 + $0x58] sm:$0xff] %vm22_vm0, %v963_v56  ;;  %1060 = vst.msk [vmem:[#allocation2 + $0x158] sm:$0xff] %vm22_vm0, %v995_v57 }
 0x142   :  { %v1266_v63 = vadd.f32 %v2095_v46, %v1195_v55  ;;  %v1196_v1 = vmul.f32 %v2090_v36, %v1125_v61 }
 0x143   :  { %v1298_v4 = vmax.f32 %v1234_v62, 0.0  ;;  %v1235_v6 = vadd.f32 %v2095_v46, %v1164_v0 }
 0x144   :  { %v1330_v5 = vmax.f32 %v1266_v63, 0.0  ;;  %v1267_v7 = vadd.f32 %v2095_v46, %v1196_v1  ;;  %v745_v8 = vpop.f32.mrb[24].mxu0  ;;  %v873_v9 = vpop.f32.mrb[24].mxu1 }
 0x145   :  { %1362 = vst.msk [vmem:[%s2555_s4 + $0x40] sm:$0xff] %vm22_vm0, %v1298_v4  ;;  %v1299_v12 = vmax.f32 %v1235_v6, 0.0  ;;  %v964_v14 = vadd.f32 %v745_v8, %v99_v2  ;;  %v996_v15 = vadd.f32 %v873_v9, %v131_v3  ;;  %v747_v16 = vpop.f32.mrb[25].mxu0  ;;  %v875_v17 = vpop.f32.mrb[25].mxu1  ;;  %v103_v4 = vld [vmem:[#allocation2 + $0x80] sm:$0xff] }
 0x146   :  { %1394 = vst.msk [vmem:[%s2555_s4 + $0x140] sm:$0xff] %vm22_vm0, %v1330_v5  ;;  %v1331_v13 = vmax.f32 %v1267_v7, 0.0  ;;  %v1094_v18 = vld [vmem:[#allocation2 + $0x50] sm:$0xff]  ;;  %v748_v20 = vpop.f32.mrb[26].mxu0  ;;  %v876_v21 = vpop.f32.mrb[26].mxu1  ;;  %v135_v5 = vld [vmem:[#allocation2 + $0x180] sm:$0xff] }
 0x147   :  { %v1126_v19 = vld [vmem:[#allocation2 + $0x150] sm:$0xff]  ;;  %1363 = vst.msk [vmem:[%s2555_s4 + $0x48] sm:$0xff] %vm22_vm0, %v1299_v12  ;;  %v1165_v22 = vmul.f32 %v2090_v36, %v1094_v18  ;;  %1029 = vst.msk [vmem:[#allocation2 + $0x60] sm:$0xff] %vm22_vm0, %v964_v14  ;;  %v965_v24 = vadd.f32 %v748_v20, %v100_v10  ;;  %v997_v25 = vadd.f32 %v876_v21, %v132_v11  ;;  %v750_v26 = vpop.f32.mrb[27].mxu0  ;;  %v878_v27 = vpop.f32.mrb[27].mxu1  ;;  %v104_v12 = vld [vmem:[#allocation2 + $0x88] sm:$0xff] }
 0x148   :  { %1395 = vst.msk [vmem:[%s2555_s4 + $0x148] sm:$0xff] %vm22_vm0, %v1331_v13  ;;  %v1197_v23 = vmul.f32 %v2090_v36, %v1126_v19  ;;  %1061 = vst.msk [vmem:[#allocation2 + $0x160] sm:$0xff] %vm22_vm0, %v996_v15  ;;  %v1095_v28 = vld [vmem:[#allocation2 + $0x58] sm:$0xff]  ;;  %v136_v13 = vld [vmem:[#allocation2 + $0x188] sm:$0xff] }
 0x149   :  { %v1127_v29 = vld [vmem:[#allocation2 + $0x158] sm:$0xff]  ;;  %v1236_v30 = vadd.f32 %v2095_v46, %v1165_v22  ;;  %v1166_v32 = vmul.f32 %v2090_v36, %v1095_v28  ;;  %1030 = vst.msk [vmem:[#allocation2 + $0x68] sm:$0xff] %vm22_vm0, %v965_v24  ;;  %1062 = vst.msk [vmem:[#allocation2 + $0x168] sm:$0xff] %vm22_vm0, %v997_v25 }
 0x14a   :  { %v1268_v31 = vadd.f32 %v2095_v46, %v1197_v23  ;;  %v1198_v33 = vmul.f32 %v2090_v36, %v1127_v29 }
 0x14b   :  { %v1300_v37 = vmax.f32 %v1236_v30, 0.0  ;;  %v1237_v39 = vadd.f32 %v2095_v46, %v1166_v32 }
 0x14c   :  { %v1332_v38 = vmax.f32 %v1268_v31, 0.0  ;;  %v1269_v40 = vadd.f32 %v2095_v46, %v1198_v33  ;;  %v753_v41 = vpop.f32.mrb[28].mxu0  ;;  %v881_v42 = vpop.f32.mrb[28].mxu1 }
 0x14d   :  { %1364 = vst.msk [vmem:[%s2555_s4 + $0x50] sm:$0xff] %vm22_vm0, %v1300_v37  ;;  %v1301_v45 = vmax.f32 %v1237_v39, 0.0  ;;  %v966_v48 = vadd.f32 %v753_v41, %v101_v34  ;;  %v998_v49 = vadd.f32 %v881_v42, %v133_v35  ;;  %v755_v50 = vpop.f32.mrb[29].mxu0  ;;  %v883_v51 = vpop.f32.mrb[29].mxu1  ;;  %v105_v37 = vld [vmem:[#allocation2 + $0x90] sm:$0xff] }
 0x14e   :  { %1396 = vst.msk [vmem:[%s2555_s4 + $0x150] sm:$0xff] %vm22_vm0, %v1332_v38  ;;  %v1333_v47 = vmax.f32 %v1269_v40, 0.0  ;;  %v1096_v52 = vld [vmem:[#allocation2 + $0x60] sm:$0xff]  ;;  %v756_v54 = vpop.f32.mrb[30].mxu0  ;;  %v884_v55 = vpop.f32.mrb[30].mxu1  ;;  %v137_v38 = vld [vmem:[#allocation2 + $0x190] sm:$0xff] }
 0x14f   :  { %v1128_v53 = vld [vmem:[#allocation2 + $0x160] sm:$0xff]  ;;  %1365 = vst.msk [vmem:[%s2555_s4 + $0x58] sm:$0xff] %vm22_vm0, %v1301_v45  ;;  %v1167_v56 = vmul.f32 %v2090_v36, %v1096_v52  ;;  %1031 = vst.msk [vmem:[#allocation2 + $0x70] sm:$0xff] %vm22_vm0, %v966_v48  ;;  %v967_v58 = vadd.f32 %v756_v54, %v102_v43  ;;  %v999_v59 = vadd.f32 %v884_v55, %v134_v44  ;;  %v758_v60 = vpop.f32.mrb[31].mxu0  ;;  %v886_v61 = vpop.f32.mrb[31].mxu1  ;;  %v106_v45 = vld [vmem:[#allocation2 + $0x98] sm:$0xff] }
 0x150   :  { %1397 = vst.msk [vmem:[%s2555_s4 + $0x158] sm:$0xff] %vm22_vm0, %v1333_v47  ;;  %v1199_v57 = vmul.f32 %v2090_v36, %v1128_v53  ;;  %1063 = vst.msk [vmem:[#allocation2 + $0x170] sm:$0xff] %vm22_vm0, %v998_v49  ;;  %v1097_v62 = vld [vmem:[#allocation2 + $0x68] sm:$0xff]  ;;  %v138_v47 = vld [vmem:[#allocation2 + $0x198] sm:$0xff] }
 0x151   :  { %v1129_v63 = vld [vmem:[#allocation2 + $0x168] sm:$0xff]  ;;  %v1238_v0 = vadd.f32 %v2095_v46, %v1167_v56  ;;  %v1168_v2 = vmul.f32 %v2090_v36, %v1097_v62  ;;  %1032 = vst.msk [vmem:[#allocation2 + $0x78] sm:$0xff] %vm22_vm0, %v967_v58  ;;  %1064 = vst.msk [vmem:[#allocation2 + $0x178] sm:$0xff] %vm22_vm0, %v999_v59 }
 0x152   :  { %v1270_v1 = vadd.f32 %v2095_v46, %v1199_v57  ;;  %v1200_v3 = vmul.f32 %v2090_v36, %v1129_v63 }
 0x153   :  { %v1302_v6 = vmax.f32 %v1238_v0, 0.0  ;;  %v1239_v8 = vadd.f32 %v2095_v46, %v1168_v2 }
 0x154   :  { %v1334_v7 = vmax.f32 %v1270_v1, 0.0  ;;  %v1271_v9 = vadd.f32 %v2095_v46, %v1200_v3  ;;  %v761_v10 = vpop.f32.mrb[32].mxu0  ;;  %v889_v11 = vpop.f32.mrb[32].mxu1 }
 0x155   :  { %1366 = vst.msk [vmem:[%s2555_s4 + $0x60] sm:$0xff] %vm22_vm0, %v1302_v6  ;;  %v1303_v14 = vmax.f32 %v1239_v8, 0.0  ;;  %v968_v16 = vadd.f32 %v761_v10, %v103_v4  ;;  %v1000_v17 = vadd.f32 %v889_v11, %v135_v5  ;;  %v763_v18 = vpop.f32.mrb[33].mxu0  ;;  %v891_v19 = vpop.f32.mrb[33].mxu1  ;;  %v107_v6 = vld [vmem:[#allocation2 + $0xa0] sm:$0xff] }
 0x156   :  { %1398 = vst.msk [vmem:[%s2555_s4 + $0x160] sm:$0xff] %vm22_vm0, %v1334_v7  ;;  %v1335_v15 = vmax.f32 %v1271_v9, 0.0  ;;  %v1098_v20 = vld [vmem:[#allocation2 + $0x70] sm:$0xff]  ;;  %v764_v22 = vpop.f32.mrb[34].mxu0  ;;  %v892_v23 = vpop.f32.mrb[34].mxu1  ;;  %v139_v7 = vld [vmem:[#allocation2 + $0x1a0] sm:$0xff] }
 0x157   :  { %v1130_v21 = vld [vmem:[#allocation2 + $0x170] sm:$0xff]  ;;  %1367 = vst.msk [vmem:[%s2555_s4 + $0x68] sm:$0xff] %vm22_vm0, %v1303_v14  ;;  %v1169_v24 = vmul.f32 %v2090_v36, %v1098_v20  ;;  %1033 = vst.msk [vmem:[#allocation2 + $0x80] sm:$0xff] %vm22_vm0, %v968_v16  ;;  %v969_v26 = vadd.f32 %v764_v22, %v104_v12  ;;  %v1001_v27 = vadd.f32 %v892_v23, %v136_v13  ;;  %v766_v28 = vpop.f32.mrb[35].mxu0  ;;  %v894_v29 = vpop.f32.mrb[35].mxu1  ;;  %v108_v14 = vld [vmem:[#allocation2 + $0xa8] sm:$0xff] }
 0x158   :  { %1399 = vst.msk [vmem:[%s2555_s4 + $0x168] sm:$0xff] %vm22_vm0, %v1335_v15  ;;  %v1201_v25 = vmul.f32 %v2090_v36, %v1130_v21  ;;  %1065 = vst.msk [vmem:[#allocation2 + $0x180] sm:$0xff] %vm22_vm0, %v1000_v17  ;;  %v1099_v30 = vld [vmem:[#allocation2 + $0x78] sm:$0xff]  ;;  %v140_v15 = vld [vmem:[#allocation2 + $0x1a8] sm:$0xff] }
 0x159   :  { %v1131_v31 = vld [vmem:[#allocation2 + $0x178] sm:$0xff]  ;;  %v1240_v32 = vadd.f32 %v2095_v46, %v1169_v24  ;;  %v1170_v34 = vmul.f32 %v2090_v36, %v1099_v30  ;;  %1034 = vst.msk [vmem:[#allocation2 + $0x88] sm:$0xff] %vm22_vm0, %v969_v26  ;;  %1066 = vst.msk [vmem:[#allocation2 + $0x188] sm:$0xff] %vm22_vm0, %v1001_v27 }
 0x15a   :  { %v1272_v33 = vadd.f32 %v2095_v46, %v1201_v25  ;;  %v1202_v35 = vmul.f32 %v2090_v36, %v1131_v31 }
 0x15b   :  { %v1304_v39 = vmax.f32 %v1240_v32, 0.0  ;;  %v1241_v41 = vadd.f32 %v2095_v46, %v1170_v34 }
 0x15c   :  { %v1336_v40 = vmax.f32 %v1272_v33, 0.0  ;;  %v1273_v42 = vadd.f32 %v2095_v46, %v1202_v35  ;;  %v769_v43 = vpop.f32.mrb[36].mxu0  ;;  %v897_v44 = vpop.f32.mrb[36].mxu1 }
 0x15d   :  { %1368 = vst.msk [vmem:[%s2555_s4 + $0x70] sm:$0xff] %vm22_vm0, %v1304_v39  ;;  %v1305_v48 = vmax.f32 %v1241_v41, 0.0  ;;  %v970_v50 = vadd.f32 %v769_v43, %v105_v37  ;;  %v1002_v51 = vadd.f32 %v897_v44, %v137_v38  ;;  %v771_v52 = vpop.f32.mrb[37].mxu0  ;;  %v899_v53 = vpop.f32.mrb[37].mxu1  ;;  %v109_v39 = vld [vmem:[#allocation2 + $0xb0] sm:$0xff] }
 0x15e   :  { %1400 = vst.msk [vmem:[%s2555_s4 + $0x170] sm:$0xff] %vm22_vm0, %v1336_v40  ;;  %v1337_v49 = vmax.f32 %v1273_v42, 0.0  ;;  %v1100_v54 = vld [vmem:[#allocation2 + $0x80] sm:$0xff]  ;;  %v772_v56 = vpop.f32.mrb[38].mxu0  ;;  %v900_v57 = vpop.f32.mrb[38].mxu1  ;;  %v141_v40 = vld [vmem:[#allocation2 + $0x1b0] sm:$0xff] }
 0x15f   :  { %v1132_v55 = vld [vmem:[#allocation2 + $0x180] sm:$0xff]  ;;  %1369 = vst.msk [vmem:[%s2555_s4 + $0x78] sm:$0xff] %vm22_vm0, %v1305_v48  ;;  %v1171_v58 = vmul.f32 %v2090_v36, %v1100_v54  ;;  %1035 = vst.msk [vmem:[#allocation2 + $0x90] sm:$0xff] %vm22_vm0, %v970_v50  ;;  %v971_v60 = vadd.f32 %v772_v56, %v106_v45  ;;  %v1003_v61 = vadd.f32 %v900_v57, %v138_v47  ;;  %v774_v62 = vpop.f32.mrb[39].mxu0  ;;  %v902_v63 = vpop.f32.mrb[39].mxu1  ;;  %v110_v48 = vld [vmem:[#allocation2 + $0xb8] sm:$0xff] }
 0x160   :  { %1401 = vst.msk [vmem:[%s2555_s4 + $0x178] sm:$0xff] %vm22_vm0, %v1337_v49  ;;  %v1203_v59 = vmul.f32 %v2090_v36, %v1132_v55  ;;  %1067 = vst.msk [vmem:[#allocation2 + $0x190] sm:$0xff] %vm22_vm0, %v1002_v51  ;;  %v1101_v0 = vld [vmem:[#allocation2 + $0x88] sm:$0xff]  ;;  %v142_v49 = vld [vmem:[#allocation2 + $0x1b8] sm:$0xff] }
 0x161   :  { %v1133_v1 = vld [vmem:[#allocation2 + $0x188] sm:$0xff]  ;;  %v1242_v2 = vadd.f32 %v2095_v46, %v1171_v58  ;;  %v1172_v4 = vmul.f32 %v2090_v36, %v1101_v0  ;;  %1036 = vst.msk [vmem:[#allocation2 + $0x98] sm:$0xff] %vm22_vm0, %v971_v60  ;;  %1068 = vst.msk [vmem:[#allocation2 + $0x198] sm:$0xff] %vm22_vm0, %v1003_v61 }
 0x162   :  { %v1274_v3 = vadd.f32 %v2095_v46, %v1203_v59  ;;  %v1204_v5 = vmul.f32 %v2090_v36, %v1133_v1 }
 0x163   :  { %v1306_v8 = vmax.f32 %v1242_v2, 0.0  ;;  %v1243_v10 = vadd.f32 %v2095_v46, %v1172_v4 }
 0x164   :  { %v1338_v9 = vmax.f32 %v1274_v3, 0.0  ;;  %v1275_v11 = vadd.f32 %v2095_v46, %v1204_v5  ;;  %v777_v12 = vpop.f32.mrb[40].mxu0  ;;  %v905_v13 = vpop.f32.mrb[40].mxu1 }
 0x165   :  { %1370 = vst.msk [vmem:[%s2555_s4 + $0x80] sm:$0xff] %vm22_vm0, %v1306_v8  ;;  %v1307_v16 = vmax.f32 %v1243_v10, 0.0  ;;  %v972_v18 = vadd.f32 %v777_v12, %v107_v6  ;;  %v1004_v19 = vadd.f32 %v905_v13, %v139_v7  ;;  %v779_v20 = vpop.f32.mrb[41].mxu0  ;;  %v907_v21 = vpop.f32.mrb[41].mxu1  ;;  %v111_v8 = vld [vmem:[#allocation2 + $0xc0] sm:$0xff] }
 0x166   :  { %1402 = vst.msk [vmem:[%s2555_s4 + $0x180] sm:$0xff] %vm22_vm0, %v1338_v9  ;;  %v1339_v17 = vmax.f32 %v1275_v11, 0.0  ;;  %v1102_v22 = vld [vmem:[#allocation2 + $0x90] sm:$0xff]  ;;  %v780_v24 = vpop.f32.mrb[42].mxu0  ;;  %v908_v25 = vpop.f32.mrb[42].mxu1  ;;  %v143_v9 = vld [vmem:[#allocation2 + $0x1c0] sm:$0xff] }
 0x167   :  { %v1134_v23 = vld [vmem:[#allocation2 + $0x190] sm:$0xff]  ;;  %1371 = vst.msk [vmem:[%s2555_s4 + $0x88] sm:$0xff] %vm22_vm0, %v1307_v16  ;;  %v1173_v26 = vmul.f32 %v2090_v36, %v1102_v22  ;;  %1037 = vst.msk [vmem:[#allocation2 + $0xa0] sm:$0xff] %vm22_vm0, %v972_v18  ;;  %v973_v28 = vadd.f32 %v780_v24, %v108_v14  ;;  %v1005_v29 = vadd.f32 %v908_v25, %v140_v15  ;;  %v782_v30 = vpop.f32.mrb[43].mxu0  ;;  %v910_v31 = vpop.f32.mrb[43].mxu1  ;;  %v112_v16 = vld [vmem:[#allocation2 + $0xc8] sm:$0xff] }
 0x168   :  { %1403 = vst.msk [vmem:[%s2555_s4 + $0x188] sm:$0xff] %vm22_vm0, %v1339_v17  ;;  %v1205_v27 = vmul.f32 %v2090_v36, %v1134_v23  ;;  %1069 = vst.msk [vmem:[#allocation2 + $0x1a0] sm:$0xff] %vm22_vm0, %v1004_v19  ;;  %v1103_v32 = vld [vmem:[#allocation2 + $0x98] sm:$0xff]  ;;  %v144_v17 = vld [vmem:[#allocation2 + $0x1c8] sm:$0xff] }
 0x169   :  { %v1135_v33 = vld [vmem:[#allocation2 + $0x198] sm:$0xff]  ;;  %v1244_v34 = vadd.f32 %v2095_v46, %v1173_v26  ;;  %v1174_v37 = vmul.f32 %v2090_v36, %v1103_v32  ;;  %1038 = vst.msk [vmem:[#allocation2 + $0xa8] sm:$0xff] %vm22_vm0, %v973_v28  ;;  %1070 = vst.msk [vmem:[#allocation2 + $0x1a8] sm:$0xff] %vm22_vm0, %v1005_v29 }
 0x16a   :  { %v1276_v35 = vadd.f32 %v2095_v46, %v1205_v27  ;;  %v1206_v38 = vmul.f32 %v2090_v36, %v1135_v33 }
 0x16b   :  { %v1308_v41 = vmax.f32 %v1244_v34, 0.0  ;;  %v1245_v43 = vadd.f32 %v2095_v46, %v1174_v37 }
 0x16c   :  { %v1340_v42 = vmax.f32 %v1276_v35, 0.0  ;;  %v1277_v44 = vadd.f32 %v2095_v46, %v1206_v38  ;;  %v785_v45 = vpop.f32.mrb[44].mxu0  ;;  %v913_v47 = vpop.f32.mrb[44].mxu1 }
 0x16d   :  { %1372 = vst.msk [vmem:[%s2555_s4 + $0x90] sm:$0xff] %vm22_vm0, %v1308_v41  ;;  %v1309_v50 = vmax.f32 %v1245_v43, 0.0  ;;  %v974_v52 = vadd.f32 %v785_v45, %v109_v39  ;;  %v1006_v53 = vadd.f32 %v913_v47, %v141_v40  ;;  %v787_v54 = vpop.f32.mrb[45].mxu0  ;;  %v915_v55 = vpop.f32.mrb[45].mxu1  ;;  %v113_v41 = vld [vmem:[#allocation2 + $0xd0] sm:$0xff] }
 0x16e   :  { %1404 = vst.msk [vmem:[%s2555_s4 + $0x190] sm:$0xff] %vm22_vm0, %v1340_v42  ;;  %v1341_v51 = vmax.f32 %v1277_v44, 0.0  ;;  %v1104_v56 = vld [vmem:[#allocation2 + $0xa0] sm:$0xff]  ;;  %v788_v58 = vpop.f32.mrb[46].mxu0  ;;  %v916_v59 = vpop.f32.mrb[46].mxu1  ;;  %v145_v42 = vld [vmem:[#allocation2 + $0x1d0] sm:$0xff] }
 0x16f   :  { %v1136_v57 = vld [vmem:[#allocation2 + $0x1a0] sm:$0xff]  ;;  %1373 = vst.msk [vmem:[%s2555_s4 + $0x98] sm:$0xff] %vm22_vm0, %v1309_v50  ;;  %v1175_v60 = vmul.f32 %v2090_v36, %v1104_v56  ;;  %1039 = vst.msk [vmem:[#allocation2 + $0xb0] sm:$0xff] %vm22_vm0, %v974_v52  ;;  %v975_v62 = vadd.f32 %v788_v58, %v110_v48  ;;  %v1007_v63 = vadd.f32 %v916_v59, %v142_v49  ;;  %v790_v0 = vpop.f32.mrb[47].mxu0  ;;  %v918_v1 = vpop.f32.mrb[47].mxu1  ;;  %v114_v50 = vld [vmem:[#allocation2 + $0xd8] sm:$0xff] }
 0x170   :  { %1405 = vst.msk [vmem:[%s2555_s4 + $0x198] sm:$0xff] %vm22_vm0, %v1341_v51  ;;  %v1207_v61 = vmul.f32 %v2090_v36, %v1136_v57  ;;  %1071 = vst.msk [vmem:[#allocation2 + $0x1b0] sm:$0xff] %vm22_vm0, %v1006_v53  ;;  %v1105_v2 = vld [vmem:[#allocation2 + $0xa8] sm:$0xff]  ;;  %v146_v51 = vld [vmem:[#allocation2 + $0x1d8] sm:$0xff] }
 0x171   :  { %v1137_v3 = vld [vmem:[#allocation2 + $0x1a8] sm:$0xff]  ;;  %v1246_v4 = vadd.f32 %v2095_v46, %v1175_v60  ;;  %v1176_v6 = vmul.f32 %v2090_v36, %v1105_v2  ;;  %1040 = vst.msk [vmem:[#allocation2 + $0xb8] sm:$0xff] %vm22_vm0, %v975_v62  ;;  %1072 = vst.msk [vmem:[#allocation2 + $0x1b8] sm:$0xff] %vm22_vm0, %v1007_v63 }
 0x172   :  { %v1278_v5 = vadd.f32 %v2095_v46, %v1207_v61  ;;  %v1208_v7 = vmul.f32 %v2090_v36, %v1137_v3 }
 0x173   :  { %v1310_v10 = vmax.f32 %v1246_v4, 0.0  ;;  %v1247_v12 = vadd.f32 %v2095_v46, %v1176_v6 }
 0x174   :  { %v1342_v11 = vmax.f32 %v1278_v5, 0.0  ;;  %v1279_v13 = vadd.f32 %v2095_v46, %v1208_v7  ;;  %v793_v14 = vpop.f32.mrb[48].mxu0  ;;  %v921_v15 = vpop.f32.mrb[48].mxu1 }
 0x175   :  { %1374 = vst.msk [vmem:[%s2555_s4 + $0xa0] sm:$0xff] %vm22_vm0, %v1310_v10  ;;  %v1311_v18 = vmax.f32 %v1247_v12, 0.0  ;;  %v976_v20 = vadd.f32 %v793_v14, %v111_v8  ;;  %v1008_v21 = vadd.f32 %v921_v15, %v143_v9  ;;  %v795_v22 = vpop.f32.mrb[49].mxu0  ;;  %v923_v23 = vpop.f32.mrb[49].mxu1  ;;  %v115_v10 = vld [vmem:[#allocation2 + $0xe0] sm:$0xff] }
 0x176   :  { %1406 = vst.msk [vmem:[%s2555_s4 + $0x1a0] sm:$0xff] %vm22_vm0, %v1342_v11  ;;  %v1343_v19 = vmax.f32 %v1279_v13, 0.0  ;;  %v1106_v24 = vld [vmem:[#allocation2 + $0xb0] sm:$0xff]  ;;  %v796_v26 = vpop.f32.mrb[50].mxu0  ;;  %v924_v27 = vpop.f32.mrb[50].mxu1  ;;  %v147_v11 = vld [vmem:[#allocation2 + $0x1e0] sm:$0xff] }
 0x177   :  { %v1138_v25 = vld [vmem:[#allocation2 + $0x1b0] sm:$0xff]  ;;  %1375 = vst.msk [vmem:[%s2555_s4 + $0xa8] sm:$0xff] %vm22_vm0, %v1311_v18  ;;  %v1177_v28 = vmul.f32 %v2090_v36, %v1106_v24  ;;  %1041 = vst.msk [vmem:[#allocation2 + $0xc0] sm:$0xff] %vm22_vm0, %v976_v20  ;;  %v977_v30 = vadd.f32 %v796_v26, %v112_v16  ;;  %v1009_v31 = vadd.f32 %v924_v27, %v144_v17  ;;  %v798_v32 = vpop.f32.mrb[51].mxu0  ;;  %v926_v33 = vpop.f32.mrb[51].mxu1  ;;  %v116_v18 = vld [vmem:[#allocation2 + $0xe8] sm:$0xff] }
 0x178   :  { %1407 = vst.msk [vmem:[%s2555_s4 + $0x1a8] sm:$0xff] %vm22_vm0, %v1343_v19  ;;  %v1209_v29 = vmul.f32 %v2090_v36, %v1138_v25  ;;  %1073 = vst.msk [vmem:[#allocation2 + $0x1c0] sm:$0xff] %vm22_vm0, %v1008_v21  ;;  %v1107_v34 = vld [vmem:[#allocation2 + $0xb8] sm:$0xff]  ;;  %v148_v19 = vld [vmem:[#allocation2 + $0x1e8] sm:$0xff] }
 0x179   :  { %v1139_v35 = vld [vmem:[#allocation2 + $0x1b8] sm:$0xff]  ;;  %v1248_v37 = vadd.f32 %v2095_v46, %v1177_v28  ;;  %v1178_v39 = vmul.f32 %v2090_v36, %v1107_v34  ;;  %1042 = vst.msk [vmem:[#allocation2 + $0xc8] sm:$0xff] %vm22_vm0, %v977_v30  ;;  %1074 = vst.msk [vmem:[#allocation2 + $0x1c8] sm:$0xff] %vm22_vm0, %v1009_v31  ;;  %v2464_v28 = vld [vmem:[%s2553_s2] ss:$0 sm:$0xff] }
 0x17a   :  { %v1280_v38 = vadd.f32 %v2095_v46, %v1209_v29  ;;  %v1210_v40 = vmul.f32 %v2090_v36, %v1139_v35 }
 0x17b   :  { %v1312_v43 = vmax.f32 %v1248_v37, 0.0  ;;  %v1249_v45 = vadd.f32 %v2095_v46, %v1178_v39 }
 0x17c   :  { %v1344_v44 = vmax.f32 %v1280_v38, 0.0  ;;  %v1281_v47 = vadd.f32 %v2095_v46, %v1210_v40  ;;  %v801_v48 = vpop.f32.mrb[52].mxu0  ;;  %v929_v49 = vpop.f32.mrb[52].mxu1  ;;  %v2473_v38 = vld [vmem:[%s2554_s3] ss:$0 sm:$0xff] }
 0x17d   :  { %1376 = vst.msk [vmem:[%s2555_s4 + $0xb0] sm:$0xff] %vm22_vm0, %v1312_v43  ;;  %v1313_v52 = vmax.f32 %v1249_v45, 0.0  ;;  %v978_v54 = vadd.f32 %v801_v48, %v113_v41  ;;  %v1010_v55 = vadd.f32 %v929_v49, %v145_v42  ;;  %v803_v56 = vpop.f32.mrb[53].mxu0  ;;  %v931_v57 = vpop.f32.mrb[53].mxu1  ;;  %v117_v43 = vld [vmem:[#allocation2 + $0xf0] sm:$0xff] }
 0x17e   :  { %1408 = vst.msk [vmem:[%s2555_s4 + $0x1b0] sm:$0xff] %vm22_vm0, %v1344_v44  ;;  %v1345_v53 = vmax.f32 %v1281_v47, 0.0  ;;  %v1108_v58 = vld [vmem:[#allocation2 + $0xc0] sm:$0xff]  ;;  %v804_v60 = vpop.f32.mrb[54].mxu0  ;;  %v932_v61 = vpop.f32.mrb[54].mxu1  ;;  %v149_v44 = vld [vmem:[#allocation2 + $0x1f0] sm:$0xff] }
 0x17f   :  { %v1140_v59 = vld [vmem:[#allocation2 + $0x1c0] sm:$0xff]  ;;  %1377 = vst.msk [vmem:[%s2555_s4 + $0xb8] sm:$0xff] %vm22_vm0, %v1313_v52  ;;  %v1179_v62 = vmul.f32 %v2090_v36, %v1108_v58  ;;  %1043 = vst.msk [vmem:[#allocation2 + $0xd0] sm:$0xff] %vm22_vm0, %v978_v54  ;;  %v979_v0 = vadd.f32 %v804_v60, %v114_v50  ;;  %v1011_v1 = vadd.f32 %v932_v61, %v146_v51  ;;  %v806_v2 = vpop.f32.mrb[55].mxu0  ;;  %v934_v3 = vpop.f32.mrb[55].mxu1  ;;  %v118_v52 = vld [vmem:[#allocation2 + $0xf8] sm:$0xff] }
 0x180   :  { %1409 = vst.msk [vmem:[%s2555_s4 + $0x1b8] sm:$0xff] %vm22_vm0, %v1345_v53  ;;  %v1211_v63 = vmul.f32 %v2090_v36, %v1140_v59  ;;  %1075 = vst.msk [vmem:[#allocation2 + $0x1d0] sm:$0xff] %vm22_vm0, %v1010_v55  ;;  %v1109_v4 = vld [vmem:[#allocation2 + $0xc8] sm:$0xff]  ;;  %v150_v53 = vld [vmem:[#allocation2 + $0x1f8] sm:$0xff] }
 0x181   :  { %v1141_v5 = vld [vmem:[#allocation2 + $0x1c8] sm:$0xff]  ;;  %v1250_v6 = vadd.f32 %v2095_v46, %v1179_v62  ;;  %v1180_v8 = vmul.f32 %v2090_v36, %v1109_v4  ;;  %1044 = vst.msk [vmem:[#allocation2 + $0xd8] sm:$0xff] %vm22_vm0, %v979_v0  ;;  %1076 = vst.msk [vmem:[#allocation2 + $0x1d8] sm:$0xff] %vm22_vm0, %v1011_v1 }
 0x182   :  { %v1282_v7 = vadd.f32 %v2095_v46, %v1211_v63  ;;  %v1212_v9 = vmul.f32 %v2090_v36, %v1141_v5 }
 0x183   :  { %v1314_v12 = vmax.f32 %v1250_v6, 0.0  ;;  %v1251_v14 = vadd.f32 %v2095_v46, %v1180_v8 }
 0x184   :  { %v1346_v13 = vmax.f32 %v1282_v7, 0.0  ;;  %v1283_v15 = vadd.f32 %v2095_v46, %v1212_v9  ;;  %v809_v16 = vpop.f32.mrb[56].mxu0  ;;  %v937_v17 = vpop.f32.mrb[56].mxu1 }
 0x185   :  { %1378 = vst.msk [vmem:[%s2555_s4 + $0xc0] sm:$0xff] %vm22_vm0, %v1314_v12  ;;  %v1315_v36 = vmax.f32 %v1251_v14, 0.0  ;;  %v980_v21 = vadd.f32 %v809_v16, %v115_v10  ;;  %v1012_v22 = vadd.f32 %v937_v17, %v147_v11  ;;  %v811_v23 = vpop.f32.mrb[57].mxu0  ;;  %v939_v46 = vpop.f32.mrb[57].mxu1 }
 0x186   :  { %1410 = vst.msk [vmem:[%s2555_s4 + $0x1c0] sm:$0xff] %vm22_vm0, %v1346_v13  ;;  %v1347_v20 = vmax.f32 %v1283_v15, 0.0  ;;  %v1110_v24 = vld [vmem:[#allocation2 + $0xd0] sm:$0xff]  ;;  %v812_v26 = vpop.f32.mrb[58].mxu0  ;;  %v940_v27 = vpop.f32.mrb[58].mxu1 }
 0x187   :  { %v1142_v25 = vld [vmem:[#allocation2 + $0x1d0] sm:$0xff]  ;;  %1379 = vst.msk [vmem:[%s2555_s4 + $0xc8] sm:$0xff] %vm22_vm0, %v1315_v36  ;;  %v1181_v29 = vmul.f32 %v2464_v28, %v1110_v24  ;;  %1045 = vst.msk [vmem:[#allocation2 + $0xe0] sm:$0xff] %vm22_vm0, %v980_v21  ;;  %v981_v31 = vadd.f32 %v812_v26, %v116_v18  ;;  %v1013_v32 = vadd.f32 %v940_v27, %v148_v19  ;;  %v814_v33 = vpop.f32.mrb[59].mxu0  ;;  %v942_v34 = vpop.f32.mrb[59].mxu1 }
 0x188   :  { %1411 = vst.msk [vmem:[%s2555_s4 + $0x1c8] sm:$0xff] %vm22_vm0, %v1347_v20  ;;  %v1213_v30 = vmul.f32 %v2464_v28, %v1142_v25  ;;  %1077 = vst.msk [vmem:[#allocation2 + $0x1e0] sm:$0xff] %vm22_vm0, %v1012_v22  ;;  %v1111_v35 = vld [vmem:[#allocation2 + $0xd8] sm:$0xff] }
 0x189   :  { %v1143_v37 = vld [vmem:[#allocation2 + $0x1d8] sm:$0xff]  ;;  %v1252_v39 = vadd.f32 %v2473_v38, %v1181_v29  ;;  %v1182_v41 = vmul.f32 %v2464_v28, %v1111_v35  ;;  %1046 = vst.msk [vmem:[#allocation2 + $0xe8] sm:$0xff] %vm22_vm0, %v981_v31  ;;  %1078 = vst.msk [vmem:[#allocation2 + $0x1e8] sm:$0xff] %vm22_vm0, %v1013_v32 }
 0x18a   :  { %v1284_v40 = vadd.f32 %v2473_v38, %v1213_v30  ;;  %v1214_v42 = vmul.f32 %v2464_v28, %v1143_v37 }
 0x18b   :  { %v1316_v45 = vmax.f32 %v1252_v39, 0.0  ;;  %v1253_v48 = vadd.f32 %v2473_v38, %v1182_v41 }
 0x18c   :  { %v1348_v47 = vmax.f32 %v1284_v40, 0.0  ;;  %v1285_v49 = vadd.f32 %v2473_v38, %v1214_v42  ;;  %v817_v50 = vpop.f32.mrb[60].mxu0  ;;  %v945_v51 = vpop.f32.mrb[60].mxu1 }
 0x18d   :  { %1380 = vst.msk [vmem:[%s2555_s4 + $0xd0] sm:$0xff] %vm22_vm0, %v1316_v45  ;;  %v1317_v54 = vmax.f32 %v1253_v48, 0.0  ;;  %v982_v56 = vadd.f32 %v817_v50, %v117_v43  ;;  %v1014_v57 = vadd.f32 %v945_v51, %v149_v44  ;;  %v819_v58 = vpop.f32.mrb[61].mxu0  ;;  %v947_v59 = vpop.f32.mrb[61].mxu1 }
 0x18e   :  { %1412 = vst.msk [vmem:[%s2555_s4 + $0x1d0] sm:$0xff] %vm22_vm0, %v1348_v47  ;;  %v1349_v55 = vmax.f32 %v1285_v49, 0.0  ;;  %v1112_v60 = vld [vmem:[#allocation2 + $0xe0] sm:$0xff]  ;;  %v820_v62 = vpop.f32.mrb[62].mxu0  ;;  %v948_v63 = vpop.f32.mrb[62].mxu1 }
 0x18f   :  { %v1144_v61 = vld [vmem:[#allocation2 + $0x1e0] sm:$0xff]  ;;  %1381 = vst.msk [vmem:[%s2555_s4 + $0xd8] sm:$0xff] %vm22_vm0, %v1317_v54  ;;  %v1183_v0 = vmul.f32 %v2464_v28, %v1112_v60  ;;  %1047 = vst.msk [vmem:[#allocation2 + $0xf0] sm:$0xff] %vm22_vm0, %v982_v56  ;;  %v983_v2 = vadd.f32 %v820_v62, %v118_v52  ;;  %v1015_v3 = vadd.f32 %v948_v63, %v150_v53  ;;  %v822_v4 = vpop.f32.mrb[63].mxu0  ;;  %v950_v5 = vpop.f32.mrb[63].mxu1 }
 0x190   :  { %1413 = vst.msk [vmem:[%s2555_s4 + $0x1d8] sm:$0xff] %vm22_vm0, %v1349_v55  ;;  %v1215_v1 = vmul.f32 %v2464_v28, %v1144_v61  ;;  %1079 = vst.msk [vmem:[#allocation2 + $0x1f0] sm:$0xff] %vm22_vm0, %v1014_v57  ;;  %v1113_v6 = vld [vmem:[#allocation2 + $0xe8] sm:$0xff] }
 0x191   :  { %v1145_v7 = vld [vmem:[#allocation2 + $0x1e8] sm:$0xff]  ;;  %v1254_v8 = vadd.f32 %v2473_v38, %v1183_v0  ;;  %v1184_v10 = vmul.f32 %v2464_v28, %v1113_v6  ;;  %1048 = vst.msk [vmem:[#allocation2 + $0xf8] sm:$0xff] %vm22_vm0, %v983_v2  ;;  %1080 = vst.msk [vmem:[#allocation2 + $0x1f8] sm:$0xff] %vm22_vm0, %v1015_v3 }
 0x192   :  { %v1286_v9 = vadd.f32 %v2473_v38, %v1215_v1  ;;  %v1216_v11 = vmul.f32 %v2464_v28, %v1145_v7 }
 0x193   :  { %v1318_v12 = vmax.f32 %v1254_v8, 0.0  ;;  %v1255_v14 = vadd.f32 %v2473_v38, %v1184_v10 }
 0x194   :  { %v1350_v13 = vmax.f32 %v1286_v9, 0.0  ;;  %v1287_v15 = vadd.f32 %v2473_v38, %v1216_v11 }
 0x195   :  { %1382 = vst.msk [vmem:[%s2555_s4 + $0xe0] sm:$0xff] %vm22_vm0, %v1318_v12  ;;  %v1319_v16 = vmax.f32 %v1255_v14, 0.0 }
 0x196   :  { %1414 = vst.msk [vmem:[%s2555_s4 + $0x1e0] sm:$0xff] %vm22_vm0, %v1350_v13  ;;  %v1351_v17 = vmax.f32 %v1287_v15, 0.0  ;;  %v1114_v18 = vld [vmem:[#allocation2 + $0xf0] sm:$0xff] }
 0x197   :  { %v1146_v19 = vld [vmem:[#allocation2 + $0x1f0] sm:$0xff]  ;;  %1383 = vst.msk [vmem:[%s2555_s4 + $0xe8] sm:$0xff] %vm22_vm0, %v1319_v16  ;;  %v1185_v36 = vmul.f32 %v2464_v28, %v1114_v18 }
 0x198   :  { %1415 = vst.msk [vmem:[%s2555_s4 + $0x1e8] sm:$0xff] %vm22_vm0, %v1351_v17  ;;  %v1217_v20 = vmul.f32 %v2464_v28, %v1146_v19  ;;  %v1115_v21 = vld [vmem:[#allocation2 + $0xf8] sm:$0xff] }
 0x199   :  { %v1147_v22 = vld [vmem:[#allocation2 + $0x1f8] sm:$0xff]  ;;  %v1256_v23 = vadd.f32 %v2473_v38, %v1185_v36  ;;  %v1186_v24 = vmul.f32 %v2464_v28, %v1115_v21 }
 0x19a   :  { %v1288_v46 = vadd.f32 %v2473_v38, %v1217_v20  ;;  %v1218_v25 = vmul.f32 %v2464_v28, %v1147_v22 }
 0x19b   :  { %v1320_v26 = vmax.f32 %v1256_v23, 0.0  ;;  %v1257_v29 = vadd.f32 %v2473_v38, %v1186_v24 }
 0x19c   :  { %v1352_v27 = vmax.f32 %v1288_v46, 0.0  ;;  %v1289_v30 = vadd.f32 %v2473_v38, %v1218_v25 }
 0x19d   :  { %1384 = vst.msk [vmem:[%s2555_s4 + $0xf0] sm:$0xff] %vm22_vm0, %v1320_v26  ;;  %v1321_v31 = vmax.f32 %v1257_v29, 0.0 }
 0x19e   :  { %1416 = vst.msk [vmem:[%s2555_s4 + $0x1f0] sm:$0xff] %vm22_vm0, %v1352_v27  ;;  %v1353_v32 = vmax.f32 %v1289_v30, 0.0 }
 0x19f   :  { %1385 = vst.msk [vmem:[%s2555_s4 + $0xf8] sm:$0xff] %vm22_vm0, %v1321_v31 }
 0x1a0   :  { %1417 = vst.msk [vmem:[%s2555_s4 + $0x1f8] sm:$0xff] %vm22_vm0, %v1353_v32 }

// kernel: resnet34_forward.40
= control target key start
LH: loop header
LB: loop body
LE: loop exit
PB: predicated region body
PF: predicated region fallthrough
CT: control target
= control target key end

     0   :  { %vm152_vm0 = vcmask 523264   ;;  %s1095_s0 = inlined_call_operand.vmem [shape: f32[9,128,64], index: 0, kind: input, shape index: {}]   ;;  %s1096_s1 = inlined_call_operand.vmem [shape: f32[128,64], index: 1, kind: output, shape index: {}]  }
   0x1   :  { %v8_v0 = vld [vmem:[%s1095_s0] sm:$0xff]  ;;  %v9_v13 = vld [vmem:[%s1095_s0 + $0x8] sm:$0xff]  ;;  %v10_v32 = vld [vmem:[%s1095_s0 + $0x10] sm:$0xff] }
   0x2   :  { %v24_v1 = vld [vmem:[%s1095_s0 + $0x80] sm:$0xff]  ;;  %v153_v5 = vsel %vm152_vm0, %v8_v0, -inf  ;;  %v25_v14 = vld [vmem:[%s1095_s0 + $0x88] sm:$0xff]  ;;  %v170_v19 = vsel %vm152_vm0, %v9_v13, -inf  ;;  %v26_v33 = vld [vmem:[%s1095_s0 + $0x90] sm:$0xff]  ;;  %v187_v38 = vsel %vm152_vm0, %v10_v32, -inf }
   0x3   :  { %v40_v2 = vld [vmem:[%s1095_s0 + $0x100] sm:$0xff]  ;;  %v154_v6 = vsel %vm152_vm0, %v24_v1, -inf  ;;  %v41_v15 = vld [vmem:[%s1095_s0 + $0x108] sm:$0xff]  ;;  %v171_v20 = vsel %vm152_vm0, %v25_v14, -inf  ;;  %v42_v34 = vld [vmem:[%s1095_s0 + $0x110] sm:$0xff]  ;;  %v188_v39 = vsel %vm152_vm0, %v26_v33, -inf }
   0x4   :  { %v56_v3 = vld [vmem:[%s1095_s0 + $0x180] sm:$0xff]  ;;  %v156_v7 = vsel %vm152_vm0, %v40_v2, -inf  ;;  %v155_v11 = vmax.f32 %v153_v5, %v154_v6  ;;  %v57_v18 = vld [vmem:[%s1095_s0 + $0x188] sm:$0xff]  ;;  %v173_v21 = vsel %vm152_vm0, %v41_v15, -inf  ;;  %v172_v27 = vmax.f32 %v170_v19, %v171_v20  ;;  %v58_v37 = vld [vmem:[%s1095_s0 + $0x190] sm:$0xff] }
   0x5   :  { %v72_v4 = vld [vmem:[%s1095_s0 + $0x200] sm:$0xff]  ;;  %v158_v12 = vsel %vm152_vm0, %v56_v3, -inf  ;;  %v73_v24 = vld [vmem:[%s1095_s0 + $0x208] sm:$0xff]  ;;  %v175_v31 = vsel %vm152_vm0, %v57_v18, -inf  ;;  %v190_v40 = vsel %vm152_vm0, %v42_v34, -inf  ;;  %v74_v45 = vld [vmem:[%s1095_s0 + $0x210] sm:$0xff]  ;;  %v189_v46 = vmax.f32 %v187_v38, %v188_v39 }
   0x6   :  { %v88_v8 = vld [vmem:[%s1095_s0 + $0x280] sm:$0xff]  ;;  %v157_v17 = vmax.f32 %v155_v11, %v156_v7  ;;  %v160_v22 = vsel %vm152_vm0, %v72_v4, -inf  ;;  %v89_v25 = vld [vmem:[%s1095_s0 + $0x288] sm:$0xff]  ;;  %v174_v36 = vmax.f32 %v172_v27, %v173_v21  ;;  %v177_v44 = vsel %vm152_vm0, %v73_v24, -inf  ;;  %v11_v51 = vld [vmem:[%s1095_s0 + $0x18] sm:$0xff] }
   0x7   :  { %v104_v9 = vld [vmem:[%s1095_s0 + $0x300] sm:$0xff]  ;;  %v162_v23 = vsel %vm152_vm0, %v88_v8, -inf  ;;  %v105_v26 = vld [vmem:[%s1095_s0 + $0x308] sm:$0xff]  ;;  %v179_v48 = vsel %vm152_vm0, %v89_v25, -inf  ;;  %v192_v50 = vsel %vm152_vm0, %v58_v37, -inf  ;;  %v27_v52 = vld [vmem:[%s1095_s0 + $0x98] sm:$0xff]  ;;  %v191_v58 = vmax.f32 %v189_v46, %v190_v40 }
   0x8   :  { %v120_v10 = vld [vmem:[%s1095_s0 + $0x380] sm:$0xff]  ;;  %v159_v28 = vmax.f32 %v157_v17, %v158_v12  ;;  %v164_v29 = vsel %vm152_vm0, %v104_v9, -inf  ;;  %v121_v35 = vld [vmem:[%s1095_s0 + $0x388] sm:$0xff]  ;;  %v176_v47 = vmax.f32 %v174_v36, %v175_v31  ;;  %v181_v49 = vsel %vm152_vm0, %v105_v26, -inf  ;;  %v43_v53 = vld [vmem:[%s1095_s0 + $0x118] sm:$0xff] }
   0x9   :  { %v136_v16 = vld [vmem:[%s1095_s0 + $0x400] sm:$0xff]  ;;  %v166_v30 = vsel %vm152_vm0, %v120_v10, -inf  ;;  %v137_v43 = vld [vmem:[%s1095_s0 + $0x408] sm:$0xff]  ;;  %v183_v55 = vsel %vm152_vm0, %v121_v35, -inf  ;;  %v90_v56 = vld [vmem:[%s1095_s0 + $0x290] sm:$0xff]  ;;  %v204_v60 = vsel %vm152_vm0, %v11_v51, -inf  ;;  %v193_v4 = vmax.f32 %v191_v58, %v192_v50 }
   0xa   :  { %v161_v41 = vmax.f32 %v159_v28, %v160_v22  ;;  %v168_v42 = vsel %vm152_vm0, %v136_v16, -inf  ;;  %v106_v57 = vld [vmem:[%s1095_s0 + $0x310] sm:$0xff]  ;;  %v59_v59 = vld [vmem:[%s1095_s0 + $0x198] sm:$0xff]  ;;  %v178_v61 = vmax.f32 %v176_v47, %v177_v44  ;;  %v194_v62 = vsel %vm152_vm0, %v74_v45, -inf  ;;  %v12_v6 = vld [vmem:[%s1095_s0 + $0x20] sm:$0xff] }
   0xb   :  { %v75_v63 = vld [vmem:[%s1095_s0 + $0x218] sm:$0xff]  ;;  %v205_v0 = vsel %vm152_vm0, %v27_v52, -inf  ;;  %v207_v1 = vsel %vm152_vm0, %v43_v53, -inf  ;;  %v185_v3 = vsel %vm152_vm0, %v137_v43, -inf  ;;  %v28_v7 = vld [vmem:[%s1095_s0 + $0xa0] sm:$0xff]  ;;  %v196_v10 = vsel %vm152_vm0, %v90_v56, -inf }
   0xc   :  { %v163_v54 = vmax.f32 %v161_v41, %v162_v23  ;;  %v206_v5 = vmax.f32 %v204_v60, %v205_v0  ;;  %v44_v8 = vld [vmem:[%s1095_s0 + $0x120] sm:$0xff]  ;;  %v180_v9 = vmax.f32 %v178_v61, %v179_v48  ;;  %v198_v11 = vsel %vm152_vm0, %v106_v57, -inf  ;;  %v122_v14 = vld [vmem:[%s1095_s0 + $0x390] sm:$0xff]  ;;  %v91_v16 = vld [vmem:[%s1095_s0 + $0x298] sm:$0xff] }
   0xd   :  { %v209_v12 = vsel %vm152_vm0, %v59_v59, -inf  ;;  %v195_v15 = vmax.f32 %v193_v4, %v194_v62  ;;  %v211_v18 = vsel %vm152_vm0, %v75_v63, -inf  ;;  %v60_v19 = vld [vmem:[%s1095_s0 + $0x1a0] sm:$0xff]  ;;  %v138_v21 = vld [vmem:[%s1095_s0 + $0x410] sm:$0xff]  ;;  %v221_v22 = vsel %vm152_vm0, %v12_v6, -inf  ;;  %v107_v27 = vld [vmem:[%s1095_s0 + $0x318] sm:$0xff] }
   0xe   :  { %v165_v2 = vmax.f32 %v163_v54, %v164_v29  ;;  %v208_v17 = vmax.f32 %v206_v5, %v207_v1  ;;  %v182_v20 = vmax.f32 %v180_v9, %v181_v49  ;;  %v222_v23 = vsel %vm152_vm0, %v28_v7, -inf  ;;  %v76_v29 = vld [vmem:[%s1095_s0 + $0x220] sm:$0xff]  ;;  %v13_v31 = vld [vmem:[%s1095_s0 + $0x28] sm:$0xff]  ;;  %v123_v39 = vld [vmem:[%s1095_s0 + $0x398] sm:$0xff] }
   0xf   :  { %v224_v24 = vsel %vm152_vm0, %v44_v8, -inf  ;;  %v197_v26 = vmax.f32 %v195_v15, %v196_v10  ;;  %v200_v33 = vsel %vm152_vm0, %v122_v14, -inf  ;;  %v213_v34 = vsel %vm152_vm0, %v91_v16, -inf  ;;  %v29_v36 = vld [vmem:[%s1095_s0 + $0xa8] sm:$0xff]  ;;  %v92_v41 = vld [vmem:[%s1095_s0 + $0x2a0] sm:$0xff]  ;;  %v139_v50 = vld [vmem:[%s1095_s0 + $0x418] sm:$0xff] }
  0x10   :  { %v167_v13 = vmax.f32 %v165_v2, %v166_v30  ;;  %v210_v28 = vmax.f32 %v208_v17, %v209_v12  ;;  %v223_v30 = vmax.f32 %v221_v22, %v222_v23  ;;  %v184_v32 = vmax.f32 %v182_v20, %v183_v55  ;;  %v45_v43 = vld [vmem:[%s1095_s0 + $0x128] sm:$0xff]  ;;  %v108_v52 = vld [vmem:[%s1095_s0 + $0x320] sm:$0xff]  ;;  %v14_v60 = vld [vmem:[%s1095_s0 + $0x30] sm:$0xff] }
  0x11   :  { %v226_v35 = vsel %vm152_vm0, %v60_v19, -inf  ;;  %v199_v37 = vmax.f32 %v197_v26, %v198_v11  ;;  %v202_v38 = vsel %vm152_vm0, %v138_v21, -inf  ;;  %v215_v45 = vsel %vm152_vm0, %v107_v27, -inf  ;;  %v61_v47 = vld [vmem:[%s1095_s0 + $0x1a8] sm:$0xff]  ;;  %v30_v61 = vld [vmem:[%s1095_s0 + $0xb0] sm:$0xff]  ;;  %v124_v0 = vld [vmem:[%s1095_s0 + $0x3a0] sm:$0xff] }
  0x12   :  { %v169_v25 = vmax.f32 %v167_v13, %v168_v42  ;;  %v212_v40 = vmax.f32 %v210_v28, %v211_v18  ;;  %v225_v42 = vmax.f32 %v223_v30, %v224_v24  ;;  %v186_v44 = vmax.f32 %v184_v32, %v185_v3  ;;  %v77_v54 = vld [vmem:[%s1095_s0 + $0x228] sm:$0xff]  ;;  %v46_v3 = vld [vmem:[%s1095_s0 + $0x130] sm:$0xff]  ;;  %v140_v11 = vld [vmem:[%s1095_s0 + $0x420] sm:$0xff] }
  0x13   :  { %v228_v46 = vsel %vm152_vm0, %v76_v29, -inf  ;;  %v238_v48 = vsel %vm152_vm0, %v13_v31, -inf  ;;  %v201_v49 = vmax.f32 %v199_v37, %v200_v33  ;;  %v239_v55 = vsel %vm152_vm0, %v29_v36, -inf  ;;  %v93_v6 = vld [vmem:[%s1095_s0 + $0x2a8] sm:$0xff]  ;;  %v62_v9 = vld [vmem:[%s1095_s0 + $0x1b0] sm:$0xff]  ;;  %v15_v21 = vld [vmem:[%s1095_s0 + $0x38] sm:$0xff] }
  0x14   :  { %425 = vst.msk [vmem:[%s1096_s1] sm:$0xff] %vm152_vm0, %v169_v25  ;;  %v214_v51 = vmax.f32 %v212_v40, %v213_v34  ;;  %v227_v53 = vmax.f32 %v225_v42, %v226_v35  ;;  %426 = vst.msk [vmem:[%s1096_s1 + $0x8] sm:$0xff] %vm152_vm0, %v186_v44  ;;  %v217_v56 = vsel %vm152_vm0, %v123_v39, -inf  ;;  %v230_v57 = vsel %vm152_vm0, %v92_v41, -inf  ;;  %v109_v13 = vld [vmem:[%s1095_s0 + $0x328] sm:$0xff]  ;;  %v78_v18 = vld [vmem:[%s1095_s0 + $0x230] sm:$0xff] }
  0x15   :  { %v240_v58 = vmax.f32 %v238_v48, %v239_v55  ;;  %v241_v59 = vsel %vm152_vm0, %v45_v43, -inf  ;;  %v203_v62 = vmax.f32 %v201_v49, %v202_v38  ;;  %v243_v2 = vsel %vm152_vm0, %v61_v47, -inf  ;;  %v31_v22 = vld [vmem:[%s1095_s0 + $0xb8] sm:$0xff]  ;;  %v125_v29 = vld [vmem:[%s1095_s0 + $0x3a8] sm:$0xff]  ;;  %v94_v32 = vld [vmem:[%s1095_s0 + $0x2b0] sm:$0xff] }
  0x16   :  { %v216_v63 = vmax.f32 %v214_v51, %v215_v45  ;;  %v229_v1 = vmax.f32 %v227_v53, %v228_v46  ;;  %v219_v4 = vsel %vm152_vm0, %v139_v50, -inf  ;;  %v232_v5 = vsel %vm152_vm0, %v108_v52, -inf  ;;  %v47_v27 = vld [vmem:[%s1095_s0 + $0x138] sm:$0xff]  ;;  %v141_v36 = vld [vmem:[%s1095_s0 + $0x428] sm:$0xff]  ;;  %v110_v37 = vld [vmem:[%s1095_s0 + $0x330] sm:$0xff] }
  0x17   :  { %v242_v7 = vmax.f32 %v240_v58, %v241_v59  ;;  %v245_v8 = vsel %vm152_vm0, %v77_v54, -inf  ;;  %427 = vst.msk [vmem:[%s1096_s1 + $0x10] sm:$0xff] %vm152_vm0, %v203_v62  ;;  %v255_v14 = vsel %vm152_vm0, %v14_v60, -inf  ;;  %v256_v15 = vsel %vm152_vm0, %v30_v61, -inf  ;;  %v63_v34 = vld [vmem:[%s1095_s0 + $0x1b8] sm:$0xff]  ;;  %v16_v46 = vld [vmem:[%s1095_s0 + $0x40] sm:$0xff] }
  0x18   :  { %v218_v10 = vmax.f32 %v216_v63, %v217_v56  ;;  %v231_v12 = vmax.f32 %v229_v1, %v230_v57  ;;  %v234_v16 = vsel %vm152_vm0, %v124_v0, -inf  ;;  %v257_v19 = vmax.f32 %v255_v14, %v256_v15  ;;  %v79_v43 = vld [vmem:[%s1095_s0 + $0x238] sm:$0xff]  ;;  %v32_v47 = vld [vmem:[%s1095_s0 + $0xc0] sm:$0xff]  ;;  %v126_v50 = vld [vmem:[%s1095_s0 + $0x3b0] sm:$0xff] }
  0x19   :  { %v244_v17 = vmax.f32 %v242_v7, %v243_v2  ;;  %v258_v20 = vsel %vm152_vm0, %v46_v3, -inf  ;;  %v247_v25 = vsel %vm152_vm0, %v93_v6, -inf  ;;  %v260_v26 = vsel %vm152_vm0, %v62_v9, -inf  ;;  %v95_v56 = vld [vmem:[%s1095_s0 + $0x2b8] sm:$0xff]  ;;  %v48_v58 = vld [vmem:[%s1095_s0 + $0x140] sm:$0xff]  ;;  %v142_v60 = vld [vmem:[%s1095_s0 + $0x430] sm:$0xff] }
  0x1a   :  { %v220_v23 = vmax.f32 %v218_v10, %v219_v4  ;;  %v233_v24 = vmax.f32 %v231_v12, %v232_v5  ;;  %v236_v28 = vsel %vm152_vm0, %v140_v11, -inf  ;;  %v249_v31 = vsel %vm152_vm0, %v109_v13, -inf  ;;  %v64_v59 = vld [vmem:[%s1095_s0 + $0x1c0] sm:$0xff]  ;;  %v111_v3 = vld [vmem:[%s1095_s0 + $0x338] sm:$0xff]  ;;  %v17_v7 = vld [vmem:[%s1095_s0 + $0x48] sm:$0xff] }
  0x1b   :  { %v246_v30 = vmax.f32 %v244_v17, %v245_v8  ;;  %v259_v33 = vmax.f32 %v257_v19, %v258_v20  ;;  %v262_v38 = vsel %vm152_vm0, %v78_v18, -inf  ;;  %v272_v39 = vsel %vm152_vm0, %v15_v21, -inf  ;;  %v80_v5 = vld [vmem:[%s1095_s0 + $0x240] sm:$0xff]  ;;  %v33_v12 = vld [vmem:[%s1095_s0 + $0xc8] sm:$0xff]  ;;  %v127_v15 = vld [vmem:[%s1095_s0 + $0x3b8] sm:$0xff] }
  0x1c   :  { %428 = vst.msk [vmem:[%s1096_s1 + $0x18] sm:$0xff] %vm152_vm0, %v220_v23  ;;  %v235_v35 = vmax.f32 %v233_v24, %v234_v16  ;;  %v273_v40 = vsel %vm152_vm0, %v31_v22, -inf  ;;  %v275_v45 = vsel %vm152_vm0, %v47_v27, -inf  ;;  %v251_v49 = vsel %vm152_vm0, %v125_v29, -inf  ;;  %v96_v17 = vld [vmem:[%s1095_s0 + $0x2c0] sm:$0xff]  ;;  %v49_v19 = vld [vmem:[%s1095_s0 + $0x148] sm:$0xff] }
  0x1d   :  { %v248_v41 = vmax.f32 %v246_v30, %v247_v25  ;;  %v261_v42 = vmax.f32 %v259_v33, %v260_v26  ;;  %v274_v44 = vmax.f32 %v272_v39, %v273_v40  ;;  %v264_v51 = vsel %vm152_vm0, %v94_v32, -inf  ;;  %v65_v23 = vld [vmem:[%s1095_s0 + $0x1c8] sm:$0xff]  ;;  %v143_v26 = vld [vmem:[%s1095_s0 + $0x438] sm:$0xff]  ;;  %v128_v40 = vld [vmem:[%s1095_s0 + $0x3c0] sm:$0xff] }
  0x1e   :  { %v237_v48 = vmax.f32 %v235_v35, %v236_v28  ;;  %v277_v52 = vsel %vm152_vm0, %v63_v34, -inf  ;;  %v253_v54 = vsel %vm152_vm0, %v141_v36, -inf  ;;  %v266_v61 = vsel %vm152_vm0, %v110_v37, -inf  ;;  %v112_v28 = vld [vmem:[%s1095_s0 + $0x340] sm:$0xff]  ;;  %v81_v30 = vld [vmem:[%s1095_s0 + $0x248] sm:$0xff]  ;;  %v18_v36 = vld [vmem:[%s1095_s0 + $0x50] sm:$0xff] }
  0x1f   :  { %v250_v53 = vmax.f32 %v248_v41, %v249_v31  ;;  %v263_v55 = vmax.f32 %v261_v42, %v262_v38  ;;  %v276_v57 = vmax.f32 %v274_v44, %v275_v45  ;;  %v279_v62 = vsel %vm152_vm0, %v79_v43, -inf  ;;  %v34_v37 = vld [vmem:[%s1095_s0 + $0xd0] sm:$0xff] }
  0x20   :  { %429 = vst.msk [vmem:[%s1096_s1 + $0x20] sm:$0xff] %vm152_vm0, %v237_v48  ;;  %v289_v63 = vsel %vm152_vm0, %v16_v46, -inf  ;;  %v290_v0 = vsel %vm152_vm0, %v32_v47, -inf  ;;  %v268_v8 = vsel %vm152_vm0, %v126_v50, -inf  ;;  %v281_v9 = vsel %vm152_vm0, %v95_v56, -inf  ;;  %v50_v43 = vld [vmem:[%s1095_s0 + $0x150] sm:$0xff] }
  0x21   :  { %v252_v1 = vmax.f32 %v250_v53, %v251_v49  ;;  %v265_v2 = vmax.f32 %v263_v55, %v264_v51  ;;  %v278_v4 = vmax.f32 %v276_v57, %v277_v52  ;;  %v291_v6 = vmax.f32 %v289_v63, %v290_v0  ;;  %v97_v46 = vld [vmem:[%s1095_s0 + $0x2c8] sm:$0xff]  ;;  %v66_v49 = vld [vmem:[%s1095_s0 + $0x1d0] sm:$0xff]  ;;  %v144_v51 = vld [vmem:[%s1095_s0 + $0x440] sm:$0xff] }
  0x22   :  { %v292_v10 = vsel %vm152_vm0, %v48_v58, -inf  ;;  %v294_v11 = vsel %vm152_vm0, %v64_v59, -inf  ;;  %v270_v20 = vsel %vm152_vm0, %v142_v60, -inf  ;;  %v283_v21 = vsel %vm152_vm0, %v111_v3, -inf  ;;  %v113_v53 = vld [vmem:[%s1095_s0 + $0x348] sm:$0xff]  ;;  %v82_v58 = vld [vmem:[%s1095_s0 + $0x250] sm:$0xff] }
  0x23   :  { %v254_v13 = vmax.f32 %v252_v1, %v253_v54  ;;  %v267_v14 = vmax.f32 %v265_v2, %v266_v61  ;;  %v280_v16 = vmax.f32 %v278_v4, %v279_v62  ;;  %v293_v18 = vmax.f32 %v291_v6, %v292_v10  ;;  %v19_v61 = vld [vmem:[%s1095_s0 + $0x58] sm:$0xff] }
  0x24   :  { %v296_v22 = vsel %vm152_vm0, %v80_v5, -inf  ;;  %v306_v24 = vsel %vm152_vm0, %v17_v7, -inf  ;;  %v307_v31 = vsel %vm152_vm0, %v33_v12, -inf  ;;  %v285_v32 = vsel %vm152_vm0, %v127_v15, -inf  ;;  %v35_v62 = vld [vmem:[%s1095_s0 + $0xd8] sm:$0xff]  ;;  %v129_v5 = vld [vmem:[%s1095_s0 + $0x3c8] sm:$0xff] }
  0x25   :  { %430 = vst.msk [vmem:[%s1096_s1 + $0x28] sm:$0xff] %vm152_vm0, %v254_v13  ;;  %v269_v25 = vmax.f32 %v267_v14, %v268_v8  ;;  %v282_v27 = vmax.f32 %v280_v16, %v281_v9  ;;  %v295_v29 = vmax.f32 %v293_v18, %v294_v11  ;;  %v298_v33 = vsel %vm152_vm0, %v96_v17, -inf  ;;  %v51_v3 = vld [vmem:[%s1095_s0 + $0x158] sm:$0xff]  ;;  %v98_v8 = vld [vmem:[%s1095_s0 + $0x2d0] sm:$0xff]  ;;  %v145_v12 = vld [vmem:[%s1095_s0 + $0x448] sm:$0xff] }
  0x26   :  { %v308_v34 = vmax.f32 %v306_v24, %v307_v31  ;;  %v309_v35 = vsel %vm152_vm0, %v49_v19, -inf  ;;  %v311_v42 = vsel %vm152_vm0, %v65_v23, -inf  ;;  %v287_v44 = vsel %vm152_vm0, %v143_v26, -inf  ;;  %v67_v10 = vld [vmem:[%s1095_s0 + $0x1d8] sm:$0xff]  ;;  %v114_v13 = vld [vmem:[%s1095_s0 + $0x350] sm:$0xff]  ;;  %v36_v23 = vld [vmem:[%s1095_s0 + $0xe0] sm:$0xff] }
  0x27   :  { %v271_v38 = vmax.f32 %v269_v25, %v270_v20  ;;  %v284_v39 = vmax.f32 %v282_v27, %v283_v21  ;;  %v297_v41 = vmax.f32 %v295_v29, %v296_v22  ;;  %v300_v45 = vsel %vm152_vm0, %v112_v28, -inf  ;;  %v83_v19 = vld [vmem:[%s1095_s0 + $0x258] sm:$0xff]  ;;  %v20_v22 = vld [vmem:[%s1095_s0 + $0x60] sm:$0xff]  ;;  %v130_v26 = vld [vmem:[%s1095_s0 + $0x3d0] sm:$0xff] }
  0x28   :  { %v310_v47 = vmax.f32 %v308_v34, %v309_v35  ;;  %v313_v48 = vsel %vm152_vm0, %v81_v30, -inf  ;;  %v323_v54 = vsel %vm152_vm0, %v18_v36, -inf  ;;  %v324_v55 = vsel %vm152_vm0, %v34_v37, -inf  ;;  %v52_v34 = vld [vmem:[%s1095_s0 + $0x160] sm:$0xff]  ;;  %v146_v36 = vld [vmem:[%s1095_s0 + $0x450] sm:$0xff] }
  0x29   :  { %431 = vst.msk [vmem:[%s1096_s1 + $0x30] sm:$0xff] %vm152_vm0, %v271_v38  ;;  %v286_v50 = vmax.f32 %v284_v39, %v285_v32  ;;  %v299_v52 = vmax.f32 %v297_v41, %v298_v33  ;;  %v302_v56 = vsel %vm152_vm0, %v128_v40, -inf  ;;  %v325_v59 = vmax.f32 %v323_v54, %v324_v55  ;;  %v99_v32 = vld [vmem:[%s1095_s0 + $0x2d8] sm:$0xff]  ;;  %v68_v35 = vld [vmem:[%s1095_s0 + $0x1e0] sm:$0xff] }
  0x2a   :  { %v312_v57 = vmax.f32 %v310_v47, %v311_v42  ;;  %v326_v60 = vsel %vm152_vm0, %v50_v43, -inf  ;;  %v315_v1 = vsel %vm152_vm0, %v97_v46, -inf  ;;  %v328_v2 = vsel %vm152_vm0, %v66_v49, -inf  ;;  %v115_v43 = vld [vmem:[%s1095_s0 + $0x358] sm:$0xff]  ;;  %v21_v47 = vld [vmem:[%s1095_s0 + $0x68] sm:$0xff] }
  0x2b   :  { %v288_v63 = vmax.f32 %v286_v50, %v287_v44  ;;  %v301_v0 = vmax.f32 %v299_v52, %v300_v45  ;;  %v304_v4 = vsel %vm152_vm0, %v144_v51, -inf  ;;  %v317_v7 = vsel %vm152_vm0, %v113_v53, -inf  ;;  %v84_v45 = vld [vmem:[%s1095_s0 + $0x260] sm:$0xff]  ;;  %v37_v52 = vld [vmem:[%s1095_s0 + $0xe8] sm:$0xff]  ;;  %v131_v55 = vld [vmem:[%s1095_s0 + $0x3d8] sm:$0xff] }
  0x2c   :  { %v314_v6 = vmax.f32 %v312_v57, %v313_v48  ;;  %v327_v9 = vmax.f32 %v325_v59, %v326_v60  ;;  %v330_v14 = vsel %vm152_vm0, %v82_v58, -inf  ;;  %v340_v15 = vsel %vm152_vm0, %v19_v61, -inf  ;;  %v100_v57 = vld [vmem:[%s1095_s0 + $0x2e0] sm:$0xff]  ;;  %v53_v59 = vld [vmem:[%s1095_s0 + $0x168] sm:$0xff] }
  0x2d   :  { %432 = vst.msk [vmem:[%s1096_s1 + $0x38] sm:$0xff] %vm152_vm0, %v288_v63  ;;  %v303_v11 = vmax.f32 %v301_v0, %v302_v56  ;;  %v341_v16 = vsel %vm152_vm0, %v35_v62, -inf  ;;  %v343_v21 = vsel %vm152_vm0, %v51_v3, -inf  ;;  %v319_v25 = vsel %vm152_vm0, %v129_v5, -inf  ;;  %v69_v63 = vld [vmem:[%s1095_s0 + $0x1e8] sm:$0xff] }
  0x2e   :  { %v316_v17 = vmax.f32 %v314_v6, %v315_v1  ;;  %v329_v18 = vmax.f32 %v327_v9, %v328_v2  ;;  %v342_v20 = vmax.f32 %v340_v15, %v341_v16  ;;  %v332_v27 = vsel %vm152_vm0, %v98_v8, -inf  ;;  %v147_v2 = vld [vmem:[%s1095_s0 + $0x458] sm:$0xff]  ;;  %v85_v6 = vld [vmem:[%s1095_s0 + $0x268] sm:$0xff]  ;;  %v132_v16 = vld [vmem:[%s1095_s0 + $0x3e0] sm:$0xff] }
  0x2f   :  { %v305_v24 = vmax.f32 %v303_v11, %v304_v4  ;;  %v345_v28 = vsel %vm152_vm0, %v67_v10, -inf  ;;  %v321_v30 = vsel %vm152_vm0, %v145_v12, -inf  ;;  %v334_v37 = vsel %vm152_vm0, %v114_v13, -inf  ;;  %v116_v4 = vld [vmem:[%s1095_s0 + $0x360] sm:$0xff]  ;;  %v22_v12 = vld [vmem:[%s1095_s0 + $0x70] sm:$0xff] }
  0x30   :  { %v318_v29 = vmax.f32 %v316_v17, %v317_v7  ;;  %v331_v31 = vmax.f32 %v329_v18, %v330_v14  ;;  %v344_v33 = vmax.f32 %v342_v20, %v343_v21  ;;  %v347_v38 = vsel %vm152_vm0, %v83_v19, -inf  ;;  %v38_v13 = vld [vmem:[%s1095_s0 + $0xf0] sm:$0xff] }
  0x31   :  { %433 = vst.msk [vmem:[%s1096_s1 + $0x40] sm:$0xff] %vm152_vm0, %v305_v24  ;;  %v357_v39 = vsel %vm152_vm0, %v20_v22, -inf  ;;  %v358_v40 = vsel %vm152_vm0, %v36_v23, -inf  ;;  %v336_v48 = vsel %vm152_vm0, %v130_v26, -inf  ;;  %v349_v49 = vsel %vm152_vm0, %v99_v32, -inf  ;;  %v54_v19 = vld [vmem:[%s1095_s0 + $0x170] sm:$0xff] }
  0x32   :  { %v320_v41 = vmax.f32 %v318_v29, %v319_v25  ;;  %v333_v42 = vmax.f32 %v331_v31, %v332_v27  ;;  %v346_v44 = vmax.f32 %v344_v33, %v345_v28  ;;  %v359_v46 = vmax.f32 %v357_v39, %v358_v40  ;;  %v101_v22 = vld [vmem:[%s1095_s0 + $0x2e8] sm:$0xff]  ;;  %v70_v25 = vld [vmem:[%s1095_s0 + $0x1f0] sm:$0xff]  ;;  %v148_v27 = vld [vmem:[%s1095_s0 + $0x460] sm:$0xff] }
  0x33   :  { %v360_v50 = vsel %vm152_vm0, %v52_v34, -inf  ;;  %v362_v51 = vsel %vm152_vm0, %v68_v35, -inf  ;;  %v338_v60 = vsel %vm152_vm0, %v146_v36, -inf  ;;  %v351_v61 = vsel %vm152_vm0, %v115_v43, -inf  ;;  %v117_v29 = vld [vmem:[%s1095_s0 + $0x368] sm:$0xff]  ;;  %v86_v34 = vld [vmem:[%s1095_s0 + $0x270] sm:$0xff] }
  0x34   :  { %v322_v53 = vmax.f32 %v320_v41, %v321_v30  ;;  %v335_v54 = vmax.f32 %v333_v42, %v334_v37  ;;  %v348_v56 = vmax.f32 %v346_v44, %v347_v38  ;;  %v361_v58 = vmax.f32 %v359_v46, %v360_v50  ;;  %v23_v37 = vld [vmem:[%s1095_s0 + $0x78] sm:$0xff] }
  0x35   :  { %v364_v62 = vsel %vm152_vm0, %v84_v45, -inf  ;;  %v374_v0 = vsel %vm152_vm0, %v21_v47, -inf  ;;  %v375_v7 = vsel %vm152_vm0, %v37_v52, -inf  ;;  %v353_v8 = vsel %vm152_vm0, %v131_v55, -inf  ;;  %v39_v38 = vld [vmem:[%s1095_s0 + $0xf8] sm:$0xff]  ;;  %v133_v45 = vld [vmem:[%s1095_s0 + $0x3e8] sm:$0xff] }
  0x36   :  { %434 = vst.msk [vmem:[%s1096_s1 + $0x48] sm:$0xff] %vm152_vm0, %v322_v53  ;;  %v337_v1 = vmax.f32 %v335_v54, %v336_v48  ;;  %v350_v3 = vmax.f32 %v348_v56, %v349_v49  ;;  %v363_v5 = vmax.f32 %v361_v58, %v362_v51  ;;  %v366_v9 = vsel %vm152_vm0, %v100_v57, -inf  ;;  %v55_v43 = vld [vmem:[%s1095_s0 + $0x178] sm:$0xff]  ;;  %v102_v48 = vld [vmem:[%s1095_s0 + $0x2f0] sm:$0xff]  ;;  %v149_v55 = vld [vmem:[%s1095_s0 + $0x468] sm:$0xff] }
  0x37   :  { %v376_v10 = vmax.f32 %v374_v0, %v375_v7  ;;  %v377_v11 = vsel %vm152_vm0, %v53_v59, -inf  ;;  %v379_v18 = vsel %vm152_vm0, %v69_v63, -inf  ;;  %v355_v20 = vsel %vm152_vm0, %v147_v2, -inf  ;;  %v71_v50 = vld [vmem:[%s1095_s0 + $0x1f8] sm:$0xff]  ;;  %v118_v57 = vld [vmem:[%s1095_s0 + $0x370] sm:$0xff] }
  0x38   :  { %v339_v14 = vmax.f32 %v337_v1, %v338_v60  ;;  %v352_v15 = vmax.f32 %v350_v3, %v351_v61  ;;  %v365_v17 = vmax.f32 %v363_v5, %v364_v62  ;;  %v368_v21 = vsel %vm152_vm0, %v116_v4, -inf  ;;  %v87_v59 = vld [vmem:[%s1095_s0 + $0x278] sm:$0xff]  ;;  %v134_v3 = vld [vmem:[%s1095_s0 + $0x3f0] sm:$0xff] }
  0x39   :  { %v378_v23 = vmax.f32 %v376_v10, %v377_v11  ;;  %v381_v24 = vsel %vm152_vm0, %v85_v6, -inf  ;;  %v391_v30 = vsel %vm152_vm0, %v22_v12, -inf  ;;  %v392_v31 = vsel %vm152_vm0, %v38_v13, -inf  ;;  %v103_v5 = vld [vmem:[%s1095_s0 + $0x2f8] sm:$0xff]  ;;  %v150_v11 = vld [vmem:[%s1095_s0 + $0x470] sm:$0xff] }
  0x3a   :  { %435 = vst.msk [vmem:[%s1096_s1 + $0x50] sm:$0xff] %vm152_vm0, %v339_v14  ;;  %v354_v26 = vmax.f32 %v352_v15, %v353_v8  ;;  %v367_v28 = vmax.f32 %v365_v17, %v366_v9  ;;  %v370_v32 = vsel %vm152_vm0, %v132_v16, -inf  ;;  %v393_v35 = vmax.f32 %v391_v30, %v392_v31  ;;  %v119_v13 = vld [vmem:[%s1095_s0 + $0x378] sm:$0xff] }
  0x3b   :  { %v380_v33 = vmax.f32 %v378_v23, %v379_v18  ;;  %v394_v36 = vsel %vm152_vm0, %v54_v19, -inf  ;;  %v383_v41 = vsel %vm152_vm0, %v101_v22, -inf  ;;  %v396_v42 = vsel %vm152_vm0, %v70_v25, -inf  ;;  %v135_v19 = vld [vmem:[%s1095_s0 + $0x3f8] sm:$0xff] }
  0x3c   :  { %v356_v39 = vmax.f32 %v354_v26, %v355_v20  ;;  %v369_v40 = vmax.f32 %v367_v28, %v368_v21  ;;  %v372_v44 = vsel %vm152_vm0, %v148_v27, -inf  ;;  %v385_v47 = vsel %vm152_vm0, %v117_v29, -inf }
  0x3d   :  { %v382_v46 = vmax.f32 %v380_v33, %v381_v24  ;;  %v395_v49 = vmax.f32 %v393_v35, %v394_v36  ;;  %v398_v52 = vsel %vm152_vm0, %v86_v34, -inf  ;;  %v408_v53 = vsel %vm152_vm0, %v23_v37, -inf  ;;  %v151_v24 = vld [vmem:[%s1095_s0 + $0x478] sm:$0xff] }
  0x3e   :  { %436 = vst.msk [vmem:[%s1096_s1 + $0x58] sm:$0xff] %vm152_vm0, %v356_v39  ;;  %v371_v51 = vmax.f32 %v369_v40, %v370_v32  ;;  %v409_v54 = vsel %vm152_vm0, %v39_v38, -inf  ;;  %v411_v61 = vsel %vm152_vm0, %v55_v43, -inf  ;;  %v387_v63 = vsel %vm152_vm0, %v133_v45, -inf }
  0x3f   :  { %v384_v56 = vmax.f32 %v382_v46, %v383_v41  ;;  %v397_v58 = vmax.f32 %v395_v49, %v396_v42  ;;  %v410_v60 = vmax.f32 %v408_v53, %v409_v54  ;;  %v400_v0 = vsel %vm152_vm0, %v102_v48, -inf }
  0x40   :  { %v373_v62 = vmax.f32 %v371_v51, %v372_v44  ;;  %v413_v1 = vsel %vm152_vm0, %v71_v50, -inf  ;;  %v389_v7 = vsel %vm152_vm0, %v149_v55, -inf  ;;  %v402_v8 = vsel %vm152_vm0, %v118_v57, -inf }
  0x41   :  { %v386_v2 = vmax.f32 %v384_v56, %v385_v47  ;;  %v399_v4 = vmax.f32 %v397_v58, %v398_v52  ;;  %v412_v6 = vmax.f32 %v410_v60, %v411_v61  ;;  %v415_v9 = vsel %vm152_vm0, %v87_v59, -inf }
  0x42   :  { %437 = vst.msk [vmem:[%s1096_s1 + $0x60] sm:$0xff] %vm152_vm0, %v373_v62  ;;  %v404_v15 = vsel %vm152_vm0, %v134_v3, -inf  ;;  %v417_v16 = vsel %vm152_vm0, %v103_v5, -inf  ;;  %v406_v21 = vsel %vm152_vm0, %v150_v11, -inf  ;;  %v419_v22 = vsel %vm152_vm0, %v119_v13, -inf }
  0x43   :  { %v388_v10 = vmax.f32 %v386_v2, %v387_v63  ;;  %v401_v12 = vmax.f32 %v399_v4, %v400_v0  ;;  %v414_v14 = vmax.f32 %v412_v6, %v413_v1  ;;  %v421_v26 = vsel %vm152_vm0, %v135_v19, -inf }
  0x44   :  { %v423_v29 = vsel %vm152_vm0, %v151_v24, -inf }
  0x45   :  { %v390_v17 = vmax.f32 %v388_v10, %v389_v7  ;;  %v403_v18 = vmax.f32 %v401_v12, %v402_v8  ;;  %v416_v20 = vmax.f32 %v414_v14, %v415_v9 }
  0x47   :  { %438 = vst.msk [vmem:[%s1096_s1 + $0x68] sm:$0xff] %vm152_vm0, %v390_v17  ;;  %v405_v23 = vmax.f32 %v403_v18, %v404_v15  ;;  %v418_v25 = vmax.f32 %v416_v20, %v417_v16 }
  0x49   :  { %v407_v27 = vmax.f32 %v405_v23, %v406_v21  ;;  %v420_v28 = vmax.f32 %v418_v25, %v419_v22 }
  0x4b   :  { %439 = vst.msk [vmem:[%s1096_s1 + $0x70] sm:$0xff] %vm152_vm0, %v407_v27  ;;  %v422_v30 = vmax.f32 %v420_v28, %v421_v26 }
  0x4d   :  { %v424_v31 = vmax.f32 %v422_v30, %v423_v29 }
  0x4f   :  { %440 = vst.msk [vmem:[%s1096_s1 + $0x78] sm:$0xff] %vm152_vm0, %v424_v31 }

// kernel: resnet34_forward.41
= control target key start
LH: loop header
LB: loop body
LE: loop exit
PB: predicated region body
PF: predicated region fallthrough
CT: control target
= control target key end

     0   :  { %s973_s15 = smov 0   ;;  %s975_s16 = smov 0   ;;  %s1156_s0 = inlined_call_operand.vmem [shape: bf16[9,128,64], index: 0, kind: input, shape index: {}]   ;;  %s1157_s1 = inlined_call_operand.vmem [shape: bf16[9,64,64], index: 1, kind: input, shape index: {}]   ;;  %s1158_s2 = inlined_call_operand.vmem [shape: f32[1,64], index: 2, kind: input, shape index: {}]   ;;  %s1159_s3 = inlined_call_operand.vmem [shape: f32[1,64], index: 3, kind: input, shape index: {}]   ;;  %s1160_s4 = inlined_call_operand.vmem [shape: f32[128,64], index: 4, kind: output, shape index: {}]  }
   0x1   :  { %s977_s17 = smov 0  }
   0x2 LB: > { %s26_s18 = sadd.s32 1, %s941_s16  ;;  %p807_p0 = scmp.ge.s32.totalorder %s945_s17, 1  ;;  %s945_s17 = sphi %s977_s17, %s14_s17   ;;  %s941_s16 = sphi %s975_s16, %s1162_s16   ;;  %s937_s15 = sphi %s973_s15, %s1161_s15  }
   0x3   : > { %p27_p1 = scmp.ge.s32.totalorder %s26_s18, 9  ;;  %p221_p2 = scmp.lt.s32.totalorder %s945_s17, 10 }
   0x5   : > { %s1164_s18 = smov (%p27_p1, %s26_s18), 0  ;;  %p222_p3 = pnand %p807_p0, %p221_p2 }
   0x6   : > { %p269_p4 = scmp.lt.s32.totalorder (!%p222_p3), %s937_s15, 8  ;;  %p812_p5 = scmp.ne.s32.totalorder (!%p222_p3), %s937_s15, 0 }
   0x7   : > { %225 = sbr.rel (%p222_p3) target bundleno = 282 (0x11a), region = 36 }
   0xe   : > { %s270_s19 = scalar_select %p269_p4, %s937_s15, 8 }
   0xf   : > { %305 = sbr.rel (%p812_p5) target bundleno = 24 (0x18), region = 40  ;;  %vm306_vm0 = vcmask (!%p812_p5), 523264   ;;  %v947_v0 = vmov (!%p812_p5), 0.0  }
  0x10   : > { %s840_s20 = sshll.u32 %s270_s19, 6  ;;  %s841_s21 = sshll.u32 %s270_s19, 5  ;;  %307 = vst.msk [vmem:[#allocation2] sm:$0xff] (!%p812_p5), %vm306_vm0, %v947_v0  ;;  %308 = vst.msk [vmem:[#allocation2 + $0x8] sm:$0xff] (!%p812_p5), %vm306_vm0, %v947_v0 }
  0x11   : > { %s998_s24 = scalar_lea.vmem %s1156_s0, %s840_s20  ;;  %s1003_s27 = scalar_lea.vmem %s1157_s1, %s841_s21  ;;  %309 = vst.msk [vmem:[#allocation2 + $0x10] sm:$0xff] (!%p812_p5), %vm306_vm0, %v947_v0  ;;  %310 = vst.msk [vmem:[#allocation2 + $0x18] sm:$0xff] (!%p812_p5), %vm306_vm0, %v947_v0 }
  0x12   : > { %311 = vst.msk [vmem:[#allocation2 + $0x20] sm:$0xff] (!%p812_p5), %vm306_vm0, %v947_v0  ;;  %312 = vst.msk [vmem:[#allocation2 + $0x28] sm:$0xff] (!%p812_p5), %vm306_vm0, %v947_v0 }
  0x13   : > { %313 = vst.msk [vmem:[#allocation2 + $0x30] sm:$0xff] (!%p812_p5), %vm306_vm0, %v947_v0  ;;  %314 = vst.msk [vmem:[#allocation2 + $0x38] sm:$0xff] (!%p812_p5), %vm306_vm0, %v947_v0 }
  0x14   : > { %315 = vst.msk [vmem:[#allocation2 + $0x40] sm:$0xff] (!%p812_p5), %vm306_vm0, %v947_v0  ;;  %316 = vst.msk [vmem:[#allocation2 + $0x48] sm:$0xff] (!%p812_p5), %vm306_vm0, %v947_v0 }
  0x15   : > { %317 = vst.msk [vmem:[#allocation2 + $0x50] sm:$0xff] (!%p812_p5), %vm306_vm0, %v947_v0  ;;  %318 = vst.msk [vmem:[#allocation2 + $0x58] sm:$0xff] (!%p812_p5), %vm306_vm0, %v947_v0 }
  0x16   : > { %319 = vst.msk [vmem:[#allocation2 + $0x60] sm:$0xff] %vm306_vm0, %v947_v0  ;;  %320 = vst.msk [vmem:[#allocation2 + $0x68] sm:$0xff] %vm306_vm0, %v947_v0 }
  0x17   : > { %321 = vst.msk [vmem:[#allocation2 + $0x70] sm:$0xff] %vm306_vm0, %v947_v0  ;;  %322 = vst.msk [vmem:[#allocation2 + $0x78] sm:$0xff] %vm306_vm0, %v947_v0 }
  0x18 PF: > { %v911_v1 = vld [vmem:[%s1003_s27] sm:$0xff]   ;;  %v912_v2 = vld [vmem:[%s1003_s27 + $0x8] sm:$0xff]   ;;  %v913_v3 = vld [vmem:[%s1003_s27 + $0x10] sm:$0xff]   ;;  %vm427_vm1 = vcmask 523264   ;;  %p833_p6 = scmp.ne.s32.totalorder %s937_s15, 8 }
  0x19   : > { %854 = vmatprep.subr.bf16.mxu0 %v911_v1  ;;  %878 = vmatprep.subr.bf16.mxu1 %v911_v1  ;;  %v915_v4 = vld [vmem:[%s998_s24] sm:$0xff]   ;;  %v914_v6 = vld [vmem:[%s1003_s27 + $0x18] sm:$0xff]   ;;  %v917_v7 = vld [vmem:[%s998_s24 + $0x8] sm:$0xff]  }
  0x1a   : > { %855 = vmatpush3.bf16.msra.mxu0 %v911_v1  ;;  %882 = vmatpush3.bf16.msra.mxu1 %v911_v1  ;;  %v916_v5 = vld [vmem:[%s998_s24 + $0x20] sm:$0xff]   ;;  %v918_v8 = vld [vmem:[%s998_s24 + $0x28] sm:$0xff]   ;;  %v919_v9 = vld [vmem:[%s998_s24 + $0x10] sm:$0xff]  }
  0x1b   : > { %856 = vmatprep.subr.bf16.mxu0 %v912_v2  ;;  %879 = vmatprep.subr.bf16.mxu1 %v912_v2  ;;  %v920_v10 = vld [vmem:[%s998_s24 + $0x30] sm:$0xff]   ;;  %v921_v11 = vld [vmem:[%s998_s24 + $0x18] sm:$0xff]   ;;  %v323_v15 = vld [vmem:[#allocation2] sm:$0xff] }
  0x1c   : > { %862 = vmatprep.mubr.msk.bf16.mxu0 %vm427_vm1, %v915_v4  ;;  %870 = vmatprep.mubr.msk.bf16.mxu1 %vm427_vm1, %v916_v5  ;;  %v922_v12 = vld [vmem:[%s998_s24 + $0x38] sm:$0xff]   ;;  %v325_v13 = vld [vmem:[#allocation2 + $0x10] sm:$0xff]  ;;  %v324_v25 = vld [vmem:[#allocation2 + $0x8] sm:$0xff] }
  0x1d   : > { %v331_v16 = vld [vmem:[#allocation2 + $0x40] sm:$0xff]  ;;  %v326_v19 = vld [vmem:[#allocation2 + $0x18] sm:$0xff]  ;;  %v332_v26 = vld [vmem:[#allocation2 + $0x48] sm:$0xff] }
  0x1e   : > { %857 = vmatpush3.bf16.msra.mxu0 %v912_v2  ;;  %883 = vmatpush3.bf16.msra.mxu1 %v912_v2  ;;  %v333_v14 = vld [vmem:[#allocation2 + $0x50] sm:$0xff]  ;;  %v334_v20 = vld [vmem:[#allocation2 + $0x58] sm:$0xff]  ;;  %v327_v39 = vld [vmem:[#allocation2 + $0x20] sm:$0xff] }
  0x1f   : > { %858 = vmatprep.subr.bf16.mxu0 %v913_v3  ;;  %880 = vmatprep.subr.bf16.mxu1 %v913_v3  ;;  %v329_v37 = vld [vmem:[#allocation2 + $0x30] sm:$0xff]  ;;  %v335_v40 = vld [vmem:[#allocation2 + $0x60] sm:$0xff]  ;;  %v330_v43 = vld [vmem:[#allocation2 + $0x38] sm:$0xff] }
  0x20   : > { %v337_v38 = vld [vmem:[#allocation2 + $0x70] sm:$0xff]  ;;  %v338_v44 = vld [vmem:[#allocation2 + $0x78] sm:$0xff]  ;;  %v328_v49 = vld [vmem:[#allocation2 + $0x28] sm:$0xff] }
  0x21   : > { %v336_v50 = vld [vmem:[#allocation2 + $0x68] sm:$0xff]  ;;  %v834_v62 = vld [vmem:[%s1158_s2] ss:$0 sm:$0xff] (!%p833_p6) }
  0x22   : > { %859 = vmatpush3.bf16.msra.mxu0 %v913_v3  ;;  %884 = vmatpush3.bf16.msra.mxu1 %v913_v3  ;;  %v1065_v63 = vld [vmem:[%s1159_s3] ss:$0 sm:$0xff] (!%p833_p6) }
  0x23   : > { %860 = vmatprep.subr.bf16.mxu0 %v914_v6  ;;  %881 = vmatprep.subr.bf16.mxu1 %v914_v6 }
  0x26   : > { %861 = vmatpush3.bf16.msra.mxu0 %v914_v6  ;;  %885 = vmatpush3.bf16.msra.mxu1 %v914_v6 }
  0x29   : > { %863 = vmatmul.mubr.msk.bf16.vlgmr.msra.gmra.mrb[0].mxu0 %vm427_vm1, %v917_v7  ;;  %871 = vmatmul.mubr.msk.bf16.vlgmr.msra.gmra.mrb[0].mxu1 %vm427_vm1, %v918_v8 }
  0x2a   : > { %866 = vmatprep.mubr.msk.bf16.mxu0 %vm427_vm1, %v919_v9  ;;  %874 = vmatprep.mubr.msk.bf16.mxu1 %vm427_vm1, %v920_v10 }
  0x31   : > { %867 = vmatmul.mubr.msk.bf16.gmra.mrb[4].mxu0 %vm427_vm1, %v921_v11  ;;  %875 = vmatmul.mubr.msk.bf16.gmra.mrb[4].mxu1 %vm427_vm1, %v922_v12 }
  0xfc   : > { %v864_v17 = vpop.f32.mrb[0].mxu0  ;;  %v872_v18 = vpop.f32.mrb[0].mxu1 }
  0xfd   : > { %v551_v21 = vadd.f32 %v864_v17, %v325_v13  ;;  %v559_v22 = vadd.f32 %v872_v18, %v333_v14  ;;  %v486_v23 = vpop.f32.mrb[1].mxu0  ;;  %v518_v24 = vpop.f32.mrb[1].mxu1 }
  0xfe   : > { %v549_v27 = vadd.f32 %v486_v23, %v323_v15  ;;  %v557_v28 = vadd.f32 %v518_v24, %v331_v16  ;;  %v865_v29 = vpop.f32.mrb[2].mxu0  ;;  %v873_v30 = vpop.f32.mrb[2].mxu1 }
  0xff   : > { %567 = vst.msk [vmem:[#allocation2 + $0x10] sm:$0xff] %vm427_vm1, %v551_v21  ;;  %575 = vst.msk [vmem:[#allocation2 + $0x50] sm:$0xff] %vm427_vm1, %v559_v22  ;;  %v552_v31 = vadd.f32 %v865_v29, %v326_v19  ;;  %v560_v32 = vadd.f32 %v873_v30, %v334_v20  ;;  %v489_v33 = vpop.f32.mrb[3].mxu0  ;;  %v521_v34 = vpop.f32.mrb[3].mxu1 }
 0x100   : > { %565 = vst.msk [vmem:[#allocation2] sm:$0xff] %vm427_vm1, %v549_v27  ;;  %573 = vst.msk [vmem:[#allocation2 + $0x40] sm:$0xff] %vm427_vm1, %v557_v28  ;;  %v550_v35 = vadd.f32 %v489_v33, %v324_v25  ;;  %v558_v36 = vadd.f32 %v521_v34, %v332_v26 }
 0x101   : > { %568 = vst.msk [vmem:[#allocation2 + $0x18] sm:$0xff] %vm427_vm1, %v552_v31  ;;  %576 = vst.msk [vmem:[#allocation2 + $0x58] sm:$0xff] %vm427_vm1, %v560_v32 }
 0x102   : > { %566 = vst.msk [vmem:[#allocation2 + $0x8] sm:$0xff] %vm427_vm1, %v550_v35  ;;  %574 = vst.msk [vmem:[#allocation2 + $0x48] sm:$0xff] %vm427_vm1, %v558_v36 }
 0x104   : > { %v868_v41 = vpop.f32.mrb[4].mxu0  ;;  %v876_v42 = vpop.f32.mrb[4].mxu1  ;;  %584 = sbr.rel (%p833_p6) target bundleno = 282 (0x11a), region = 44 }
 0x105   : > { %v555_v45 = vadd.f32 %v868_v41, %v329_v37  ;;  %v563_v46 = vadd.f32 %v876_v42, %v337_v38  ;;  %v502_v47 = vpop.f32.mrb[5].mxu0  ;;  %v534_v48 = vpop.f32.mrb[5].mxu1 }
 0x106   : > { %v553_v51 = vadd.f32 %v502_v47, %v327_v39  ;;  %v561_v52 = vadd.f32 %v534_v48, %v335_v40  ;;  %v869_v53 = vpop.f32.mrb[6].mxu0  ;;  %v877_v54 = vpop.f32.mrb[6].mxu1  ;;  %v587_v2 = vld [vmem:[#allocation2 + $0x10] sm:$0xff] (!%p833_p6) }
 0x107   : > { %571 = vst.msk [vmem:[#allocation2 + $0x30] sm:$0xff] %vm427_vm1, %v555_v45  ;;  %579 = vst.msk [vmem:[#allocation2 + $0x70] sm:$0xff] %vm427_vm1, %v563_v46  ;;  %v556_v55 = vadd.f32 %v869_v53, %v330_v43  ;;  %v564_v56 = vadd.f32 %v877_v54, %v338_v44  ;;  %v505_v57 = vpop.f32.mrb[7].mxu0  ;;  %v537_v58 = vpop.f32.mrb[7].mxu1  ;;  %v585_v61 = vld [vmem:[#allocation2] sm:$0xff] (!%p833_p6)  ;;  %v610_v5 = vmul.f32 (!%p833_p6), %v834_v62, %v587_v2  ;;  %v595_v25 = vld [vmem:[#allocation2 + $0x50] sm:$0xff] (!%p833_p6) }
 0x108   : > { %569 = vst.msk [vmem:[#allocation2 + $0x20] sm:$0xff] %vm427_vm1, %v553_v51  ;;  %577 = vst.msk [vmem:[#allocation2 + $0x60] sm:$0xff] %vm427_vm1, %v561_v52  ;;  %v554_v59 = vadd.f32 %v505_v57, %v328_v49  ;;  %v562_v60 = vadd.f32 %v537_v58, %v336_v50  ;;  %v608_v0 = vmul.f32 (!%p833_p6), %v834_v62, %v585_v61  ;;  %v588_v3 = vld [vmem:[#allocation2 + $0x18] sm:$0xff] (!%p833_p6)  ;;  %v593_v19 = vld [vmem:[#allocation2 + $0x40] sm:$0xff] (!%p833_p6) }
 0x109   : > { %572 = vst.msk [vmem:[#allocation2 + $0x38] sm:$0xff] %vm427_vm1, %v556_v55  ;;  %580 = vst.msk [vmem:[#allocation2 + $0x78] sm:$0xff] %vm427_vm1, %v564_v56  ;;  %v586_v1 = vld [vmem:[#allocation2 + $0x8] sm:$0xff] (!%p833_p6)  ;;  %v611_v6 = vmul.f32 (!%p833_p6), %v834_v62, %v588_v3  ;;  %v633_v16 = vadd.f32 (!%p833_p6), %v1065_v63, %v610_v5  ;;  %v596_v26 = vld [vmem:[#allocation2 + $0x58] sm:$0xff] (!%p833_p6)  ;;  %v616_v37 = vmul.f32 (!%p833_p6), %v834_v62, %v593_v19 }
 0x10a   : > { %570 = vst.msk [vmem:[#allocation2 + $0x28] sm:$0xff] %vm427_vm1, %v554_v59  ;;  %578 = vst.msk [vmem:[#allocation2 + $0x68] sm:$0xff] %vm427_vm1, %v562_v60  ;;  %v609_v4 = vmul.f32 (!%p833_p6), %v834_v62, %v586_v1  ;;  %v631_v10 = vadd.f32 (!%p833_p6), %v1065_v63, %v608_v0  ;;  %v594_v24 = vld [vmem:[#allocation2 + $0x48] sm:$0xff] (!%p833_p6)  ;;  %v618_v41 = vmul.f32 (!%p833_p6), %v834_v62, %v595_v25 }
 0x10b   : > { %v634_v17 = vadd.f32 %v1065_v63, %v611_v6  ;;  %v649_v28 = vmax.f32 %v633_v16, 0.0  ;;  %v617_v40 = vmul.f32 %v834_v62, %v594_v24  ;;  %v619_v42 = vmul.f32 %v834_v62, %v596_v26 }
 0x10c   : > { %v632_v15 = vadd.f32 %v1065_v63, %v609_v4  ;;  %v647_v20 = vmax.f32 %v631_v10, 0.0  ;;  %v639_v43 = vadd.f32 %v1065_v63, %v616_v37  ;;  %v641_v48 = vadd.f32 %v1065_v63, %v618_v41 }
 0x10d   : > { %v650_v29 = vmax.f32 %v634_v17, 0.0  ;;  %665 = vst.msk [vmem:[%s1160_s4 + $0x10] sm:$0xff] %vm427_vm1, %v649_v28  ;;  %v640_v47 = vadd.f32 %v1065_v63, %v617_v40  ;;  %v642_v49 = vadd.f32 %v1065_v63, %v619_v42 }
 0x10e   : > { %v591_v9 = vld [vmem:[#allocation2 + $0x30] sm:$0xff]  ;;  %v648_v27 = vmax.f32 %v632_v15, 0.0  ;;  %663 = vst.msk [vmem:[%s1160_s4] sm:$0xff] %vm427_vm1, %v647_v20  ;;  %v655_v51 = vmax.f32 %v639_v43, 0.0  ;;  %v657_v56 = vmax.f32 %v641_v48, 0.0 }
 0x10f   : > { %v589_v7 = vld [vmem:[#allocation2 + $0x20] sm:$0xff]  ;;  %v614_v13 = vmul.f32 %v834_v62, %v591_v9  ;;  %v599_v33 = vld [vmem:[#allocation2 + $0x70] sm:$0xff]  ;;  %666 = vst.msk [vmem:[%s1160_s4 + $0x18] sm:$0xff] %vm427_vm1, %v650_v29  ;;  %v656_v55 = vmax.f32 %v640_v47, 0.0  ;;  %v658_v57 = vmax.f32 %v642_v49, 0.0 }
 0x110   : > { %v612_v11 = vmul.f32 %v834_v62, %v589_v7  ;;  %v592_v14 = vld [vmem:[#allocation2 + $0x38] sm:$0xff]  ;;  %v597_v31 = vld [vmem:[#allocation2 + $0x60] sm:$0xff]  ;;  %664 = vst.msk [vmem:[%s1160_s4 + $0x8] sm:$0xff] %vm427_vm1, %v648_v27  ;;  %v622_v46 = vmul.f32 %v834_v62, %v599_v33  ;;  %671 = vst.msk [vmem:[%s1160_s4 + $0x40] sm:$0xff] %vm427_vm1, %v655_v51 }
 0x111   : > { %v590_v8 = vld [vmem:[#allocation2 + $0x28] sm:$0xff]  ;;  %v615_v18 = vmul.f32 %v834_v62, %v592_v14  ;;  %v637_v23 = vadd.f32 %v1065_v63, %v614_v13  ;;  %v600_v38 = vld [vmem:[#allocation2 + $0x78] sm:$0xff]  ;;  %v620_v44 = vmul.f32 %v834_v62, %v597_v31  ;;  %672 = vst.msk [vmem:[%s1160_s4 + $0x48] sm:$0xff] %vm427_vm1, %v656_v55  ;;  %673 = vst.msk [vmem:[%s1160_s4 + $0x50] sm:$0xff] %vm427_vm1, %v657_v56 }
 0x112   : > { %v613_v12 = vmul.f32 %v834_v62, %v590_v8  ;;  %v635_v21 = vadd.f32 %v1065_v63, %v612_v11  ;;  %v598_v32 = vld [vmem:[#allocation2 + $0x68] sm:$0xff]  ;;  %v623_v50 = vmul.f32 %v834_v62, %v600_v38  ;;  %v645_v54 = vadd.f32 %v1065_v63, %v622_v46  ;;  %674 = vst.msk [vmem:[%s1160_s4 + $0x58] sm:$0xff] %vm427_vm1, %v658_v57 }
 0x113   : > { %v638_v30 = vadd.f32 %v1065_v63, %v615_v18  ;;  %v653_v36 = vmax.f32 %v637_v23, 0.0  ;;  %v621_v45 = vmul.f32 %v834_v62, %v598_v32  ;;  %v643_v52 = vadd.f32 %v1065_v63, %v620_v44 }
 0x114   : > { %v636_v22 = vadd.f32 %v1065_v63, %v613_v12  ;;  %v651_v34 = vmax.f32 %v635_v21, 0.0  ;;  %v646_v58 = vadd.f32 %v1065_v63, %v623_v50  ;;  %v661_v61 = vmax.f32 %v645_v54, 0.0 }
 0x115   : > { %v654_v39 = vmax.f32 %v638_v30, 0.0  ;;  %669 = vst.msk [vmem:[%s1160_s4 + $0x30] sm:$0xff] %vm427_vm1, %v653_v36  ;;  %v644_v53 = vadd.f32 %v1065_v63, %v621_v45  ;;  %v659_v59 = vmax.f32 %v643_v52, 0.0 }
 0x116   : > { %v652_v35 = vmax.f32 %v636_v22, 0.0  ;;  %667 = vst.msk [vmem:[%s1160_s4 + $0x20] sm:$0xff] %vm427_vm1, %v651_v34  ;;  %v662_v62 = vmax.f32 %v646_v58, 0.0  ;;  %677 = vst.msk [vmem:[%s1160_s4 + $0x70] sm:$0xff] %vm427_vm1, %v661_v61 }
 0x117   : > { %670 = vst.msk [vmem:[%s1160_s4 + $0x38] sm:$0xff] %vm427_vm1, %v654_v39  ;;  %v660_v60 = vmax.f32 %v644_v53, 0.0  ;;  %675 = vst.msk [vmem:[%s1160_s4 + $0x60] sm:$0xff] %vm427_vm1, %v659_v59 }
 0x118   : > { %668 = vst.msk [vmem:[%s1160_s4 + $0x28] sm:$0xff] %vm427_vm1, %v652_v35  ;;  %678 = vst.msk [vmem:[%s1160_s4 + $0x78] sm:$0xff] %vm427_vm1, %v662_v62 }
 0x119   : > { %676 = vst.msk [vmem:[%s1160_s4 + $0x68] sm:$0xff] %vm427_vm1, %v660_v60 }
 0x11a PF: > { %s14_s17 = sadd.s32 1, %s945_s17   ;;  %s1161_s15 = smov %s941_s16 }
 0x11b   : > { %p11_p7 = scmp.ge.s32.totalorder %s14_s17, 11   ;;  %s1162_s16 = smov %s1164_s18 }
 0x11d   :  { %13 = sbr.rel (!%p11_p7) target bundleno = 2 (0x2), region = 83 }

// kernel: resnet34_forward.42
= control target key start
LH: loop header
LB: loop body
LE: loop exit
PB: predicated region body
PF: predicated region fallthrough
CT: control target
= control target key end

     0   :  { %s1089_s18 = smov 0   ;;  %s1091_s19 = smov 0   ;;  %s1338_s0 = inlined_call_operand.vmem [shape: bf16[9,128,64], index: 0, kind: input, shape index: {}]   ;;  %s1339_s1 = inlined_call_operand.vmem [shape: bf16[9,64,64], index: 1, kind: input, shape index: {}]   ;;  %s1340_s2 = inlined_call_operand.vmem [shape: f32[1,64], index: 2, kind: input, shape index: {}]   ;;  %s1341_s3 = inlined_call_operand.vmem [shape: f32[1,64], index: 3, kind: input, shape index: {}]   ;;  %s1342_s4 = inlined_call_operand.vmem [shape: f32[128,64], index: 4, kind: input, shape index: {}]   ;;  %s1343_s5 = inlined_call_operand.vmem [shape: f32[128,64], index: 5, kind: output, shape index: {}]  }
   0x1   :  { %s1093_s20 = smov 0  }
   0x2 LB: > { %s27_s21 = sadd.s32 1, %s1052_s19  ;;  %p918_p0 = scmp.ge.s32.totalorder %s1056_s20, 1  ;;  %s1056_s20 = sphi %s1093_s20, %s15_s20   ;;  %s1052_s19 = sphi %s1091_s19, %s1345_s19   ;;  %s1048_s18 = sphi %s1089_s18, %s1344_s18  }
   0x3   : > { %p28_p1 = scmp.ge.s32.totalorder %s27_s21, 9  ;;  %p262_p2 = scmp.lt.s32.totalorder %s1056_s20, 10 }
   0x5   : > { %s1347_s21 = smov (%p28_p1, %s27_s21), 0  ;;  %p263_p3 = pnand %p918_p0, %p262_p2 }
   0x6   : > { %p320_p4 = scmp.lt.s32.totalorder (!%p263_p3), %s1048_s18, 8  ;;  %p923_p5 = scmp.ne.s32.totalorder (!%p263_p3), %s1048_s18, 0 }
   0x7   : > { %266 = sbr.rel (%p263_p3) target bundleno = 285 (0x11d), region = 40 }
   0xe   : > { %s321_s22 = scalar_select %p320_p4, %s1048_s18, 8 }
   0xf   : > { %365 = sbr.rel (%p923_p5) target bundleno = 24 (0x18), region = 44  ;;  %vm366_vm0 = vcmask (!%p923_p5), 523264   ;;  %v1058_v0 = vmov (!%p923_p5), 0.0  }
  0x10   : > { %s951_s23 = sshll.u32 %s321_s22, 6  ;;  %s952_s24 = sshll.u32 %s321_s22, 5  ;;  %367 = vst.msk [vmem:[#allocation2] sm:$0xff] (!%p923_p5), %vm366_vm0, %v1058_v0  ;;  %368 = vst.msk [vmem:[#allocation2 + $0x8] sm:$0xff] (!%p923_p5), %vm366_vm0, %v1058_v0 }
  0x11   : > { %s1114_s27 = scalar_lea.vmem %s1338_s0, %s951_s23  ;;  %s1119_s30 = scalar_lea.vmem %s1339_s1, %s952_s24  ;;  %369 = vst.msk [vmem:[#allocation2 + $0x10] sm:$0xff] (!%p923_p5), %vm366_vm0, %v1058_v0  ;;  %370 = vst.msk [vmem:[#allocation2 + $0x18] sm:$0xff] (!%p923_p5), %vm366_vm0, %v1058_v0 }
  0x12   : > { %371 = vst.msk [vmem:[#allocation2 + $0x20] sm:$0xff] (!%p923_p5), %vm366_vm0, %v1058_v0  ;;  %372 = vst.msk [vmem:[#allocation2 + $0x28] sm:$0xff] (!%p923_p5), %vm366_vm0, %v1058_v0 }
  0x13   : > { %373 = vst.msk [vmem:[#allocation2 + $0x30] sm:$0xff] (!%p923_p5), %vm366_vm0, %v1058_v0  ;;  %374 = vst.msk [vmem:[#allocation2 + $0x38] sm:$0xff] (!%p923_p5), %vm366_vm0, %v1058_v0 }
  0x14   : > { %375 = vst.msk [vmem:[#allocation2 + $0x40] sm:$0xff] (!%p923_p5), %vm366_vm0, %v1058_v0  ;;  %376 = vst.msk [vmem:[#allocation2 + $0x48] sm:$0xff] (!%p923_p5), %vm366_vm0, %v1058_v0 }
  0x15   : > { %377 = vst.msk [vmem:[#allocation2 + $0x50] sm:$0xff] (!%p923_p5), %vm366_vm0, %v1058_v0  ;;  %378 = vst.msk [vmem:[#allocation2 + $0x58] sm:$0xff] (!%p923_p5), %vm366_vm0, %v1058_v0 }
  0x16   : > { %379 = vst.msk [vmem:[#allocation2 + $0x60] sm:$0xff] %vm366_vm0, %v1058_v0  ;;  %380 = vst.msk [vmem:[#allocation2 + $0x68] sm:$0xff] %vm366_vm0, %v1058_v0 }
  0x17   : > { %381 = vst.msk [vmem:[#allocation2 + $0x70] sm:$0xff] %vm366_vm0, %v1058_v0  ;;  %382 = vst.msk [vmem:[#allocation2 + $0x78] sm:$0xff] %vm366_vm0, %v1058_v0 }
  0x18 PF: > { %v1022_v1 = vld [vmem:[%s1119_s30] sm:$0xff]   ;;  %v1023_v2 = vld [vmem:[%s1119_s30 + $0x8] sm:$0xff]   ;;  %v1024_v3 = vld [vmem:[%s1119_s30 + $0x10] sm:$0xff]   ;;  %vm487_vm1 = vcmask 523264   ;;  %p944_p6 = scmp.ne.s32.totalorder %s1048_s18, 8 }
  0x19   : > { %965 = vmatprep.subr.bf16.mxu0 %v1022_v1  ;;  %989 = vmatprep.subr.bf16.mxu1 %v1022_v1  ;;  %v1026_v4 = vld [vmem:[%s1114_s27] sm:$0xff]   ;;  %v1025_v6 = vld [vmem:[%s1119_s30 + $0x18] sm:$0xff]   ;;  %v1028_v7 = vld [vmem:[%s1114_s27 + $0x8] sm:$0xff]  }
  0x1a   : > { %966 = vmatpush3.bf16.msra.mxu0 %v1022_v1  ;;  %993 = vmatpush3.bf16.msra.mxu1 %v1022_v1  ;;  %v1027_v5 = vld [vmem:[%s1114_s27 + $0x20] sm:$0xff]   ;;  %v1029_v8 = vld [vmem:[%s1114_s27 + $0x28] sm:$0xff]   ;;  %v1030_v9 = vld [vmem:[%s1114_s27 + $0x10] sm:$0xff]  }
  0x1b   : > { %967 = vmatprep.subr.bf16.mxu0 %v1023_v2  ;;  %990 = vmatprep.subr.bf16.mxu1 %v1023_v2  ;;  %v1031_v10 = vld [vmem:[%s1114_s27 + $0x30] sm:$0xff]   ;;  %v1032_v11 = vld [vmem:[%s1114_s27 + $0x18] sm:$0xff]   ;;  %v383_v15 = vld [vmem:[#allocation2] sm:$0xff] }
  0x1c   : > { %973 = vmatprep.mubr.msk.bf16.mxu0 %vm487_vm1, %v1026_v4  ;;  %981 = vmatprep.mubr.msk.bf16.mxu1 %vm487_vm1, %v1027_v5  ;;  %v1033_v12 = vld [vmem:[%s1114_s27 + $0x38] sm:$0xff]   ;;  %v385_v13 = vld [vmem:[#allocation2 + $0x10] sm:$0xff]  ;;  %v384_v25 = vld [vmem:[#allocation2 + $0x8] sm:$0xff] }
  0x1d   : > { %v391_v16 = vld [vmem:[#allocation2 + $0x40] sm:$0xff]  ;;  %v386_v19 = vld [vmem:[#allocation2 + $0x18] sm:$0xff]  ;;  %v392_v26 = vld [vmem:[#allocation2 + $0x48] sm:$0xff] }
  0x1e   : > { %968 = vmatpush3.bf16.msra.mxu0 %v1023_v2  ;;  %994 = vmatpush3.bf16.msra.mxu1 %v1023_v2  ;;  %v393_v14 = vld [vmem:[#allocation2 + $0x50] sm:$0xff]  ;;  %v394_v20 = vld [vmem:[#allocation2 + $0x58] sm:$0xff]  ;;  %v387_v39 = vld [vmem:[#allocation2 + $0x20] sm:$0xff] }
  0x1f   : > { %969 = vmatprep.subr.bf16.mxu0 %v1024_v3  ;;  %991 = vmatprep.subr.bf16.mxu1 %v1024_v3  ;;  %v389_v37 = vld [vmem:[#allocation2 + $0x30] sm:$0xff]  ;;  %v395_v40 = vld [vmem:[#allocation2 + $0x60] sm:$0xff]  ;;  %v390_v43 = vld [vmem:[#allocation2 + $0x38] sm:$0xff] }
  0x20   : > { %v397_v38 = vld [vmem:[#allocation2 + $0x70] sm:$0xff]  ;;  %v398_v44 = vld [vmem:[#allocation2 + $0x78] sm:$0xff]  ;;  %v388_v49 = vld [vmem:[#allocation2 + $0x28] sm:$0xff] }
  0x21   : > { %v396_v50 = vld [vmem:[#allocation2 + $0x68] sm:$0xff]  ;;  %v1178_v62 = vld [vmem:[%s1340_s2] ss:$0 sm:$0xff] (!%p944_p6) }
  0x22   : > { %970 = vmatpush3.bf16.msra.mxu0 %v1024_v3  ;;  %995 = vmatpush3.bf16.msra.mxu1 %v1024_v3  ;;  %v1183_v63 = vld [vmem:[%s1341_s3] ss:$0 sm:$0xff] (!%p944_p6) }
  0x23   : > { %971 = vmatprep.subr.bf16.mxu0 %v1025_v6  ;;  %992 = vmatprep.subr.bf16.mxu1 %v1025_v6  ;;  %v707_v2 = vld [vmem:[%s1342_s4] sm:$0xff] (!%p944_p6) }
  0x26   : > { %972 = vmatpush3.bf16.msra.mxu0 %v1025_v6  ;;  %996 = vmatpush3.bf16.msra.mxu1 %v1025_v6 }
  0x29   : > { %974 = vmatmul.mubr.msk.bf16.vlgmr.msra.gmra.mrb[0].mxu0 %vm487_vm1, %v1028_v7  ;;  %982 = vmatmul.mubr.msk.bf16.vlgmr.msra.gmra.mrb[0].mxu1 %vm487_vm1, %v1029_v8  ;;  %v708_v7 = vld [vmem:[%s1342_s4 + $0x8] sm:$0xff] (!%p944_p6) }
  0x2a   : > { %977 = vmatprep.mubr.msk.bf16.mxu0 %vm487_vm1, %v1030_v9  ;;  %985 = vmatprep.mubr.msk.bf16.mxu1 %vm487_vm1, %v1031_v10  ;;  %v709_v9 = vld [vmem:[%s1342_s4 + $0x10] sm:$0xff] (!%p944_p6) }
  0x31   : > { %978 = vmatmul.mubr.msk.bf16.gmra.mrb[4].mxu0 %vm487_vm1, %v1032_v11  ;;  %986 = vmatmul.mubr.msk.bf16.gmra.mrb[4].mxu1 %vm487_vm1, %v1033_v12 }
  0xfc   : > { %v975_v17 = vpop.f32.mrb[0].mxu0  ;;  %v983_v18 = vpop.f32.mrb[0].mxu1 }
  0xfd   : > { %v611_v21 = vadd.f32 %v975_v17, %v385_v13  ;;  %v619_v22 = vadd.f32 %v983_v18, %v393_v14  ;;  %v546_v23 = vpop.f32.mrb[1].mxu0  ;;  %v578_v24 = vpop.f32.mrb[1].mxu1  ;;  %v710_v13 = vld [vmem:[%s1342_s4 + $0x18] sm:$0xff] (!%p944_p6) }
  0xfe   : > { %v609_v27 = vadd.f32 %v546_v23, %v383_v15  ;;  %v617_v28 = vadd.f32 %v578_v24, %v391_v16  ;;  %v976_v29 = vpop.f32.mrb[2].mxu0  ;;  %v984_v30 = vpop.f32.mrb[2].mxu1 }
  0xff   : > { %627 = vst.msk [vmem:[#allocation2 + $0x10] sm:$0xff] %vm487_vm1, %v611_v21  ;;  %635 = vst.msk [vmem:[#allocation2 + $0x50] sm:$0xff] %vm487_vm1, %v619_v22  ;;  %v612_v31 = vadd.f32 %v976_v29, %v386_v19  ;;  %v620_v32 = vadd.f32 %v984_v30, %v394_v20  ;;  %v549_v33 = vpop.f32.mrb[3].mxu0  ;;  %v581_v34 = vpop.f32.mrb[3].mxu1  ;;  %v711_v20 = vld [vmem:[%s1342_s4 + $0x20] sm:$0xff] (!%p944_p6) }
 0x100   : > { %625 = vst.msk [vmem:[#allocation2] sm:$0xff] %vm487_vm1, %v609_v27  ;;  %633 = vst.msk [vmem:[#allocation2 + $0x40] sm:$0xff] %vm487_vm1, %v617_v28  ;;  %v610_v35 = vadd.f32 %v549_v33, %v384_v25  ;;  %v618_v36 = vadd.f32 %v581_v34, %v392_v26  ;;  %v712_v25 = vld [vmem:[%s1342_s4 + $0x28] sm:$0xff] (!%p944_p6)  ;;  %v713_v33 = vld [vmem:[%s1342_s4 + $0x30] sm:$0xff] (!%p944_p6) }
 0x101   : > { %628 = vst.msk [vmem:[#allocation2 + $0x18] sm:$0xff] %vm487_vm1, %v612_v31  ;;  %636 = vst.msk [vmem:[#allocation2 + $0x58] sm:$0xff] %vm487_vm1, %v620_v32  ;;  %v714_v34 = vld [vmem:[%s1342_s4 + $0x38] sm:$0xff] (!%p944_p6) }
 0x102   : > { %626 = vst.msk [vmem:[#allocation2 + $0x8] sm:$0xff] %vm487_vm1, %v610_v35  ;;  %634 = vst.msk [vmem:[#allocation2 + $0x48] sm:$0xff] %vm487_vm1, %v618_v36 }
 0x104   : > { %v979_v41 = vpop.f32.mrb[4].mxu0  ;;  %v987_v42 = vpop.f32.mrb[4].mxu1  ;;  %644 = sbr.rel (%p944_p6) target bundleno = 285 (0x11d), region = 48 }
 0x105   : > { %v615_v45 = vadd.f32 %v979_v41, %v389_v37  ;;  %v623_v46 = vadd.f32 %v987_v42, %v397_v38  ;;  %v562_v47 = vpop.f32.mrb[5].mxu0  ;;  %v594_v48 = vpop.f32.mrb[5].mxu1 }
 0x106   : > { %v613_v51 = vadd.f32 %v562_v47, %v387_v39  ;;  %v621_v52 = vadd.f32 %v594_v48, %v395_v40  ;;  %v980_v53 = vpop.f32.mrb[6].mxu0  ;;  %v988_v54 = vpop.f32.mrb[6].mxu1  ;;  %v647_v4 = vld [vmem:[#allocation2 + $0x10] sm:$0xff] (!%p944_p6) }
 0x107   : > { %631 = vst.msk [vmem:[#allocation2 + $0x30] sm:$0xff] %vm487_vm1, %v615_v45  ;;  %639 = vst.msk [vmem:[#allocation2 + $0x70] sm:$0xff] %vm487_vm1, %v623_v46  ;;  %v616_v55 = vadd.f32 %v980_v53, %v390_v43  ;;  %v624_v56 = vadd.f32 %v988_v54, %v398_v44  ;;  %v565_v57 = vpop.f32.mrb[7].mxu0  ;;  %v597_v58 = vpop.f32.mrb[7].mxu1  ;;  %v645_v61 = vld [vmem:[#allocation2] sm:$0xff] (!%p944_p6)  ;;  %v670_v8 = vmul.f32 (!%p944_p6), %v1178_v62, %v647_v4  ;;  %v655_v40 = vld [vmem:[#allocation2 + $0x50] sm:$0xff] (!%p944_p6) }
 0x108   : > { %629 = vst.msk [vmem:[#allocation2 + $0x20] sm:$0xff] %vm487_vm1, %v613_v51  ;;  %637 = vst.msk [vmem:[#allocation2 + $0x60] sm:$0xff] %vm487_vm1, %v621_v52  ;;  %v614_v59 = vadd.f32 %v565_v57, %v388_v49  ;;  %v622_v60 = vadd.f32 %v597_v58, %v396_v50  ;;  %v668_v0 = vmul.f32 (!%p944_p6), %v1178_v62, %v645_v61  ;;  %v648_v5 = vld [vmem:[#allocation2 + $0x18] sm:$0xff] (!%p944_p6)  ;;  %v653_v28 = vld [vmem:[#allocation2 + $0x40] sm:$0xff] (!%p944_p6) }
 0x109   : > { %632 = vst.msk [vmem:[#allocation2 + $0x38] sm:$0xff] %vm487_vm1, %v616_v55  ;;  %640 = vst.msk [vmem:[#allocation2 + $0x78] sm:$0xff] %vm487_vm1, %v624_v56  ;;  %v646_v1 = vld [vmem:[#allocation2 + $0x8] sm:$0xff] (!%p944_p6)  ;;  %v671_v10 = vmul.f32 (!%p944_p6), %v1178_v62, %v648_v5  ;;  %v693_v18 = vadd.f32 (!%p944_p6), %v1183_v63, %v670_v8  ;;  %v656_v41 = vld [vmem:[#allocation2 + $0x58] sm:$0xff] (!%p944_p6)  ;;  %v676_v45 = vmul.f32 (!%p944_p6), %v1178_v62, %v653_v28 }
 0x10a   : > { %630 = vst.msk [vmem:[#allocation2 + $0x28] sm:$0xff] %vm487_vm1, %v614_v59  ;;  %638 = vst.msk [vmem:[#allocation2 + $0x68] sm:$0xff] %vm487_vm1, %v622_v60  ;;  %v669_v3 = vmul.f32 (!%p944_p6), %v1178_v62, %v646_v1  ;;  %v691_v6 = vadd.f32 (!%p944_p6), %v1183_v63, %v668_v0  ;;  %v654_v35 = vld [vmem:[#allocation2 + $0x48] sm:$0xff] (!%p944_p6)  ;;  %v715_v50 = vld [vmem:[%s1342_s4 + $0x40] sm:$0xff] (!%p944_p6)  ;;  %v678_v56 = vmul.f32 (!%p944_p6), %v1178_v62, %v655_v40 }
 0x10b   : > { %v694_v19 = vadd.f32 %v1183_v63, %v671_v10  ;;  %v725_v30 = vadd.f32 %v709_v9, %v693_v18  ;;  %v677_v51 = vmul.f32 %v1178_v62, %v654_v35  ;;  %v699_v54 = vadd.f32 %v1183_v63, %v676_v45  ;;  %v716_v55 = vld [vmem:[%s1342_s4 + $0x48] sm:$0xff]  ;;  %v717_v1 = vld [vmem:[%s1342_s4 + $0x50] sm:$0xff] }
 0x10c   : > { %v692_v12 = vadd.f32 %v1183_v63, %v669_v3  ;;  %v723_v17 = vadd.f32 %v707_v2, %v691_v6  ;;  %v679_v57 = vmul.f32 %v1178_v62, %v656_v41  ;;  %v718_v2 = vld [vmem:[%s1342_s4 + $0x58] sm:$0xff]  ;;  %v701_v5 = vadd.f32 %v1183_v63, %v678_v56  ;;  %v721_v18 = vld [vmem:[%s1342_s4 + $0x70] sm:$0xff] }
 0x10d   : > { %v726_v31 = vadd.f32 %v710_v13, %v694_v19  ;;  %v741_v42 = vmax.f32 %v725_v30, 0.0  ;;  %v700_v0 = vadd.f32 %v1183_v63, %v677_v51  ;;  %v731_v4 = vadd.f32 %v715_v50, %v699_v54  ;;  %v722_v19 = vld [vmem:[%s1342_s4 + $0x78] sm:$0xff] }
 0x10e   : > { %v651_v16 = vld [vmem:[#allocation2 + $0x30] sm:$0xff]  ;;  %v724_v23 = vadd.f32 %v708_v7, %v692_v12  ;;  %v739_v29 = vmax.f32 %v723_v17, 0.0  ;;  %v702_v6 = vadd.f32 %v1183_v63, %v679_v57  ;;  %v719_v7 = vld [vmem:[%s1342_s4 + $0x60] sm:$0xff] }
 0x10f   : > { %v649_v11 = vld [vmem:[#allocation2 + $0x20] sm:$0xff]  ;;  %v674_v26 = vmul.f32 %v1178_v62, %v651_v16  ;;  %v742_v43 = vmax.f32 %v726_v31, 0.0  ;;  %757 = vst.msk [vmem:[%s1343_s5 + $0x10] sm:$0xff] %vm487_vm1, %v741_v42  ;;  %v659_v58 = vld [vmem:[#allocation2 + $0x70] sm:$0xff]  ;;  %v732_v9 = vadd.f32 %v716_v55, %v700_v0 }
 0x110   : > { %v672_v14 = vmul.f32 %v1178_v62, %v649_v11  ;;  %v652_v22 = vld [vmem:[#allocation2 + $0x38] sm:$0xff]  ;;  %v740_v36 = vmax.f32 %v724_v23, 0.0  ;;  %755 = vst.msk [vmem:[%s1343_s5] sm:$0xff] %vm487_vm1, %v739_v29  ;;  %v657_v46 = vld [vmem:[#allocation2 + $0x60] sm:$0xff]  ;;  %v720_v11 = vld [vmem:[%s1342_s4 + $0x68] sm:$0xff]  ;;  %v682_v12 = vmul.f32 %v1178_v62, %v659_v58  ;;  %v734_v16 = vadd.f32 %v718_v2, %v702_v6 }
 0x111   : > { %v650_v15 = vld [vmem:[#allocation2 + $0x28] sm:$0xff]  ;;  %v675_v27 = vmul.f32 %v1178_v62, %v652_v22  ;;  %v697_v38 = vadd.f32 %v1183_v63, %v674_v26  ;;  %758 = vst.msk [vmem:[%s1343_s5 + $0x18] sm:$0xff] %vm487_vm1, %v742_v43  ;;  %v660_v59 = vld [vmem:[#allocation2 + $0x78] sm:$0xff]  ;;  %v680_v3 = vmul.f32 %v1178_v62, %v657_v46 }
 0x112   : > { %v673_v21 = vmul.f32 %v1178_v62, %v650_v15  ;;  %v695_v24 = vadd.f32 %v1183_v63, %v672_v14  ;;  %756 = vst.msk [vmem:[%s1343_s5 + $0x8] sm:$0xff] %vm487_vm1, %v740_v36  ;;  %v658_v52 = vld [vmem:[#allocation2 + $0x68] sm:$0xff]  ;;  %v683_v13 = vmul.f32 %v1178_v62, %v660_v59  ;;  %v747_v14 = vmax.f32 %v731_v4, 0.0 }
 0x113   : > { %v698_v39 = vadd.f32 %v1183_v63, %v675_v27  ;;  %v729_v48 = vadd.f32 %v713_v33, %v697_v38  ;;  %v681_v8 = vmul.f32 %v1178_v62, %v658_v52  ;;  %v703_v10 = vadd.f32 %v1183_v63, %v680_v3 }
 0x114   : > { %v696_v32 = vadd.f32 %v1183_v63, %v673_v21  ;;  %v727_v37 = vadd.f32 %v711_v20, %v695_v24  ;;  %v733_v15 = vadd.f32 %v717_v1, %v701_v5  ;;  %v748_v20 = vmax.f32 %v732_v9, 0.0  ;;  %763 = vst.msk [vmem:[%s1343_s5 + $0x40] sm:$0xff] %vm487_vm1, %v747_v14 }
 0x115   : > { %v730_v49 = vadd.f32 %v714_v34, %v698_v39  ;;  %v745_v60 = vmax.f32 %v729_v48, 0.0  ;;  %v704_v17 = vadd.f32 %v1183_v63, %v681_v8  ;;  %v735_v21 = vadd.f32 %v719_v7, %v703_v10 }
 0x116   : > { %v728_v44 = vadd.f32 %v712_v25, %v696_v32  ;;  %v743_v47 = vmax.f32 %v727_v37, 0.0  ;;  %v705_v22 = vadd.f32 %v1183_v63, %v682_v12  ;;  %v706_v23 = vadd.f32 %v1183_v63, %v683_v13  ;;  %764 = vst.msk [vmem:[%s1343_s5 + $0x48] sm:$0xff] %vm487_vm1, %v748_v20 }
 0x117   : > { %v746_v61 = vmax.f32 %v730_v49, 0.0  ;;  %761 = vst.msk [vmem:[%s1343_s5 + $0x30] sm:$0xff] %vm487_vm1, %v745_v60  ;;  %v749_v62 = vmax.f32 %v733_v15, 0.0  ;;  %v750_v24 = vmax.f32 %v734_v16, 0.0  ;;  %v736_v25 = vadd.f32 %v720_v11, %v704_v17 }
 0x118   : > { %v744_v53 = vmax.f32 %v728_v44, 0.0  ;;  %759 = vst.msk [vmem:[%s1343_s5 + $0x20] sm:$0xff] %vm487_vm1, %v743_v47  ;;  %v751_v26 = vmax.f32 %v735_v21, 0.0  ;;  %v737_v27 = vadd.f32 %v721_v18, %v705_v22  ;;  %v738_v28 = vadd.f32 %v722_v19, %v706_v23 }
 0x119   : > { %762 = vst.msk [vmem:[%s1343_s5 + $0x38] sm:$0xff] %vm487_vm1, %v746_v61  ;;  %765 = vst.msk [vmem:[%s1343_s5 + $0x50] sm:$0xff] %vm487_vm1, %v749_v62  ;;  %v752_v63 = vmax.f32 %v736_v25, 0.0 }
 0x11a   : > { %760 = vst.msk [vmem:[%s1343_s5 + $0x28] sm:$0xff] %vm487_vm1, %v744_v53  ;;  %766 = vst.msk [vmem:[%s1343_s5 + $0x58] sm:$0xff] %vm487_vm1, %v750_v24  ;;  %v753_v29 = vmax.f32 %v737_v27, 0.0  ;;  %v754_v30 = vmax.f32 %v738_v28, 0.0 }
 0x11b   : > { %767 = vst.msk [vmem:[%s1343_s5 + $0x60] sm:$0xff] %vm487_vm1, %v751_v26  ;;  %768 = vst.msk [vmem:[%s1343_s5 + $0x68] sm:$0xff] %vm487_vm1, %v752_v63 }
 0x11c   : > { %769 = vst.msk [vmem:[%s1343_s5 + $0x70] sm:$0xff] %vm487_vm1, %v753_v29  ;;  %770 = vst.msk [vmem:[%s1343_s5 + $0x78] sm:$0xff] %vm487_vm1, %v754_v30 }
 0x11d PF: > { %s15_s20 = sadd.s32 1, %s1056_s20   ;;  %s1344_s18 = smov %s1052_s19 }
 0x11e   : > { %p12_p7 = scmp.ge.s32.totalorder %s15_s20, 11   ;;  %s1345_s19 = smov %s1347_s21 }
 0x120   :  { %14 = sbr.rel (!%p12_p7) target bundleno = 2 (0x2), region = 90 }

// kernel: resnet34_forward.47
= control target key start
LH: loop header
LB: loop body
LE: loop exit
PB: predicated region body
PF: predicated region fallthrough
CT: control target
= control target key end

     0   :  { %s712_s15 = smov 0   ;;  %s714_s16 = smov 0   ;;  %s769_s0 = inlined_call_operand.vmem [shape: bf16[9,32,64], index: 0, kind: input, shape index: {}]   ;;  %s770_s1 = inlined_call_operand.vmem [shape: bf16[9,64,128], index: 1, kind: input, shape index: {}]   ;;  %s771_s2 = inlined_call_operand.vmem [shape: f32[1,128], index: 2, kind: input, shape index: {}]   ;;  %s772_s3 = inlined_call_operand.vmem [shape: f32[1,128], index: 3, kind: input, shape index: {}]   ;;  %s773_s4 = inlined_call_operand.vmem [shape: f32[32,128], index: 4, kind: output, shape index: {}]  }
   0x1   :  { %s716_s17 = smov 0  }
   0x2 LB: > { %s26_s18 = sadd.s32 1, %s680_s16  ;;  %p590_p0 = scmp.ge.s32.totalorder %s684_s17, 1  ;;  %s684_s17 = sphi %s716_s17, %s14_s17   ;;  %s680_s16 = sphi %s714_s16, %s775_s16   ;;  %s676_s15 = sphi %s712_s15, %s774_s15  }
   0x3   : > { %p27_p1 = scmp.ge.s32.totalorder %s26_s18, 9  ;;  %p221_p2 = scmp.lt.s32.totalorder %s684_s17, 10 }
   0x5   : > { %s777_s18 = smov (%p27_p1, %s26_s18), 0  ;;  %p222_p3 = pnand %p590_p0, %p221_p2 }
   0x6   : > { %p269_p4 = scmp.lt.s32.totalorder (!%p222_p3), %s676_s15, 8  ;;  %p595_p5 = scmp.ne.s32.totalorder (!%p222_p3), %s676_s15, 0 }
   0x7   : > { %225 = sbr.rel (%p222_p3) target bundleno = 271 (0x10f), region = 36 }
   0xe   : > { %s270_s19 = scalar_select %p269_p4, %s676_s15, 8 }
   0xf   : > { %305 = sbr.rel (%p595_p5) target bundleno = 22 (0x16), region = 40  ;;  %v686_v0 = vmov (!%p595_p5), 0.0  }
  0x10   : > { %s611_s20 = sshll.u32 %s270_s19, 4  ;;  %s612_s21 = sshll.u32 %s270_s19, 5  ;;  %306 = vst [vmem:[#allocation2] sm:$0xff] (!%p595_p5), %v686_v0  ;;  %307 = vst [vmem:[#allocation2 + $0x8] sm:$0xff] (!%p595_p5), %v686_v0 }
  0x11   : > { %s276_s24 = scalar_lea.vmem %s769_s0, %s611_s20  ;;  %s285_s27 = scalar_lea.vmem %s770_s1, %s612_s21  ;;  %308 = vst [vmem:[#allocation2 + $0x10] sm:$0xff] (!%p595_p5), %v686_v0  ;;  %309 = vst [vmem:[#allocation2 + $0x18] sm:$0xff] (!%p595_p5), %v686_v0 }
  0x16 PF: > { %v656_v1 = vld [vmem:[%s285_s27] sm:$0xff]   ;;  %v657_v2 = vld [vmem:[%s285_s27 + $0x8] sm:$0xff]   ;;  %v658_v3 = vld [vmem:[%s285_s27 + $0x10] sm:$0xff]   ;;  %vm360_vm0 = vcmask 523264   ;;  %p604_p6 = scmp.ne.s32.totalorder %s676_s15, 8 }
  0x17   : > { %619 = vmatprep.subr.bf16.mxu0 %v656_v1  ;;  %v660_v4 = vld [vmem:[%s276_s24] sm:$0xff]   ;;  %v659_v5 = vld [vmem:[%s285_s27 + $0x18] sm:$0xff]   ;;  %v661_v6 = vld [vmem:[%s276_s24 + $0x8] sm:$0xff]  }
  0x18   : > { %620 = vmatpush3.bf16.msra.mxu0 %v656_v1  ;;  %627 = vmatprep.mubr.msk.bf16.mxu0 %vm360_vm0, %v660_v4  ;;  %v312_v7 = vld [vmem:[#allocation2 + $0x10] sm:$0xff]  ;;  %v310_v8 = vld [vmem:[#allocation2] sm:$0xff]  ;;  %v313_v10 = vld [vmem:[#allocation2 + $0x18] sm:$0xff] }
  0x19   : > { %621 = vmatprep.subr.bf16.mxu0 %v657_v2  ;;  %v311_v13 = vld [vmem:[#allocation2 + $0x8] sm:$0xff]  ;;  %v605_v20 = vld [vmem:[%s771_s2] ss:$0 sm:$0xff] (!%p604_p6) }
  0x1a   : > { %v606_v21 = vld [vmem:[%s772_s3] ss:$0 sm:$0xff] (!%p604_p6) }
  0x1c   : > { %622 = vmatpush3.bf16.msra.mxu0 %v657_v2 }
  0x1d   : > { %623 = vmatprep.subr.bf16.mxu0 %v658_v3 }
  0x20   : > { %624 = vmatpush3.bf16.msra.mxu0 %v658_v3 }
  0x21   : > { %625 = vmatprep.subr.bf16.mxu0 %v659_v5 }
  0x24   : > { %626 = vmatpush3.bf16.msra.mxu0 %v659_v5 }
  0x27   : > { %628 = vmatmul.mubr.msk.bf16.vlgmr.msra.gmra.mrb[0].mxu0 %vm360_vm0, %v661_v6 }
  0xfa   : > { %v629_v9 = vpop.f32.mrb[0].mxu0  ;;  %427 = sbr.rel (%p604_p6) target bundleno = 271 (0x10f), region = 44 }
  0xfb   : > { %v418_v11 = vadd.f32 %v629_v9, %v312_v7  ;;  %v401_v12 = vpop.f32.mrb[1].mxu0 }
  0xfc   : > { %v416_v14 = vadd.f32 %v401_v12, %v310_v8  ;;  %v630_v15 = vpop.f32.mrb[2].mxu0 }
  0xfd   : > { %422 = vst [vmem:[#allocation2 + $0x10] sm:$0xff] %v418_v11  ;;  %v419_v16 = vadd.f32 %v630_v15, %v313_v10  ;;  %v404_v17 = vpop.f32.mrb[3].mxu0 }
  0xfe   : > { %420 = vst [vmem:[#allocation2] sm:$0xff] %v416_v14  ;;  %v417_v18 = vadd.f32 %v404_v17, %v311_v13 }
  0xff   : > { %423 = vst [vmem:[#allocation2 + $0x18] sm:$0xff] %v419_v16 }
 0x100   : > { %421 = vst [vmem:[#allocation2 + $0x8] sm:$0xff] %v417_v18 }
 0x104   : > { %v430_v24 = vld [vmem:[#allocation2 + $0x10] sm:$0xff] }
 0x105   : > { %v428_v19 = vld [vmem:[#allocation2] sm:$0xff]  ;;  %v441_v27 = vmul.f32 %v605_v20, %v430_v24 }
 0x106   : > { %v439_v22 = vmul.f32 %v605_v20, %v428_v19  ;;  %v431_v25 = vld [vmem:[#allocation2 + $0x18] sm:$0xff] }
 0x107   : > { %v429_v23 = vld [vmem:[#allocation2 + $0x8] sm:$0xff]  ;;  %v442_v28 = vmul.f32 %v605_v20, %v431_v25  ;;  %v452_v31 = vadd.f32 %v606_v21, %v441_v27 }
 0x108   : > { %v440_v26 = vmul.f32 %v605_v20, %v429_v23  ;;  %v450_v29 = vadd.f32 %v606_v21, %v439_v22 }
 0x109   : > { %v453_v32 = vadd.f32 %v606_v21, %v442_v28  ;;  %v456_v35 = vmax.f32 %v452_v31, 0.0 }
 0x10a   : > { %v451_v30 = vadd.f32 %v606_v21, %v440_v26  ;;  %v454_v33 = vmax.f32 %v450_v29, 0.0 }
 0x10b   : > { %v457_v36 = vmax.f32 %v453_v32, 0.0  ;;  %460 = vst [vmem:[%s773_s4 + $0x10] sm:$0xff] %v456_v35 }
 0x10c   : > { %v455_v34 = vmax.f32 %v451_v30, 0.0  ;;  %458 = vst [vmem:[%s773_s4] sm:$0xff] %v454_v33 }
 0x10d   : > { %461 = vst [vmem:[%s773_s4 + $0x18] sm:$0xff] %v457_v36 }
 0x10e   : > { %459 = vst [vmem:[%s773_s4 + $0x8] sm:$0xff] %v455_v34 }
 0x10f PF: > { %s14_s17 = sadd.s32 1, %s684_s17   ;;  %s774_s15 = smov %s680_s16 }
 0x110   : > { %p11_p7 = scmp.ge.s32.totalorder %s14_s17, 11   ;;  %s775_s16 = smov %s777_s18 }
 0x112   :  { %13 = sbr.rel (!%p11_p7) target bundleno = 2 (0x2), region = 83 }

// kernel: resnet34_forward.48
= control target key start
LH: loop header
LB: loop body
LE: loop exit
PB: predicated region body
PF: predicated region fallthrough
CT: control target
= control target key end

     0   :  { %vm76_vm0 = vcmask 523264   ;;  %s272_s1 = inlined_call_operand.vmem [shape: bf16[1,64,128], index: 1, kind: input, shape index: {}]   ;;  %s273_s0 = inlined_call_operand.vmem [shape: bf16[1,32,64], index: 0, kind: input, shape index: {}]   ;;  %s274_s2 = inlined_call_operand.vmem [shape: f32[1,128], index: 2, kind: input, shape index: {}]   ;;  %s275_s3 = inlined_call_operand.vmem [shape: f32[1,128], index: 3, kind: input, shape index: {}]   ;;  %s276_s4 = inlined_call_operand.vmem [shape: f32[32,128], index: 4, kind: output, shape index: {}]  }
   0x1   :  { %v205_v0 = vld [vmem:[%s272_s1] sm:$0xff]   ;;  %v206_v1 = vld [vmem:[%s272_s1 + $0x8] sm:$0xff]   ;;  %v207_v2 = vld [vmem:[%s272_s1 + $0x10] sm:$0xff]  }
   0x2   :  { %193 = vmatprep.subr.bf16.mxu0 %v205_v0  ;;  %v209_v3 = vld [vmem:[%s273_s0] sm:$0xff]   ;;  %v208_v4 = vld [vmem:[%s272_s1 + $0x18] sm:$0xff]   ;;  %v210_v5 = vld [vmem:[%s273_s0 + $0x8] sm:$0xff]  }
   0x3   :  { %194 = vmatpush3.bf16.msra.mxu0 %v205_v0  ;;  %201 = vmatprep.mubr.msk.bf16.mxu0 %vm76_vm0, %v209_v3  ;;  %v185_v6 = vld [vmem:[%s274_s2] ss:$0 sm:$0xff] }
   0x4   :  { %195 = vmatprep.subr.bf16.mxu0 %v206_v1  ;;  %v186_v8 = vld [vmem:[%s275_s3] ss:$0 sm:$0xff] }
   0x7   :  { %196 = vmatpush3.bf16.msra.mxu0 %v206_v1 }
   0x8   :  { %197 = vmatprep.subr.bf16.mxu0 %v207_v2 }
   0xb   :  { %198 = vmatpush3.bf16.msra.mxu0 %v207_v2 }
   0xc   :  { %199 = vmatprep.subr.bf16.mxu0 %v208_v4 }
   0xf   :  { %200 = vmatpush3.bf16.msra.mxu0 %v208_v4 }
  0x12   :  { %202 = vmatmul.mubr.msk.bf16.vlgmr.msra.gmra.mrb[0].mxu0 %vm76_vm0, %v210_v5 }
  0xe5   :  { %v203_v7 = vpop.f32.mrb[0].mxu0 }
  0xe6   :  { %v156_v9 = vmul.f32 %v203_v7, %v185_v6  ;;  %v117_v10 = vpop.f32.mrb[1].mxu0 }
  0xe7   :  { %v154_v11 = vmul.f32 %v185_v6, %v117_v10  ;;  %v204_v12 = vpop.f32.mrb[2].mxu0 }
  0xe8   :  { %v167_v13 = vadd.f32 %v186_v8, %v156_v9  ;;  %v157_v14 = vmul.f32 %v204_v12, %v185_v6  ;;  %v120_v15 = vpop.f32.mrb[3].mxu0 }
  0xe9   :  { %v165_v16 = vadd.f32 %v186_v8, %v154_v11  ;;  %v155_v17 = vmul.f32 %v185_v6, %v120_v15 }
  0xea   :  { %171 = vst [vmem:[%s276_s4 + $0x10] sm:$0xff] %v167_v13  ;;  %v168_v18 = vadd.f32 %v186_v8, %v157_v14 }
  0xeb   :  { %169 = vst [vmem:[%s276_s4] sm:$0xff] %v165_v16  ;;  %v166_v19 = vadd.f32 %v186_v8, %v155_v17 }
  0xec   :  { %172 = vst [vmem:[%s276_s4 + $0x18] sm:$0xff] %v168_v18 }
  0xed   :  { %170 = vst [vmem:[%s276_s4 + $0x8] sm:$0xff] %v166_v19 }

// kernel: resnet34_forward.49
= control target key start
LH: loop header
LB: loop body
LE: loop exit
PB: predicated region body
PF: predicated region fallthrough
CT: control target
= control target key end

     0   :  { %s849_s18 = smov 0   ;;  %s851_s19 = smov 0   ;;  %s932_s0 = inlined_call_operand.vmem [shape: bf16[9,32,128], index: 0, kind: input, shape index: {}]   ;;  %s933_s1 = inlined_call_operand.vmem [shape: bf16[9,128,128], index: 1, kind: input, shape index: {}]   ;;  %s934_s2 = inlined_call_operand.vmem [shape: f32[1,128], index: 2, kind: input, shape index: {}]   ;;  %s935_s3 = inlined_call_operand.vmem [shape: f32[1,128], index: 3, kind: input, shape index: {}]   ;;  %s936_s4 = inlined_call_operand.vmem [shape: f32[32,128], index: 4, kind: input, shape index: {}]   ;;  %s937_s5 = inlined_call_operand.vmem [shape: f32[32,128], index: 5, kind: output, shape index: {}]  }
   0x1   :  { %s853_s20 = smov 0  }
   0x2 LB: > { %s27_s21 = sadd.s32 1, %s812_s19  ;;  %p704_p0 = scmp.ge.s32.totalorder %s816_s20, 1  ;;  %s816_s20 = sphi %s853_s20, %s15_s20   ;;  %s812_s19 = sphi %s851_s19, %s939_s19   ;;  %s808_s18 = sphi %s849_s18, %s938_s18  }
   0x3   : > { %p28_p1 = scmp.ge.s32.totalorder %s27_s21, 9  ;;  %p262_p2 = scmp.lt.s32.totalorder %s816_s20, 10 }
   0x5   : > { %s941_s21 = smov (%p28_p1, %s27_s21), 0  ;;  %p263_p3 = pnand %p704_p0, %p262_p2 }
   0x6   : > { %p320_p4 = scmp.lt.s32.totalorder (!%p263_p3), %s808_s18, 8  ;;  %p709_p5 = scmp.ne.s32.totalorder (!%p263_p3), %s808_s18, 0 }
   0x7   : > { %266 = sbr.rel (%p263_p3) target bundleno = 289 (0x121), region = 40 }
   0xe   : > { %s321_s22 = scalar_select %p320_p4, %s808_s18, 8 }
   0xf   : > { %365 = sbr.rel (%p709_p5) target bundleno = 22 (0x16), region = 44  ;;  %v818_v0 = vmov (!%p709_p5), 0.0  }
  0x10   : > { %s727_s23 = sshll.u32 %s321_s22, 4  ;;  %s728_s24 = sshll.u32 %s321_s22, 6  ;;  %366 = vst [vmem:[#allocation2] sm:$0xff] (!%p709_p5), %v818_v0  ;;  %367 = vst [vmem:[#allocation2 + $0x8] sm:$0xff] (!%p709_p5), %v818_v0 }
  0x11   : > { %s874_s27 = scalar_lea.vmem %s932_s0, %s727_s23  ;;  %s879_s30 = scalar_lea.vmem %s933_s1, %s728_s24  ;;  %368 = vst [vmem:[#allocation2 + $0x10] sm:$0xff] (!%p709_p5), %v818_v0  ;;  %369 = vst [vmem:[#allocation2 + $0x18] sm:$0xff] (!%p709_p5), %v818_v0 }
  0x16 PF: > { %v784_v1 = vld [vmem:[%s879_s30] sm:$0xff]   ;;  %v785_v2 = vld [vmem:[%s879_s30 + $0x8] sm:$0xff]   ;;  %v786_v3 = vld [vmem:[%s879_s30 + $0x10] sm:$0xff]   ;;  %p720_p6 = scmp.ne.s32.totalorder %s808_s18, 8 }
  0x17   : > { %739 = vmatprep.subr.bf16.mxu0 %v784_v1  ;;  %v787_v4 = vld [vmem:[%s879_s30 + $0x18] sm:$0xff]   ;;  %v792_v5 = vld [vmem:[%s874_s27] sm:$0xff]   ;;  %v789_v7 = vld [vmem:[%s879_s30 + $0x28] sm:$0xff]  }
  0x18   : > { %740 = vmatpush3.bf16.msra.mxu0 %v784_v1  ;;  %755 = vmatprep.mubr.bf16.mxu0 %v792_v5  ;;  %v788_v6 = vld [vmem:[%s879_s30 + $0x20] sm:$0xff]   ;;  %v790_v8 = vld [vmem:[%s879_s30 + $0x30] sm:$0xff]   ;;  %v791_v9 = vld [vmem:[%s879_s30 + $0x38] sm:$0xff]  }
  0x19   : > { %741 = vmatprep.subr.bf16.mxu0 %v785_v2  ;;  %v793_v10 = vld [vmem:[%s874_s27 + $0x8] sm:$0xff]   ;;  %v372_v11 = vld [vmem:[#allocation2 + $0x10] sm:$0xff]  ;;  %v370_v12 = vld [vmem:[#allocation2] sm:$0xff] }
  0x1a   : > { %v373_v14 = vld [vmem:[#allocation2 + $0x18] sm:$0xff]  ;;  %v371_v17 = vld [vmem:[#allocation2 + $0x8] sm:$0xff]  ;;  %v721_v24 = vld [vmem:[%s934_s2] ss:$0 sm:$0xff] (!%p720_p6) }
  0x1b   : > { %v722_v25 = vld [vmem:[%s935_s3] ss:$0 sm:$0xff] (!%p720_p6)  ;;  %v542_v33 = vld [vmem:[%s936_s4 + $0x8] sm:$0xff] (!%p720_p6)  ;;  %v543_v37 = vld [vmem:[%s936_s4 + $0x10] sm:$0xff] (!%p720_p6) }
  0x1c   : > { %742 = vmatpush3.bf16.msra.mxu0 %v785_v2  ;;  %v541_v28 = vld [vmem:[%s936_s4] sm:$0xff] (!%p720_p6)  ;;  %v544_v38 = vld [vmem:[%s936_s4 + $0x18] sm:$0xff] (!%p720_p6) }
  0x1d   : > { %743 = vmatprep.subr.bf16.mxu0 %v786_v3 }
  0x20   : > { %744 = vmatpush3.bf16.msra.mxu0 %v786_v3 }
  0x21   : > { %745 = vmatprep.subr.bf16.mxu0 %v787_v4 }
  0x24   : > { %746 = vmatpush3.bf16.msra.mxu0 %v787_v4 }
  0x25   : > { %747 = vmatprep.subr.bf16.mxu0 %v788_v6 }
  0x28   : > { %748 = vmatpush3.bf16.msra.mxu0 %v788_v6 }
  0x29   : > { %749 = vmatprep.subr.bf16.mxu0 %v789_v7 }
  0x2c   : > { %750 = vmatpush3.bf16.msra.mxu0 %v789_v7 }
  0x2d   : > { %751 = vmatprep.subr.bf16.mxu0 %v790_v8 }
  0x30   : > { %752 = vmatpush3.bf16.msra.mxu0 %v790_v8 }
  0x31   : > { %753 = vmatprep.subr.bf16.mxu0 %v791_v9 }
  0x34   : > { %754 = vmatpush3.bf16.msra.mxu0 %v791_v9 }
  0x37   : > { %756 = vmatmul.mubr.bf16.vlgmr.msra.gmra.mrb[0].mxu0 %v793_v10 }
 0x10a   : > { %v757_v13 = vpop.f32.mrb[0].mxu0  ;;  %514 = sbr.rel (%p720_p6) target bundleno = 289 (0x121), region = 48 }
 0x10b   : > { %v505_v15 = vadd.f32 %v757_v13, %v372_v11  ;;  %v488_v16 = vpop.f32.mrb[1].mxu0 }
 0x10c   : > { %v503_v18 = vadd.f32 %v488_v16, %v370_v12  ;;  %v758_v19 = vpop.f32.mrb[2].mxu0 }
 0x10d   : > { %509 = vst [vmem:[#allocation2 + $0x10] sm:$0xff] %v505_v15  ;;  %v506_v20 = vadd.f32 %v758_v19, %v373_v14  ;;  %v491_v21 = vpop.f32.mrb[3].mxu0 }
 0x10e   : > { %507 = vst [vmem:[#allocation2] sm:$0xff] %v503_v18  ;;  %v504_v22 = vadd.f32 %v491_v21, %v371_v17 }
 0x10f   : > { %510 = vst [vmem:[#allocation2 + $0x18] sm:$0xff] %v506_v20 }
 0x110   : > { %508 = vst [vmem:[#allocation2 + $0x8] sm:$0xff] %v504_v22 }
 0x114   : > { %v517_v30 = vld [vmem:[#allocation2 + $0x10] sm:$0xff] }
 0x115   : > { %v515_v23 = vld [vmem:[#allocation2] sm:$0xff]  ;;  %v528_v34 = vmul.f32 %v721_v24, %v517_v30 }
 0x116   : > { %v526_v26 = vmul.f32 %v721_v24, %v515_v23  ;;  %v518_v31 = vld [vmem:[#allocation2 + $0x18] sm:$0xff] }
 0x117   : > { %v516_v27 = vld [vmem:[#allocation2 + $0x8] sm:$0xff]  ;;  %v529_v35 = vmul.f32 %v721_v24, %v518_v31  ;;  %v539_v40 = vadd.f32 %v722_v25, %v528_v34 }
 0x118   : > { %v527_v29 = vmul.f32 %v721_v24, %v516_v27  ;;  %v537_v32 = vadd.f32 %v722_v25, %v526_v26 }
 0x119   : > { %v540_v41 = vadd.f32 %v722_v25, %v529_v35  ;;  %v547_v44 = vadd.f32 %v543_v37, %v539_v40 }
 0x11a   : > { %v538_v36 = vadd.f32 %v722_v25, %v527_v29  ;;  %v545_v39 = vadd.f32 %v541_v28, %v537_v32 }
 0x11b   : > { %v548_v45 = vadd.f32 %v544_v38, %v540_v41  ;;  %v551_v47 = vmax.f32 %v547_v44, 0.0 }
 0x11c   : > { %v546_v42 = vadd.f32 %v542_v33, %v538_v36  ;;  %v549_v43 = vmax.f32 %v545_v39, 0.0 }
 0x11d   : > { %v552_v48 = vmax.f32 %v548_v45, 0.0  ;;  %555 = vst [vmem:[%s937_s5 + $0x10] sm:$0xff] %v551_v47 }
 0x11e   : > { %v550_v46 = vmax.f32 %v546_v42, 0.0  ;;  %553 = vst [vmem:[%s937_s5] sm:$0xff] %v549_v43 }
 0x11f   : > { %556 = vst [vmem:[%s937_s5 + $0x18] sm:$0xff] %v552_v48 }
 0x120   : > { %554 = vst [vmem:[%s937_s5 + $0x8] sm:$0xff] %v550_v46 }
 0x121 PF: > { %s15_s20 = sadd.s32 1, %s816_s20   ;;  %s938_s18 = smov %s812_s19 }
 0x122   : > { %p12_p7 = scmp.ge.s32.totalorder %s15_s20, 11   ;;  %s939_s19 = smov %s941_s21 }
 0x124   :  { %14 = sbr.rel (!%p12_p7) target bundleno = 2 (0x2), region = 90 }

// kernel: resnet34_forward.50
= control target key start
LH: loop header
LB: loop body
LE: loop exit
PB: predicated region body
PF: predicated region fallthrough
CT: control target
= control target key end

     0   :  { %s757_s15 = smov 0   ;;  %s759_s16 = smov 0   ;;  %s828_s0 = inlined_call_operand.vmem [shape: bf16[9,32,128], index: 0, kind: input, shape index: {}]   ;;  %s829_s1 = inlined_call_operand.vmem [shape: bf16[9,128,128], index: 1, kind: input, shape index: {}]   ;;  %s830_s2 = inlined_call_operand.vmem [shape: f32[1,128], index: 2, kind: input, shape index: {}]   ;;  %s831_s3 = inlined_call_operand.vmem [shape: f32[1,128], index: 3, kind: input, shape index: {}]   ;;  %s832_s4 = inlined_call_operand.vmem [shape: f32[32,128], index: 4, kind: output, shape index: {}]  }
   0x1   :  { %s761_s17 = smov 0  }
   0x2 LB: > { %s26_s18 = sadd.s32 1, %s725_s16  ;;  %p617_p0 = scmp.ge.s32.totalorder %s729_s17, 1  ;;  %s729_s17 = sphi %s761_s17, %s14_s17   ;;  %s725_s16 = sphi %s759_s16, %s834_s16   ;;  %s721_s15 = sphi %s757_s15, %s833_s15  }
   0x3   : > { %p27_p1 = scmp.ge.s32.totalorder %s26_s18, 9  ;;  %p221_p2 = scmp.lt.s32.totalorder %s729_s17, 10 }
   0x5   : > { %s836_s18 = smov (%p27_p1, %s26_s18), 0  ;;  %p222_p3 = pnand %p617_p0, %p221_p2 }
   0x6   : > { %p269_p4 = scmp.lt.s32.totalorder (!%p222_p3), %s721_s15, 8  ;;  %p622_p5 = scmp.ne.s32.totalorder (!%p222_p3), %s721_s15, 0 }
   0x7   : > { %225 = sbr.rel (%p222_p3) target bundleno = 287 (0x11f), region = 36 }
   0xe   : > { %s270_s19 = scalar_select %p269_p4, %s721_s15, 8 }
   0xf   : > { %305 = sbr.rel (%p622_p5) target bundleno = 22 (0x16), region = 40  ;;  %v731_v0 = vmov (!%p622_p5), 0.0  }
  0x10   : > { %s640_s20 = sshll.u32 %s270_s19, 4  ;;  %s641_s21 = sshll.u32 %s270_s19, 6  ;;  %306 = vst [vmem:[#allocation2] sm:$0xff] (!%p622_p5), %v731_v0  ;;  %307 = vst [vmem:[#allocation2 + $0x8] sm:$0xff] (!%p622_p5), %v731_v0 }
  0x11   : > { %s782_s24 = scalar_lea.vmem %s828_s0, %s640_s20  ;;  %s787_s27 = scalar_lea.vmem %s829_s1, %s641_s21  ;;  %308 = vst [vmem:[#allocation2 + $0x10] sm:$0xff] (!%p622_p5), %v731_v0  ;;  %309 = vst [vmem:[#allocation2 + $0x18] sm:$0xff] (!%p622_p5), %v731_v0 }
  0x16 PF: > { %v697_v1 = vld [vmem:[%s787_s27] sm:$0xff]   ;;  %v698_v2 = vld [vmem:[%s787_s27 + $0x8] sm:$0xff]   ;;  %v699_v3 = vld [vmem:[%s787_s27 + $0x10] sm:$0xff]   ;;  %p633_p6 = scmp.ne.s32.totalorder %s721_s15, 8 }
  0x17   : > { %652 = vmatprep.subr.bf16.mxu0 %v697_v1  ;;  %v700_v4 = vld [vmem:[%s787_s27 + $0x18] sm:$0xff]   ;;  %v705_v5 = vld [vmem:[%s782_s24] sm:$0xff]   ;;  %v702_v7 = vld [vmem:[%s787_s27 + $0x28] sm:$0xff]  }
  0x18   : > { %653 = vmatpush3.bf16.msra.mxu0 %v697_v1  ;;  %668 = vmatprep.mubr.bf16.mxu0 %v705_v5  ;;  %v701_v6 = vld [vmem:[%s787_s27 + $0x20] sm:$0xff]   ;;  %v703_v8 = vld [vmem:[%s787_s27 + $0x30] sm:$0xff]   ;;  %v704_v9 = vld [vmem:[%s787_s27 + $0x38] sm:$0xff]  }
  0x19   : > { %654 = vmatprep.subr.bf16.mxu0 %v698_v2  ;;  %v706_v10 = vld [vmem:[%s782_s24 + $0x8] sm:$0xff]   ;;  %v312_v11 = vld [vmem:[#allocation2 + $0x10] sm:$0xff]  ;;  %v310_v12 = vld [vmem:[#allocation2] sm:$0xff] }
  0x1a   : > { %v313_v14 = vld [vmem:[#allocation2 + $0x18] sm:$0xff]  ;;  %v311_v17 = vld [vmem:[#allocation2 + $0x8] sm:$0xff]  ;;  %v634_v24 = vld [vmem:[%s830_s2] ss:$0 sm:$0xff] (!%p633_p6) }
  0x1b   : > { %v635_v25 = vld [vmem:[%s831_s3] ss:$0 sm:$0xff] (!%p633_p6) }
  0x1c   : > { %655 = vmatpush3.bf16.msra.mxu0 %v698_v2 }
  0x1d   : > { %656 = vmatprep.subr.bf16.mxu0 %v699_v3 }
  0x20   : > { %657 = vmatpush3.bf16.msra.mxu0 %v699_v3 }
  0x21   : > { %658 = vmatprep.subr.bf16.mxu0 %v700_v4 }
  0x24   : > { %659 = vmatpush3.bf16.msra.mxu0 %v700_v4 }
  0x25   : > { %660 = vmatprep.subr.bf16.mxu0 %v701_v6 }
  0x28   : > { %661 = vmatpush3.bf16.msra.mxu0 %v701_v6 }
  0x29   : > { %662 = vmatprep.subr.bf16.mxu0 %v702_v7 }
  0x2c   : > { %663 = vmatpush3.bf16.msra.mxu0 %v702_v7 }
  0x2d   : > { %664 = vmatprep.subr.bf16.mxu0 %v703_v8 }
  0x30   : > { %665 = vmatpush3.bf16.msra.mxu0 %v703_v8 }
  0x31   : > { %666 = vmatprep.subr.bf16.mxu0 %v704_v9 }
  0x34   : > { %667 = vmatpush3.bf16.msra.mxu0 %v704_v9 }
  0x37   : > { %669 = vmatmul.mubr.bf16.vlgmr.msra.gmra.mrb[0].mxu0 %v706_v10 }
 0x10a   : > { %v670_v13 = vpop.f32.mrb[0].mxu0  ;;  %454 = sbr.rel (%p633_p6) target bundleno = 287 (0x11f), region = 44 }
 0x10b   : > { %v445_v15 = vadd.f32 %v670_v13, %v312_v11  ;;  %v428_v16 = vpop.f32.mrb[1].mxu0 }
 0x10c   : > { %v443_v18 = vadd.f32 %v428_v16, %v310_v12  ;;  %v671_v19 = vpop.f32.mrb[2].mxu0 }
 0x10d   : > { %449 = vst [vmem:[#allocation2 + $0x10] sm:$0xff] %v445_v15  ;;  %v446_v20 = vadd.f32 %v671_v19, %v313_v14  ;;  %v431_v21 = vpop.f32.mrb[3].mxu0 }
 0x10e   : > { %447 = vst [vmem:[#allocation2] sm:$0xff] %v443_v18  ;;  %v444_v22 = vadd.f32 %v431_v21, %v311_v17 }
 0x10f   : > { %450 = vst [vmem:[#allocation2 + $0x18] sm:$0xff] %v446_v20 }
 0x110   : > { %448 = vst [vmem:[#allocation2 + $0x8] sm:$0xff] %v444_v22 }
 0x114   : > { %v457_v28 = vld [vmem:[#allocation2 + $0x10] sm:$0xff] }
 0x115   : > { %v455_v23 = vld [vmem:[#allocation2] sm:$0xff]  ;;  %v468_v31 = vmul.f32 %v634_v24, %v457_v28 }
 0x116   : > { %v466_v26 = vmul.f32 %v634_v24, %v455_v23  ;;  %v458_v29 = vld [vmem:[#allocation2 + $0x18] sm:$0xff] }
 0x117   : > { %v456_v27 = vld [vmem:[#allocation2 + $0x8] sm:$0xff]  ;;  %v469_v32 = vmul.f32 %v634_v24, %v458_v29  ;;  %v479_v35 = vadd.f32 %v635_v25, %v468_v31 }
 0x118   : > { %v467_v30 = vmul.f32 %v634_v24, %v456_v27  ;;  %v477_v33 = vadd.f32 %v635_v25, %v466_v26 }
 0x119   : > { %v480_v36 = vadd.f32 %v635_v25, %v469_v32  ;;  %v483_v39 = vmax.f32 %v479_v35, 0.0 }
 0x11a   : > { %v478_v34 = vadd.f32 %v635_v25, %v467_v30  ;;  %v481_v37 = vmax.f32 %v477_v33, 0.0 }
 0x11b   : > { %v484_v40 = vmax.f32 %v480_v36, 0.0  ;;  %487 = vst [vmem:[%s832_s4 + $0x10] sm:$0xff] %v483_v39 }
 0x11c   : > { %v482_v38 = vmax.f32 %v478_v34, 0.0  ;;  %485 = vst [vmem:[%s832_s4] sm:$0xff] %v481_v37 }
 0x11d   : > { %488 = vst [vmem:[%s832_s4 + $0x18] sm:$0xff] %v484_v40 }
 0x11e   : > { %486 = vst [vmem:[%s832_s4 + $0x8] sm:$0xff] %v482_v38 }
 0x11f PF: > { %s14_s17 = sadd.s32 1, %s729_s17   ;;  %s833_s15 = smov %s725_s16 }
 0x120   : > { %p11_p7 = scmp.ge.s32.totalorder %s14_s17, 11   ;;  %s834_s16 = smov %s836_s18 }
 0x122   :  { %13 = sbr.rel (!%p11_p7) target bundleno = 2 (0x2), region = 83 }

// kernel: resnet34_forward.56
= control target key start
LH: loop header
LB: loop body
LE: loop exit
PB: predicated region body
PF: predicated region fallthrough
CT: control target
= control target key end

     0   :  { %s758_s15 = smov 0   ;;  %s760_s16 = smov 0   ;;  %s830_s0 = inlined_call_operand.vmem [shape: bf16[9,8,128], index: 0, kind: input, shape index: {}]   ;;  %s831_s1 = inlined_call_operand.vmem [shape: bf16[9,128,256], index: 1, kind: input, shape index: {}]   ;;  %s832_s2 = inlined_call_operand.vmem [shape: f32[1,256], index: 2, kind: input, shape index: {}]   ;;  %s833_s3 = inlined_call_operand.vmem [shape: f32[1,256], index: 3, kind: input, shape index: {}]   ;;  %s834_s4 = inlined_call_operand.vmem [shape: f32[8,256], index: 4, kind: output, shape index: {}]  }
   0x1   :  { %s762_s17 = smov 0  }
   0x2 LB: > { %s26_s18 = sadd.s32 1, %s725_s16  ;;  %p630_p0 = scmp.ge.s32.totalorder %s729_s17, 1  ;;  %s729_s17 = sphi %s762_s17, %s14_s17   ;;  %s725_s16 = sphi %s760_s16, %s836_s16   ;;  %s721_s15 = sphi %s758_s15, %s835_s15  }
   0x3   : > { %p27_p1 = scmp.ge.s32.totalorder %s26_s18, 9  ;;  %p224_p2 = scmp.lt.s32.totalorder %s729_s17, 10 }
   0x5   : > { %s838_s18 = smov (%p27_p1, %s26_s18), 0  ;;  %p225_p3 = pnand %p630_p0, %p224_p2 }
   0x6   : > { %p273_p4 = scmp.lt.s32.totalorder (!%p225_p3), %s721_s15, 8  ;;  %p634_p5 = scmp.ne.s32.totalorder (!%p225_p3), %s721_s15, 0 }
   0x7   : > { %228 = sbr.rel (%p225_p3) target bundleno = 285 (0x11d), region = 36 }
   0xe   : > { %s274_s19 = scalar_select %p273_p4, %s721_s15, 8 }
   0xf   : > { %314 = sbr.rel (%p634_p5) target bundleno = 22 (0x16), region = 40  ;;  %v731_v0 = vmov (!%p634_p5), 0.0  }
  0x10   : > { %s631_s20 = sshll.u32 %s274_s19, 2  ;;  %s656_s21 = sshll.u32 %s274_s19, 7  ;;  %315 = vst [vmem:[#allocation2] sm:$0xff] (!%p634_p5), %v731_v0  ;;  %316 = vst [vmem:[#allocation2 + $0x8] sm:$0xff] (!%p634_p5), %v731_v0 }
  0x11   : > { %s783_s24 = scalar_lea.vmem %s830_s0, %s631_s20  ;;  %s788_s27 = scalar_lea.vmem %s831_s1, %s656_s21 }
  0x16 PF: > { %v683_v1 = vld [vmem:[%s788_s27 + $0x4] ss:$8 sps:$4 sm:$0xff]   ;;  %v685_v2 = vld [vmem:[%s788_s27] ss:$8 sps:$4 sm:$0xff]   ;;  %v732_v3 = vmov 0   ;;  %p651_p6 = scmp.ne.s32.totalorder %s721_s15, 8 }
  0x17   : > { %448 = vmatprep.mubr.bf16.mxu0 %v732_v3  ;;  %416 = vmatprep.subr.bf16.mxu0 %v683_v1  ;;  %v686_v4 = vld [vmem:[%s788_s27 + $0x14] ss:$8 sps:$4 sm:$0xff]   ;;  %v688_v5 = vld [vmem:[%s788_s27 + $0x10] ss:$8 sps:$4 sm:$0xff]   ;;  %v689_v6 = vld [vmem:[%s788_s27 + $0x24] ss:$8 sps:$4 sm:$0xff]   ;;  %v469_v27 = vlaneseq (!%p651_p6) }
  0x18   : > { %417 = vmatpush1.bf16.msra.mxu0 %v685_v2  ;;  %v691_v7 = vld [vmem:[%s788_s27 + $0x20] ss:$8 sps:$4 sm:$0xff]   ;;  %v692_v8 = vld [vmem:[%s788_s27 + $0x34] ss:$8 sps:$4 sm:$0xff]   ;;  %v694_v9 = vld [vmem:[%s788_s27 + $0x30] ss:$8 sps:$4 sm:$0xff]  }
  0x19   : > { %418 = vmatprep.subr.bf16.mxu0 %v686_v4  ;;  %v695_v10 = vld [vmem:[%s788_s27 + $0x44] ss:$8 sps:$4 sm:$0xff]   ;;  %v697_v11 = vld [vmem:[%s788_s27 + $0x40] ss:$8 sps:$4 sm:$0xff]   ;;  %v698_v12 = vld [vmem:[%s788_s27 + $0x54] ss:$8 sps:$4 sm:$0xff]  }
  0x1a   : > { %v700_v13 = vld [vmem:[%s788_s27 + $0x50] ss:$8 sps:$4 sm:$0xff]   ;;  %v701_v14 = vld [vmem:[%s788_s27 + $0x64] ss:$8 sps:$4 sm:$0xff]   ;;  %v703_v15 = vld [vmem:[%s788_s27 + $0x60] ss:$8 sps:$4 sm:$0xff]  }
  0x1b   : > { %v704_v16 = vld [vmem:[%s788_s27 + $0x74] ss:$8 sps:$4 sm:$0xff]   ;;  %v706_v17 = vld [vmem:[%s788_s27 + $0x70] ss:$8 sps:$4 sm:$0xff]   ;;  %v319_v18 = vld [vmem:[%s783_s24] sm:$0xf] }
  0x1c   : > { %419 = vmatpush1.bf16.msra.mxu0 %v688_v5  ;;  %v317_v19 = vld [vmem:[#allocation2] sm:$0xff]  ;;  %v318_v20 = vld [vmem:[#allocation2 + $0x8] sm:$0xff]  ;;  %v470_v28 = vshrl.u32 (!%p651_p6), %v469_v27, 7 }
  0x1d   : > { %420 = vmatprep.subr.bf16.mxu0 %v689_v6  ;;  %v467_v29 = vld [vmem:[%s832_s2] sm:$0x3] (!%p651_p6) }
  0x1e   : > { %v481_v30 = vld [vmem:[%s833_s3] sm:$0x3] (!%p651_p6)  ;;  %v471_v31 = vsub.s32 (!%p651_p6), 0, %v470_v28  ;;  %v475_v32 = vsub.s32 (!%p651_p6), 1, %v470_v28 }
  0x20   : > { %421 = vmatpush1.bf16.msra.mxu0 %v691_v7  ;;  %v472_v35 = vrot.slane (!%p651_p6), %v467_v29, %v471_v31  ;;  %v486_v36 = vrot.slane (!%p651_p6), %v481_v30, %v471_v31  ;;  %v476_v37 = vrot.slane (!%p651_p6), %v467_v29, %v475_v32  ;;  %v490_v38 = vrot.slane (!%p651_p6), %v481_v30, %v475_v32 }
  0x21   : > { %422 = vmatprep.subr.bf16.mxu0 %v692_v8 }
  0x24   : > { %423 = vmatpush1.bf16.msra.mxu0 %v694_v9 }
  0x25   : > { %424 = vmatprep.subr.bf16.mxu0 %v695_v10 }
  0x28   : > { %425 = vmatpush1.bf16.msra.mxu0 %v697_v11 }
  0x29   : > { %426 = vmatprep.subr.bf16.mxu0 %v698_v12 }
  0x2c   : > { %427 = vmatpush1.bf16.msra.mxu0 %v700_v13 }
  0x2d   : > { %428 = vmatprep.subr.bf16.mxu0 %v701_v14 }
  0x30   : > { %429 = vmatpush1.bf16.msra.mxu0 %v703_v15 }
  0x31   : > { %430 = vmatprep.subr.bf16.mxu0 %v704_v16 }
  0x34   : > { %431 = vmatpush1.bf16.msra.mxu0 %v706_v17 }
  0x37   : > { %449 = vmatmul.mubr.bf16.vlgmr.msra.gmra.mrb[0].mxu0 %v319_v18 }
 0x108   : > { %464 = sbr.rel (%p651_p6) target bundleno = 285 (0x11d), region = 44 }
 0x10a   : > { %v450_v21 = vpop.f32.mrb[0].mxu0 }
 0x10b   : > { %v457_v22 = vadd.f32 %v450_v21, %v317_v19  ;;  %v452_v23 = vpop.f32.mrb[1].mxu0 }
 0x10c   : > { %v458_v24 = vadd.f32 %v452_v23, %v318_v20  ;;  %v454_v25 = vpop.f32.mrb[2].mxu0 }
 0x10d   : > { %459 = vst [vmem:[#allocation2] sm:$0xff] %v457_v22  ;;  %v455_v26 = vpop.f32.mrb[3].mxu0 }
 0x10e   : > { %460 = vst [vmem:[#allocation2 + $0x8] sm:$0xff] %v458_v24 }
 0x114   : > { %v465_v33 = vld [vmem:[#allocation2] sm:$0xff] }
 0x115   : > { %v466_v34 = vld [vmem:[#allocation2 + $0x8] sm:$0xff]  ;;  %v479_v39 = vmul.f32 %v472_v35, %v465_v33 }
 0x116   : > { %v480_v40 = vmul.f32 %v476_v37, %v466_v34 }
 0x117   : > { %v493_v41 = vadd.f32 %v486_v36, %v479_v39 }
 0x118   : > { %v494_v42 = vadd.f32 %v490_v38, %v480_v40 }
 0x119   : > { %v495_v43 = vmax.f32 %v493_v41, 0.0 }
 0x11a   : > { %v496_v44 = vmax.f32 %v494_v42, 0.0 }
 0x11b   : > { %497 = vst [vmem:[%s834_s4] sm:$0xff] %v495_v43 }
 0x11c   : > { %498 = vst [vmem:[%s834_s4 + $0x8] sm:$0xff] %v496_v44 }
 0x11d PF: > { %s14_s17 = sadd.s32 1, %s729_s17   ;;  %s835_s15 = smov %s725_s16 }
 0x11e   : > { %p11_p7 = scmp.ge.s32.totalorder %s14_s17, 11   ;;  %s836_s16 = smov %s838_s18 }
 0x120   :  { %13 = sbr.rel (!%p11_p7) target bundleno = 2 (0x2), region = 83 }

// kernel: resnet34_forward.57
= control target key start
LH: loop header
LB: loop body
LE: loop exit
PB: predicated region body
PF: predicated region fallthrough
CT: control target
= control target key end

     0   :  { %v248_v1 = vmov 0   ;;  %v175_v18 = vlaneseq  ;;  %s337_s1 = inlined_call_operand.vmem [shape: bf16[1,128,256], index: 1, kind: input, shape index: {}]   ;;  %s338_s0 = inlined_call_operand.vmem [shape: bf16[1,8,128], index: 0, kind: input, shape index: {}]   ;;  %s339_s2 = inlined_call_operand.vmem [shape: f32[1,256], index: 2, kind: input, shape index: {}]   ;;  %s340_s3 = inlined_call_operand.vmem [shape: f32[1,256], index: 3, kind: input, shape index: {}]   ;;  %s341_s4 = inlined_call_operand.vmem [shape: f32[8,256], index: 4, kind: output, shape index: {}]  }
   0x1   :  { %v224_v0 = vld [vmem:[%s337_s1 + $0x4] ss:$8 sps:$4 sm:$0xff]   ;;  %155 = vmatprep.mubr.bf16.mxu0 %v248_v1  ;;  %v226_v2 = vld [vmem:[%s337_s1] ss:$8 sps:$4 sm:$0xff]   ;;  %v227_v3 = vld [vmem:[%s337_s1 + $0x14] ss:$8 sps:$4 sm:$0xff]  }
   0x2   :  { %123 = vmatprep.subr.bf16.mxu0 %v224_v0  ;;  %v229_v4 = vld [vmem:[%s337_s1 + $0x10] ss:$8 sps:$4 sm:$0xff]   ;;  %v230_v5 = vld [vmem:[%s337_s1 + $0x24] ss:$8 sps:$4 sm:$0xff]   ;;  %v232_v6 = vld [vmem:[%s337_s1 + $0x20] ss:$8 sps:$4 sm:$0xff]  }
   0x3   :  { %124 = vmatpush1.bf16.msra.mxu0 %v226_v2  ;;  %v233_v7 = vld [vmem:[%s337_s1 + $0x34] ss:$8 sps:$4 sm:$0xff]   ;;  %v235_v8 = vld [vmem:[%s337_s1 + $0x30] ss:$8 sps:$4 sm:$0xff]   ;;  %v236_v9 = vld [vmem:[%s337_s1 + $0x44] ss:$8 sps:$4 sm:$0xff]  }
   0x4   :  { %125 = vmatprep.subr.bf16.mxu0 %v227_v3  ;;  %v238_v10 = vld [vmem:[%s337_s1 + $0x40] ss:$8 sps:$4 sm:$0xff]   ;;  %v239_v11 = vld [vmem:[%s337_s1 + $0x54] ss:$8 sps:$4 sm:$0xff]   ;;  %v241_v12 = vld [vmem:[%s337_s1 + $0x50] ss:$8 sps:$4 sm:$0xff]  }
   0x5   :  { %v242_v13 = vld [vmem:[%s337_s1 + $0x64] ss:$8 sps:$4 sm:$0xff]   ;;  %v244_v14 = vld [vmem:[%s337_s1 + $0x60] ss:$8 sps:$4 sm:$0xff]   ;;  %v245_v15 = vld [vmem:[%s337_s1 + $0x74] ss:$8 sps:$4 sm:$0xff]  }
   0x6   :  { %v247_v16 = vld [vmem:[%s337_s1 + $0x70] ss:$8 sps:$4 sm:$0xff]   ;;  %v26_v17 = vld [vmem:[%s338_s0] sm:$0xf]  ;;  %v176_v19 = vshrl.u32 %v175_v18, 7 }
   0x7   :  { %126 = vmatpush1.bf16.msra.mxu0 %v229_v4  ;;  %v173_v21 = vld [vmem:[%s339_s2] sm:$0x3] }
   0x8   :  { %127 = vmatprep.subr.bf16.mxu0 %v230_v5  ;;  %v177_v20 = vsub.s32 0, %v176_v19  ;;  %v181_v22 = vsub.s32 1, %v176_v19  ;;  %v187_v23 = vld [vmem:[%s340_s3] sm:$0x3] }
   0xa   :  { %v178_v24 = vrot.slane %v173_v21, %v177_v20  ;;  %v182_v25 = vrot.slane %v173_v21, %v181_v22  ;;  %v192_v26 = vrot.slane %v187_v23, %v177_v20  ;;  %v196_v28 = vrot.slane %v187_v23, %v181_v22 }
   0xb   :  { %128 = vmatpush1.bf16.msra.mxu0 %v232_v6 }
   0xc   :  { %129 = vmatprep.subr.bf16.mxu0 %v233_v7 }
   0xf   :  { %130 = vmatpush1.bf16.msra.mxu0 %v235_v8 }
  0x10   :  { %131 = vmatprep.subr.bf16.mxu0 %v236_v9 }
  0x13   :  { %132 = vmatpush1.bf16.msra.mxu0 %v238_v10 }
  0x14   :  { %133 = vmatprep.subr.bf16.mxu0 %v239_v11 }
  0x17   :  { %134 = vmatpush1.bf16.msra.mxu0 %v241_v12 }
  0x18   :  { %135 = vmatprep.subr.bf16.mxu0 %v242_v13 }
  0x1b   :  { %136 = vmatpush1.bf16.msra.mxu0 %v244_v14 }
  0x1c   :  { %137 = vmatprep.subr.bf16.mxu0 %v245_v15 }
  0x1f   :  { %138 = vmatpush1.bf16.msra.mxu0 %v247_v16 }
  0x22   :  { %156 = vmatmul.mubr.bf16.vlgmr.msra.gmra.mrb[0].mxu0 %v26_v17 }
  0xf5   :  { %v157_v27 = vpop.f32.mrb[0].mxu0 }
  0xf6   :  { %v185_v29 = vmul.f32 %v178_v24, %v157_v27  ;;  %v159_v30 = vpop.f32.mrb[1].mxu0 }
  0xf7   :  { %v186_v31 = vmul.f32 %v182_v25, %v159_v30  ;;  %v161_v32 = vpop.f32.mrb[2].mxu0 }
  0xf8   :  { %v199_v33 = vadd.f32 %v192_v26, %v185_v29  ;;  %v162_v34 = vpop.f32.mrb[3].mxu0 }
  0xf9   :  { %v200_v35 = vadd.f32 %v196_v28, %v186_v31 }
  0xfa   :  { %201 = vst [vmem:[%s341_s4] sm:$0xff] %v199_v33 }
  0xfb   :  { %202 = vst [vmem:[%s341_s4 + $0x8] sm:$0xff] %v200_v35 }

// kernel: resnet34_forward.58
= control target key start
LH: loop header
LB: loop body
LE: loop exit
PB: predicated region body
PF: predicated region fallthrough
CT: control target
= control target key end

     0   :  { %s1010_s18 = smov 0   ;;  %s1012_s19 = smov 0   ;;  %s1104_s0 = inlined_call_operand.vmem [shape: bf16[9,8,256], index: 0, kind: input, shape index: {}]   ;;  %s1105_s1 = inlined_call_operand.vmem [shape: bf16[9,256,256], index: 1, kind: input, shape index: {}]   ;;  %s1106_s2 = inlined_call_operand.vmem [shape: f32[1,256], index: 2, kind: input, shape index: {}]   ;;  %s1107_s3 = inlined_call_operand.vmem [shape: f32[1,256], index: 3, kind: input, shape index: {}]   ;;  %s1108_s4 = inlined_call_operand.vmem [shape: f32[8,256], index: 4, kind: input, shape index: {}]   ;;  %s1109_s5 = inlined_call_operand.vmem [shape: f32[8,256], index: 5, kind: output, shape index: {}]  }
   0x1   :  { %s1014_s20 = smov 0  }
   0x2 LB: > { %s27_s21 = sadd.s32 1, %s973_s19  ;;  %p833_p0 = scmp.ge.s32.totalorder %s977_s20, 1  ;;  %s977_s20 = sphi %s1014_s20, %s15_s20   ;;  %s973_s19 = sphi %s1012_s19, %s1111_s19   ;;  %s969_s18 = sphi %s1010_s18, %s1110_s18  }
   0x3   : > { %p28_p1 = scmp.ge.s32.totalorder %s27_s21, 9  ;;  %p268_p2 = scmp.lt.s32.totalorder %s977_s20, 10 }
   0x5   : > { %s1113_s21 = smov (%p28_p1, %s27_s21), 0  ;;  %p269_p3 = pnand %p833_p0, %p268_p2 }
   0x6   : > { %p330_p4 = scmp.lt.s32.totalorder (!%p269_p3), %s969_s18, 8  ;;  %p838_p5 = scmp.ne.s32.totalorder (!%p269_p3), %s969_s18, 0 }
   0x7   : > { %272 = sbr.rel (%p269_p3) target bundleno = 319 (0x13f), region = 40 }
   0xe   : > { %s331_s22 = scalar_select %p330_p4, %s969_s18, 8 }
   0xf   : > { %382 = sbr.rel (%p838_p5) target bundleno = 22 (0x16), region = 44  ;;  %v979_v0 = vmov (!%p838_p5), 0.0  }
  0x10   : > { %s878_s23 = sshll.u32 %s331_s22, 3  ;;  %s879_s24 = sshll.u32 %s331_s22, 8  ;;  %383 = vst [vmem:[#allocation2] sm:$0xff] (!%p838_p5), %v979_v0  ;;  %384 = vst [vmem:[#allocation2 + $0x8] sm:$0xff] (!%p838_p5), %v979_v0 }
  0x11   : > { %s1035_s27 = scalar_lea.vmem %s1104_s0, %s878_s23  ;;  %s1040_s30 = scalar_lea.vmem %s1105_s1, %s879_s24 }
  0x16 PF: > { %v905_v1 = vld [vmem:[%s1040_s30 + $0x4] ss:$8 sps:$4 sm:$0xff]   ;;  %v907_v2 = vld [vmem:[%s1040_s30] ss:$8 sps:$4 sm:$0xff]   ;;  %v908_v3 = vld [vmem:[%s1040_s30 + $0x14] ss:$8 sps:$4 sm:$0xff]  }
  0x17   : > { %587 = vmatprep.subr.bf16.mxu0 %v905_v1  ;;  %v910_v4 = vld [vmem:[%s1040_s30 + $0x10] ss:$8 sps:$4 sm:$0xff]   ;;  %v911_v5 = vld [vmem:[%s1040_s30 + $0x24] ss:$8 sps:$4 sm:$0xff]   ;;  %v913_v6 = vld [vmem:[%s1040_s30 + $0x20] ss:$8 sps:$4 sm:$0xff]  }
  0x18   : > { %588 = vmatpush1.bf16.msra.mxu0 %v907_v2  ;;  %v914_v7 = vld [vmem:[%s1040_s30 + $0x34] ss:$8 sps:$4 sm:$0xff]   ;;  %v916_v8 = vld [vmem:[%s1040_s30 + $0x30] ss:$8 sps:$4 sm:$0xff]   ;;  %v917_v9 = vld [vmem:[%s1040_s30 + $0x44] ss:$8 sps:$4 sm:$0xff]  }
  0x19   : > { %589 = vmatprep.subr.bf16.mxu0 %v908_v3  ;;  %v919_v10 = vld [vmem:[%s1040_s30 + $0x40] ss:$8 sps:$4 sm:$0xff]   ;;  %v920_v11 = vld [vmem:[%s1040_s30 + $0x54] ss:$8 sps:$4 sm:$0xff]   ;;  %v922_v12 = vld [vmem:[%s1040_s30 + $0x50] ss:$8 sps:$4 sm:$0xff]  }
  0x1a   : > { %v923_v13 = vld [vmem:[%s1040_s30 + $0x64] ss:$8 sps:$4 sm:$0xff]   ;;  %v925_v16 = vld [vmem:[%s1040_s30 + $0x60] ss:$8 sps:$4 sm:$0xff]   ;;  %v926_v17 = vld [vmem:[%s1040_s30 + $0x74] ss:$8 sps:$4 sm:$0xff]  }
  0x1b   : > { %v387_v14 = vld [vmem:[%s1035_s27] sm:$0xff]  ;;  %v928_v18 = vld [vmem:[%s1040_s30 + $0x70] ss:$8 sps:$4 sm:$0xff]   ;;  %v932_v21 = vld [vmem:[%s1040_s30 + $0x94] ss:$8 sps:$4 sm:$0xff]   ;;  %p873_p6 = scmp.ne.s32.totalorder %s969_s18, 8 }
  0x1c   : > { %590 = vmatpush1.bf16.msra.mxu0 %v910_v4  ;;  %v840_v15 = vcombine.high %v387_v14, %v387_v14  ;;  %v929_v19 = vld [vmem:[%s1040_s30 + $0x84] ss:$8 sps:$4 sm:$0xff]   ;;  %v931_v20 = vld [vmem:[%s1040_s30 + $0x80] ss:$8 sps:$4 sm:$0xff]   ;;  %v934_v22 = vld [vmem:[%s1040_s30 + $0x90] ss:$8 sps:$4 sm:$0xff]   ;;  %v839_v35 = vcombine.low %v387_v14, %v387_v14  ;;  %v640_v44 = vlaneseq (!%p873_p6) }
  0x1d   : > { %591 = vmatprep.subr.bf16.mxu0 %v911_v5  ;;  %v935_v23 = vld [vmem:[%s1040_s30 + $0xa4] ss:$8 sps:$4 sm:$0xff]   ;;  %v937_v24 = vld [vmem:[%s1040_s30 + $0xa0] ss:$8 sps:$4 sm:$0xff]   ;;  %v938_v25 = vld [vmem:[%s1040_s30 + $0xb4] ss:$8 sps:$4 sm:$0xff]  }
  0x1e   : > { %619 = vmatprep.mubr.bf16.mxu0 %v840_v15  ;;  %v940_v26 = vld [vmem:[%s1040_s30 + $0xb0] ss:$8 sps:$4 sm:$0xff]   ;;  %v941_v27 = vld [vmem:[%s1040_s30 + $0xc4] ss:$8 sps:$4 sm:$0xff]   ;;  %v943_v28 = vld [vmem:[%s1040_s30 + $0xc0] ss:$8 sps:$4 sm:$0xff]  }
  0x1f   : > { %v944_v29 = vld [vmem:[%s1040_s30 + $0xd4] ss:$8 sps:$4 sm:$0xff]   ;;  %v946_v30 = vld [vmem:[%s1040_s30 + $0xd0] ss:$8 sps:$4 sm:$0xff]   ;;  %v947_v31 = vld [vmem:[%s1040_s30 + $0xe4] ss:$8 sps:$4 sm:$0xff]  }
  0x20   : > { %592 = vmatpush1.bf16.msra.mxu0 %v913_v6  ;;  %v949_v32 = vld [vmem:[%s1040_s30 + $0xe0] ss:$8 sps:$4 sm:$0xff]   ;;  %v950_v33 = vld [vmem:[%s1040_s30 + $0xf4] ss:$8 sps:$4 sm:$0xff]   ;;  %v952_v34 = vld [vmem:[%s1040_s30 + $0xf0] ss:$8 sps:$4 sm:$0xff]  }
  0x21   : > { %593 = vmatprep.subr.bf16.mxu0 %v914_v7  ;;  %v385_v36 = vld [vmem:[#allocation2] sm:$0xff]  ;;  %v386_v37 = vld [vmem:[#allocation2 + $0x8] sm:$0xff]  ;;  %v641_v45 = vshrl.u32 (!%p873_p6), %v640_v44, 7 }
  0x22   : > { %v638_v46 = vld [vmem:[%s1106_s2] sm:$0x3] (!%p873_p6)  ;;  %v667_v59 = vld [vmem:[%s1108_s4 + $0x8] sm:$0xff] (!%p873_p6) }
  0x23   : > { %v652_v47 = vld [vmem:[%s1107_s3] sm:$0x3] (!%p873_p6)  ;;  %v642_v48 = vsub.s32 (!%p873_p6), 0, %v641_v45  ;;  %v646_v49 = vsub.s32 (!%p873_p6), 1, %v641_v45 }
  0x24   : > { %594 = vmatpush1.bf16.msra.mxu0 %v916_v8  ;;  %v666_v58 = vld [vmem:[%s1108_s4] sm:$0xff] (!%p873_p6) }
  0x25   : > { %595 = vmatprep.subr.bf16.mxu0 %v917_v9  ;;  %v643_v52 = vrot.slane (!%p873_p6), %v638_v46, %v642_v48  ;;  %v657_v53 = vrot.slane (!%p873_p6), %v652_v47, %v642_v48  ;;  %v647_v54 = vrot.slane (!%p873_p6), %v638_v46, %v646_v49  ;;  %v661_v55 = vrot.slane (!%p873_p6), %v652_v47, %v646_v49 }
  0x28   : > { %596 = vmatpush1.bf16.msra.mxu0 %v919_v10 }
  0x29   : > { %597 = vmatprep.subr.bf16.mxu0 %v920_v11 }
  0x2c   : > { %598 = vmatpush1.bf16.msra.mxu0 %v922_v12 }
  0x2d   : > { %599 = vmatprep.subr.bf16.mxu0 %v923_v13 }
  0x30   : > { %600 = vmatpush1.bf16.msra.mxu0 %v925_v16 }
  0x31   : > { %601 = vmatprep.subr.bf16.mxu0 %v926_v17 }
  0x34   : > { %602 = vmatpush1.bf16.msra.mxu0 %v928_v18 }
  0x35   : > { %603 = vmatprep.subr.bf16.mxu0 %v929_v19 }
  0x38   : > { %604 = vmatpush1.bf16.msra.mxu0 %v931_v20 }
  0x39   : > { %605 = vmatprep.subr.bf16.mxu0 %v932_v21 }
  0x3c   : > { %606 = vmatpush1.bf16.msra.mxu0 %v934_v22 }
  0x3d   : > { %607 = vmatprep.subr.bf16.mxu0 %v935_v23 }
  0x40   : > { %608 = vmatpush1.bf16.msra.mxu0 %v937_v24 }
  0x41   : > { %609 = vmatprep.subr.bf16.mxu0 %v938_v25 }
  0x44   : > { %610 = vmatpush1.bf16.msra.mxu0 %v940_v26 }
  0x45   : > { %611 = vmatprep.subr.bf16.mxu0 %v941_v27 }
  0x48   : > { %612 = vmatpush1.bf16.msra.mxu0 %v943_v28 }
  0x49   : > { %613 = vmatprep.subr.bf16.mxu0 %v944_v29 }
  0x4c   : > { %614 = vmatpush1.bf16.msra.mxu0 %v946_v30 }
  0x4d   : > { %615 = vmatprep.subr.bf16.mxu0 %v947_v31 }
  0x50   : > { %616 = vmatpush1.bf16.msra.mxu0 %v949_v32 }
  0x51   : > { %617 = vmatprep.subr.bf16.mxu0 %v950_v33 }
  0x54   : > { %618 = vmatpush1.bf16.msra.mxu0 %v952_v34 }
  0x57   : > { %620 = vmatmul.mubr.bf16.vlgmr.msra.gmra.mrb[0].mxu0 %v839_v35 }
 0x128   : > { %635 = sbr.rel (%p873_p6) target bundleno = 319 (0x13f), region = 48 }
 0x12a   : > { %v621_v38 = vpop.f32.mrb[0].mxu0 }
 0x12b   : > { %v628_v39 = vadd.f32 %v621_v38, %v385_v36  ;;  %v623_v40 = vpop.f32.mrb[1].mxu0 }
 0x12c   : > { %v629_v41 = vadd.f32 %v623_v40, %v386_v37  ;;  %v625_v42 = vpop.f32.mrb[2].mxu0 }
 0x12d   : > { %630 = vst [vmem:[#allocation2] sm:$0xff] %v628_v39  ;;  %v626_v43 = vpop.f32.mrb[3].mxu0 }
 0x12e   : > { %631 = vst [vmem:[#allocation2 + $0x8] sm:$0xff] %v629_v41 }
 0x134   : > { %v636_v50 = vld [vmem:[#allocation2] sm:$0xff] }
 0x135   : > { %v637_v51 = vld [vmem:[#allocation2 + $0x8] sm:$0xff]  ;;  %v650_v56 = vmul.f32 %v643_v52, %v636_v50 }
 0x136   : > { %v651_v57 = vmul.f32 %v647_v54, %v637_v51 }
 0x137   : > { %v664_v60 = vadd.f32 %v657_v53, %v650_v56 }
 0x138   : > { %v665_v61 = vadd.f32 %v661_v55, %v651_v57 }
 0x139   : > { %v668_v62 = vadd.f32 %v666_v58, %v664_v60 }
 0x13a   : > { %v669_v63 = vadd.f32 %v667_v59, %v665_v61 }
 0x13b   : > { %v670_v0 = vmax.f32 %v668_v62, 0.0 }
 0x13c   : > { %v671_v1 = vmax.f32 %v669_v63, 0.0 }
 0x13d   : > { %672 = vst [vmem:[%s1109_s5] sm:$0xff] %v670_v0 }
 0x13e   : > { %673 = vst [vmem:[%s1109_s5 + $0x8] sm:$0xff] %v671_v1 }
 0x13f PF: > { %s15_s20 = sadd.s32 1, %s977_s20   ;;  %s1110_s18 = smov %s973_s19 }
 0x140   : > { %p12_p7 = scmp.ge.s32.totalorder %s15_s20, 11   ;;  %s1111_s19 = smov %s1113_s21 }
 0x142   :  { %14 = sbr.rel (!%p12_p7) target bundleno = 2 (0x2), region = 90 }

// kernel: resnet34_forward.59
= control target key start
LH: loop header
LB: loop body
LE: loop exit
PB: predicated region body
PF: predicated region fallthrough
CT: control target
= control target key end

     0   :  { %s916_s15 = smov 0   ;;  %s918_s16 = smov 0   ;;  %s1004_s0 = inlined_call_operand.vmem [shape: bf16[9,8,256], index: 0, kind: input, shape index: {}]   ;;  %s1005_s1 = inlined_call_operand.vmem [shape: bf16[9,256,256], index: 1, kind: input, shape index: {}]   ;;  %s1006_s2 = inlined_call_operand.vmem [shape: f32[1,256], index: 2, kind: input, shape index: {}]   ;;  %s1007_s3 = inlined_call_operand.vmem [shape: f32[1,256], index: 3, kind: input, shape index: {}]   ;;  %s1008_s4 = inlined_call_operand.vmem [shape: f32[8,256], index: 4, kind: output, shape index: {}]  }
   0x1   :  { %s920_s17 = smov 0  }
   0x2 LB: > { %s26_s18 = sadd.s32 1, %s884_s16  ;;  %p744_p0 = scmp.ge.s32.totalorder %s888_s17, 1  ;;  %s888_s17 = sphi %s920_s17, %s14_s17   ;;  %s884_s16 = sphi %s918_s16, %s1010_s16   ;;  %s880_s15 = sphi %s916_s15, %s1009_s15  }
   0x3   : > { %p27_p1 = scmp.ge.s32.totalorder %s26_s18, 9  ;;  %p226_p2 = scmp.lt.s32.totalorder %s888_s17, 10 }
   0x5   : > { %s1012_s18 = smov (%p27_p1, %s26_s18), 0  ;;  %p227_p3 = pnand %p744_p0, %p226_p2 }
   0x6   : > { %p277_p4 = scmp.lt.s32.totalorder (!%p227_p3), %s880_s15, 8  ;;  %p749_p5 = scmp.ne.s32.totalorder (!%p227_p3), %s880_s15, 0 }
   0x7   : > { %230 = sbr.rel (%p227_p3) target bundleno = 317 (0x13d), region = 36 }
   0xe   : > { %s278_s19 = scalar_select %p277_p4, %s880_s15, 8 }
   0xf   : > { %319 = sbr.rel (%p749_p5) target bundleno = 22 (0x16), region = 40  ;;  %v890_v0 = vmov (!%p749_p5), 0.0  }
  0x10   : > { %s789_s20 = sshll.u32 %s278_s19, 3  ;;  %s790_s21 = sshll.u32 %s278_s19, 8  ;;  %320 = vst [vmem:[#allocation2] sm:$0xff] (!%p749_p5), %v890_v0  ;;  %321 = vst [vmem:[#allocation2 + $0x8] sm:$0xff] (!%p749_p5), %v890_v0 }
  0x11   : > { %s941_s24 = scalar_lea.vmem %s1004_s0, %s789_s20  ;;  %s946_s27 = scalar_lea.vmem %s1005_s1, %s790_s21 }
  0x16 PF: > { %v816_v1 = vld [vmem:[%s946_s27 + $0x4] ss:$8 sps:$4 sm:$0xff]   ;;  %v818_v2 = vld [vmem:[%s946_s27] ss:$8 sps:$4 sm:$0xff]   ;;  %v819_v3 = vld [vmem:[%s946_s27 + $0x14] ss:$8 sps:$4 sm:$0xff]  }
  0x17   : > { %524 = vmatprep.subr.bf16.mxu0 %v816_v1  ;;  %v821_v4 = vld [vmem:[%s946_s27 + $0x10] ss:$8 sps:$4 sm:$0xff]   ;;  %v822_v5 = vld [vmem:[%s946_s27 + $0x24] ss:$8 sps:$4 sm:$0xff]   ;;  %v824_v6 = vld [vmem:[%s946_s27 + $0x20] ss:$8 sps:$4 sm:$0xff]  }
  0x18   : > { %525 = vmatpush1.bf16.msra.mxu0 %v818_v2  ;;  %v825_v7 = vld [vmem:[%s946_s27 + $0x34] ss:$8 sps:$4 sm:$0xff]   ;;  %v827_v8 = vld [vmem:[%s946_s27 + $0x30] ss:$8 sps:$4 sm:$0xff]   ;;  %v828_v9 = vld [vmem:[%s946_s27 + $0x44] ss:$8 sps:$4 sm:$0xff]  }
  0x19   : > { %526 = vmatprep.subr.bf16.mxu0 %v819_v3  ;;  %v830_v10 = vld [vmem:[%s946_s27 + $0x40] ss:$8 sps:$4 sm:$0xff]   ;;  %v831_v11 = vld [vmem:[%s946_s27 + $0x54] ss:$8 sps:$4 sm:$0xff]   ;;  %v833_v12 = vld [vmem:[%s946_s27 + $0x50] ss:$8 sps:$4 sm:$0xff]  }
  0x1a   : > { %v834_v13 = vld [vmem:[%s946_s27 + $0x64] ss:$8 sps:$4 sm:$0xff]   ;;  %v836_v16 = vld [vmem:[%s946_s27 + $0x60] ss:$8 sps:$4 sm:$0xff]   ;;  %v837_v17 = vld [vmem:[%s946_s27 + $0x74] ss:$8 sps:$4 sm:$0xff]  }
  0x1b   : > { %v324_v14 = vld [vmem:[%s941_s24] sm:$0xff]  ;;  %v839_v18 = vld [vmem:[%s946_s27 + $0x70] ss:$8 sps:$4 sm:$0xff]   ;;  %v843_v21 = vld [vmem:[%s946_s27 + $0x94] ss:$8 sps:$4 sm:$0xff]   ;;  %p784_p6 = scmp.ne.s32.totalorder %s880_s15, 8 }
  0x1c   : > { %527 = vmatpush1.bf16.msra.mxu0 %v821_v4  ;;  %v751_v15 = vcombine.high %v324_v14, %v324_v14  ;;  %v840_v19 = vld [vmem:[%s946_s27 + $0x84] ss:$8 sps:$4 sm:$0xff]   ;;  %v842_v20 = vld [vmem:[%s946_s27 + $0x80] ss:$8 sps:$4 sm:$0xff]   ;;  %v845_v22 = vld [vmem:[%s946_s27 + $0x90] ss:$8 sps:$4 sm:$0xff]   ;;  %v750_v35 = vcombine.low %v324_v14, %v324_v14  ;;  %v577_v44 = vlaneseq (!%p784_p6) }
  0x1d   : > { %528 = vmatprep.subr.bf16.mxu0 %v822_v5  ;;  %v846_v23 = vld [vmem:[%s946_s27 + $0xa4] ss:$8 sps:$4 sm:$0xff]   ;;  %v848_v24 = vld [vmem:[%s946_s27 + $0xa0] ss:$8 sps:$4 sm:$0xff]   ;;  %v849_v25 = vld [vmem:[%s946_s27 + $0xb4] ss:$8 sps:$4 sm:$0xff]  }
  0x1e   : > { %556 = vmatprep.mubr.bf16.mxu0 %v751_v15  ;;  %v851_v26 = vld [vmem:[%s946_s27 + $0xb0] ss:$8 sps:$4 sm:$0xff]   ;;  %v852_v27 = vld [vmem:[%s946_s27 + $0xc4] ss:$8 sps:$4 sm:$0xff]   ;;  %v854_v28 = vld [vmem:[%s946_s27 + $0xc0] ss:$8 sps:$4 sm:$0xff]  }
  0x1f   : > { %v855_v29 = vld [vmem:[%s946_s27 + $0xd4] ss:$8 sps:$4 sm:$0xff]   ;;  %v857_v30 = vld [vmem:[%s946_s27 + $0xd0] ss:$8 sps:$4 sm:$0xff]   ;;  %v858_v31 = vld [vmem:[%s946_s27 + $0xe4] ss:$8 sps:$4 sm:$0xff]  }
  0x20   : > { %529 = vmatpush1.bf16.msra.mxu0 %v824_v6  ;;  %v860_v32 = vld [vmem:[%s946_s27 + $0xe0] ss:$8 sps:$4 sm:$0xff]   ;;  %v861_v33 = vld [vmem:[%s946_s27 + $0xf4] ss:$8 sps:$4 sm:$0xff]   ;;  %v863_v34 = vld [vmem:[%s946_s27 + $0xf0] ss:$8 sps:$4 sm:$0xff]  }
  0x21   : > { %530 = vmatprep.subr.bf16.mxu0 %v825_v7  ;;  %v322_v36 = vld [vmem:[#allocation2] sm:$0xff]  ;;  %v323_v37 = vld [vmem:[#allocation2 + $0x8] sm:$0xff]  ;;  %v578_v45 = vshrl.u32 (!%p784_p6), %v577_v44, 7 }
  0x22   : > { %v575_v46 = vld [vmem:[%s1006_s2] sm:$0x3] (!%p784_p6) }
  0x23   : > { %v589_v47 = vld [vmem:[%s1007_s3] sm:$0x3] (!%p784_p6)  ;;  %v579_v48 = vsub.s32 (!%p784_p6), 0, %v578_v45  ;;  %v583_v49 = vsub.s32 (!%p784_p6), 1, %v578_v45 }
  0x24   : > { %531 = vmatpush1.bf16.msra.mxu0 %v827_v8 }
  0x25   : > { %532 = vmatprep.subr.bf16.mxu0 %v828_v9  ;;  %v580_v52 = vrot.slane (!%p784_p6), %v575_v46, %v579_v48  ;;  %v594_v53 = vrot.slane (!%p784_p6), %v589_v47, %v579_v48  ;;  %v584_v54 = vrot.slane (!%p784_p6), %v575_v46, %v583_v49  ;;  %v598_v55 = vrot.slane (!%p784_p6), %v589_v47, %v583_v49 }
  0x28   : > { %533 = vmatpush1.bf16.msra.mxu0 %v830_v10 }
  0x29   : > { %534 = vmatprep.subr.bf16.mxu0 %v831_v11 }
  0x2c   : > { %535 = vmatpush1.bf16.msra.mxu0 %v833_v12 }
  0x2d   : > { %536 = vmatprep.subr.bf16.mxu0 %v834_v13 }
  0x30   : > { %537 = vmatpush1.bf16.msra.mxu0 %v836_v16 }
  0x31   : > { %538 = vmatprep.subr.bf16.mxu0 %v837_v17 }
  0x34   : > { %539 = vmatpush1.bf16.msra.mxu0 %v839_v18 }
  0x35   : > { %540 = vmatprep.subr.bf16.mxu0 %v840_v19 }
  0x38   : > { %541 = vmatpush1.bf16.msra.mxu0 %v842_v20 }
  0x39   : > { %542 = vmatprep.subr.bf16.mxu0 %v843_v21 }
  0x3c   : > { %543 = vmatpush1.bf16.msra.mxu0 %v845_v22 }
  0x3d   : > { %544 = vmatprep.subr.bf16.mxu0 %v846_v23 }
  0x40   : > { %545 = vmatpush1.bf16.msra.mxu0 %v848_v24 }
  0x41   : > { %546 = vmatprep.subr.bf16.mxu0 %v849_v25 }
  0x44   : > { %547 = vmatpush1.bf16.msra.mxu0 %v851_v26 }
  0x45   : > { %548 = vmatprep.subr.bf16.mxu0 %v852_v27 }
  0x48   : > { %549 = vmatpush1.bf16.msra.mxu0 %v854_v28 }
  0x49   : > { %550 = vmatprep.subr.bf16.mxu0 %v855_v29 }
  0x4c   : > { %551 = vmatpush1.bf16.msra.mxu0 %v857_v30 }
  0x4d   : > { %552 = vmatprep.subr.bf16.mxu0 %v858_v31 }
  0x50   : > { %553 = vmatpush1.bf16.msra.mxu0 %v860_v32 }
  0x51   : > { %554 = vmatprep.subr.bf16.mxu0 %v861_v33 }
  0x54   : > { %555 = vmatpush1.bf16.msra.mxu0 %v863_v34 }
  0x57   : > { %557 = vmatmul.mubr.bf16.vlgmr.msra.gmra.mrb[0].mxu0 %v750_v35 }
 0x128   : > { %572 = sbr.rel (%p784_p6) target bundleno = 317 (0x13d), region = 44 }
 0x12a   : > { %v558_v38 = vpop.f32.mrb[0].mxu0 }
 0x12b   : > { %v565_v39 = vadd.f32 %v558_v38, %v322_v36  ;;  %v560_v40 = vpop.f32.mrb[1].mxu0 }
 0x12c   : > { %v566_v41 = vadd.f32 %v560_v40, %v323_v37  ;;  %v562_v42 = vpop.f32.mrb[2].mxu0 }
 0x12d   : > { %567 = vst [vmem:[#allocation2] sm:$0xff] %v565_v39  ;;  %v563_v43 = vpop.f32.mrb[3].mxu0 }
 0x12e   : > { %568 = vst [vmem:[#allocation2 + $0x8] sm:$0xff] %v566_v41 }
 0x134   : > { %v573_v50 = vld [vmem:[#allocation2] sm:$0xff] }
 0x135   : > { %v574_v51 = vld [vmem:[#allocation2 + $0x8] sm:$0xff]  ;;  %v587_v56 = vmul.f32 %v580_v52, %v573_v50 }
 0x136   : > { %v588_v57 = vmul.f32 %v584_v54, %v574_v51 }
 0x137   : > { %v601_v58 = vadd.f32 %v594_v53, %v587_v56 }
 0x138   : > { %v602_v59 = vadd.f32 %v598_v55, %v588_v57 }
 0x139   : > { %v603_v60 = vmax.f32 %v601_v58, 0.0 }
 0x13a   : > { %v604_v61 = vmax.f32 %v602_v59, 0.0 }
 0x13b   : > { %605 = vst [vmem:[%s1008_s4] sm:$0xff] %v603_v60 }
 0x13c   : > { %606 = vst [vmem:[%s1008_s4 + $0x8] sm:$0xff] %v604_v61 }
 0x13d PF: > { %s14_s17 = sadd.s32 1, %s888_s17   ;;  %s1009_s15 = smov %s884_s16 }
 0x13e   : > { %p11_p7 = scmp.ge.s32.totalorder %s14_s17, 11   ;;  %s1010_s16 = smov %s1012_s18 }
 0x140   :  { %13 = sbr.rel (!%p11_p7) target bundleno = 2 (0x2), region = 83 }

// kernel: resnet34_forward.69
= control target key start
LH: loop header
LB: loop body
LE: loop exit
PB: predicated region body
PF: predicated region fallthrough
CT: control target
= control target key end

     0   :  { %s1134_s15 = smov 0   ;;  %s1136_s16 = smov 0   ;;  %s1359_s0 = inlined_call_operand.vmem [shape: bf16[9,8,256], index: 0, kind: input, shape index: {}]   ;;  %s1360_s1 = inlined_call_operand.vmem [shape: bf16[9,256,512], index: 1, kind: input, shape index: {}]   ;;  %s1361_s2 = inlined_call_operand.vmem [shape: f32[1,512], index: 2, kind: input, shape index: {}]   ;;  %s1362_s3 = inlined_call_operand.vmem [shape: f32[1,512], index: 3, kind: input, shape index: {}]   ;;  %s1363_s4 = inlined_call_operand.vmem [shape: f32[8,512], index: 4, kind: output, shape index: {}]  }
   0x1   :  { %s1138_s17 = smov 0   ;;  %s1140_s18 = smov 0  }
   0x2   :  { %s1142_s19 = smov 0   ;;  %s1144_s20 = smov 0  }
   0x3   :  { %s1146_s21 = smov 0  }
   0x4 LB: > { %s26_s22 = sadd.s32 1, %s1098_s19  ;;  %s29_s23 = sadd.s32 1, %s1102_s20  ;;  %s1106_s21 = sphi %s1146_s21, %s14_s21   ;;  %s1102_s20 = sphi %s1144_s20, %s1369_s20   ;;  %s1098_s19 = sphi %s1142_s19, %s1368_s19   ;;  %s1094_s18 = sphi %s1140_s18, %s1367_s18   ;;  %s1090_s17 = sphi %s1138_s17, %s1366_s17   ;;  %s1086_s16 = sphi %s1136_s16, %s1365_s16   ;;  %s1082_s15 = sphi %s1134_s15, %s1364_s15  }
   0x5   : > { %p27_p0 = scmp.ge.s32.totalorder %s26_s22, 9  ;;  %p77_p1 = scmp.ne.s32.totalorder %s1086_s16, %s1082_s15 }
   0x6   : > { %p78_p2 = scmp.eq.s32.totalorder %s1106_s21, 0  ;;  %s70_s27 = sadd.s32 1, %s1086_s16 }
   0x7   : > { %s1371_s22 = smov (%p27_p0, %s26_s22), 0  ;;  %s1373_s23 = smov (!%p27_p0, %s29_s23), %s1102_s20 }
   0x8   : > { %p79_p3 = por %p78_p2, %p77_p1  ;;  %p31_p4 = scmp.ge.s32.totalorder %s1373_s23, 2 }
   0x9   : > { %s65_s24 = ssub.s32 %s1098_s19, %s1371_s22  ;;  %p893_p6 = scmp.ge.s32.totalorder %s1106_s21, 18 }
   0xa   : > { %s1375_s23 = smov (%p31_p4, %s1373_s23), 0 }
   0xb   : > { %s66_s25 = ssub.s32 %s1102_s20, %s1375_s23  ;;  %183 = sbr.rel (%p893_p6) target bundleno = 41 (0x29), region = 16 }
   0xc   : > { %s67_s26 = sor.u32 %s66_s25, %s65_s24 }
   0xd   : > { %p68_p5 = scmp.eq.s32.totalorder %s67_s26, 0 }
   0xf   : > { %s1185_s28 = scalar_select %p68_p5, %s1086_s16, %s70_s27  }
  0x12   : > { %198 = sbr.rel (!%p79_p3) target bundleno = 41 (0x29), region = 24  ;;  %s200_s29 = sand.u32 (%p79_p3), 1, %s1086_s16  }
  0x13   : > { %s895_s30 = sshll.u32 (%p79_p3), %s1102_s20, 1  ;;  %s894_s5 = sshll.u32 (%p79_p3), %s200_s29, 8 }
  0x14   : > { %s896_s6 = sshll.u32 (%p79_p3), %s1098_s19, 7  ;;  %s1199_s12 = scalar_lea.vmem (%p79_p3), [#allocation3], %s894_s5 }
  0x15   : > { %s205_s7 = sadd.s32 (%p79_p3), %s896_s6, %s895_s30 }
  0x16   : > { %s897_s8 = sshll.u32 (%p79_p3), %s205_s7, 2 }
  0x17   : > { %s1194_s11 = scalar_lea.vmem (%p79_p3), %s1360_s1, %s897_s8 }
  0x18   : > { %v297_v0 = vld [vmem:[%s1194_s11] sm:$0xff] (%p79_p3)  ;;  %v299_v1 = vld [vmem:[%s1194_s11 + $0x10] sm:$0xff] (%p79_p3) }
  0x19   : > { %v301_v2 = vld [vmem:[%s1194_s11 + $0x20] sm:$0xff]  ;;  %298 = vst [vmem:[%s1199_s12] sm:$0xff] %v297_v0  ;;  %300 = vst [vmem:[%s1199_s12 + $0x8] sm:$0xff] %v299_v1  ;;  %v303_v3 = vld [vmem:[%s1194_s11 + $0x30] sm:$0xff] }
  0x1a   : > { %302 = vst [vmem:[%s1199_s12 + $0x10] sm:$0xff] %v301_v2  ;;  %v305_v4 = vld [vmem:[%s1194_s11 + $0x40] sm:$0xff]  ;;  %v307_v5 = vld [vmem:[%s1194_s11 + $0x50] sm:$0xff]  ;;  %304 = vst [vmem:[%s1199_s12 + $0x18] sm:$0xff] %v303_v3 }
  0x1b   : > { %306 = vst [vmem:[%s1199_s12 + $0x20] sm:$0xff] %v305_v4  ;;  %308 = vst [vmem:[%s1199_s12 + $0x28] sm:$0xff] %v307_v5  ;;  %v309_v6 = vld [vmem:[%s1194_s11 + $0x60] sm:$0xff]  ;;  %v311_v7 = vld [vmem:[%s1194_s11 + $0x70] sm:$0xff] }
  0x1c   : > { %v313_v8 = vld [vmem:[%s1194_s11 + $0x80] sm:$0xff]  ;;  %310 = vst [vmem:[%s1199_s12 + $0x30] sm:$0xff] %v309_v6  ;;  %312 = vst [vmem:[%s1199_s12 + $0x38] sm:$0xff] %v311_v7  ;;  %v315_v9 = vld [vmem:[%s1194_s11 + $0x90] sm:$0xff] }
  0x1d   : > { %314 = vst [vmem:[%s1199_s12 + $0x40] sm:$0xff] %v313_v8  ;;  %v317_v10 = vld [vmem:[%s1194_s11 + $0xa0] sm:$0xff]  ;;  %v319_v11 = vld [vmem:[%s1194_s11 + $0xb0] sm:$0xff]  ;;  %316 = vst [vmem:[%s1199_s12 + $0x48] sm:$0xff] %v315_v9 }
  0x1e   : > { %318 = vst [vmem:[%s1199_s12 + $0x50] sm:$0xff] %v317_v10  ;;  %320 = vst [vmem:[%s1199_s12 + $0x58] sm:$0xff] %v319_v11  ;;  %v321_v12 = vld [vmem:[%s1194_s11 + $0xc0] sm:$0xff]  ;;  %v323_v13 = vld [vmem:[%s1194_s11 + $0xd0] sm:$0xff] }
  0x1f   : > { %v325_v14 = vld [vmem:[%s1194_s11 + $0xe0] sm:$0xff]  ;;  %322 = vst [vmem:[%s1199_s12 + $0x60] sm:$0xff] %v321_v12  ;;  %324 = vst [vmem:[%s1199_s12 + $0x68] sm:$0xff] %v323_v13  ;;  %v327_v15 = vld [vmem:[%s1194_s11 + $0xf0] sm:$0xff] }
  0x20   : > { %326 = vst [vmem:[%s1199_s12 + $0x70] sm:$0xff] %v325_v14  ;;  %v329_v16 = vld [vmem:[%s1194_s11 + $0x100] sm:$0xff]  ;;  %v331_v17 = vld [vmem:[%s1194_s11 + $0x110] sm:$0xff]  ;;  %328 = vst [vmem:[%s1199_s12 + $0x78] sm:$0xff] %v327_v15 }
  0x21   : > { %330 = vst [vmem:[%s1199_s12 + $0x80] sm:$0xff] %v329_v16  ;;  %332 = vst [vmem:[%s1199_s12 + $0x88] sm:$0xff] %v331_v17  ;;  %v333_v18 = vld [vmem:[%s1194_s11 + $0x120] sm:$0xff]  ;;  %v335_v19 = vld [vmem:[%s1194_s11 + $0x130] sm:$0xff] }
  0x22   : > { %v337_v20 = vld [vmem:[%s1194_s11 + $0x140] sm:$0xff]  ;;  %334 = vst [vmem:[%s1199_s12 + $0x90] sm:$0xff] %v333_v18  ;;  %336 = vst [vmem:[%s1199_s12 + $0x98] sm:$0xff] %v335_v19  ;;  %v339_v21 = vld [vmem:[%s1194_s11 + $0x150] sm:$0xff] }
  0x23   : > { %338 = vst [vmem:[%s1199_s12 + $0xa0] sm:$0xff] %v337_v20  ;;  %v341_v22 = vld [vmem:[%s1194_s11 + $0x160] sm:$0xff]  ;;  %v343_v23 = vld [vmem:[%s1194_s11 + $0x170] sm:$0xff]  ;;  %340 = vst [vmem:[%s1199_s12 + $0xa8] sm:$0xff] %v339_v21 }
  0x24   : > { %342 = vst [vmem:[%s1199_s12 + $0xb0] sm:$0xff] %v341_v22  ;;  %344 = vst [vmem:[%s1199_s12 + $0xb8] sm:$0xff] %v343_v23  ;;  %v345_v24 = vld [vmem:[%s1194_s11 + $0x180] sm:$0xff]  ;;  %v347_v25 = vld [vmem:[%s1194_s11 + $0x190] sm:$0xff] }
  0x25   : > { %v349_v26 = vld [vmem:[%s1194_s11 + $0x1a0] sm:$0xff]  ;;  %346 = vst [vmem:[%s1199_s12 + $0xc0] sm:$0xff] %v345_v24  ;;  %348 = vst [vmem:[%s1199_s12 + $0xc8] sm:$0xff] %v347_v25  ;;  %v351_v27 = vld [vmem:[%s1194_s11 + $0x1b0] sm:$0xff] }
  0x26   : > { %350 = vst [vmem:[%s1199_s12 + $0xd0] sm:$0xff] %v349_v26  ;;  %v353_v28 = vld [vmem:[%s1194_s11 + $0x1c0] sm:$0xff]  ;;  %v355_v29 = vld [vmem:[%s1194_s11 + $0x1d0] sm:$0xff]  ;;  %352 = vst [vmem:[%s1199_s12 + $0xd8] sm:$0xff] %v351_v27 }
  0x27   : > { %354 = vst [vmem:[%s1199_s12 + $0xe0] sm:$0xff] %v353_v28  ;;  %356 = vst [vmem:[%s1199_s12 + $0xe8] sm:$0xff] %v355_v29  ;;  %v357_v30 = vld [vmem:[%s1194_s11 + $0x1e0] sm:$0xff]  ;;  %v359_v31 = vld [vmem:[%s1194_s11 + $0x1f0] sm:$0xff] }
  0x28   : > { %358 = vst [vmem:[%s1199_s12 + $0xf0] sm:$0xff] %v357_v30  ;;  %360 = vst [vmem:[%s1199_s12 + $0xf8] sm:$0xff] %v359_v31 }
  0x29 PF: > { %p898_p7 = scmp.ge.s32.totalorder %s1106_s21, 1  ;;  %p381_p8 = scmp.lt.s32.totalorder %s1106_s21, 19 }
  0x2b   : > { %p382_p9 = pnand %p898_p7, %p381_p8 }
  0x2c   : > { %s388_s13 = sand.u32 (!%p382_p9), 1, %s1082_s15   ;;  %p434_p10 = scmp.lt.s32.totalorder (!%p382_p9), %s1090_s17, 8 }
  0x2d   : > { %385 = sbr.rel (%p382_p9) target bundleno = 355 (0x163), region = 70  ;;  %s899_s14 = sshll.u32 (!%p382_p9), %s388_s13, 8 }
  0x2e   : > { %s902_s24 = sshll.u32 (!%p382_p9), %s1094_s18, 1  ;;  %s1289_s13 = scalar_lea.vmem (!%p382_p9), [#allocation3], %s899_s14 }
  0x2f   : > { %p445_p11 = scmp.lt.s32.totalorder (!%p382_p9), %s902_s24, 3  ;;  %p906_p12 = scmp.ne.s32.totalorder (!%p382_p9), %s1090_s17, 0 }
  0x34   : > { %s435_s25 = scalar_select %p434_p10, %s1090_s17, 8 }
  0x35   : > { %s1377_s24 = smov (!%p445_p11, %s902_s24), 3  ;;  %467 = sbr.rel (%p906_p12) target bundleno = 60 (0x3c), region = 78 }
  0x36   : > { %s944_s26 = sshll.u32 %s435_s25, 3  ;;  %s447_s15 = scalar_lea.vmem %s1361_s2, %s1377_s24  ;;  %v1108_v32 = vmov (!%p906_p12), 0.0  }
  0x37   : > { %s1273_s30 = scalar_lea.vmem %s1359_s0, %s944_s26  ;;  %s452_s18 = scalar_lea.vmem %s1362_s3, %s1377_s24  ;;  %468 = vst [vmem:[#allocation2] sm:$0xff] (!%p906_p12), %v1108_v32  ;;  %469 = vst [vmem:[#allocation2 + $0x8] sm:$0xff] (!%p906_p12), %v1108_v32 }
  0x38   : > { %s905_s9 = sshll.u32 %s1377_s24, 3 }
  0x39   : > { %s1287_s12 = scalar_lea.vmem %s1363_s4, %s905_s9 }
  0x3c PF: > { %v1002_v33 = vld [vmem:[%s1289_s13 + $0x4] ss:$8 sps:$4 sm:$0xff]   ;;  %v1004_v34 = vld [vmem:[%s1289_s13] ss:$8 sps:$4 sm:$0xff]   ;;  %v1005_v35 = vld [vmem:[%s1289_s13 + $0x14] ss:$8 sps:$4 sm:$0xff]  }
  0x3d   : > { %672 = vmatprep.subr.bf16.mxu0 %v1002_v33  ;;  %v1007_v36 = vld [vmem:[%s1289_s13 + $0x10] ss:$8 sps:$4 sm:$0xff]   ;;  %v1008_v37 = vld [vmem:[%s1289_s13 + $0x24] ss:$8 sps:$4 sm:$0xff]   ;;  %v1010_v38 = vld [vmem:[%s1289_s13 + $0x20] ss:$8 sps:$4 sm:$0xff]  }
  0x3e   : > { %673 = vmatpush1.bf16.msra.mxu0 %v1004_v34  ;;  %v1011_v39 = vld [vmem:[%s1289_s13 + $0x34] ss:$8 sps:$4 sm:$0xff]   ;;  %v1013_v40 = vld [vmem:[%s1289_s13 + $0x30] ss:$8 sps:$4 sm:$0xff]   ;;  %v1014_v41 = vld [vmem:[%s1289_s13 + $0x44] ss:$8 sps:$4 sm:$0xff]  }
  0x3f   : > { %674 = vmatprep.subr.bf16.mxu0 %v1005_v35  ;;  %v1016_v42 = vld [vmem:[%s1289_s13 + $0x40] ss:$8 sps:$4 sm:$0xff]   ;;  %v1017_v43 = vld [vmem:[%s1289_s13 + $0x54] ss:$8 sps:$4 sm:$0xff]   ;;  %v1019_v44 = vld [vmem:[%s1289_s13 + $0x50] ss:$8 sps:$4 sm:$0xff]  }
  0x40   : > { %v1020_v45 = vld [vmem:[%s1289_s13 + $0x64] ss:$8 sps:$4 sm:$0xff]   ;;  %v472_v46 = vld [vmem:[%s1273_s30] sm:$0xff]  ;;  %v1022_v48 = vld [vmem:[%s1289_s13 + $0x60] ss:$8 sps:$4 sm:$0xff]   ;;  %p941_p13 = scmp.ne.s32.totalorder %s1090_s17, 8 }
  0x41   : > { %v908_v47 = vcombine.high %v472_v46, %v472_v46  ;;  %v1023_v49 = vld [vmem:[%s1289_s13 + $0x74] ss:$8 sps:$4 sm:$0xff]   ;;  %v1025_v50 = vld [vmem:[%s1289_s13 + $0x70] ss:$8 sps:$4 sm:$0xff]   ;;  %v1026_v51 = vld [vmem:[%s1289_s13 + $0x84] ss:$8 sps:$4 sm:$0xff]   ;;  %v907_v3 = vcombine.low %v472_v46, %v472_v46  ;;  %v725_v12 = vlaneseq (!%p941_p13) }
  0x42   : > { %675 = vmatpush1.bf16.msra.mxu0 %v1007_v36  ;;  %v1028_v52 = vld [vmem:[%s1289_s13 + $0x80] ss:$8 sps:$4 sm:$0xff]   ;;  %v1029_v53 = vld [vmem:[%s1289_s13 + $0x94] ss:$8 sps:$4 sm:$0xff]   ;;  %v1031_v54 = vld [vmem:[%s1289_s13 + $0x90] ss:$8 sps:$4 sm:$0xff]  }
  0x43   : > { %676 = vmatprep.subr.bf16.mxu0 %v1008_v37  ;;  %704 = vmatprep.mubr.bf16.mxu0 %v908_v47  ;;  %v1032_v55 = vld [vmem:[%s1289_s13 + $0xa4] ss:$8 sps:$4 sm:$0xff]   ;;  %v1034_v56 = vld [vmem:[%s1289_s13 + $0xa0] ss:$8 sps:$4 sm:$0xff]   ;;  %v1035_v57 = vld [vmem:[%s1289_s13 + $0xb4] ss:$8 sps:$4 sm:$0xff]  }
  0x44   : > { %v1037_v58 = vld [vmem:[%s1289_s13 + $0xb0] ss:$8 sps:$4 sm:$0xff]   ;;  %v1038_v59 = vld [vmem:[%s1289_s13 + $0xc4] ss:$8 sps:$4 sm:$0xff]   ;;  %v1040_v60 = vld [vmem:[%s1289_s13 + $0xc0] ss:$8 sps:$4 sm:$0xff]  }
  0x45   : > { %v1041_v61 = vld [vmem:[%s1289_s13 + $0xd4] ss:$8 sps:$4 sm:$0xff]   ;;  %v1043_v62 = vld [vmem:[%s1289_s13 + $0xd0] ss:$8 sps:$4 sm:$0xff]   ;;  %v1044_v63 = vld [vmem:[%s1289_s13 + $0xe4] ss:$8 sps:$4 sm:$0xff]  }
  0x46   : > { %677 = vmatpush1.bf16.msra.mxu0 %v1010_v38  ;;  %v1046_v0 = vld [vmem:[%s1289_s13 + $0xe0] ss:$8 sps:$4 sm:$0xff]   ;;  %v1047_v1 = vld [vmem:[%s1289_s13 + $0xf4] ss:$8 sps:$4 sm:$0xff]   ;;  %v1049_v2 = vld [vmem:[%s1289_s13 + $0xf0] ss:$8 sps:$4 sm:$0xff]  }
  0x47   : > { %678 = vmatprep.subr.bf16.mxu0 %v1011_v39  ;;  %v470_v4 = vld [vmem:[#allocation2] sm:$0xff]  ;;  %v471_v5 = vld [vmem:[#allocation2 + $0x8] sm:$0xff]  ;;  %v726_v13 = vshrl.u32 (!%p941_p13), %v725_v12, 7 }
  0x48   : > { %v723_v14 = vld [vmem:[%s447_s15] sm:$0x3] (!%p941_p13) }
  0x49   : > { %v737_v15 = vld [vmem:[%s452_s18] sm:$0x3] (!%p941_p13)  ;;  %v727_v16 = vsub.s32 (!%p941_p13), 0, %v726_v13  ;;  %v731_v17 = vsub.s32 (!%p941_p13), 1, %v726_v13 }
  0x4a   : > { %679 = vmatpush1.bf16.msra.mxu0 %v1013_v40 }
  0x4b   : > { %680 = vmatprep.subr.bf16.mxu0 %v1014_v41  ;;  %v728_v20 = vrot.slane (!%p941_p13), %v723_v14, %v727_v16  ;;  %v742_v21 = vrot.slane (!%p941_p13), %v737_v15, %v727_v16  ;;  %v732_v22 = vrot.slane (!%p941_p13), %v723_v14, %v731_v17  ;;  %v746_v23 = vrot.slane (!%p941_p13), %v737_v15, %v731_v17 }
  0x4e   : > { %681 = vmatpush1.bf16.msra.mxu0 %v1016_v42 }
  0x4f   : > { %682 = vmatprep.subr.bf16.mxu0 %v1017_v43 }
  0x52   : > { %683 = vmatpush1.bf16.msra.mxu0 %v1019_v44 }
  0x53   : > { %684 = vmatprep.subr.bf16.mxu0 %v1020_v45 }
  0x56   : > { %685 = vmatpush1.bf16.msra.mxu0 %v1022_v48 }
  0x57   : > { %686 = vmatprep.subr.bf16.mxu0 %v1023_v49 }
  0x5a   : > { %687 = vmatpush1.bf16.msra.mxu0 %v1025_v50 }
  0x5b   : > { %688 = vmatprep.subr.bf16.mxu0 %v1026_v51 }
  0x5e   : > { %689 = vmatpush1.bf16.msra.mxu0 %v1028_v52 }
  0x5f   : > { %690 = vmatprep.subr.bf16.mxu0 %v1029_v53 }
  0x62   : > { %691 = vmatpush1.bf16.msra.mxu0 %v1031_v54 }
  0x63   : > { %692 = vmatprep.subr.bf16.mxu0 %v1032_v55 }
  0x66   : > { %693 = vmatpush1.bf16.msra.mxu0 %v1034_v56 }
  0x67   : > { %694 = vmatprep.subr.bf16.mxu0 %v1035_v57 }
  0x6a   : > { %695 = vmatpush1.bf16.msra.mxu0 %v1037_v58 }
  0x6b   : > { %696 = vmatprep.subr.bf16.mxu0 %v1038_v59 }
  0x6e   : > { %697 = vmatpush1.bf16.msra.mxu0 %v1040_v60 }
  0x6f   : > { %698 = vmatprep.subr.bf16.mxu0 %v1041_v61 }
  0x72   : > { %699 = vmatpush1.bf16.msra.mxu0 %v1043_v62 }
  0x73   : > { %700 = vmatprep.subr.bf16.mxu0 %v1044_v63 }
  0x76   : > { %701 = vmatpush1.bf16.msra.mxu0 %v1046_v0 }
  0x77   : > { %702 = vmatprep.subr.bf16.mxu0 %v1047_v1 }
  0x7a   : > { %703 = vmatpush1.bf16.msra.mxu0 %v1049_v2 }
  0x7d   : > { %705 = vmatmul.mubr.bf16.vlgmr.msra.gmra.mrb[0].mxu0 %v907_v3 }
 0x14e   : > { %720 = sbr.rel (%p941_p13) target bundleno = 355 (0x163), region = 82 }
 0x150   : > { %v706_v6 = vpop.f32.mrb[0].mxu0 }
 0x151   : > { %v713_v7 = vadd.f32 %v706_v6, %v470_v4  ;;  %v708_v8 = vpop.f32.mrb[1].mxu0 }
 0x152   : > { %v714_v9 = vadd.f32 %v708_v8, %v471_v5  ;;  %v710_v10 = vpop.f32.mrb[2].mxu0 }
 0x153   : > { %715 = vst [vmem:[#allocation2] sm:$0xff] %v713_v7  ;;  %v711_v11 = vpop.f32.mrb[3].mxu0 }
 0x154   : > { %716 = vst [vmem:[#allocation2 + $0x8] sm:$0xff] %v714_v9 }
 0x15a   : > { %v721_v18 = vld [vmem:[#allocation2] sm:$0xff] }
 0x15b   : > { %v722_v19 = vld [vmem:[#allocation2 + $0x8] sm:$0xff]  ;;  %v735_v24 = vmul.f32 %v728_v20, %v721_v18 }
 0x15c   : > { %v736_v25 = vmul.f32 %v732_v22, %v722_v19 }
 0x15d   : > { %v749_v26 = vadd.f32 %v742_v21, %v735_v24 }
 0x15e   : > { %v750_v27 = vadd.f32 %v746_v23, %v736_v25 }
 0x15f   : > { %v751_v28 = vmax.f32 %v749_v26, 0.0 }
 0x160   : > { %v752_v29 = vmax.f32 %v750_v27, 0.0 }
 0x161   : > { %753 = vst [vmem:[%s1287_s12] sm:$0xff] %v751_v28 }
 0x162   : > { %754 = vst [vmem:[%s1287_s12 + $0x8] sm:$0xff] %v752_v29 }
 0x163 PF: > { %s14_s21 = sadd.s32 1, %s1106_s21   ;;  %s1364_s15 = smov %s1086_s16 }
 0x164   : > { %p11_p0 = scmp.ge.s32.totalorder %s14_s21, 20   ;;  %s1365_s16 = smov %s1185_s28 }
 0x165   : > { %s1366_s17 = smov %s1098_s19  ;;  %s1367_s18 = smov %s1102_s20 }
 0x166   : > { %s1368_s19 = smov %s1371_s22  ;;  %s1369_s20 = smov %s1375_s23 }
 0x167   :  { %13 = sbr.rel (!%p11_p0) target bundleno = 4 (0x4), region = 126 }

// kernel: resnet34_forward.70
= control target key start
LH: loop header
LB: loop body
LE: loop exit
PB: predicated region body
PF: predicated region fallthrough
CT: control target
= control target key end

     0   :  { %s1093_s15 = smov 0   ;;  %s1095_s16 = smov 0   ;;  %s1275_s0 = inlined_call_operand.vmem [shape: bf16[1,8,256], index: 0, kind: input, shape index: {}]   ;;  %s1276_s1 = inlined_call_operand.vmem [shape: bf16[1,256,512], index: 1, kind: input, shape index: {}]   ;;  %s1277_s2 = inlined_call_operand.vmem [shape: f32[1,512], index: 2, kind: input, shape index: {}]   ;;  %s1278_s3 = inlined_call_operand.vmem [shape: f32[1,512], index: 3, kind: input, shape index: {}]   ;;  %s1279_s4 = inlined_call_operand.vmem [shape: f32[8,512], index: 4, kind: output, shape index: {}]  }
   0x1   :  { %s1097_s17 = smov 0   ;;  %s1099_s18 = smov 0  }
   0x2   :  { %s1101_s19 = smov 0  }
   0x3 LB: > { %s29_s20 = sadd.s32 1, %s1062_s18  ;;  %p77_p1 = scmp.ne.s32.totalorder %s1054_s16, %s1050_s15  ;;  %s1066_s19 = sphi %s1101_s19, %s14_s19   ;;  %s1062_s18 = sphi %s1099_s18, %s1283_s18   ;;  %s1058_s17 = sphi %s1097_s17, %s1282_s17   ;;  %s1054_s16 = sphi %s1095_s16, %s1281_s16   ;;  %s1050_s15 = sphi %s1093_s15, %s1280_s15  }
   0x4   : > { %p31_p0 = scmp.ge.s32.totalorder %s29_s20, 2  ;;  %p78_p2 = scmp.eq.s32.totalorder %s1066_s19, 0 }
   0x5   : > { %s70_s22 = sadd.s32 1, %s1054_s16  ;;  %p891_p5 = scmp.ge.s32.totalorder %s1066_s19, 2 }
   0x6   : > { %s1285_s20 = smov (%p31_p0, %s29_s20), 0  ;;  %p79_p3 = por %p78_p2, %p77_p1 }
   0x7   : > { %s66_s21 = ssub.s32 %s1062_s18, %s1285_s20  ;;  %195 = sbr.rel (%p891_p5) target bundleno = 34 (0x22), region = 20 }
   0x8   : > { %p68_p4 = scmp.eq.s32.totalorder %s66_s21, 0 }
   0xa   : > { %s1128_s23 = scalar_select %p68_p4, %s1054_s16, %s70_s22  }
   0xe   : > { %198 = sbr.rel (!%p79_p3) target bundleno = 34 (0x22), region = 24  ;;  %s200_s24 = sand.u32 (%p79_p3), 1, %s1054_s16  }
   0xf   : > { %s937_s25 = sshll.u32 (%p79_p3), %s1062_s18, 3  ;;  %s892_s26 = sshll.u32 (%p79_p3), %s200_s24, 8 }
  0x10   : > { %s1136_s29 = scalar_lea.vmem (%p79_p3), %s1276_s1, %s937_s25  ;;  %s1141_s30 = scalar_lea.vmem (%p79_p3), [#allocation3], %s892_s26 }
  0x11   : > { %v297_v0 = vld [vmem:[%s1136_s29] sm:$0xff] (%p79_p3)  ;;  %v299_v1 = vld [vmem:[%s1136_s29 + $0x10] sm:$0xff] (%p79_p3) }
  0x12   : > { %v301_v2 = vld [vmem:[%s1136_s29 + $0x20] sm:$0xff] (%p79_p3)  ;;  %298 = vst [vmem:[%s1141_s30] sm:$0xff] (%p79_p3), %v297_v0  ;;  %300 = vst [vmem:[%s1141_s30 + $0x8] sm:$0xff] (%p79_p3), %v299_v1  ;;  %v303_v3 = vld [vmem:[%s1136_s29 + $0x30] sm:$0xff] (%p79_p3) }
  0x13   : > { %302 = vst [vmem:[%s1141_s30 + $0x10] sm:$0xff] (%p79_p3), %v301_v2  ;;  %v305_v4 = vld [vmem:[%s1136_s29 + $0x40] sm:$0xff] (%p79_p3)  ;;  %v307_v5 = vld [vmem:[%s1136_s29 + $0x50] sm:$0xff] (%p79_p3)  ;;  %304 = vst [vmem:[%s1141_s30 + $0x18] sm:$0xff] (%p79_p3), %v303_v3 }
  0x14   : > { %306 = vst [vmem:[%s1141_s30 + $0x20] sm:$0xff] (%p79_p3), %v305_v4  ;;  %308 = vst [vmem:[%s1141_s30 + $0x28] sm:$0xff] (%p79_p3), %v307_v5  ;;  %v309_v6 = vld [vmem:[%s1136_s29 + $0x60] sm:$0xff] (%p79_p3)  ;;  %v311_v7 = vld [vmem:[%s1136_s29 + $0x70] sm:$0xff] (%p79_p3) }
  0x15   : > { %v313_v8 = vld [vmem:[%s1136_s29 + $0x80] sm:$0xff]  ;;  %310 = vst [vmem:[%s1141_s30 + $0x30] sm:$0xff] %v309_v6  ;;  %312 = vst [vmem:[%s1141_s30 + $0x38] sm:$0xff] %v311_v7  ;;  %v315_v9 = vld [vmem:[%s1136_s29 + $0x90] sm:$0xff] }
  0x16   : > { %314 = vst [vmem:[%s1141_s30 + $0x40] sm:$0xff] %v313_v8  ;;  %v317_v10 = vld [vmem:[%s1136_s29 + $0xa0] sm:$0xff]  ;;  %v319_v11 = vld [vmem:[%s1136_s29 + $0xb0] sm:$0xff]  ;;  %316 = vst [vmem:[%s1141_s30 + $0x48] sm:$0xff] %v315_v9 }
  0x17   : > { %318 = vst [vmem:[%s1141_s30 + $0x50] sm:$0xff] %v317_v10  ;;  %320 = vst [vmem:[%s1141_s30 + $0x58] sm:$0xff] %v319_v11  ;;  %v321_v12 = vld [vmem:[%s1136_s29 + $0xc0] sm:$0xff]  ;;  %v323_v13 = vld [vmem:[%s1136_s29 + $0xd0] sm:$0xff] }
  0x18   : > { %v325_v14 = vld [vmem:[%s1136_s29 + $0xe0] sm:$0xff]  ;;  %322 = vst [vmem:[%s1141_s30 + $0x60] sm:$0xff] %v321_v12  ;;  %324 = vst [vmem:[%s1141_s30 + $0x68] sm:$0xff] %v323_v13  ;;  %v327_v15 = vld [vmem:[%s1136_s29 + $0xf0] sm:$0xff] }
  0x19   : > { %326 = vst [vmem:[%s1141_s30 + $0x70] sm:$0xff] %v325_v14  ;;  %v329_v16 = vld [vmem:[%s1136_s29 + $0x100] sm:$0xff]  ;;  %v331_v17 = vld [vmem:[%s1136_s29 + $0x110] sm:$0xff]  ;;  %328 = vst [vmem:[%s1141_s30 + $0x78] sm:$0xff] %v327_v15 }
  0x1a   : > { %330 = vst [vmem:[%s1141_s30 + $0x80] sm:$0xff] %v329_v16  ;;  %332 = vst [vmem:[%s1141_s30 + $0x88] sm:$0xff] %v331_v17  ;;  %v333_v18 = vld [vmem:[%s1136_s29 + $0x120] sm:$0xff]  ;;  %v335_v19 = vld [vmem:[%s1136_s29 + $0x130] sm:$0xff] }
  0x1b   : > { %v337_v20 = vld [vmem:[%s1136_s29 + $0x140] sm:$0xff]  ;;  %334 = vst [vmem:[%s1141_s30 + $0x90] sm:$0xff] %v333_v18  ;;  %336 = vst [vmem:[%s1141_s30 + $0x98] sm:$0xff] %v335_v19  ;;  %v339_v21 = vld [vmem:[%s1136_s29 + $0x150] sm:$0xff] }
  0x1c   : > { %338 = vst [vmem:[%s1141_s30 + $0xa0] sm:$0xff] %v337_v20  ;;  %v341_v22 = vld [vmem:[%s1136_s29 + $0x160] sm:$0xff]  ;;  %v343_v23 = vld [vmem:[%s1136_s29 + $0x170] sm:$0xff]  ;;  %340 = vst [vmem:[%s1141_s30 + $0xa8] sm:$0xff] %v339_v21 }
  0x1d   : > { %342 = vst [vmem:[%s1141_s30 + $0xb0] sm:$0xff] %v341_v22  ;;  %344 = vst [vmem:[%s1141_s30 + $0xb8] sm:$0xff] %v343_v23  ;;  %v345_v24 = vld [vmem:[%s1136_s29 + $0x180] sm:$0xff]  ;;  %v347_v25 = vld [vmem:[%s1136_s29 + $0x190] sm:$0xff] }
  0x1e   : > { %v349_v26 = vld [vmem:[%s1136_s29 + $0x1a0] sm:$0xff]  ;;  %346 = vst [vmem:[%s1141_s30 + $0xc0] sm:$0xff] %v345_v24  ;;  %348 = vst [vmem:[%s1141_s30 + $0xc8] sm:$0xff] %v347_v25  ;;  %v351_v27 = vld [vmem:[%s1136_s29 + $0x1b0] sm:$0xff] }
  0x1f   : > { %350 = vst [vmem:[%s1141_s30 + $0xd0] sm:$0xff] %v349_v26  ;;  %v353_v28 = vld [vmem:[%s1136_s29 + $0x1c0] sm:$0xff]  ;;  %v355_v29 = vld [vmem:[%s1136_s29 + $0x1d0] sm:$0xff]  ;;  %352 = vst [vmem:[%s1141_s30 + $0xd8] sm:$0xff] %v351_v27 }
  0x20   : > { %354 = vst [vmem:[%s1141_s30 + $0xe0] sm:$0xff] %v353_v28  ;;  %356 = vst [vmem:[%s1141_s30 + $0xe8] sm:$0xff] %v355_v29  ;;  %v357_v30 = vld [vmem:[%s1136_s29 + $0x1e0] sm:$0xff]  ;;  %v359_v31 = vld [vmem:[%s1136_s29 + $0x1f0] sm:$0xff] }
  0x21   : > { %358 = vst [vmem:[%s1141_s30 + $0xf0] sm:$0xff] %v357_v30  ;;  %360 = vst [vmem:[%s1141_s30 + $0xf8] sm:$0xff] %v359_v31 }
  0x22 PF: > { %p895_p6 = scmp.ge.s32.totalorder %s1066_s19, 1  ;;  %p381_p7 = scmp.lt.s32.totalorder %s1066_s19, 3 }
  0x24   : > { %p382_p8 = pnand %p895_p6, %p381_p7 }
  0x25   : > { %s388_s5 = sand.u32 (!%p382_p8), 1, %s1050_s15   ;;  %v1210_v32 = vld [vmem:[%s1275_s0] sm:$0xff] (!%p382_p8)  ;;  %s897_s10 = sshll.u32 (!%p382_p8), %s1058_s17, 1  ;;  %v724_v3 = vlaneseq (!%p382_p8) }
  0x26   : > { %385 = sbr.rel (%p382_p8) target bundleno = 323 (0x143), region = 70  ;;  %s896_s8 = sshll.u32 (!%p382_p8), %s388_s5, 8  ;;  %v902_v33 = vcombine.high (!%p382_p8), %v1210_v32, %v1210_v32  ;;  %v901_v2 = vcombine.low (!%p382_p8), %v1210_v32, %v1210_v32 }
  0x27   : > { %s1214_s9 = scalar_lea.vmem (!%p382_p8), [#allocation3], %s896_s8  ;;  %p445_p9 = scmp.lt.s32.totalorder (!%p382_p8), %s897_s10, 3  ;;  %v725_v4 = vshrl.u32 (!%p382_p8), %v724_v3, 7 }
  0x28   : > { %v978_v34 = vld [vmem:[%s1214_s9 + $0x4] ss:$8 sps:$4 sm:$0xff] (!%p382_p8)   ;;  %704 = vmatprep.mubr.bf16.mxu0 (!%p382_p8), %v902_v33  ;;  %v980_v35 = vld [vmem:[%s1214_s9] ss:$8 sps:$4 sm:$0xff] (!%p382_p8)   ;;  %v981_v36 = vld [vmem:[%s1214_s9 + $0x14] ss:$8 sps:$4 sm:$0xff] (!%p382_p8)  }
  0x29   : > { %672 = vmatprep.subr.bf16.mxu0 (!%p382_p8), %v978_v34  ;;  %v983_v37 = vld [vmem:[%s1214_s9 + $0x10] ss:$8 sps:$4 sm:$0xff] (!%p382_p8)   ;;  %v984_v38 = vld [vmem:[%s1214_s9 + $0x24] ss:$8 sps:$4 sm:$0xff] (!%p382_p8)   ;;  %v986_v39 = vld [vmem:[%s1214_s9 + $0x20] ss:$8 sps:$4 sm:$0xff] (!%p382_p8)  }
  0x2a   : > { %673 = vmatpush1.bf16.msra.mxu0 (!%p382_p8), %v980_v35  ;;  %v987_v40 = vld [vmem:[%s1214_s9 + $0x34] ss:$8 sps:$4 sm:$0xff] (!%p382_p8)   ;;  %v989_v41 = vld [vmem:[%s1214_s9 + $0x30] ss:$8 sps:$4 sm:$0xff] (!%p382_p8)   ;;  %v990_v42 = vld [vmem:[%s1214_s9 + $0x44] ss:$8 sps:$4 sm:$0xff] (!%p382_p8)  }
  0x2b   : > { %674 = vmatprep.subr.bf16.mxu0 (!%p382_p8), %v981_v36  ;;  %v992_v43 = vld [vmem:[%s1214_s9 + $0x40] ss:$8 sps:$4 sm:$0xff] (!%p382_p8)   ;;  %v993_v44 = vld [vmem:[%s1214_s9 + $0x54] ss:$8 sps:$4 sm:$0xff] (!%p382_p8)   ;;  %v995_v45 = vld [vmem:[%s1214_s9 + $0x50] ss:$8 sps:$4 sm:$0xff] (!%p382_p8)  }
  0x2c   : > { %v996_v46 = vld [vmem:[%s1214_s9 + $0x64] ss:$8 sps:$4 sm:$0xff] (!%p382_p8)   ;;  %v998_v47 = vld [vmem:[%s1214_s9 + $0x60] ss:$8 sps:$4 sm:$0xff] (!%p382_p8)   ;;  %v999_v48 = vld [vmem:[%s1214_s9 + $0x74] ss:$8 sps:$4 sm:$0xff] (!%p382_p8)  }
  0x2d   : > { %v1001_v49 = vld [vmem:[%s1214_s9 + $0x70] ss:$8 sps:$4 sm:$0xff]   ;;  %v1002_v50 = vld [vmem:[%s1214_s9 + $0x84] ss:$8 sps:$4 sm:$0xff]   ;;  %v1004_v51 = vld [vmem:[%s1214_s9 + $0x80] ss:$8 sps:$4 sm:$0xff]  }
  0x2e   : > { %675 = vmatpush1.bf16.msra.mxu0 %v983_v37  ;;  %v1005_v52 = vld [vmem:[%s1214_s9 + $0x94] ss:$8 sps:$4 sm:$0xff]   ;;  %v1007_v53 = vld [vmem:[%s1214_s9 + $0x90] ss:$8 sps:$4 sm:$0xff]   ;;  %v1008_v54 = vld [vmem:[%s1214_s9 + $0xa4] ss:$8 sps:$4 sm:$0xff]  }
  0x2f   : > { %676 = vmatprep.subr.bf16.mxu0 %v984_v38  ;;  %v1010_v55 = vld [vmem:[%s1214_s9 + $0xa0] ss:$8 sps:$4 sm:$0xff]   ;;  %v1011_v56 = vld [vmem:[%s1214_s9 + $0xb4] ss:$8 sps:$4 sm:$0xff]   ;;  %v1013_v57 = vld [vmem:[%s1214_s9 + $0xb0] ss:$8 sps:$4 sm:$0xff]  }
  0x30   : > { %v1014_v58 = vld [vmem:[%s1214_s9 + $0xc4] ss:$8 sps:$4 sm:$0xff]   ;;  %v1016_v59 = vld [vmem:[%s1214_s9 + $0xc0] ss:$8 sps:$4 sm:$0xff]   ;;  %v1017_v60 = vld [vmem:[%s1214_s9 + $0xd4] ss:$8 sps:$4 sm:$0xff]  }
  0x31   : > { %v1019_v61 = vld [vmem:[%s1214_s9 + $0xd0] ss:$8 sps:$4 sm:$0xff]   ;;  %v1020_v62 = vld [vmem:[%s1214_s9 + $0xe4] ss:$8 sps:$4 sm:$0xff]   ;;  %v1022_v63 = vld [vmem:[%s1214_s9 + $0xe0] ss:$8 sps:$4 sm:$0xff]  }
  0x32   : > { %677 = vmatpush1.bf16.msra.mxu0 %v986_v39  ;;  %v1023_v0 = vld [vmem:[%s1214_s9 + $0xf4] ss:$8 sps:$4 sm:$0xff]   ;;  %v1025_v1 = vld [vmem:[%s1214_s9 + $0xf0] ss:$8 sps:$4 sm:$0xff]   ;;  %s1287_s10 = smov (!%p445_p9, %s897_s10), 3  ;;  %v726_v5 = vsub.s32 0, %v725_v4 }
  0x33   : > { %678 = vmatprep.subr.bf16.mxu0 %v987_v40  ;;  %s447_s13 = scalar_lea.vmem %s1277_s2, %s1287_s10  ;;  %s452_s21 = scalar_lea.vmem %s1278_s3, %s1287_s10  ;;  %v730_v7 = vsub.s32 1, %v725_v4 }
  0x34   : > { %v722_v6 = vld [vmem:[%s447_s13] sm:$0x3]  ;;  %s900_s22 = sshll.u32 %s1287_s10, 3 }
  0x35   : > { %v736_v8 = vld [vmem:[%s452_s21] sm:$0x3]  ;;  %v727_v9 = vrot.slane %v722_v6, %v726_v5  ;;  %v731_v10 = vrot.slane %v722_v6, %v730_v7  ;;  %s462_s25 = scalar_lea.vmem %s1279_s4, %s900_s22 }
  0x36   : > { %679 = vmatpush1.bf16.msra.mxu0 %v989_v41  ;;  %v741_v11 = vrot.slane %v736_v8, %v726_v5  ;;  %v745_v13 = vrot.slane %v736_v8, %v730_v7 }
  0x37   : > { %680 = vmatprep.subr.bf16.mxu0 %v990_v42 }
  0x3a   : > { %681 = vmatpush1.bf16.msra.mxu0 %v992_v43 }
  0x3b   : > { %682 = vmatprep.subr.bf16.mxu0 %v993_v44 }
  0x3e   : > { %683 = vmatpush1.bf16.msra.mxu0 %v995_v45 }
  0x3f   : > { %684 = vmatprep.subr.bf16.mxu0 %v996_v46 }
  0x42   : > { %685 = vmatpush1.bf16.msra.mxu0 %v998_v47 }
  0x43   : > { %686 = vmatprep.subr.bf16.mxu0 %v999_v48 }
  0x46   : > { %687 = vmatpush1.bf16.msra.mxu0 %v1001_v49 }
  0x47   : > { %688 = vmatprep.subr.bf16.mxu0 %v1002_v50 }
  0x4a   : > { %689 = vmatpush1.bf16.msra.mxu0 %v1004_v51 }
  0x4b   : > { %690 = vmatprep.subr.bf16.mxu0 %v1005_v52 }
  0x4e   : > { %691 = vmatpush1.bf16.msra.mxu0 %v1007_v53 }
  0x4f   : > { %692 = vmatprep.subr.bf16.mxu0 %v1008_v54 }
  0x52   : > { %693 = vmatpush1.bf16.msra.mxu0 %v1010_v55 }
  0x53   : > { %694 = vmatprep.subr.bf16.mxu0 %v1011_v56 }
  0x56   : > { %695 = vmatpush1.bf16.msra.mxu0 %v1013_v57 }
  0x57   : > { %696 = vmatprep.subr.bf16.mxu0 %v1014_v58 }
  0x5a   : > { %697 = vmatpush1.bf16.msra.mxu0 %v1016_v59 }
  0x5b   : > { %698 = vmatprep.subr.bf16.mxu0 %v1017_v60 }
  0x5e   : > { %699 = vmatpush1.bf16.msra.mxu0 %v1019_v61 }
  0x5f   : > { %700 = vmatprep.subr.bf16.mxu0 %v1020_v62 }
  0x62   : > { %701 = vmatpush1.bf16.msra.mxu0 %v1022_v63 }
  0x63   : > { %702 = vmatprep.subr.bf16.mxu0 %v1023_v0 }
  0x66   : > { %703 = vmatpush1.bf16.msra.mxu0 %v1025_v1 }
  0x69   : > { %705 = vmatmul.mubr.bf16.vlgmr.msra.gmra.mrb[0].mxu0 %v901_v2 }
 0x13c   : > { %v706_v12 = vpop.f32.mrb[0].mxu0 }
 0x13d   : > { %v734_v14 = vmul.f32 %v727_v9, %v706_v12  ;;  %v708_v15 = vpop.f32.mrb[1].mxu0 }
 0x13e   : > { %v735_v16 = vmul.f32 %v731_v10, %v708_v15  ;;  %v710_v17 = vpop.f32.mrb[2].mxu0 }
 0x13f   : > { %v748_v18 = vadd.f32 %v741_v11, %v734_v14  ;;  %v711_v19 = vpop.f32.mrb[3].mxu0 }
 0x140   : > { %v749_v20 = vadd.f32 %v745_v13, %v735_v16 }
 0x141   : > { %750 = vst [vmem:[%s462_s25] sm:$0xff] %v748_v18 }
 0x142   : > { %751 = vst [vmem:[%s462_s25 + $0x8] sm:$0xff] %v749_v20 }
 0x143 PF: > { %s14_s19 = sadd.s32 1, %s1066_s19   ;;  %s1280_s15 = smov %s1054_s16 }
 0x144   : > { %p11_p10 = scmp.ge.s32.totalorder %s14_s19, 4   ;;  %s1281_s16 = smov %s1128_s23 }
 0x145   : > { %s1282_s17 = smov %s1062_s18  ;;  %s1283_s18 = smov %s1285_s20 }
 0x146   :  { %13 = sbr.rel (!%p11_p10) target bundleno = 3 (0x3), region = 126 }

// kernel: resnet34_forward.71
= control target key start
LH: loop header
LB: loop body
LE: loop exit
PB: predicated region body
PF: predicated region fallthrough
CT: control target
= control target key end

     0   :  { %s2008_s0 = inlined_call_operand.vmem [shape: bf16[9,8,512], index: 0, kind: input, shape index: {}]   ;;  %s2009_s1 = inlined_call_operand.vmem [shape: bf16[9,512,512], index: 1, kind: input, shape index: {}]   ;;  %s2010_s2 = inlined_call_operand.vmem [shape: f32[1,512], index: 2, kind: input, shape index: {}]   ;;  %s2011_s3 = inlined_call_operand.vmem [shape: f32[1,512], index: 3, kind: input, shape index: {}]   ;;  %s2012_s4 = inlined_call_operand.vmem [shape: f32[8,512], index: 4, kind: input, shape index: {}]   ;;  %s2013_s5 = inlined_call_operand.vmem [shape: f32[8,512], index: 5, kind: output, shape index: {}]  }
   0x1   :  { %2014 = sst [smem:[#allocation4_spill]] %s2009_s1 }
   0x2   :  { %s1679_s18 = smov 0   ;;  %s1681_s19 = smov 0  }
   0x3   :  { %s1683_s20 = smov 0   ;;  %s1685_s21 = smov 0  }
   0x4   :  { %s1687_s22 = smov 0   ;;  %s1689_s23 = smov 0  }
   0x5   :  { %s1691_s24 = smov 0  }
   0x6 LB: > { %s27_s25 = sadd.s32 1, %s1638_s22  ;;  %s30_s26 = sadd.s32 1, %s1642_s23  ;;  %s1646_s24 = sphi %s1691_s24, %s15_s24   ;;  %s1642_s23 = sphi %s1689_s23, %s2021_s23   ;;  %s1638_s22 = sphi %s1687_s22, %s2020_s22   ;;  %s1634_s21 = sphi %s1685_s21, %s2019_s21   ;;  %s1630_s20 = sphi %s1683_s20, %s2018_s20   ;;  %s1626_s19 = sphi %s1681_s19, %s2017_s19   ;;  %s1622_s18 = sphi %s1679_s18, %s2016_s18  }
   0x7   : > { %p28_p0 = scmp.ge.s32.totalorder %s27_s25, 9  ;;  %p78_p1 = scmp.ne.s32.totalorder %s1626_s19, %s1622_s18 }
   0x8   : > { %p79_p2 = scmp.eq.s32.totalorder %s1646_s24, 0  ;;  %s71_s30 = sadd.s32 1, %s1626_s19 }
   0x9   : > { %s2023_s25 = smov (%p28_p0, %s27_s25), 0  ;;  %s2025_s26 = smov (!%p28_p0, %s30_s26), %s1642_s23 }
   0xa   : > { %p80_p3 = por %p79_p2, %p78_p1  ;;  %p32_p4 = scmp.ge.s32.totalorder %s2025_s26, 2 }
   0xb   : > { %s66_s27 = ssub.s32 %s1638_s22, %s2023_s25  ;;  %p1347_p6 = scmp.ge.s32.totalorder %s1646_s24, 18 }
   0xc   : > { %s2027_s26 = smov (%p32_p4, %s2025_s26), 0 }
   0xd   : > { %s67_s28 = ssub.s32 %s1642_s23, %s2027_s26  ;;  %212 = sbr.rel (%p1347_p6) target bundleno = 62 (0x3e), region = 16 }
   0xe   : > { %s68_s29 = sor.u32 %s67_s28, %s66_s27 }
   0xf   : > { %p69_p5 = scmp.eq.s32.totalorder %s68_s29, 0 }
  0x11   : > { %s1730_s6 = scalar_select %p69_p5, %s1626_s19, %s71_s30  }
  0x14   : > { %227 = sbr.rel (!%p80_p3) target bundleno = 62 (0x3e), region = 24  ;;  %s229_s7 = sand.u32 (%p80_p3), 1, %s1626_s19  }
  0x15   : > { %s1349_s8 = sshll.u32 (%p80_p3), %s1642_s23, 1  ;;  %s1348_s9 = sshll.u32 (%p80_p3), %s229_s7, 9 }
  0x16   : > { %s1350_s10 = sshll.u32 (%p80_p3), %s1638_s22, 8  ;;  %s2015_s1 = sld [smem:[#allocation4_spill]] (%p80_p3) }
  0x17   : > { %s234_s11 = sadd.s32 (%p80_p3), %s1350_s10, %s1349_s8  ;;  %s1744_s16 = scalar_lea.vmem (%p80_p3), [#allocation3], %s1348_s9 }
  0x18   : > { %s1351_s12 = sshll.u32 (%p80_p3), %s234_s11, 2 }
  0x1c   : > { %s1739_s15 = scalar_lea.vmem %s2015_s1, %s1351_s12 }
  0x1d   : > { %v390_v0 = vld [vmem:[%s1739_s15] sm:$0xff]  ;;  %v392_v1 = vld [vmem:[%s1739_s15 + $0x10] sm:$0xff] }
  0x1e   : > { %v394_v2 = vld [vmem:[%s1739_s15 + $0x20] sm:$0xff]  ;;  %391 = vst [vmem:[%s1744_s16] sm:$0xff] %v390_v0  ;;  %393 = vst [vmem:[%s1744_s16 + $0x8] sm:$0xff] %v392_v1  ;;  %v396_v3 = vld [vmem:[%s1739_s15 + $0x30] sm:$0xff] }
  0x1f   : > { %395 = vst [vmem:[%s1744_s16 + $0x10] sm:$0xff] %v394_v2  ;;  %v398_v4 = vld [vmem:[%s1739_s15 + $0x40] sm:$0xff]  ;;  %v400_v5 = vld [vmem:[%s1739_s15 + $0x50] sm:$0xff]  ;;  %397 = vst [vmem:[%s1744_s16 + $0x18] sm:$0xff] %v396_v3 }
  0x20   : > { %399 = vst [vmem:[%s1744_s16 + $0x20] sm:$0xff] %v398_v4  ;;  %401 = vst [vmem:[%s1744_s16 + $0x28] sm:$0xff] %v400_v5  ;;  %v402_v6 = vld [vmem:[%s1739_s15 + $0x60] sm:$0xff]  ;;  %v404_v7 = vld [vmem:[%s1739_s15 + $0x70] sm:$0xff] }
  0x21   : > { %v406_v8 = vld [vmem:[%s1739_s15 + $0x80] sm:$0xff]  ;;  %403 = vst [vmem:[%s1744_s16 + $0x30] sm:$0xff] %v402_v6  ;;  %405 = vst [vmem:[%s1744_s16 + $0x38] sm:$0xff] %v404_v7  ;;  %v408_v9 = vld [vmem:[%s1739_s15 + $0x90] sm:$0xff] }
  0x22   : > { %407 = vst [vmem:[%s1744_s16 + $0x40] sm:$0xff] %v406_v8  ;;  %v410_v10 = vld [vmem:[%s1739_s15 + $0xa0] sm:$0xff]  ;;  %v412_v11 = vld [vmem:[%s1739_s15 + $0xb0] sm:$0xff]  ;;  %409 = vst [vmem:[%s1744_s16 + $0x48] sm:$0xff] %v408_v9 }
  0x23   : > { %411 = vst [vmem:[%s1744_s16 + $0x50] sm:$0xff] %v410_v10  ;;  %413 = vst [vmem:[%s1744_s16 + $0x58] sm:$0xff] %v412_v11  ;;  %v414_v12 = vld [vmem:[%s1739_s15 + $0xc0] sm:$0xff]  ;;  %v416_v13 = vld [vmem:[%s1739_s15 + $0xd0] sm:$0xff] }
  0x24   : > { %v418_v14 = vld [vmem:[%s1739_s15 + $0xe0] sm:$0xff]  ;;  %415 = vst [vmem:[%s1744_s16 + $0x60] sm:$0xff] %v414_v12  ;;  %417 = vst [vmem:[%s1744_s16 + $0x68] sm:$0xff] %v416_v13  ;;  %v420_v15 = vld [vmem:[%s1739_s15 + $0xf0] sm:$0xff] }
  0x25   : > { %419 = vst [vmem:[%s1744_s16 + $0x70] sm:$0xff] %v418_v14  ;;  %v422_v16 = vld [vmem:[%s1739_s15 + $0x100] sm:$0xff]  ;;  %v424_v17 = vld [vmem:[%s1739_s15 + $0x110] sm:$0xff]  ;;  %421 = vst [vmem:[%s1744_s16 + $0x78] sm:$0xff] %v420_v15 }
  0x26   : > { %423 = vst [vmem:[%s1744_s16 + $0x80] sm:$0xff] %v422_v16  ;;  %425 = vst [vmem:[%s1744_s16 + $0x88] sm:$0xff] %v424_v17  ;;  %v426_v18 = vld [vmem:[%s1739_s15 + $0x120] sm:$0xff]  ;;  %v428_v19 = vld [vmem:[%s1739_s15 + $0x130] sm:$0xff] }
  0x27   : > { %v430_v20 = vld [vmem:[%s1739_s15 + $0x140] sm:$0xff]  ;;  %427 = vst [vmem:[%s1744_s16 + $0x90] sm:$0xff] %v426_v18  ;;  %429 = vst [vmem:[%s1744_s16 + $0x98] sm:$0xff] %v428_v19  ;;  %v432_v21 = vld [vmem:[%s1739_s15 + $0x150] sm:$0xff] }
  0x28   : > { %431 = vst [vmem:[%s1744_s16 + $0xa0] sm:$0xff] %v430_v20  ;;  %v434_v22 = vld [vmem:[%s1739_s15 + $0x160] sm:$0xff]  ;;  %v436_v23 = vld [vmem:[%s1739_s15 + $0x170] sm:$0xff]  ;;  %433 = vst [vmem:[%s1744_s16 + $0xa8] sm:$0xff] %v432_v21 }
  0x29   : > { %435 = vst [vmem:[%s1744_s16 + $0xb0] sm:$0xff] %v434_v22  ;;  %437 = vst [vmem:[%s1744_s16 + $0xb8] sm:$0xff] %v436_v23  ;;  %v438_v24 = vld [vmem:[%s1739_s15 + $0x180] sm:$0xff]  ;;  %v440_v25 = vld [vmem:[%s1739_s15 + $0x190] sm:$0xff] }
  0x2a   : > { %v442_v26 = vld [vmem:[%s1739_s15 + $0x1a0] sm:$0xff]  ;;  %439 = vst [vmem:[%s1744_s16 + $0xc0] sm:$0xff] %v438_v24  ;;  %441 = vst [vmem:[%s1744_s16 + $0xc8] sm:$0xff] %v440_v25  ;;  %v444_v27 = vld [vmem:[%s1739_s15 + $0x1b0] sm:$0xff] }
  0x2b   : > { %443 = vst [vmem:[%s1744_s16 + $0xd0] sm:$0xff] %v442_v26  ;;  %v446_v28 = vld [vmem:[%s1739_s15 + $0x1c0] sm:$0xff]  ;;  %v448_v29 = vld [vmem:[%s1739_s15 + $0x1d0] sm:$0xff]  ;;  %445 = vst [vmem:[%s1744_s16 + $0xd8] sm:$0xff] %v444_v27 }
  0x2c   : > { %447 = vst [vmem:[%s1744_s16 + $0xe0] sm:$0xff] %v446_v28  ;;  %449 = vst [vmem:[%s1744_s16 + $0xe8] sm:$0xff] %v448_v29  ;;  %v450_v30 = vld [vmem:[%s1739_s15 + $0x1e0] sm:$0xff]  ;;  %v452_v31 = vld [vmem:[%s1739_s15 + $0x1f0] sm:$0xff] }
  0x2d   : > { %v454_v32 = vld [vmem:[%s1739_s15 + $0x200] sm:$0xff]  ;;  %451 = vst [vmem:[%s1744_s16 + $0xf0] sm:$0xff] %v450_v30  ;;  %453 = vst [vmem:[%s1744_s16 + $0xf8] sm:$0xff] %v452_v31  ;;  %v456_v33 = vld [vmem:[%s1739_s15 + $0x210] sm:$0xff] }
  0x2e   : > { %455 = vst [vmem:[%s1744_s16 + $0x100] sm:$0xff] %v454_v32  ;;  %v458_v34 = vld [vmem:[%s1739_s15 + $0x220] sm:$0xff]  ;;  %v460_v35 = vld [vmem:[%s1739_s15 + $0x230] sm:$0xff]  ;;  %457 = vst [vmem:[%s1744_s16 + $0x108] sm:$0xff] %v456_v33 }
  0x2f   : > { %459 = vst [vmem:[%s1744_s16 + $0x110] sm:$0xff] %v458_v34  ;;  %461 = vst [vmem:[%s1744_s16 + $0x118] sm:$0xff] %v460_v35  ;;  %v462_v36 = vld [vmem:[%s1739_s15 + $0x240] sm:$0xff]  ;;  %v464_v37 = vld [vmem:[%s1739_s15 + $0x250] sm:$0xff] }
  0x30   : > { %v466_v38 = vld [vmem:[%s1739_s15 + $0x260] sm:$0xff]  ;;  %463 = vst [vmem:[%s1744_s16 + $0x120] sm:$0xff] %v462_v36  ;;  %465 = vst [vmem:[%s1744_s16 + $0x128] sm:$0xff] %v464_v37  ;;  %v468_v39 = vld [vmem:[%s1739_s15 + $0x270] sm:$0xff] }
  0x31   : > { %467 = vst [vmem:[%s1744_s16 + $0x130] sm:$0xff] %v466_v38  ;;  %v470_v40 = vld [vmem:[%s1739_s15 + $0x280] sm:$0xff]  ;;  %v472_v41 = vld [vmem:[%s1739_s15 + $0x290] sm:$0xff]  ;;  %469 = vst [vmem:[%s1744_s16 + $0x138] sm:$0xff] %v468_v39 }
  0x32   : > { %471 = vst [vmem:[%s1744_s16 + $0x140] sm:$0xff] %v470_v40  ;;  %473 = vst [vmem:[%s1744_s16 + $0x148] sm:$0xff] %v472_v41  ;;  %v474_v42 = vld [vmem:[%s1739_s15 + $0x2a0] sm:$0xff]  ;;  %v476_v43 = vld [vmem:[%s1739_s15 + $0x2b0] sm:$0xff] }
  0x33   : > { %v478_v44 = vld [vmem:[%s1739_s15 + $0x2c0] sm:$0xff]  ;;  %475 = vst [vmem:[%s1744_s16 + $0x150] sm:$0xff] %v474_v42  ;;  %477 = vst [vmem:[%s1744_s16 + $0x158] sm:$0xff] %v476_v43  ;;  %v480_v45 = vld [vmem:[%s1739_s15 + $0x2d0] sm:$0xff] }
  0x34   : > { %479 = vst [vmem:[%s1744_s16 + $0x160] sm:$0xff] %v478_v44  ;;  %v482_v46 = vld [vmem:[%s1739_s15 + $0x2e0] sm:$0xff]  ;;  %v484_v47 = vld [vmem:[%s1739_s15 + $0x2f0] sm:$0xff]  ;;  %481 = vst [vmem:[%s1744_s16 + $0x168] sm:$0xff] %v480_v45 }
  0x35   : > { %483 = vst [vmem:[%s1744_s16 + $0x170] sm:$0xff] %v482_v46  ;;  %485 = vst [vmem:[%s1744_s16 + $0x178] sm:$0xff] %v484_v47  ;;  %v486_v48 = vld [vmem:[%s1739_s15 + $0x300] sm:$0xff]  ;;  %v488_v49 = vld [vmem:[%s1739_s15 + $0x310] sm:$0xff] }
  0x36   : > { %v490_v50 = vld [vmem:[%s1739_s15 + $0x320] sm:$0xff]  ;;  %487 = vst [vmem:[%s1744_s16 + $0x180] sm:$0xff] %v486_v48  ;;  %489 = vst [vmem:[%s1744_s16 + $0x188] sm:$0xff] %v488_v49  ;;  %v492_v51 = vld [vmem:[%s1739_s15 + $0x330] sm:$0xff] }
  0x37   : > { %491 = vst [vmem:[%s1744_s16 + $0x190] sm:$0xff] %v490_v50  ;;  %v494_v52 = vld [vmem:[%s1739_s15 + $0x340] sm:$0xff]  ;;  %v496_v53 = vld [vmem:[%s1739_s15 + $0x350] sm:$0xff]  ;;  %493 = vst [vmem:[%s1744_s16 + $0x198] sm:$0xff] %v492_v51 }
  0x38   : > { %495 = vst [vmem:[%s1744_s16 + $0x1a0] sm:$0xff] %v494_v52  ;;  %497 = vst [vmem:[%s1744_s16 + $0x1a8] sm:$0xff] %v496_v53  ;;  %v498_v54 = vld [vmem:[%s1739_s15 + $0x360] sm:$0xff]  ;;  %v500_v55 = vld [vmem:[%s1739_s15 + $0x370] sm:$0xff] }
  0x39   : > { %v502_v56 = vld [vmem:[%s1739_s15 + $0x380] sm:$0xff]  ;;  %499 = vst [vmem:[%s1744_s16 + $0x1b0] sm:$0xff] %v498_v54  ;;  %501 = vst [vmem:[%s1744_s16 + $0x1b8] sm:$0xff] %v500_v55  ;;  %v504_v57 = vld [vmem:[%s1739_s15 + $0x390] sm:$0xff] }
  0x3a   : > { %503 = vst [vmem:[%s1744_s16 + $0x1c0] sm:$0xff] %v502_v56  ;;  %v506_v58 = vld [vmem:[%s1739_s15 + $0x3a0] sm:$0xff]  ;;  %v508_v59 = vld [vmem:[%s1739_s15 + $0x3b0] sm:$0xff]  ;;  %505 = vst [vmem:[%s1744_s16 + $0x1c8] sm:$0xff] %v504_v57 }
  0x3b   : > { %507 = vst [vmem:[%s1744_s16 + $0x1d0] sm:$0xff] %v506_v58  ;;  %509 = vst [vmem:[%s1744_s16 + $0x1d8] sm:$0xff] %v508_v59  ;;  %v510_v60 = vld [vmem:[%s1739_s15 + $0x3c0] sm:$0xff]  ;;  %v512_v61 = vld [vmem:[%s1739_s15 + $0x3d0] sm:$0xff] }
  0x3c   : > { %v514_v62 = vld [vmem:[%s1739_s15 + $0x3e0] sm:$0xff]  ;;  %511 = vst [vmem:[%s1744_s16 + $0x1e0] sm:$0xff] %v510_v60  ;;  %513 = vst [vmem:[%s1744_s16 + $0x1e8] sm:$0xff] %v512_v61  ;;  %v516_v63 = vld [vmem:[%s1739_s15 + $0x3f0] sm:$0xff] }
  0x3d   : > { %515 = vst [vmem:[%s1744_s16 + $0x1f0] sm:$0xff] %v514_v62  ;;  %517 = vst [vmem:[%s1744_s16 + $0x1f8] sm:$0xff] %v516_v63 }
  0x3e PF: > { %p1352_p7 = scmp.ge.s32.totalorder %s1646_s24, 1  ;;  %p551_p8 = scmp.lt.s32.totalorder %s1646_s24, 19 }
  0x40   : > { %p552_p9 = pnand %p1352_p7, %p551_p8 }
  0x41   : > { %s558_s17 = sand.u32 (!%p552_p9), 1, %s1622_s18   ;;  %p615_p10 = scmp.lt.s32.totalorder (!%p552_p9), %s1630_s20, 8 }
  0x42   : > { %555 = sbr.rel (%p552_p9) target bundleno = 381 (0x17d), region = 74  ;;  %s1353_s27 = sshll.u32 (!%p552_p9), %s558_s17, 9 }
  0x43   : > { %s1356_s28 = sshll.u32 (!%p552_p9), %s1634_s21, 1  ;;  %p1362_p12 = scmp.ne.s32.totalorder (!%p552_p9), %s1630_s20, 0 }
  0x44   : > { %p626_p11 = scmp.lt.s32.totalorder (!%p552_p9), %s1356_s28, 3 }
  0x49   : > { %s616_s29 = scalar_select %p615_p10, %s1630_s20, 8 }
  0x4a   : > { %s2029_s28 = smov (!%p626_p11, %s1356_s28), 3  ;;  %658 = sbr.rel (%p1362_p12) target bundleno = 81 (0x51), region = 82 }
  0x4b   : > { %s1434_s30 = sshll.u32 %s616_s29, 4  ;;  %s628_s18 = scalar_lea.vmem %s2010_s2, %s2029_s28  ;;  %v1648_v0 = vmov (!%p1362_p12), 0.0  }
  0x4c   : > { %s1882_s9 = scalar_lea.vmem %s2008_s0, %s1434_s30  ;;  %s633_s21 = scalar_lea.vmem %s2011_s3, %s2029_s28  ;;  %659 = vst [vmem:[#allocation2] sm:$0xff] (!%p1362_p12), %v1648_v0  ;;  %660 = vst [vmem:[#allocation2 + $0x8] sm:$0xff] (!%p1362_p12), %v1648_v0 }
  0x4d   : > { %s1359_s14 = sshll.u32 %s2029_s28, 3  ;;  %s1903_s30 = scalar_lea.vmem [#allocation3], %s1353_s27 }
  0x4e   : > { %s1896_s17 = scalar_lea.vmem %s2012_s4, %s1359_s14  ;;  %s1901_s7 = scalar_lea.vmem %s2013_s5, %s1359_s14 }
  0x51 PF: > { %v1492_v1 = vld [vmem:[%s1903_s30 + $0x4] ss:$8 sps:$4 sm:$0xff]   ;;  %v1496_v3 = vld [vmem:[%s1903_s30] ss:$8 sps:$4 sm:$0xff]   ;;  %v1498_v5 = vld [vmem:[%s1903_s30 + $0x14] ss:$8 sps:$4 sm:$0xff]  }
  0x52   : > { %v1494_v2 = vld [vmem:[%s1903_s30 + $0x104] ss:$8 sps:$4 sm:$0xff]   ;;  %1063 = vmatprep.subr.bf16.mxu0 %v1492_v1  ;;  %v1497_v4 = vld [vmem:[%s1903_s30 + $0x100] ss:$8 sps:$4 sm:$0xff]   ;;  %v1500_v6 = vld [vmem:[%s1903_s30 + $0x114] ss:$8 sps:$4 sm:$0xff]  }
  0x53   : > { %1104 = vmatprep.subr.bf16.mxu1 %v1494_v2  ;;  %1064 = vmatpush1.bf16.msra.mxu0 %v1496_v3  ;;  %v1502_v7 = vld [vmem:[%s1903_s30 + $0x10] ss:$8 sps:$4 sm:$0xff]   ;;  %v1504_v9 = vld [vmem:[%s1903_s30 + $0x24] ss:$8 sps:$4 sm:$0xff]   ;;  %v1508_v11 = vld [vmem:[%s1903_s30 + $0x20] ss:$8 sps:$4 sm:$0xff]  }
  0x54   : > { %1105 = vmatpush1.bf16.msra.mxu1 %v1497_v4  ;;  %1065 = vmatprep.subr.bf16.mxu0 %v1498_v5  ;;  %v1503_v8 = vld [vmem:[%s1903_s30 + $0x110] ss:$8 sps:$4 sm:$0xff]   ;;  %v1506_v10 = vld [vmem:[%s1903_s30 + $0x124] ss:$8 sps:$4 sm:$0xff]   ;;  %v1509_v12 = vld [vmem:[%s1903_s30 + $0x120] ss:$8 sps:$4 sm:$0xff]  }
  0x55   : > { %1106 = vmatprep.subr.bf16.mxu1 %v1500_v6  ;;  %v1510_v13 = vld [vmem:[%s1903_s30 + $0x34] ss:$8 sps:$4 sm:$0xff]   ;;  %v1514_v15 = vld [vmem:[%s1903_s30 + $0x30] ss:$8 sps:$4 sm:$0xff]   ;;  %v1516_v17 = vld [vmem:[%s1903_s30 + $0x44] ss:$8 sps:$4 sm:$0xff]  }
  0x56   : > { %v1512_v14 = vld [vmem:[%s1903_s30 + $0x134] ss:$8 sps:$4 sm:$0xff]   ;;  %v1515_v16 = vld [vmem:[%s1903_s30 + $0x130] ss:$8 sps:$4 sm:$0xff]   ;;  %v1518_v18 = vld [vmem:[%s1903_s30 + $0x144] ss:$8 sps:$4 sm:$0xff]  }
  0x57   : > { %1066 = vmatpush1.bf16.msra.mxu0 %v1502_v7  ;;  %v1520_v19 = vld [vmem:[%s1903_s30 + $0x40] ss:$8 sps:$4 sm:$0xff]   ;;  %v1522_v21 = vld [vmem:[%s1903_s30 + $0x54] ss:$8 sps:$4 sm:$0xff]   ;;  %v1526_v23 = vld [vmem:[%s1903_s30 + $0x50] ss:$8 sps:$4 sm:$0xff]  }
  0x58   : > { %1107 = vmatpush1.bf16.msra.mxu1 %v1503_v8  ;;  %1067 = vmatprep.subr.bf16.mxu0 %v1504_v9  ;;  %v1521_v20 = vld [vmem:[%s1903_s30 + $0x140] ss:$8 sps:$4 sm:$0xff]   ;;  %v1524_v22 = vld [vmem:[%s1903_s30 + $0x154] ss:$8 sps:$4 sm:$0xff]   ;;  %v1527_v24 = vld [vmem:[%s1903_s30 + $0x150] ss:$8 sps:$4 sm:$0xff]  }
  0x59   : > { %1108 = vmatprep.subr.bf16.mxu1 %v1506_v10  ;;  %v1528_v25 = vld [vmem:[%s1903_s30 + $0x64] ss:$8 sps:$4 sm:$0xff]   ;;  %v1532_v27 = vld [vmem:[%s1903_s30 + $0x60] ss:$8 sps:$4 sm:$0xff]   ;;  %v1534_v29 = vld [vmem:[%s1903_s30 + $0x74] ss:$8 sps:$4 sm:$0xff]  }
  0x5a   : > { %v1530_v26 = vld [vmem:[%s1903_s30 + $0x164] ss:$8 sps:$4 sm:$0xff]   ;;  %v1533_v28 = vld [vmem:[%s1903_s30 + $0x160] ss:$8 sps:$4 sm:$0xff]   ;;  %v1536_v30 = vld [vmem:[%s1903_s30 + $0x174] ss:$8 sps:$4 sm:$0xff]  }
  0x5b   : > { %1068 = vmatpush1.bf16.msra.mxu0 %v1508_v11  ;;  %v1538_v31 = vld [vmem:[%s1903_s30 + $0x70] ss:$8 sps:$4 sm:$0xff]   ;;  %v1540_v33 = vld [vmem:[%s1903_s30 + $0x84] ss:$8 sps:$4 sm:$0xff]   ;;  %v1544_v35 = vld [vmem:[%s1903_s30 + $0x80] ss:$8 sps:$4 sm:$0xff]  }
  0x5c   : > { %1109 = vmatpush1.bf16.msra.mxu1 %v1509_v12  ;;  %1069 = vmatprep.subr.bf16.mxu0 %v1510_v13  ;;  %v1539_v32 = vld [vmem:[%s1903_s30 + $0x170] ss:$8 sps:$4 sm:$0xff]   ;;  %v1542_v34 = vld [vmem:[%s1903_s30 + $0x184] ss:$8 sps:$4 sm:$0xff]   ;;  %v1545_v36 = vld [vmem:[%s1903_s30 + $0x180] ss:$8 sps:$4 sm:$0xff]  }
  0x5d   : > { %1110 = vmatprep.subr.bf16.mxu1 %v1512_v14  ;;  %v1546_v37 = vld [vmem:[%s1903_s30 + $0x94] ss:$8 sps:$4 sm:$0xff]   ;;  %v1550_v39 = vld [vmem:[%s1903_s30 + $0x90] ss:$8 sps:$4 sm:$0xff]   ;;  %v1552_v41 = vld [vmem:[%s1903_s30 + $0xa4] ss:$8 sps:$4 sm:$0xff]  }
  0x5e   : > { %v1548_v38 = vld [vmem:[%s1903_s30 + $0x194] ss:$8 sps:$4 sm:$0xff]   ;;  %v1551_v40 = vld [vmem:[%s1903_s30 + $0x190] ss:$8 sps:$4 sm:$0xff]   ;;  %v1554_v42 = vld [vmem:[%s1903_s30 + $0x1a4] ss:$8 sps:$4 sm:$0xff]  }
  0x5f   : > { %1070 = vmatpush1.bf16.msra.mxu0 %v1514_v15  ;;  %v1556_v43 = vld [vmem:[%s1903_s30 + $0xa0] ss:$8 sps:$4 sm:$0xff]   ;;  %v1558_v45 = vld [vmem:[%s1903_s30 + $0xb4] ss:$8 sps:$4 sm:$0xff]   ;;  %v1562_v50 = vld [vmem:[%s1903_s30 + $0xb0] ss:$8 sps:$4 sm:$0xff]  }
  0x60   : > { %1111 = vmatpush1.bf16.msra.mxu1 %v1515_v16  ;;  %1071 = vmatprep.subr.bf16.mxu0 %v1516_v17  ;;  %v1557_v44 = vld [vmem:[%s1903_s30 + $0x1a0] ss:$8 sps:$4 sm:$0xff]   ;;  %v1560_v46 = vld [vmem:[%s1903_s30 + $0x1b4] ss:$8 sps:$4 sm:$0xff]   ;;  %v1563_v51 = vld [vmem:[%s1903_s30 + $0x1b0] ss:$8 sps:$4 sm:$0xff]  }
  0x61   : > { %1112 = vmatprep.subr.bf16.mxu1 %v1518_v18  ;;  %v663_v47 = vld [vmem:[%s1882_s9] sm:$0xff]  ;;  %v664_v49 = vld [vmem:[%s1882_s9 + $0x8] sm:$0xff]  ;;  %v1564_v53 = vld [vmem:[%s1903_s30 + $0xc4] ss:$8 sps:$4 sm:$0xff]   ;;  %p1431_p13 = scmp.ne.s32.totalorder %s1630_s20, 8 }
  0x62   : > { %v1364_v48 = vcombine.high %v663_v47, %v663_v47  ;;  %v1366_v52 = vcombine.high %v664_v49, %v664_v49  ;;  %v1566_v54 = vld [vmem:[%s1903_s30 + $0x1c4] ss:$8 sps:$4 sm:$0xff]   ;;  %v1568_v55 = vld [vmem:[%s1903_s30 + $0xc0] ss:$8 sps:$4 sm:$0xff]   ;;  %v1570_v57 = vld [vmem:[%s1903_s30 + $0xd4] ss:$8 sps:$4 sm:$0xff]   ;;  %v1363_v5 = vcombine.low %v663_v47, %v663_v47  ;;  %v1365_v6 = vcombine.low %v664_v49, %v664_v49 }
  0x63   : > { %1072 = vmatpush1.bf16.msra.mxu0 %v1520_v19  ;;  %v1569_v56 = vld [vmem:[%s1903_s30 + $0x1c0] ss:$8 sps:$4 sm:$0xff]   ;;  %v1572_v58 = vld [vmem:[%s1903_s30 + $0x1d4] ss:$8 sps:$4 sm:$0xff]   ;;  %v1574_v59 = vld [vmem:[%s1903_s30 + $0xd0] ss:$8 sps:$4 sm:$0xff]  }
  0x64   : > { %1113 = vmatpush1.bf16.msra.mxu1 %v1521_v20  ;;  %1073 = vmatprep.subr.bf16.mxu0 %v1522_v21  ;;  %v1575_v60 = vld [vmem:[%s1903_s30 + $0x1d0] ss:$8 sps:$4 sm:$0xff]   ;;  %v1576_v61 = vld [vmem:[%s1903_s30 + $0xe4] ss:$8 sps:$4 sm:$0xff]   ;;  %v1580_v63 = vld [vmem:[%s1903_s30 + $0xe0] ss:$8 sps:$4 sm:$0xff]   ;;  %v1157_v21 = vlaneseq (!%p1431_p13) }
  0x65   : > { %1114 = vmatprep.subr.bf16.mxu1 %v1524_v22  ;;  %1095 = vmatprep.mubr.bf16.mxu0 %v1364_v48  ;;  %v1578_v62 = vld [vmem:[%s1903_s30 + $0x1e4] ss:$8 sps:$4 sm:$0xff]   ;;  %v1581_v0 = vld [vmem:[%s1903_s30 + $0x1e0] ss:$8 sps:$4 sm:$0xff]   ;;  %v1582_v1 = vld [vmem:[%s1903_s30 + $0xf4] ss:$8 sps:$4 sm:$0xff]  }
  0x66   : > { %1136 = vmatprep.mubr.bf16.mxu1 %v1366_v52  ;;  %v1584_v2 = vld [vmem:[%s1903_s30 + $0x1f4] ss:$8 sps:$4 sm:$0xff]   ;;  %v1586_v3 = vld [vmem:[%s1903_s30 + $0xf0] ss:$8 sps:$4 sm:$0xff]   ;;  %v1158_v22 = vshrl.u32 (!%p1431_p13), %v1157_v21, 7 }
  0x67   : > { %1074 = vmatpush1.bf16.msra.mxu0 %v1526_v23  ;;  %v1587_v4 = vld [vmem:[%s1903_s30 + $0x1f0] ss:$8 sps:$4 sm:$0xff]  }
  0x68   : > { %1115 = vmatpush1.bf16.msra.mxu1 %v1527_v24  ;;  %1075 = vmatprep.subr.bf16.mxu0 %v1528_v25  ;;  %v661_v8 = vld [vmem:[#allocation2] sm:$0xff]  ;;  %v662_v12 = vld [vmem:[#allocation2 + $0x8] sm:$0xff]  ;;  %v1159_v25 = vsub.s32 (!%p1431_p13), 0, %v1158_v22 }
  0x69   : > { %1116 = vmatprep.subr.bf16.mxu1 %v1530_v26  ;;  %v1155_v23 = vld [vmem:[%s628_s18] sm:$0x3] (!%p1431_p13)  ;;  %v1163_v26 = vsub.s32 (!%p1431_p13), 1, %v1158_v22 }
  0x6a   : > { %v1169_v24 = vld [vmem:[%s633_s21] sm:$0x3] (!%p1431_p13) }
  0x6b   : > { %1076 = vmatpush1.bf16.msra.mxu0 %v1532_v27 }
  0x6c   : > { %1117 = vmatpush1.bf16.msra.mxu1 %v1533_v28  ;;  %1077 = vmatprep.subr.bf16.mxu0 %v1534_v29  ;;  %v1160_v29 = vrot.slane (!%p1431_p13), %v1155_v23, %v1159_v25 }
  0x6d   : > { %1118 = vmatprep.subr.bf16.mxu1 %v1536_v30  ;;  %v1174_v30 = vrot.slane (!%p1431_p13), %v1169_v24, %v1159_v25 }
  0x6f   : > { %1078 = vmatpush1.bf16.msra.mxu0 %v1538_v31  ;;  %v1164_v31 = vrot.slane (!%p1431_p13), %v1155_v23, %v1163_v26 }
  0x70   : > { %1119 = vmatpush1.bf16.msra.mxu1 %v1539_v32  ;;  %1079 = vmatprep.subr.bf16.mxu0 %v1540_v33  ;;  %v1178_v32 = vrot.slane (!%p1431_p13), %v1169_v24, %v1163_v26 }
  0x71   : > { %1120 = vmatprep.subr.bf16.mxu1 %v1542_v34 }
  0x73   : > { %1080 = vmatpush1.bf16.msra.mxu0 %v1544_v35  ;;  %v1183_v35 = vld [vmem:[%s1896_s17] sm:$0xff] (!%p1431_p13) }
  0x74   : > { %1121 = vmatpush1.bf16.msra.mxu1 %v1545_v36  ;;  %1081 = vmatprep.subr.bf16.mxu0 %v1546_v37  ;;  %v1184_v36 = vld [vmem:[%s1896_s17 + $0x8] sm:$0xff] (!%p1431_p13) }
  0x75   : > { %1122 = vmatprep.subr.bf16.mxu1 %v1548_v38 }
  0x77   : > { %1082 = vmatpush1.bf16.msra.mxu0 %v1550_v39 }
  0x78   : > { %1123 = vmatpush1.bf16.msra.mxu1 %v1551_v40  ;;  %1083 = vmatprep.subr.bf16.mxu0 %v1552_v41 }
  0x79   : > { %1124 = vmatprep.subr.bf16.mxu1 %v1554_v42 }
  0x7b   : > { %1084 = vmatpush1.bf16.msra.mxu0 %v1556_v43 }
  0x7c   : > { %1125 = vmatpush1.bf16.msra.mxu1 %v1557_v44  ;;  %1085 = vmatprep.subr.bf16.mxu0 %v1558_v45 }
  0x7d   : > { %1126 = vmatprep.subr.bf16.mxu1 %v1560_v46 }
  0x7f   : > { %1086 = vmatpush1.bf16.msra.mxu0 %v1562_v50 }
  0x80   : > { %1127 = vmatpush1.bf16.msra.mxu1 %v1563_v51  ;;  %1087 = vmatprep.subr.bf16.mxu0 %v1564_v53 }
  0x81   : > { %1128 = vmatprep.subr.bf16.mxu1 %v1566_v54 }
  0x83   : > { %1088 = vmatpush1.bf16.msra.mxu0 %v1568_v55 }
  0x84   : > { %1129 = vmatpush1.bf16.msra.mxu1 %v1569_v56  ;;  %1089 = vmatprep.subr.bf16.mxu0 %v1570_v57 }
  0x85   : > { %1130 = vmatprep.subr.bf16.mxu1 %v1572_v58 }
  0x87   : > { %1090 = vmatpush1.bf16.msra.mxu0 %v1574_v59 }
  0x88   : > { %1131 = vmatpush1.bf16.msra.mxu1 %v1575_v60  ;;  %1091 = vmatprep.subr.bf16.mxu0 %v1576_v61 }
  0x89   : > { %1132 = vmatprep.subr.bf16.mxu1 %v1578_v62 }
  0x8b   : > { %1092 = vmatpush1.bf16.msra.mxu0 %v1580_v63 }
  0x8c   : > { %1133 = vmatpush1.bf16.msra.mxu1 %v1581_v0  ;;  %1093 = vmatprep.subr.bf16.mxu0 %v1582_v1 }
  0x8d   : > { %1134 = vmatprep.subr.bf16.mxu1 %v1584_v2 }
  0x8f   : > { %1094 = vmatpush1.bf16.msra.mxu0 %v1586_v3 }
  0x90   : > { %1135 = vmatpush1.bf16.msra.mxu1 %v1587_v4 }
  0x92   : > { %1096 = vmatmul.mubr.bf16.vlgmr.msra.gmra.mrb[0].mxu0 %v1363_v5 }
  0x93   : > { %1137 = vmatmul.mubr.bf16.vlgmr.msra.gmra.mrb[0].mxu1 %v1365_v6 }
 0x165   : > { %v1097_v7 = vpop.f32.mrb[0].mxu0 }
 0x166   : > { %v1138_v9 = vpop.f32.mrb[0].mxu1  ;;  %v1099_v11 = vpop.f32.mrb[1].mxu0  ;;  %1152 = sbr.rel (%p1431_p13) target bundleno = 381 (0x17d), region = 86 }
 0x167   : > { %v1139_v10 = vadd.f32 %v1138_v9, %v1097_v7  ;;  %v1140_v13 = vpop.f32.mrb[1].mxu1  ;;  %v1101_v15 = vpop.f32.mrb[2].mxu0 }
 0x168   : > { %v1141_v14 = vadd.f32 %v1140_v13, %v1099_v11  ;;  %v1142_v16 = vpop.f32.mrb[2].mxu1  ;;  %v1102_v18 = vpop.f32.mrb[3].mxu0 }
 0x169   : > { %v1145_v17 = vadd.f32 %v1139_v10, %v661_v8  ;;  %v1143_v19 = vpop.f32.mrb[3].mxu1 }
 0x16a   : > { %v1146_v20 = vadd.f32 %v1141_v14, %v662_v12 }
 0x16b   : > { %1147 = vst [vmem:[#allocation2] sm:$0xff] %v1145_v17 }
 0x16c   : > { %1148 = vst [vmem:[#allocation2 + $0x8] sm:$0xff] %v1146_v20 }
 0x172   : > { %v1153_v27 = vld [vmem:[#allocation2] sm:$0xff] }
 0x173   : > { %v1154_v28 = vld [vmem:[#allocation2 + $0x8] sm:$0xff]  ;;  %v1167_v33 = vmul.f32 %v1160_v29, %v1153_v27 }
 0x174   : > { %v1168_v34 = vmul.f32 %v1164_v31, %v1154_v28 }
 0x175   : > { %v1181_v37 = vadd.f32 %v1174_v30, %v1167_v33 }
 0x176   : > { %v1182_v38 = vadd.f32 %v1178_v32, %v1168_v34 }
 0x177   : > { %v1185_v39 = vadd.f32 %v1183_v35, %v1181_v37 }
 0x178   : > { %v1186_v40 = vadd.f32 %v1184_v36, %v1182_v38 }
 0x179   : > { %v1187_v41 = vmax.f32 %v1185_v39, 0.0 }
 0x17a   : > { %v1188_v42 = vmax.f32 %v1186_v40, 0.0 }
 0x17b   : > { %1189 = vst [vmem:[%s1901_s7] sm:$0xff] %v1187_v41 }
 0x17c   : > { %1190 = vst [vmem:[%s1901_s7 + $0x8] sm:$0xff] %v1188_v42 }
 0x17d PF: > { %s15_s24 = sadd.s32 1, %s1646_s24   ;;  %s2016_s18 = smov %s1626_s19 }
 0x17e   : > { %p12_p0 = scmp.ge.s32.totalorder %s15_s24, 20   ;;  %s2017_s19 = smov %s1730_s6 }
 0x17f   : > { %s2018_s20 = smov %s1638_s22  ;;  %s2019_s21 = smov %s1642_s23 }
 0x180   : > { %s2020_s22 = smov %s2023_s25  ;;  %s2021_s23 = smov %s2027_s26 }
 0x181   :  { %14 = sbr.rel (!%p12_p0) target bundleno = 6 (0x6), region = 133 }

// kernel: resnet34_forward.76
= control target key start
LH: loop header
LB: loop body
LE: loop exit
PB: predicated region body
PF: predicated region fallthrough
CT: control target
= control target key end

     0   :  { %v39_v0 = vlaneseq  ;;  %v121_v1 = vmov 1966171168   ;;  %s156_s0 = inlined_call_operand.vmem [shape: f32[8,1,512], index: 0, kind: input, shape index: {}]   ;;  %s157_s1 = inlined_call_operand.vmem [shape: f32[8,512], index: 1, kind: output, shape index: {}]  }
   0x1   :  { %v37_v2 = vunpack.c.l.s4 %v121_v1  ;;  %v117_v3 = vld.sshfl [vmem:[%s156_s0] sm:$0xff pattern:$0x75316420]  ;;  %v118_v6 = vld.sshfl [vmem:[%s156_s0 + $0x8] sm:$0xff pattern:$0x75316420] }
   0x2   :  { %v40_v5 = vshrl.u32 %v39_v0, 7  ;;  %v119_v7 = vld.sshfl [vmem:[%s156_s0 + $0x10] sm:$0xff pattern:$0x75316420]  ;;  %v64_v10 = vcombine.low %v117_v3, %v118_v6  ;;  %v65_v12 = vcombine.high %v117_v3, %v118_v6 }
   0x3   :  { %v38_v4 = vunpack.c.0.s8 %v37_v2  ;;  %v120_v8 = vld.sshfl [vmem:[%s156_s0 + $0x18] sm:$0xff pattern:$0x75316420] }
   0x4   :  { %v66_v11 = vcombine.low %v119_v7, %v120_v8  ;;  %v67_v13 = vcombine.high %v119_v7, %v120_v8 }
   0x5   :  { %v41_v9 = vsub.s32 %v38_v4, %v40_v5 }
   0x7   :  { %v74_v14 = vrot.slane %v64_v10, %v41_v9  ;;  %v88_v15 = vrot.slane %v66_v11, %v41_v9  ;;  %v81_v16 = vrot.slane %v65_v12, %v41_v9  ;;  %v95_v17 = vrot.slane %v67_v13, %v41_v9 }
   0x9   :  { %v96_v18 = vcombine.low %v74_v14, %v88_v15  ;;  %v98_v19 = vcombine.low %v81_v16, %v95_v17  ;;  %v97_v20 = vcombine.high %v74_v14, %v88_v15  ;;  %v99_v21 = vcombine.high %v81_v16, %v95_v17 }
   0xb   :  { %104 = vst [vmem:[%s157_s1] sm:$0xff] %v96_v18  ;;  %105 = vst [vmem:[%s157_s1 + $0x8] sm:$0xff] %v98_v19 }
   0xc   :  { %106 = vst [vmem:[%s157_s1 + $0x10] sm:$0xff] %v97_v20  ;;  %107 = vst [vmem:[%s157_s1 + $0x18] sm:$0xff] %v99_v21 }

// kernel: resnet34_forward.72
= control target key start
LH: loop header
LB: loop body
LE: loop exit
PB: predicated region body
PF: predicated region fallthrough
CT: control target
= control target key end

     0   :  { %s1587_s15 = smov 0   ;;  %s1589_s16 = smov 0   ;;  %s1909_s0 = inlined_call_operand.vmem [shape: bf16[9,8,512], index: 0, kind: input, shape index: {}]   ;;  %s1910_s1 = inlined_call_operand.vmem [shape: bf16[9,512,512], index: 1, kind: input, shape index: {}]   ;;  %s1911_s2 = inlined_call_operand.vmem [shape: f32[1,512], index: 2, kind: input, shape index: {}]   ;;  %s1912_s3 = inlined_call_operand.vmem [shape: f32[1,512], index: 3, kind: input, shape index: {}]   ;;  %s1913_s4 = inlined_call_operand.vmem [shape: f32[8,512], index: 4, kind: output, shape index: {}]  }
   0x1   :  { %s1591_s17 = smov 0   ;;  %s1593_s18 = smov 0  }
   0x2   :  { %s1595_s19 = smov 0   ;;  %s1597_s20 = smov 0  }
   0x3   :  { %s1599_s21 = smov 0  }
   0x4 LB: > { %s26_s22 = sadd.s32 1, %s1551_s19  ;;  %s29_s23 = sadd.s32 1, %s1555_s20  ;;  %s1559_s21 = sphi %s1599_s21, %s14_s21   ;;  %s1555_s20 = sphi %s1597_s20, %s1919_s20   ;;  %s1551_s19 = sphi %s1595_s19, %s1918_s19   ;;  %s1547_s18 = sphi %s1593_s18, %s1917_s18   ;;  %s1543_s17 = sphi %s1591_s17, %s1916_s17   ;;  %s1539_s16 = sphi %s1589_s16, %s1915_s16   ;;  %s1535_s15 = sphi %s1587_s15, %s1914_s15  }
   0x5   : > { %p27_p0 = scmp.ge.s32.totalorder %s26_s22, 9  ;;  %p77_p1 = scmp.ne.s32.totalorder %s1539_s16, %s1535_s15 }
   0x6   : > { %p78_p2 = scmp.eq.s32.totalorder %s1559_s21, 0  ;;  %s70_s27 = sadd.s32 1, %s1539_s16 }
   0x7   : > { %s1921_s22 = smov (%p27_p0, %s26_s22), 0  ;;  %s1923_s23 = smov (!%p27_p0, %s29_s23), %s1555_s20 }
   0x8   : > { %p79_p3 = por %p78_p2, %p77_p1  ;;  %p31_p4 = scmp.ge.s32.totalorder %s1923_s23, 2 }
   0x9   : > { %s65_s24 = ssub.s32 %s1551_s19, %s1921_s22  ;;  %p1262_p6 = scmp.ge.s32.totalorder %s1559_s21, 18 }
   0xa   : > { %s1925_s23 = smov (%p31_p4, %s1923_s23), 0 }
   0xb   : > { %s66_s25 = ssub.s32 %s1555_s20, %s1925_s23  ;;  %183 = sbr.rel (%p1262_p6) target bundleno = 57 (0x39), region = 16 }
   0xc   : > { %s67_s26 = sor.u32 %s66_s25, %s65_s24 }
   0xd   : > { %p68_p5 = scmp.eq.s32.totalorder %s67_s26, 0 }
   0xf   : > { %s1638_s28 = scalar_select %p68_p5, %s1539_s16, %s70_s27  }
  0x12   : > { %198 = sbr.rel (!%p79_p3) target bundleno = 57 (0x39), region = 24  ;;  %s200_s29 = sand.u32 (%p79_p3), 1, %s1539_s16  }
  0x13   : > { %s1264_s30 = sshll.u32 (%p79_p3), %s1555_s20, 1  ;;  %s1263_s5 = sshll.u32 (%p79_p3), %s200_s29, 9 }
  0x14   : > { %s1265_s6 = sshll.u32 (%p79_p3), %s1551_s19, 8  ;;  %s1652_s12 = scalar_lea.vmem (%p79_p3), [#allocation3], %s1263_s5 }
  0x15   : > { %s205_s7 = sadd.s32 (%p79_p3), %s1265_s6, %s1264_s30 }
  0x16   : > { %s1266_s8 = sshll.u32 (%p79_p3), %s205_s7, 2 }
  0x17   : > { %s1647_s11 = scalar_lea.vmem (%p79_p3), %s1910_s1, %s1266_s8 }
  0x18   : > { %v361_v0 = vld [vmem:[%s1647_s11] sm:$0xff] (%p79_p3)  ;;  %v363_v1 = vld [vmem:[%s1647_s11 + $0x10] sm:$0xff] (%p79_p3) }
  0x19   : > { %v365_v2 = vld [vmem:[%s1647_s11 + $0x20] sm:$0xff]  ;;  %362 = vst [vmem:[%s1652_s12] sm:$0xff] %v361_v0  ;;  %364 = vst [vmem:[%s1652_s12 + $0x8] sm:$0xff] %v363_v1  ;;  %v367_v3 = vld [vmem:[%s1647_s11 + $0x30] sm:$0xff] }
  0x1a   : > { %366 = vst [vmem:[%s1652_s12 + $0x10] sm:$0xff] %v365_v2  ;;  %v369_v4 = vld [vmem:[%s1647_s11 + $0x40] sm:$0xff]  ;;  %v371_v5 = vld [vmem:[%s1647_s11 + $0x50] sm:$0xff]  ;;  %368 = vst [vmem:[%s1652_s12 + $0x18] sm:$0xff] %v367_v3 }
  0x1b   : > { %370 = vst [vmem:[%s1652_s12 + $0x20] sm:$0xff] %v369_v4  ;;  %372 = vst [vmem:[%s1652_s12 + $0x28] sm:$0xff] %v371_v5  ;;  %v373_v6 = vld [vmem:[%s1647_s11 + $0x60] sm:$0xff]  ;;  %v375_v7 = vld [vmem:[%s1647_s11 + $0x70] sm:$0xff] }
  0x1c   : > { %v377_v8 = vld [vmem:[%s1647_s11 + $0x80] sm:$0xff]  ;;  %374 = vst [vmem:[%s1652_s12 + $0x30] sm:$0xff] %v373_v6  ;;  %376 = vst [vmem:[%s1652_s12 + $0x38] sm:$0xff] %v375_v7  ;;  %v379_v9 = vld [vmem:[%s1647_s11 + $0x90] sm:$0xff] }
  0x1d   : > { %378 = vst [vmem:[%s1652_s12 + $0x40] sm:$0xff] %v377_v8  ;;  %v381_v10 = vld [vmem:[%s1647_s11 + $0xa0] sm:$0xff]  ;;  %v383_v11 = vld [vmem:[%s1647_s11 + $0xb0] sm:$0xff]  ;;  %380 = vst [vmem:[%s1652_s12 + $0x48] sm:$0xff] %v379_v9 }
  0x1e   : > { %382 = vst [vmem:[%s1652_s12 + $0x50] sm:$0xff] %v381_v10  ;;  %384 = vst [vmem:[%s1652_s12 + $0x58] sm:$0xff] %v383_v11  ;;  %v385_v12 = vld [vmem:[%s1647_s11 + $0xc0] sm:$0xff]  ;;  %v387_v13 = vld [vmem:[%s1647_s11 + $0xd0] sm:$0xff] }
  0x1f   : > { %v389_v14 = vld [vmem:[%s1647_s11 + $0xe0] sm:$0xff]  ;;  %386 = vst [vmem:[%s1652_s12 + $0x60] sm:$0xff] %v385_v12  ;;  %388 = vst [vmem:[%s1652_s12 + $0x68] sm:$0xff] %v387_v13  ;;  %v391_v15 = vld [vmem:[%s1647_s11 + $0xf0] sm:$0xff] }
  0x20   : > { %390 = vst [vmem:[%s1652_s12 + $0x70] sm:$0xff] %v389_v14  ;;  %v393_v16 = vld [vmem:[%s1647_s11 + $0x100] sm:$0xff]  ;;  %v395_v17 = vld [vmem:[%s1647_s11 + $0x110] sm:$0xff]  ;;  %392 = vst [vmem:[%s1652_s12 + $0x78] sm:$0xff] %v391_v15 }
  0x21   : > { %394 = vst [vmem:[%s1652_s12 + $0x80] sm:$0xff] %v393_v16  ;;  %396 = vst [vmem:[%s1652_s12 + $0x88] sm:$0xff] %v395_v17  ;;  %v397_v18 = vld [vmem:[%s1647_s11 + $0x120] sm:$0xff]  ;;  %v399_v19 = vld [vmem:[%s1647_s11 + $0x130] sm:$0xff] }
  0x22   : > { %v401_v20 = vld [vmem:[%s1647_s11 + $0x140] sm:$0xff]  ;;  %398 = vst [vmem:[%s1652_s12 + $0x90] sm:$0xff] %v397_v18  ;;  %400 = vst [vmem:[%s1652_s12 + $0x98] sm:$0xff] %v399_v19  ;;  %v403_v21 = vld [vmem:[%s1647_s11 + $0x150] sm:$0xff] }
  0x23   : > { %402 = vst [vmem:[%s1652_s12 + $0xa0] sm:$0xff] %v401_v20  ;;  %v405_v22 = vld [vmem:[%s1647_s11 + $0x160] sm:$0xff]  ;;  %v407_v23 = vld [vmem:[%s1647_s11 + $0x170] sm:$0xff]  ;;  %404 = vst [vmem:[%s1652_s12 + $0xa8] sm:$0xff] %v403_v21 }
  0x24   : > { %406 = vst [vmem:[%s1652_s12 + $0xb0] sm:$0xff] %v405_v22  ;;  %408 = vst [vmem:[%s1652_s12 + $0xb8] sm:$0xff] %v407_v23  ;;  %v409_v24 = vld [vmem:[%s1647_s11 + $0x180] sm:$0xff]  ;;  %v411_v25 = vld [vmem:[%s1647_s11 + $0x190] sm:$0xff] }
  0x25   : > { %v413_v26 = vld [vmem:[%s1647_s11 + $0x1a0] sm:$0xff]  ;;  %410 = vst [vmem:[%s1652_s12 + $0xc0] sm:$0xff] %v409_v24  ;;  %412 = vst [vmem:[%s1652_s12 + $0xc8] sm:$0xff] %v411_v25  ;;  %v415_v27 = vld [vmem:[%s1647_s11 + $0x1b0] sm:$0xff] }
  0x26   : > { %414 = vst [vmem:[%s1652_s12 + $0xd0] sm:$0xff] %v413_v26  ;;  %v417_v28 = vld [vmem:[%s1647_s11 + $0x1c0] sm:$0xff]  ;;  %v419_v29 = vld [vmem:[%s1647_s11 + $0x1d0] sm:$0xff]  ;;  %416 = vst [vmem:[%s1652_s12 + $0xd8] sm:$0xff] %v415_v27 }
  0x27   : > { %418 = vst [vmem:[%s1652_s12 + $0xe0] sm:$0xff] %v417_v28  ;;  %420 = vst [vmem:[%s1652_s12 + $0xe8] sm:$0xff] %v419_v29  ;;  %v421_v30 = vld [vmem:[%s1647_s11 + $0x1e0] sm:$0xff]  ;;  %v423_v31 = vld [vmem:[%s1647_s11 + $0x1f0] sm:$0xff] }
  0x28   : > { %v425_v32 = vld [vmem:[%s1647_s11 + $0x200] sm:$0xff]  ;;  %422 = vst [vmem:[%s1652_s12 + $0xf0] sm:$0xff] %v421_v30  ;;  %424 = vst [vmem:[%s1652_s12 + $0xf8] sm:$0xff] %v423_v31  ;;  %v427_v33 = vld [vmem:[%s1647_s11 + $0x210] sm:$0xff] }
  0x29   : > { %426 = vst [vmem:[%s1652_s12 + $0x100] sm:$0xff] %v425_v32  ;;  %v429_v34 = vld [vmem:[%s1647_s11 + $0x220] sm:$0xff]  ;;  %v431_v35 = vld [vmem:[%s1647_s11 + $0x230] sm:$0xff]  ;;  %428 = vst [vmem:[%s1652_s12 + $0x108] sm:$0xff] %v427_v33 }
  0x2a   : > { %430 = vst [vmem:[%s1652_s12 + $0x110] sm:$0xff] %v429_v34  ;;  %432 = vst [vmem:[%s1652_s12 + $0x118] sm:$0xff] %v431_v35  ;;  %v433_v36 = vld [vmem:[%s1647_s11 + $0x240] sm:$0xff]  ;;  %v435_v37 = vld [vmem:[%s1647_s11 + $0x250] sm:$0xff] }
  0x2b   : > { %v437_v38 = vld [vmem:[%s1647_s11 + $0x260] sm:$0xff]  ;;  %434 = vst [vmem:[%s1652_s12 + $0x120] sm:$0xff] %v433_v36  ;;  %436 = vst [vmem:[%s1652_s12 + $0x128] sm:$0xff] %v435_v37  ;;  %v439_v39 = vld [vmem:[%s1647_s11 + $0x270] sm:$0xff] }
  0x2c   : > { %438 = vst [vmem:[%s1652_s12 + $0x130] sm:$0xff] %v437_v38  ;;  %v441_v40 = vld [vmem:[%s1647_s11 + $0x280] sm:$0xff]  ;;  %v443_v41 = vld [vmem:[%s1647_s11 + $0x290] sm:$0xff]  ;;  %440 = vst [vmem:[%s1652_s12 + $0x138] sm:$0xff] %v439_v39 }
  0x2d   : > { %442 = vst [vmem:[%s1652_s12 + $0x140] sm:$0xff] %v441_v40  ;;  %444 = vst [vmem:[%s1652_s12 + $0x148] sm:$0xff] %v443_v41  ;;  %v445_v42 = vld [vmem:[%s1647_s11 + $0x2a0] sm:$0xff]  ;;  %v447_v43 = vld [vmem:[%s1647_s11 + $0x2b0] sm:$0xff] }
  0x2e   : > { %v449_v44 = vld [vmem:[%s1647_s11 + $0x2c0] sm:$0xff]  ;;  %446 = vst [vmem:[%s1652_s12 + $0x150] sm:$0xff] %v445_v42  ;;  %448 = vst [vmem:[%s1652_s12 + $0x158] sm:$0xff] %v447_v43  ;;  %v451_v45 = vld [vmem:[%s1647_s11 + $0x2d0] sm:$0xff] }
  0x2f   : > { %450 = vst [vmem:[%s1652_s12 + $0x160] sm:$0xff] %v449_v44  ;;  %v453_v46 = vld [vmem:[%s1647_s11 + $0x2e0] sm:$0xff]  ;;  %v455_v47 = vld [vmem:[%s1647_s11 + $0x2f0] sm:$0xff]  ;;  %452 = vst [vmem:[%s1652_s12 + $0x168] sm:$0xff] %v451_v45 }
  0x30   : > { %454 = vst [vmem:[%s1652_s12 + $0x170] sm:$0xff] %v453_v46  ;;  %456 = vst [vmem:[%s1652_s12 + $0x178] sm:$0xff] %v455_v47  ;;  %v457_v48 = vld [vmem:[%s1647_s11 + $0x300] sm:$0xff]  ;;  %v459_v49 = vld [vmem:[%s1647_s11 + $0x310] sm:$0xff] }
  0x31   : > { %v461_v50 = vld [vmem:[%s1647_s11 + $0x320] sm:$0xff]  ;;  %458 = vst [vmem:[%s1652_s12 + $0x180] sm:$0xff] %v457_v48  ;;  %460 = vst [vmem:[%s1652_s12 + $0x188] sm:$0xff] %v459_v49  ;;  %v463_v51 = vld [vmem:[%s1647_s11 + $0x330] sm:$0xff] }
  0x32   : > { %462 = vst [vmem:[%s1652_s12 + $0x190] sm:$0xff] %v461_v50  ;;  %v465_v52 = vld [vmem:[%s1647_s11 + $0x340] sm:$0xff]  ;;  %v467_v53 = vld [vmem:[%s1647_s11 + $0x350] sm:$0xff]  ;;  %464 = vst [vmem:[%s1652_s12 + $0x198] sm:$0xff] %v463_v51 }
  0x33   : > { %466 = vst [vmem:[%s1652_s12 + $0x1a0] sm:$0xff] %v465_v52  ;;  %468 = vst [vmem:[%s1652_s12 + $0x1a8] sm:$0xff] %v467_v53  ;;  %v469_v54 = vld [vmem:[%s1647_s11 + $0x360] sm:$0xff]  ;;  %v471_v55 = vld [vmem:[%s1647_s11 + $0x370] sm:$0xff] }
  0x34   : > { %v473_v56 = vld [vmem:[%s1647_s11 + $0x380] sm:$0xff]  ;;  %470 = vst [vmem:[%s1652_s12 + $0x1b0] sm:$0xff] %v469_v54  ;;  %472 = vst [vmem:[%s1652_s12 + $0x1b8] sm:$0xff] %v471_v55  ;;  %v475_v57 = vld [vmem:[%s1647_s11 + $0x390] sm:$0xff] }
  0x35   : > { %474 = vst [vmem:[%s1652_s12 + $0x1c0] sm:$0xff] %v473_v56  ;;  %v477_v58 = vld [vmem:[%s1647_s11 + $0x3a0] sm:$0xff]  ;;  %v479_v59 = vld [vmem:[%s1647_s11 + $0x3b0] sm:$0xff]  ;;  %476 = vst [vmem:[%s1652_s12 + $0x1c8] sm:$0xff] %v475_v57 }
  0x36   : > { %478 = vst [vmem:[%s1652_s12 + $0x1d0] sm:$0xff] %v477_v58  ;;  %480 = vst [vmem:[%s1652_s12 + $0x1d8] sm:$0xff] %v479_v59  ;;  %v481_v60 = vld [vmem:[%s1647_s11 + $0x3c0] sm:$0xff]  ;;  %v483_v61 = vld [vmem:[%s1647_s11 + $0x3d0] sm:$0xff] }
  0x37   : > { %v485_v62 = vld [vmem:[%s1647_s11 + $0x3e0] sm:$0xff]  ;;  %482 = vst [vmem:[%s1652_s12 + $0x1e0] sm:$0xff] %v481_v60  ;;  %484 = vst [vmem:[%s1652_s12 + $0x1e8] sm:$0xff] %v483_v61  ;;  %v487_v63 = vld [vmem:[%s1647_s11 + $0x3f0] sm:$0xff] }
  0x38   : > { %486 = vst [vmem:[%s1652_s12 + $0x1f0] sm:$0xff] %v485_v62  ;;  %488 = vst [vmem:[%s1652_s12 + $0x1f8] sm:$0xff] %v487_v63 }
  0x39 PF: > { %p1267_p7 = scmp.ge.s32.totalorder %s1559_s21, 1  ;;  %p509_p8 = scmp.lt.s32.totalorder %s1559_s21, 19 }
  0x3b   : > { %p510_p9 = pnand %p1267_p7, %p509_p8 }
  0x3c   : > { %s516_s13 = sand.u32 (!%p510_p9), 1, %s1535_s15   ;;  %p562_p10 = scmp.lt.s32.totalorder (!%p510_p9), %s1543_s17, 8 }
  0x3d   : > { %513 = sbr.rel (%p510_p9) target bundleno = 374 (0x176), region = 70  ;;  %s1268_s14 = sshll.u32 (!%p510_p9), %s516_s13, 9 }
  0x3e   : > { %s1271_s24 = sshll.u32 (!%p510_p9), %s1547_s18, 1  ;;  %s1806_s13 = scalar_lea.vmem (!%p510_p9), [#allocation3], %s1268_s14 }
  0x3f   : > { %p573_p11 = scmp.lt.s32.totalorder (!%p510_p9), %s1271_s24, 3  ;;  %p1275_p12 = scmp.ne.s32.totalorder (!%p510_p9), %s1543_s17, 0 }
  0x44   : > { %s563_s25 = scalar_select %p562_p10, %s1543_s17, 8 }
  0x45   : > { %s1927_s24 = smov (!%p573_p11, %s1271_s24), 3  ;;  %595 = sbr.rel (%p1275_p12) target bundleno = 76 (0x4c), region = 78 }
  0x46   : > { %s1347_s26 = sshll.u32 %s563_s25, 4  ;;  %s575_s15 = scalar_lea.vmem %s1911_s2, %s1927_s24  ;;  %v1561_v0 = vmov (!%p1275_p12), 0.0  }
  0x47   : > { %s1790_s30 = scalar_lea.vmem %s1909_s0, %s1347_s26  ;;  %s580_s18 = scalar_lea.vmem %s1912_s3, %s1927_s24  ;;  %596 = vst [vmem:[#allocation2] sm:$0xff] (!%p1275_p12), %v1561_v0  ;;  %597 = vst [vmem:[#allocation2 + $0x8] sm:$0xff] (!%p1275_p12), %v1561_v0 }
  0x48   : > { %s1274_s9 = sshll.u32 %s1927_s24, 3 }
  0x49   : > { %s1804_s12 = scalar_lea.vmem %s1913_s4, %s1274_s9 }
  0x4c PF: > { %v1405_v1 = vld [vmem:[%s1806_s13 + $0x4] ss:$8 sps:$4 sm:$0xff]   ;;  %v1409_v3 = vld [vmem:[%s1806_s13] ss:$8 sps:$4 sm:$0xff]   ;;  %v1411_v5 = vld [vmem:[%s1806_s13 + $0x14] ss:$8 sps:$4 sm:$0xff]  }
  0x4d   : > { %v1407_v2 = vld [vmem:[%s1806_s13 + $0x104] ss:$8 sps:$4 sm:$0xff]   ;;  %1000 = vmatprep.subr.bf16.mxu0 %v1405_v1  ;;  %v1410_v4 = vld [vmem:[%s1806_s13 + $0x100] ss:$8 sps:$4 sm:$0xff]   ;;  %v1413_v6 = vld [vmem:[%s1806_s13 + $0x114] ss:$8 sps:$4 sm:$0xff]  }
  0x4e   : > { %1041 = vmatprep.subr.bf16.mxu1 %v1407_v2  ;;  %1001 = vmatpush1.bf16.msra.mxu0 %v1409_v3  ;;  %v1415_v7 = vld [vmem:[%s1806_s13 + $0x10] ss:$8 sps:$4 sm:$0xff]   ;;  %v1417_v9 = vld [vmem:[%s1806_s13 + $0x24] ss:$8 sps:$4 sm:$0xff]   ;;  %v1421_v11 = vld [vmem:[%s1806_s13 + $0x20] ss:$8 sps:$4 sm:$0xff]  }
  0x4f   : > { %1042 = vmatpush1.bf16.msra.mxu1 %v1410_v4  ;;  %1002 = vmatprep.subr.bf16.mxu0 %v1411_v5  ;;  %v1416_v8 = vld [vmem:[%s1806_s13 + $0x110] ss:$8 sps:$4 sm:$0xff]   ;;  %v1419_v10 = vld [vmem:[%s1806_s13 + $0x124] ss:$8 sps:$4 sm:$0xff]   ;;  %v1422_v12 = vld [vmem:[%s1806_s13 + $0x120] ss:$8 sps:$4 sm:$0xff]  }
  0x50   : > { %1043 = vmatprep.subr.bf16.mxu1 %v1413_v6  ;;  %v1423_v13 = vld [vmem:[%s1806_s13 + $0x34] ss:$8 sps:$4 sm:$0xff]   ;;  %v1427_v15 = vld [vmem:[%s1806_s13 + $0x30] ss:$8 sps:$4 sm:$0xff]   ;;  %v1429_v17 = vld [vmem:[%s1806_s13 + $0x44] ss:$8 sps:$4 sm:$0xff]  }
  0x51   : > { %v1425_v14 = vld [vmem:[%s1806_s13 + $0x134] ss:$8 sps:$4 sm:$0xff]   ;;  %v1428_v16 = vld [vmem:[%s1806_s13 + $0x130] ss:$8 sps:$4 sm:$0xff]   ;;  %v1431_v18 = vld [vmem:[%s1806_s13 + $0x144] ss:$8 sps:$4 sm:$0xff]  }
  0x52   : > { %1003 = vmatpush1.bf16.msra.mxu0 %v1415_v7  ;;  %v1433_v19 = vld [vmem:[%s1806_s13 + $0x40] ss:$8 sps:$4 sm:$0xff]   ;;  %v1435_v21 = vld [vmem:[%s1806_s13 + $0x54] ss:$8 sps:$4 sm:$0xff]   ;;  %v1439_v23 = vld [vmem:[%s1806_s13 + $0x50] ss:$8 sps:$4 sm:$0xff]  }
  0x53   : > { %1044 = vmatpush1.bf16.msra.mxu1 %v1416_v8  ;;  %1004 = vmatprep.subr.bf16.mxu0 %v1417_v9  ;;  %v1434_v20 = vld [vmem:[%s1806_s13 + $0x140] ss:$8 sps:$4 sm:$0xff]   ;;  %v1437_v22 = vld [vmem:[%s1806_s13 + $0x154] ss:$8 sps:$4 sm:$0xff]   ;;  %v1440_v24 = vld [vmem:[%s1806_s13 + $0x150] ss:$8 sps:$4 sm:$0xff]  }
  0x54   : > { %1045 = vmatprep.subr.bf16.mxu1 %v1419_v10  ;;  %v1441_v25 = vld [vmem:[%s1806_s13 + $0x64] ss:$8 sps:$4 sm:$0xff]   ;;  %v1445_v27 = vld [vmem:[%s1806_s13 + $0x60] ss:$8 sps:$4 sm:$0xff]   ;;  %v1447_v29 = vld [vmem:[%s1806_s13 + $0x74] ss:$8 sps:$4 sm:$0xff]  }
  0x55   : > { %v1443_v26 = vld [vmem:[%s1806_s13 + $0x164] ss:$8 sps:$4 sm:$0xff]   ;;  %v1446_v28 = vld [vmem:[%s1806_s13 + $0x160] ss:$8 sps:$4 sm:$0xff]   ;;  %v1449_v30 = vld [vmem:[%s1806_s13 + $0x174] ss:$8 sps:$4 sm:$0xff]  }
  0x56   : > { %1005 = vmatpush1.bf16.msra.mxu0 %v1421_v11  ;;  %v1451_v31 = vld [vmem:[%s1806_s13 + $0x70] ss:$8 sps:$4 sm:$0xff]   ;;  %v1453_v33 = vld [vmem:[%s1806_s13 + $0x84] ss:$8 sps:$4 sm:$0xff]   ;;  %v1457_v35 = vld [vmem:[%s1806_s13 + $0x80] ss:$8 sps:$4 sm:$0xff]  }
  0x57   : > { %1046 = vmatpush1.bf16.msra.mxu1 %v1422_v12  ;;  %1006 = vmatprep.subr.bf16.mxu0 %v1423_v13  ;;  %v1452_v32 = vld [vmem:[%s1806_s13 + $0x170] ss:$8 sps:$4 sm:$0xff]   ;;  %v1455_v34 = vld [vmem:[%s1806_s13 + $0x184] ss:$8 sps:$4 sm:$0xff]   ;;  %v1458_v36 = vld [vmem:[%s1806_s13 + $0x180] ss:$8 sps:$4 sm:$0xff]  }
  0x58   : > { %1047 = vmatprep.subr.bf16.mxu1 %v1425_v14  ;;  %v1459_v37 = vld [vmem:[%s1806_s13 + $0x94] ss:$8 sps:$4 sm:$0xff]   ;;  %v1463_v39 = vld [vmem:[%s1806_s13 + $0x90] ss:$8 sps:$4 sm:$0xff]   ;;  %v1465_v41 = vld [vmem:[%s1806_s13 + $0xa4] ss:$8 sps:$4 sm:$0xff]  }
  0x59   : > { %v1461_v38 = vld [vmem:[%s1806_s13 + $0x194] ss:$8 sps:$4 sm:$0xff]   ;;  %v1464_v40 = vld [vmem:[%s1806_s13 + $0x190] ss:$8 sps:$4 sm:$0xff]   ;;  %v1467_v42 = vld [vmem:[%s1806_s13 + $0x1a4] ss:$8 sps:$4 sm:$0xff]  }
  0x5a   : > { %1007 = vmatpush1.bf16.msra.mxu0 %v1427_v15  ;;  %v1469_v43 = vld [vmem:[%s1806_s13 + $0xa0] ss:$8 sps:$4 sm:$0xff]   ;;  %v1471_v45 = vld [vmem:[%s1806_s13 + $0xb4] ss:$8 sps:$4 sm:$0xff]   ;;  %v1475_v50 = vld [vmem:[%s1806_s13 + $0xb0] ss:$8 sps:$4 sm:$0xff]  }
  0x5b   : > { %1048 = vmatpush1.bf16.msra.mxu1 %v1428_v16  ;;  %1008 = vmatprep.subr.bf16.mxu0 %v1429_v17  ;;  %v1470_v44 = vld [vmem:[%s1806_s13 + $0x1a0] ss:$8 sps:$4 sm:$0xff]   ;;  %v1473_v46 = vld [vmem:[%s1806_s13 + $0x1b4] ss:$8 sps:$4 sm:$0xff]   ;;  %v1476_v51 = vld [vmem:[%s1806_s13 + $0x1b0] ss:$8 sps:$4 sm:$0xff]  }
  0x5c   : > { %1049 = vmatprep.subr.bf16.mxu1 %v1431_v18  ;;  %v600_v47 = vld [vmem:[%s1790_s30] sm:$0xff]  ;;  %v601_v49 = vld [vmem:[%s1790_s30 + $0x8] sm:$0xff]  ;;  %v1477_v53 = vld [vmem:[%s1806_s13 + $0xc4] ss:$8 sps:$4 sm:$0xff]   ;;  %p1344_p13 = scmp.ne.s32.totalorder %s1543_s17, 8 }
  0x5d   : > { %v1277_v48 = vcombine.high %v600_v47, %v600_v47  ;;  %v1279_v52 = vcombine.high %v601_v49, %v601_v49  ;;  %v1479_v54 = vld [vmem:[%s1806_s13 + $0x1c4] ss:$8 sps:$4 sm:$0xff]   ;;  %v1481_v55 = vld [vmem:[%s1806_s13 + $0xc0] ss:$8 sps:$4 sm:$0xff]   ;;  %v1483_v57 = vld [vmem:[%s1806_s13 + $0xd4] ss:$8 sps:$4 sm:$0xff]   ;;  %v1276_v5 = vcombine.low %v600_v47, %v600_v47  ;;  %v1278_v6 = vcombine.low %v601_v49, %v601_v49 }
  0x5e   : > { %1009 = vmatpush1.bf16.msra.mxu0 %v1433_v19  ;;  %v1482_v56 = vld [vmem:[%s1806_s13 + $0x1c0] ss:$8 sps:$4 sm:$0xff]   ;;  %v1485_v58 = vld [vmem:[%s1806_s13 + $0x1d4] ss:$8 sps:$4 sm:$0xff]   ;;  %v1487_v59 = vld [vmem:[%s1806_s13 + $0xd0] ss:$8 sps:$4 sm:$0xff]  }
  0x5f   : > { %1050 = vmatpush1.bf16.msra.mxu1 %v1434_v20  ;;  %1010 = vmatprep.subr.bf16.mxu0 %v1435_v21  ;;  %v1488_v60 = vld [vmem:[%s1806_s13 + $0x1d0] ss:$8 sps:$4 sm:$0xff]   ;;  %v1489_v61 = vld [vmem:[%s1806_s13 + $0xe4] ss:$8 sps:$4 sm:$0xff]   ;;  %v1493_v63 = vld [vmem:[%s1806_s13 + $0xe0] ss:$8 sps:$4 sm:$0xff]   ;;  %v1094_v21 = vlaneseq (!%p1344_p13) }
  0x60   : > { %1051 = vmatprep.subr.bf16.mxu1 %v1437_v22  ;;  %1032 = vmatprep.mubr.bf16.mxu0 %v1277_v48  ;;  %v1491_v62 = vld [vmem:[%s1806_s13 + $0x1e4] ss:$8 sps:$4 sm:$0xff]   ;;  %v1494_v0 = vld [vmem:[%s1806_s13 + $0x1e0] ss:$8 sps:$4 sm:$0xff]   ;;  %v1495_v1 = vld [vmem:[%s1806_s13 + $0xf4] ss:$8 sps:$4 sm:$0xff]  }
  0x61   : > { %1073 = vmatprep.mubr.bf16.mxu1 %v1279_v52  ;;  %v1497_v2 = vld [vmem:[%s1806_s13 + $0x1f4] ss:$8 sps:$4 sm:$0xff]   ;;  %v1499_v3 = vld [vmem:[%s1806_s13 + $0xf0] ss:$8 sps:$4 sm:$0xff]   ;;  %v1095_v22 = vshrl.u32 (!%p1344_p13), %v1094_v21, 7 }
  0x62   : > { %1011 = vmatpush1.bf16.msra.mxu0 %v1439_v23  ;;  %v1500_v4 = vld [vmem:[%s1806_s13 + $0x1f0] ss:$8 sps:$4 sm:$0xff]  }
  0x63   : > { %1052 = vmatpush1.bf16.msra.mxu1 %v1440_v24  ;;  %1012 = vmatprep.subr.bf16.mxu0 %v1441_v25  ;;  %v598_v8 = vld [vmem:[#allocation2] sm:$0xff]  ;;  %v599_v12 = vld [vmem:[#allocation2 + $0x8] sm:$0xff]  ;;  %v1096_v25 = vsub.s32 (!%p1344_p13), 0, %v1095_v22 }
  0x64   : > { %1053 = vmatprep.subr.bf16.mxu1 %v1443_v26  ;;  %v1092_v23 = vld [vmem:[%s575_s15] sm:$0x3] (!%p1344_p13)  ;;  %v1100_v26 = vsub.s32 (!%p1344_p13), 1, %v1095_v22 }
  0x65   : > { %v1106_v24 = vld [vmem:[%s580_s18] sm:$0x3] (!%p1344_p13) }
  0x66   : > { %1013 = vmatpush1.bf16.msra.mxu0 %v1445_v27 }
  0x67   : > { %1054 = vmatpush1.bf16.msra.mxu1 %v1446_v28  ;;  %1014 = vmatprep.subr.bf16.mxu0 %v1447_v29  ;;  %v1097_v29 = vrot.slane (!%p1344_p13), %v1092_v23, %v1096_v25 }
  0x68   : > { %1055 = vmatprep.subr.bf16.mxu1 %v1449_v30  ;;  %v1111_v30 = vrot.slane (!%p1344_p13), %v1106_v24, %v1096_v25 }
  0x6a   : > { %1015 = vmatpush1.bf16.msra.mxu0 %v1451_v31  ;;  %v1101_v31 = vrot.slane (!%p1344_p13), %v1092_v23, %v1100_v26 }
  0x6b   : > { %1056 = vmatpush1.bf16.msra.mxu1 %v1452_v32  ;;  %1016 = vmatprep.subr.bf16.mxu0 %v1453_v33  ;;  %v1115_v32 = vrot.slane (!%p1344_p13), %v1106_v24, %v1100_v26 }
  0x6c   : > { %1057 = vmatprep.subr.bf16.mxu1 %v1455_v34 }
  0x6e   : > { %1017 = vmatpush1.bf16.msra.mxu0 %v1457_v35 }
  0x6f   : > { %1058 = vmatpush1.bf16.msra.mxu1 %v1458_v36  ;;  %1018 = vmatprep.subr.bf16.mxu0 %v1459_v37 }
  0x70   : > { %1059 = vmatprep.subr.bf16.mxu1 %v1461_v38 }
  0x72   : > { %1019 = vmatpush1.bf16.msra.mxu0 %v1463_v39 }
  0x73   : > { %1060 = vmatpush1.bf16.msra.mxu1 %v1464_v40  ;;  %1020 = vmatprep.subr.bf16.mxu0 %v1465_v41 }
  0x74   : > { %1061 = vmatprep.subr.bf16.mxu1 %v1467_v42 }
  0x76   : > { %1021 = vmatpush1.bf16.msra.mxu0 %v1469_v43 }
  0x77   : > { %1062 = vmatpush1.bf16.msra.mxu1 %v1470_v44  ;;  %1022 = vmatprep.subr.bf16.mxu0 %v1471_v45 }
  0x78   : > { %1063 = vmatprep.subr.bf16.mxu1 %v1473_v46 }
  0x7a   : > { %1023 = vmatpush1.bf16.msra.mxu0 %v1475_v50 }
  0x7b   : > { %1064 = vmatpush1.bf16.msra.mxu1 %v1476_v51  ;;  %1024 = vmatprep.subr.bf16.mxu0 %v1477_v53 }
  0x7c   : > { %1065 = vmatprep.subr.bf16.mxu1 %v1479_v54 }
  0x7e   : > { %1025 = vmatpush1.bf16.msra.mxu0 %v1481_v55 }
  0x7f   : > { %1066 = vmatpush1.bf16.msra.mxu1 %v1482_v56  ;;  %1026 = vmatprep.subr.bf16.mxu0 %v1483_v57 }
  0x80   : > { %1067 = vmatprep.subr.bf16.mxu1 %v1485_v58 }
  0x82   : > { %1027 = vmatpush1.bf16.msra.mxu0 %v1487_v59 }
  0x83   : > { %1068 = vmatpush1.bf16.msra.mxu1 %v1488_v60  ;;  %1028 = vmatprep.subr.bf16.mxu0 %v1489_v61 }
  0x84   : > { %1069 = vmatprep.subr.bf16.mxu1 %v1491_v62 }
  0x86   : > { %1029 = vmatpush1.bf16.msra.mxu0 %v1493_v63 }
  0x87   : > { %1070 = vmatpush1.bf16.msra.mxu1 %v1494_v0  ;;  %1030 = vmatprep.subr.bf16.mxu0 %v1495_v1 }
  0x88   : > { %1071 = vmatprep.subr.bf16.mxu1 %v1497_v2 }
  0x8a   : > { %1031 = vmatpush1.bf16.msra.mxu0 %v1499_v3 }
  0x8b   : > { %1072 = vmatpush1.bf16.msra.mxu1 %v1500_v4 }
  0x8d   : > { %1033 = vmatmul.mubr.bf16.vlgmr.msra.gmra.mrb[0].mxu0 %v1276_v5 }
  0x8e   : > { %1074 = vmatmul.mubr.bf16.vlgmr.msra.gmra.mrb[0].mxu1 %v1278_v6 }
 0x160   : > { %v1034_v7 = vpop.f32.mrb[0].mxu0 }
 0x161   : > { %v1075_v9 = vpop.f32.mrb[0].mxu1  ;;  %v1036_v11 = vpop.f32.mrb[1].mxu0  ;;  %1089 = sbr.rel (%p1344_p13) target bundleno = 374 (0x176), region = 82 }
 0x162   : > { %v1076_v10 = vadd.f32 %v1075_v9, %v1034_v7  ;;  %v1077_v13 = vpop.f32.mrb[1].mxu1  ;;  %v1038_v15 = vpop.f32.mrb[2].mxu0 }
 0x163   : > { %v1078_v14 = vadd.f32 %v1077_v13, %v1036_v11  ;;  %v1079_v16 = vpop.f32.mrb[2].mxu1  ;;  %v1039_v18 = vpop.f32.mrb[3].mxu0 }
 0x164   : > { %v1082_v17 = vadd.f32 %v1076_v10, %v598_v8  ;;  %v1080_v19 = vpop.f32.mrb[3].mxu1 }
 0x165   : > { %v1083_v20 = vadd.f32 %v1078_v14, %v599_v12 }
 0x166   : > { %1084 = vst [vmem:[#allocation2] sm:$0xff] %v1082_v17 }
 0x167   : > { %1085 = vst [vmem:[#allocation2 + $0x8] sm:$0xff] %v1083_v20 }
 0x16d   : > { %v1090_v27 = vld [vmem:[#allocation2] sm:$0xff] }
 0x16e   : > { %v1091_v28 = vld [vmem:[#allocation2 + $0x8] sm:$0xff]  ;;  %v1104_v33 = vmul.f32 %v1097_v29, %v1090_v27 }
 0x16f   : > { %v1105_v34 = vmul.f32 %v1101_v31, %v1091_v28 }
 0x170   : > { %v1118_v35 = vadd.f32 %v1111_v30, %v1104_v33 }
 0x171   : > { %v1119_v36 = vadd.f32 %v1115_v32, %v1105_v34 }
 0x172   : > { %v1120_v37 = vmax.f32 %v1118_v35, 0.0 }
 0x173   : > { %v1121_v38 = vmax.f32 %v1119_v36, 0.0 }
 0x174   : > { %1122 = vst [vmem:[%s1804_s12] sm:$0xff] %v1120_v37 }
 0x175   : > { %1123 = vst [vmem:[%s1804_s12 + $0x8] sm:$0xff] %v1121_v38 }
 0x176 PF: > { %s14_s21 = sadd.s32 1, %s1559_s21   ;;  %s1914_s15 = smov %s1539_s16 }
 0x177   : > { %p11_p0 = scmp.ge.s32.totalorder %s14_s21, 20   ;;  %s1915_s16 = smov %s1638_s28 }
 0x178   : > { %s1916_s17 = smov %s1551_s19  ;;  %s1917_s18 = smov %s1555_s20 }
 0x179   : > { %s1918_s19 = smov %s1921_s22  ;;  %s1919_s20 = smov %s1925_s23 }
 0x17a   :  { %13 = sbr.rel (!%p11_p0) target bundleno = 4 (0x4), region = 126 }

// kernel: resnet34_forward.77
= control target key start
LH: loop header
LB: loop body
LE: loop exit
PB: predicated region body
PF: predicated region fallthrough
CT: control target
= control target key end

     0   :  { %s1548_s15 = smov 0   ;;  %s1550_s16 = smov 0   ;;  %s1835_s0 = inlined_call_operand.vmem [shape: bf16[1,8,512], index: 0, kind: input, shape index: {}]   ;;  %s1836_s1 = inlined_call_operand.vmem [shape: bf16[1,512,1024], index: 1, kind: input, shape index: {}]   ;;  %s1837_s2 = inlined_call_operand.vmem [shape: f32[1,1024], index: 2, kind: input, shape index: {}]   ;;  %s1838_s3 = inlined_call_operand.vmem [shape: f32[1,1024], index: 3, kind: input, shape index: {}]   ;;  %s1839_s4 = inlined_call_operand.vmem [shape: f32[8,1024], index: 4, kind: output, shape index: {}]  }
   0x1   :  { %s1552_s17 = smov 0   ;;  %s1554_s18 = smov 0  }
   0x2   :  { %s1556_s19 = smov 0  }
   0x3 LB: > { %s29_s20 = sadd.s32 1, %s1517_s18  ;;  %p77_p1 = scmp.ne.s32.totalorder %s1509_s16, %s1505_s15  ;;  %s1521_s19 = sphi %s1556_s19, %s14_s19   ;;  %s1517_s18 = sphi %s1554_s18, %s1843_s18   ;;  %s1513_s17 = sphi %s1552_s17, %s1842_s17   ;;  %s1509_s16 = sphi %s1550_s16, %s1841_s16   ;;  %s1505_s15 = sphi %s1548_s15, %s1840_s15  }
   0x4   : > { %p31_p0 = scmp.ge.s32.totalorder %s29_s20, 4  ;;  %p78_p2 = scmp.eq.s32.totalorder %s1521_s19, 0 }
   0x5   : > { %s70_s22 = sadd.s32 1, %s1509_s16  ;;  %p1260_p5 = scmp.ge.s32.totalorder %s1521_s19, 4 }
   0x6   : > { %s1845_s20 = smov (%p31_p0, %s29_s20), 0  ;;  %p79_p3 = por %p78_p2, %p77_p1 }
   0x7   : > { %s66_s21 = ssub.s32 %s1517_s18, %s1845_s20  ;;  %195 = sbr.rel (%p1260_p5) target bundleno = 82 (0x52), region = 20 }
   0x8   : > { %p68_p4 = scmp.eq.s32.totalorder %s66_s21, 0 }
   0xa   : > { %s1583_s23 = scalar_select %p68_p4, %s1509_s16, %s70_s22  }
   0xe   : > { %198 = sbr.rel (!%p79_p3) target bundleno = 82 (0x52), region = 24  ;;  %s200_s24 = sand.u32 (%p79_p3), 1, %s1509_s16  }
   0xf   : > { %s1340_s25 = sshll.u32 (%p79_p3), %s1517_s18, 3  ;;  %s1261_s26 = sshll.u32 (%p79_p3), %s200_s24, 9 }
  0x10   : > { %s1591_s29 = scalar_lea.vmem (%p79_p3), %s1836_s1, %s1340_s25  ;;  %s1596_s30 = scalar_lea.vmem (%p79_p3), [#allocation3], %s1261_s26 }
  0x11   : > { %v361_v0 = vld [vmem:[%s1591_s29] sm:$0xff] (%p79_p3) }
  0x12   : > { %v363_v1 = vld [vmem:[%s1591_s29 + $0x20] sm:$0xff] (%p79_p3)  ;;  %362 = vst [vmem:[%s1596_s30] sm:$0xff] (%p79_p3), %v361_v0 }
  0x13   : > { %v365_v2 = vld [vmem:[%s1591_s29 + $0x40] sm:$0xff] (%p79_p3)  ;;  %364 = vst [vmem:[%s1596_s30 + $0x8] sm:$0xff] (%p79_p3), %v363_v1 }
  0x14   : > { %366 = vst [vmem:[%s1596_s30 + $0x10] sm:$0xff] (%p79_p3), %v365_v2  ;;  %v367_v3 = vld [vmem:[%s1591_s29 + $0x60] sm:$0xff] (%p79_p3) }
  0x15   : > { %v369_v4 = vld [vmem:[%s1591_s29 + $0x80] sm:$0xff]  ;;  %368 = vst [vmem:[%s1596_s30 + $0x18] sm:$0xff] %v367_v3 }
  0x16   : > { %v371_v5 = vld [vmem:[%s1591_s29 + $0xa0] sm:$0xff]  ;;  %370 = vst [vmem:[%s1596_s30 + $0x20] sm:$0xff] %v369_v4 }
  0x17   : > { %372 = vst [vmem:[%s1596_s30 + $0x28] sm:$0xff] %v371_v5  ;;  %v373_v6 = vld [vmem:[%s1591_s29 + $0xc0] sm:$0xff] }
  0x18   : > { %v375_v7 = vld [vmem:[%s1591_s29 + $0xe0] sm:$0xff]  ;;  %374 = vst [vmem:[%s1596_s30 + $0x30] sm:$0xff] %v373_v6 }
  0x19   : > { %v377_v8 = vld [vmem:[%s1591_s29 + $0x100] sm:$0xff]  ;;  %376 = vst [vmem:[%s1596_s30 + $0x38] sm:$0xff] %v375_v7 }
  0x1a   : > { %378 = vst [vmem:[%s1596_s30 + $0x40] sm:$0xff] %v377_v8  ;;  %v379_v9 = vld [vmem:[%s1591_s29 + $0x120] sm:$0xff] }
  0x1b   : > { %v381_v10 = vld [vmem:[%s1591_s29 + $0x140] sm:$0xff]  ;;  %380 = vst [vmem:[%s1596_s30 + $0x48] sm:$0xff] %v379_v9 }
  0x1c   : > { %v383_v11 = vld [vmem:[%s1591_s29 + $0x160] sm:$0xff]  ;;  %382 = vst [vmem:[%s1596_s30 + $0x50] sm:$0xff] %v381_v10 }
  0x1d   : > { %384 = vst [vmem:[%s1596_s30 + $0x58] sm:$0xff] %v383_v11  ;;  %v385_v12 = vld [vmem:[%s1591_s29 + $0x180] sm:$0xff] }
  0x1e   : > { %v387_v13 = vld [vmem:[%s1591_s29 + $0x1a0] sm:$0xff]  ;;  %386 = vst [vmem:[%s1596_s30 + $0x60] sm:$0xff] %v385_v12 }
  0x1f   : > { %v389_v14 = vld [vmem:[%s1591_s29 + $0x1c0] sm:$0xff]  ;;  %388 = vst [vmem:[%s1596_s30 + $0x68] sm:$0xff] %v387_v13 }
  0x20   : > { %390 = vst [vmem:[%s1596_s30 + $0x70] sm:$0xff] %v389_v14  ;;  %v391_v15 = vld [vmem:[%s1591_s29 + $0x1e0] sm:$0xff] }
  0x21   : > { %v393_v16 = vld [vmem:[%s1591_s29 + $0x200] sm:$0xff]  ;;  %392 = vst [vmem:[%s1596_s30 + $0x78] sm:$0xff] %v391_v15 }
  0x22   : > { %v395_v17 = vld [vmem:[%s1591_s29 + $0x220] sm:$0xff]  ;;  %394 = vst [vmem:[%s1596_s30 + $0x80] sm:$0xff] %v393_v16 }
  0x23   : > { %396 = vst [vmem:[%s1596_s30 + $0x88] sm:$0xff] %v395_v17  ;;  %v397_v18 = vld [vmem:[%s1591_s29 + $0x240] sm:$0xff] }
  0x24   : > { %v399_v19 = vld [vmem:[%s1591_s29 + $0x260] sm:$0xff]  ;;  %398 = vst [vmem:[%s1596_s30 + $0x90] sm:$0xff] %v397_v18 }
  0x25   : > { %v401_v20 = vld [vmem:[%s1591_s29 + $0x280] sm:$0xff]  ;;  %400 = vst [vmem:[%s1596_s30 + $0x98] sm:$0xff] %v399_v19 }
  0x26   : > { %402 = vst [vmem:[%s1596_s30 + $0xa0] sm:$0xff] %v401_v20  ;;  %v403_v21 = vld [vmem:[%s1591_s29 + $0x2a0] sm:$0xff] }
  0x27   : > { %v405_v22 = vld [vmem:[%s1591_s29 + $0x2c0] sm:$0xff]  ;;  %404 = vst [vmem:[%s1596_s30 + $0xa8] sm:$0xff] %v403_v21 }
  0x28   : > { %v407_v23 = vld [vmem:[%s1591_s29 + $0x2e0] sm:$0xff]  ;;  %406 = vst [vmem:[%s1596_s30 + $0xb0] sm:$0xff] %v405_v22 }
  0x29   : > { %408 = vst [vmem:[%s1596_s30 + $0xb8] sm:$0xff] %v407_v23  ;;  %v409_v24 = vld [vmem:[%s1591_s29 + $0x300] sm:$0xff] }
  0x2a   : > { %v411_v25 = vld [vmem:[%s1591_s29 + $0x320] sm:$0xff]  ;;  %410 = vst [vmem:[%s1596_s30 + $0xc0] sm:$0xff] %v409_v24 }
  0x2b   : > { %v413_v26 = vld [vmem:[%s1591_s29 + $0x340] sm:$0xff]  ;;  %412 = vst [vmem:[%s1596_s30 + $0xc8] sm:$0xff] %v411_v25 }
  0x2c   : > { %414 = vst [vmem:[%s1596_s30 + $0xd0] sm:$0xff] %v413_v26  ;;  %v415_v27 = vld [vmem:[%s1591_s29 + $0x360] sm:$0xff] }
  0x2d   : > { %v417_v28 = vld [vmem:[%s1591_s29 + $0x380] sm:$0xff]  ;;  %416 = vst [vmem:[%s1596_s30 + $0xd8] sm:$0xff] %v415_v27 }
  0x2e   : > { %v419_v29 = vld [vmem:[%s1591_s29 + $0x3a0] sm:$0xff]  ;;  %418 = vst [vmem:[%s1596_s30 + $0xe0] sm:$0xff] %v417_v28 }
  0x2f   : > { %420 = vst [vmem:[%s1596_s30 + $0xe8] sm:$0xff] %v419_v29  ;;  %v421_v30 = vld [vmem:[%s1591_s29 + $0x3c0] sm:$0xff] }
  0x30   : > { %v423_v31 = vld [vmem:[%s1591_s29 + $0x3e0] sm:$0xff]  ;;  %422 = vst [vmem:[%s1596_s30 + $0xf0] sm:$0xff] %v421_v30 }
  0x31   : > { %v425_v32 = vld [vmem:[%s1591_s29 + $0x400] sm:$0xff]  ;;  %424 = vst [vmem:[%s1596_s30 + $0xf8] sm:$0xff] %v423_v31 }
  0x32   : > { %426 = vst [vmem:[%s1596_s30 + $0x100] sm:$0xff] %v425_v32  ;;  %v427_v33 = vld [vmem:[%s1591_s29 + $0x420] sm:$0xff] }
  0x33   : > { %v429_v34 = vld [vmem:[%s1591_s29 + $0x440] sm:$0xff]  ;;  %428 = vst [vmem:[%s1596_s30 + $0x108] sm:$0xff] %v427_v33 }
  0x34   : > { %v431_v35 = vld [vmem:[%s1591_s29 + $0x460] sm:$0xff]  ;;  %430 = vst [vmem:[%s1596_s30 + $0x110] sm:$0xff] %v429_v34 }
  0x35   : > { %432 = vst [vmem:[%s1596_s30 + $0x118] sm:$0xff] %v431_v35  ;;  %v433_v36 = vld [vmem:[%s1591_s29 + $0x480] sm:$0xff] }
  0x36   : > { %v435_v37 = vld [vmem:[%s1591_s29 + $0x4a0] sm:$0xff]  ;;  %434 = vst [vmem:[%s1596_s30 + $0x120] sm:$0xff] %v433_v36 }
  0x37   : > { %v437_v38 = vld [vmem:[%s1591_s29 + $0x4c0] sm:$0xff]  ;;  %436 = vst [vmem:[%s1596_s30 + $0x128] sm:$0xff] %v435_v37 }
  0x38   : > { %438 = vst [vmem:[%s1596_s30 + $0x130] sm:$0xff] %v437_v38  ;;  %v439_v39 = vld [vmem:[%s1591_s29 + $0x4e0] sm:$0xff] }
  0x39   : > { %v441_v40 = vld [vmem:[%s1591_s29 + $0x500] sm:$0xff]  ;;  %440 = vst [vmem:[%s1596_s30 + $0x138] sm:$0xff] %v439_v39 }
  0x3a   : > { %v443_v41 = vld [vmem:[%s1591_s29 + $0x520] sm:$0xff]  ;;  %442 = vst [vmem:[%s1596_s30 + $0x140] sm:$0xff] %v441_v40 }
  0x3b   : > { %444 = vst [vmem:[%s1596_s30 + $0x148] sm:$0xff] %v443_v41  ;;  %v445_v42 = vld [vmem:[%s1591_s29 + $0x540] sm:$0xff] }
  0x3c   : > { %v447_v43 = vld [vmem:[%s1591_s29 + $0x560] sm:$0xff]  ;;  %446 = vst [vmem:[%s1596_s30 + $0x150] sm:$0xff] %v445_v42 }
  0x3d   : > { %v449_v44 = vld [vmem:[%s1591_s29 + $0x580] sm:$0xff]  ;;  %448 = vst [vmem:[%s1596_s30 + $0x158] sm:$0xff] %v447_v43 }
  0x3e   : > { %450 = vst [vmem:[%s1596_s30 + $0x160] sm:$0xff] %v449_v44  ;;  %v451_v45 = vld [vmem:[%s1591_s29 + $0x5a0] sm:$0xff] }
  0x3f   : > { %v453_v46 = vld [vmem:[%s1591_s29 + $0x5c0] sm:$0xff]  ;;  %452 = vst [vmem:[%s1596_s30 + $0x168] sm:$0xff] %v451_v45 }
  0x40   : > { %v455_v47 = vld [vmem:[%s1591_s29 + $0x5e0] sm:$0xff]  ;;  %454 = vst [vmem:[%s1596_s30 + $0x170] sm:$0xff] %v453_v46 }
  0x41   : > { %456 = vst [vmem:[%s1596_s30 + $0x178] sm:$0xff] %v455_v47  ;;  %v457_v48 = vld [vmem:[%s1591_s29 + $0x600] sm:$0xff] }
  0x42   : > { %v459_v49 = vld [vmem:[%s1591_s29 + $0x620] sm:$0xff]  ;;  %458 = vst [vmem:[%s1596_s30 + $0x180] sm:$0xff] %v457_v48 }
  0x43   : > { %v461_v50 = vld [vmem:[%s1591_s29 + $0x640] sm:$0xff]  ;;  %460 = vst [vmem:[%s1596_s30 + $0x188] sm:$0xff] %v459_v49 }
  0x44   : > { %462 = vst [vmem:[%s1596_s30 + $0x190] sm:$0xff] %v461_v50  ;;  %v463_v51 = vld [vmem:[%s1591_s29 + $0x660] sm:$0xff] }
  0x45   : > { %v465_v52 = vld [vmem:[%s1591_s29 + $0x680] sm:$0xff]  ;;  %464 = vst [vmem:[%s1596_s30 + $0x198] sm:$0xff] %v463_v51 }
  0x46   : > { %v467_v53 = vld [vmem:[%s1591_s29 + $0x6a0] sm:$0xff]  ;;  %466 = vst [vmem:[%s1596_s30 + $0x1a0] sm:$0xff] %v465_v52 }
  0x47   : > { %468 = vst [vmem:[%s1596_s30 + $0x1a8] sm:$0xff] %v467_v53  ;;  %v469_v54 = vld [vmem:[%s1591_s29 + $0x6c0] sm:$0xff] }
  0x48   : > { %v471_v55 = vld [vmem:[%s1591_s29 + $0x6e0] sm:$0xff]  ;;  %470 = vst [vmem:[%s1596_s30 + $0x1b0] sm:$0xff] %v469_v54 }
  0x49   : > { %v473_v56 = vld [vmem:[%s1591_s29 + $0x700] sm:$0xff]  ;;  %472 = vst [vmem:[%s1596_s30 + $0x1b8] sm:$0xff] %v471_v55 }
  0x4a   : > { %474 = vst [vmem:[%s1596_s30 + $0x1c0] sm:$0xff] %v473_v56  ;;  %v475_v57 = vld [vmem:[%s1591_s29 + $0x720] sm:$0xff] }
  0x4b   : > { %v477_v58 = vld [vmem:[%s1591_s29 + $0x740] sm:$0xff]  ;;  %476 = vst [vmem:[%s1596_s30 + $0x1c8] sm:$0xff] %v475_v57 }
  0x4c   : > { %v479_v59 = vld [vmem:[%s1591_s29 + $0x760] sm:$0xff]  ;;  %478 = vst [vmem:[%s1596_s30 + $0x1d0] sm:$0xff] %v477_v58 }
  0x4d   : > { %480 = vst [vmem:[%s1596_s30 + $0x1d8] sm:$0xff] %v479_v59  ;;  %v481_v60 = vld [vmem:[%s1591_s29 + $0x780] sm:$0xff] }
  0x4e   : > { %v483_v61 = vld [vmem:[%s1591_s29 + $0x7a0] sm:$0xff]  ;;  %482 = vst [vmem:[%s1596_s30 + $0x1e0] sm:$0xff] %v481_v60 }
  0x4f   : > { %v485_v62 = vld [vmem:[%s1591_s29 + $0x7c0] sm:$0xff]  ;;  %484 = vst [vmem:[%s1596_s30 + $0x1e8] sm:$0xff] %v483_v61 }
  0x50   : > { %486 = vst [vmem:[%s1596_s30 + $0x1f0] sm:$0xff] %v485_v62  ;;  %v487_v63 = vld [vmem:[%s1591_s29 + $0x7e0] sm:$0xff] }
  0x51   : > { %488 = vst [vmem:[%s1596_s30 + $0x1f8] sm:$0xff] %v487_v63 }
  0x52 PF: > { %p1264_p6 = scmp.ge.s32.totalorder %s1521_s19, 1  ;;  %p509_p7 = scmp.lt.s32.totalorder %s1521_s19, 5 }
  0x54   : > { %p510_p8 = pnand %p1264_p6, %p509_p7 }
  0x55   : > { %s516_s5 = sand.u32 (!%p510_p8), 1, %s1505_s15   ;;  %v1729_v0 = vld [vmem:[%s1835_s0] sm:$0xff] (!%p510_p8)  ;;  %v1734_v1 = vld [vmem:[%s1835_s0 + $0x8] sm:$0xff] (!%p510_p8)  ;;  %s1266_s12 = sshll.u32 (!%p510_p8), %s1513_s17, 1 }
  0x56   : > { %513 = sbr.rel (%p510_p8) target bundleno = 374 (0x176), region = 70  ;;  %s1265_s10 = sshll.u32 (!%p510_p8), %s516_s5, 9  ;;  %v1271_v2 = vcombine.high (!%p510_p8), %v1729_v0, %v1729_v0  ;;  %v1273_v3 = vcombine.high (!%p510_p8), %v1734_v1, %v1734_v1 }
  0x57   : > { %s1740_s11 = scalar_lea.vmem (!%p510_p8), [#allocation3], %s1265_s10  ;;  %p573_p9 = scmp.lt.s32.totalorder (!%p510_p8), %s1266_s12, 7 }
  0x58   : > { %v1383_v4 = vld [vmem:[%s1740_s11 + $0x4] ss:$8 sps:$4 sm:$0xff] (!%p510_p8)   ;;  %1032 = vmatprep.mubr.bf16.mxu1 (!%p510_p8), %v1271_v2  ;;  %1073 = vmatprep.mubr.bf16.mxu0 (!%p510_p8), %v1273_v3  ;;  %v1387_v6 = vld [vmem:[%s1740_s11] ss:$8 sps:$4 sm:$0xff] (!%p510_p8)   ;;  %v1389_v8 = vld [vmem:[%s1740_s11 + $0x14] ss:$8 sps:$4 sm:$0xff] (!%p510_p8)  }
  0x59   : > { %v1385_v5 = vld [vmem:[%s1740_s11 + $0x104] ss:$8 sps:$4 sm:$0xff] (!%p510_p8)   ;;  %1000 = vmatprep.subr.bf16.mxu1 (!%p510_p8), %v1383_v4  ;;  %v1388_v7 = vld [vmem:[%s1740_s11 + $0x100] ss:$8 sps:$4 sm:$0xff] (!%p510_p8)   ;;  %v1391_v9 = vld [vmem:[%s1740_s11 + $0x114] ss:$8 sps:$4 sm:$0xff] (!%p510_p8)  }
  0x5a   : > { %1041 = vmatprep.subr.bf16.mxu0 (!%p510_p8), %v1385_v5  ;;  %1001 = vmatpush1.bf16.msra.mxu1 (!%p510_p8), %v1387_v6  ;;  %v1393_v10 = vld [vmem:[%s1740_s11 + $0x10] ss:$8 sps:$4 sm:$0xff] (!%p510_p8)   ;;  %v1395_v12 = vld [vmem:[%s1740_s11 + $0x24] ss:$8 sps:$4 sm:$0xff] (!%p510_p8)   ;;  %v1399_v14 = vld [vmem:[%s1740_s11 + $0x20] ss:$8 sps:$4 sm:$0xff] (!%p510_p8)   ;;  %v1270_v6 = vcombine.low (!%p510_p8), %v1729_v0, %v1729_v0 }
  0x5b   : > { %1042 = vmatpush1.bf16.msra.mxu0 (!%p510_p8), %v1388_v7  ;;  %1002 = vmatprep.subr.bf16.mxu1 (!%p510_p8), %v1389_v8  ;;  %v1394_v11 = vld [vmem:[%s1740_s11 + $0x110] ss:$8 sps:$4 sm:$0xff] (!%p510_p8)   ;;  %v1397_v13 = vld [vmem:[%s1740_s11 + $0x124] ss:$8 sps:$4 sm:$0xff] (!%p510_p8)   ;;  %v1400_v15 = vld [vmem:[%s1740_s11 + $0x120] ss:$8 sps:$4 sm:$0xff] (!%p510_p8)   ;;  %v1272_v7 = vcombine.low (!%p510_p8), %v1734_v1, %v1734_v1  ;;  %v1093_v8 = vlaneseq (!%p510_p8) }
  0x5c   : > { %1043 = vmatprep.subr.bf16.mxu0 (!%p510_p8), %v1391_v9  ;;  %v1401_v16 = vld [vmem:[%s1740_s11 + $0x34] ss:$8 sps:$4 sm:$0xff] (!%p510_p8)   ;;  %v1405_v18 = vld [vmem:[%s1740_s11 + $0x30] ss:$8 sps:$4 sm:$0xff] (!%p510_p8)   ;;  %v1407_v20 = vld [vmem:[%s1740_s11 + $0x44] ss:$8 sps:$4 sm:$0xff] (!%p510_p8)  }
  0x5d   : > { %v1403_v17 = vld [vmem:[%s1740_s11 + $0x134] ss:$8 sps:$4 sm:$0xff]   ;;  %v1406_v19 = vld [vmem:[%s1740_s11 + $0x130] ss:$8 sps:$4 sm:$0xff]   ;;  %v1409_v21 = vld [vmem:[%s1740_s11 + $0x144] ss:$8 sps:$4 sm:$0xff]  }
  0x5e   : > { %1003 = vmatpush1.bf16.msra.mxu1 %v1393_v10  ;;  %v1411_v22 = vld [vmem:[%s1740_s11 + $0x40] ss:$8 sps:$4 sm:$0xff]   ;;  %v1413_v24 = vld [vmem:[%s1740_s11 + $0x54] ss:$8 sps:$4 sm:$0xff]   ;;  %v1417_v26 = vld [vmem:[%s1740_s11 + $0x50] ss:$8 sps:$4 sm:$0xff]  }
  0x5f   : > { %1044 = vmatpush1.bf16.msra.mxu0 %v1394_v11  ;;  %1004 = vmatprep.subr.bf16.mxu1 %v1395_v12  ;;  %v1412_v23 = vld [vmem:[%s1740_s11 + $0x140] ss:$8 sps:$4 sm:$0xff]   ;;  %v1415_v25 = vld [vmem:[%s1740_s11 + $0x154] ss:$8 sps:$4 sm:$0xff]   ;;  %v1418_v27 = vld [vmem:[%s1740_s11 + $0x150] ss:$8 sps:$4 sm:$0xff]  }
  0x60   : > { %1045 = vmatprep.subr.bf16.mxu0 %v1397_v13  ;;  %v1419_v28 = vld [vmem:[%s1740_s11 + $0x64] ss:$8 sps:$4 sm:$0xff]   ;;  %v1423_v30 = vld [vmem:[%s1740_s11 + $0x60] ss:$8 sps:$4 sm:$0xff]   ;;  %v1425_v32 = vld [vmem:[%s1740_s11 + $0x74] ss:$8 sps:$4 sm:$0xff]  }
  0x61   : > { %v1421_v29 = vld [vmem:[%s1740_s11 + $0x164] ss:$8 sps:$4 sm:$0xff]   ;;  %v1424_v31 = vld [vmem:[%s1740_s11 + $0x160] ss:$8 sps:$4 sm:$0xff]   ;;  %v1427_v33 = vld [vmem:[%s1740_s11 + $0x174] ss:$8 sps:$4 sm:$0xff]  }
  0x62   : > { %1005 = vmatpush1.bf16.msra.mxu1 %v1399_v14  ;;  %v1429_v34 = vld [vmem:[%s1740_s11 + $0x70] ss:$8 sps:$4 sm:$0xff]   ;;  %v1431_v36 = vld [vmem:[%s1740_s11 + $0x84] ss:$8 sps:$4 sm:$0xff]   ;;  %v1435_v38 = vld [vmem:[%s1740_s11 + $0x80] ss:$8 sps:$4 sm:$0xff]  }
  0x63   : > { %1046 = vmatpush1.bf16.msra.mxu0 %v1400_v15  ;;  %1006 = vmatprep.subr.bf16.mxu1 %v1401_v16  ;;  %v1430_v35 = vld [vmem:[%s1740_s11 + $0x170] ss:$8 sps:$4 sm:$0xff]   ;;  %v1433_v37 = vld [vmem:[%s1740_s11 + $0x184] ss:$8 sps:$4 sm:$0xff]   ;;  %v1436_v39 = vld [vmem:[%s1740_s11 + $0x180] ss:$8 sps:$4 sm:$0xff]  }
  0x64   : > { %1047 = vmatprep.subr.bf16.mxu0 %v1403_v17  ;;  %v1437_v40 = vld [vmem:[%s1740_s11 + $0x94] ss:$8 sps:$4 sm:$0xff]   ;;  %v1441_v42 = vld [vmem:[%s1740_s11 + $0x90] ss:$8 sps:$4 sm:$0xff]   ;;  %v1443_v44 = vld [vmem:[%s1740_s11 + $0xa4] ss:$8 sps:$4 sm:$0xff]  }
  0x65   : > { %v1439_v41 = vld [vmem:[%s1740_s11 + $0x194] ss:$8 sps:$4 sm:$0xff]   ;;  %v1442_v43 = vld [vmem:[%s1740_s11 + $0x190] ss:$8 sps:$4 sm:$0xff]   ;;  %v1445_v45 = vld [vmem:[%s1740_s11 + $0x1a4] ss:$8 sps:$4 sm:$0xff]  }
  0x66   : > { %1007 = vmatpush1.bf16.msra.mxu1 %v1405_v18  ;;  %v1447_v46 = vld [vmem:[%s1740_s11 + $0xa0] ss:$8 sps:$4 sm:$0xff]   ;;  %v1449_v48 = vld [vmem:[%s1740_s11 + $0xb4] ss:$8 sps:$4 sm:$0xff]   ;;  %v1453_v50 = vld [vmem:[%s1740_s11 + $0xb0] ss:$8 sps:$4 sm:$0xff]  }
  0x67   : > { %1048 = vmatpush1.bf16.msra.mxu0 %v1406_v19  ;;  %1008 = vmatprep.subr.bf16.mxu1 %v1407_v20  ;;  %v1448_v47 = vld [vmem:[%s1740_s11 + $0x1a0] ss:$8 sps:$4 sm:$0xff]   ;;  %v1451_v49 = vld [vmem:[%s1740_s11 + $0x1b4] ss:$8 sps:$4 sm:$0xff]   ;;  %v1454_v51 = vld [vmem:[%s1740_s11 + $0x1b0] ss:$8 sps:$4 sm:$0xff]  }
  0x68   : > { %1049 = vmatprep.subr.bf16.mxu0 %v1409_v21  ;;  %v1455_v52 = vld [vmem:[%s1740_s11 + $0xc4] ss:$8 sps:$4 sm:$0xff]   ;;  %v1459_v54 = vld [vmem:[%s1740_s11 + $0xc0] ss:$8 sps:$4 sm:$0xff]   ;;  %v1461_v56 = vld [vmem:[%s1740_s11 + $0xd4] ss:$8 sps:$4 sm:$0xff]  }
  0x69   : > { %v1457_v53 = vld [vmem:[%s1740_s11 + $0x1c4] ss:$8 sps:$4 sm:$0xff]   ;;  %v1460_v55 = vld [vmem:[%s1740_s11 + $0x1c0] ss:$8 sps:$4 sm:$0xff]   ;;  %v1463_v57 = vld [vmem:[%s1740_s11 + $0x1d4] ss:$8 sps:$4 sm:$0xff]  }
  0x6a   : > { %1009 = vmatpush1.bf16.msra.mxu1 %v1411_v22  ;;  %v1465_v58 = vld [vmem:[%s1740_s11 + $0xd0] ss:$8 sps:$4 sm:$0xff]   ;;  %v1467_v60 = vld [vmem:[%s1740_s11 + $0xe4] ss:$8 sps:$4 sm:$0xff]   ;;  %v1471_v62 = vld [vmem:[%s1740_s11 + $0xe0] ss:$8 sps:$4 sm:$0xff]  }
  0x6b   : > { %1050 = vmatpush1.bf16.msra.mxu0 %v1412_v23  ;;  %1010 = vmatprep.subr.bf16.mxu1 %v1413_v24  ;;  %v1466_v59 = vld [vmem:[%s1740_s11 + $0x1d0] ss:$8 sps:$4 sm:$0xff]   ;;  %v1469_v61 = vld [vmem:[%s1740_s11 + $0x1e4] ss:$8 sps:$4 sm:$0xff]   ;;  %v1472_v63 = vld [vmem:[%s1740_s11 + $0x1e0] ss:$8 sps:$4 sm:$0xff]  }
  0x6c   : > { %1051 = vmatprep.subr.bf16.mxu0 %v1415_v25  ;;  %v1473_v2 = vld [vmem:[%s1740_s11 + $0xf4] ss:$8 sps:$4 sm:$0xff]   ;;  %v1477_v4 = vld [vmem:[%s1740_s11 + $0xf0] ss:$8 sps:$4 sm:$0xff]   ;;  %s1847_s12 = smov (!%p573_p9, %s1266_s12), 7  ;;  %v1094_v9 = vshrl.u32 %v1093_v8, 7 }
  0x6d   : > { %v1475_v3 = vld [vmem:[%s1740_s11 + $0x1f4] ss:$8 sps:$4 sm:$0xff]   ;;  %v1478_v5 = vld [vmem:[%s1740_s11 + $0x1f0] ss:$8 sps:$4 sm:$0xff]   ;;  %s575_s15 = scalar_lea.vmem %s1837_s2, %s1847_s12  ;;  %s580_s24 = scalar_lea.vmem %s1838_s3, %s1847_s12 }
  0x6e   : > { %1011 = vmatpush1.bf16.msra.mxu1 %v1417_v26  ;;  %v1095_v0 = vsub.s32 0, %v1094_v9  ;;  %v1091_v10 = vld [vmem:[%s575_s15] sm:$0x3]  ;;  %v1099_v1 = vsub.s32 1, %v1094_v9  ;;  %s1269_s17 = sshll.u32 %s1847_s12, 3 }
  0x6f   : > { %1052 = vmatpush1.bf16.msra.mxu0 %v1418_v27  ;;  %1012 = vmatprep.subr.bf16.mxu1 %v1419_v28  ;;  %v1105_v11 = vld [vmem:[%s580_s24] sm:$0x3]  ;;  %s590_s27 = scalar_lea.vmem %s1839_s4, %s1269_s17 }
  0x70   : > { %1053 = vmatprep.subr.bf16.mxu0 %v1421_v29  ;;  %v1096_v12 = vrot.slane %v1091_v10, %v1095_v0  ;;  %v1100_v15 = vrot.slane %v1091_v10, %v1099_v1  ;;  %v1110_v17 = vrot.slane %v1105_v11, %v1095_v0  ;;  %v1114_v21 = vrot.slane %v1105_v11, %v1099_v1 }
  0x72   : > { %1013 = vmatpush1.bf16.msra.mxu1 %v1423_v30 }
  0x73   : > { %1054 = vmatpush1.bf16.msra.mxu0 %v1424_v31  ;;  %1014 = vmatprep.subr.bf16.mxu1 %v1425_v32 }
  0x74   : > { %1055 = vmatprep.subr.bf16.mxu0 %v1427_v33 }
  0x76   : > { %1015 = vmatpush1.bf16.msra.mxu1 %v1429_v34 }
  0x77   : > { %1056 = vmatpush1.bf16.msra.mxu0 %v1430_v35  ;;  %1016 = vmatprep.subr.bf16.mxu1 %v1431_v36 }
  0x78   : > { %1057 = vmatprep.subr.bf16.mxu0 %v1433_v37 }
  0x7a   : > { %1017 = vmatpush1.bf16.msra.mxu1 %v1435_v38 }
  0x7b   : > { %1058 = vmatpush1.bf16.msra.mxu0 %v1436_v39  ;;  %1018 = vmatprep.subr.bf16.mxu1 %v1437_v40 }
  0x7c   : > { %1059 = vmatprep.subr.bf16.mxu0 %v1439_v41 }
  0x7e   : > { %1019 = vmatpush1.bf16.msra.mxu1 %v1441_v42 }
  0x7f   : > { %1060 = vmatpush1.bf16.msra.mxu0 %v1442_v43  ;;  %1020 = vmatprep.subr.bf16.mxu1 %v1443_v44 }
  0x80   : > { %1061 = vmatprep.subr.bf16.mxu0 %v1445_v45 }
  0x82   : > { %1021 = vmatpush1.bf16.msra.mxu1 %v1447_v46 }
  0x83   : > { %1062 = vmatpush1.bf16.msra.mxu0 %v1448_v47  ;;  %1022 = vmatprep.subr.bf16.mxu1 %v1449_v48 }
  0x84   : > { %1063 = vmatprep.subr.bf16.mxu0 %v1451_v49 }
  0x86   : > { %1023 = vmatpush1.bf16.msra.mxu1 %v1453_v50 }
  0x87   : > { %1064 = vmatpush1.bf16.msra.mxu0 %v1454_v51  ;;  %1024 = vmatprep.subr.bf16.mxu1 %v1455_v52 }
  0x88   : > { %1065 = vmatprep.subr.bf16.mxu0 %v1457_v53 }
  0x8a   : > { %1025 = vmatpush1.bf16.msra.mxu1 %v1459_v54 }
  0x8b   : > { %1066 = vmatpush1.bf16.msra.mxu0 %v1460_v55  ;;  %1026 = vmatprep.subr.bf16.mxu1 %v1461_v56 }
  0x8c   : > { %1067 = vmatprep.subr.bf16.mxu0 %v1463_v57 }
  0x8e   : > { %1027 = vmatpush1.bf16.msra.mxu1 %v1465_v58 }
  0x8f   : > { %1068 = vmatpush1.bf16.msra.mxu0 %v1466_v59  ;;  %1028 = vmatprep.subr.bf16.mxu1 %v1467_v60 }
  0x90   : > { %1069 = vmatprep.subr.bf16.mxu0 %v1469_v61 }
  0x92   : > { %1029 = vmatpush1.bf16.msra.mxu1 %v1471_v62 }
  0x93   : > { %1070 = vmatpush1.bf16.msra.mxu0 %v1472_v63  ;;  %1030 = vmatprep.subr.bf16.mxu1 %v1473_v2 }
  0x94   : > { %1071 = vmatprep.subr.bf16.mxu0 %v1475_v3 }
  0x96   : > { %1031 = vmatpush1.bf16.msra.mxu1 %v1477_v4 }
  0x97   : > { %1072 = vmatpush1.bf16.msra.mxu0 %v1478_v5 }
  0x99   : > { %1033 = vmatmul.mubr.bf16.vlgmr.msra.gmra.mrb[0].mxu1 %v1270_v6 }
  0x9a   : > { %1074 = vmatmul.mubr.bf16.vlgmr.msra.gmra.mrb[0].mxu0 %v1272_v7 }
 0x16c   : > { %v1034_v13 = vpop.f32.mrb[0].mxu1 }
 0x16d   : > { %v1075_v14 = vpop.f32.mrb[0].mxu0  ;;  %v1036_v18 = vpop.f32.mrb[1].mxu1 }
 0x16e   : > { %v1076_v16 = vadd.f32 %v1075_v14, %v1034_v13  ;;  %v1077_v19 = vpop.f32.mrb[1].mxu0  ;;  %v1038_v22 = vpop.f32.mrb[2].mxu1 }
 0x16f   : > { %v1078_v20 = vadd.f32 %v1077_v19, %v1036_v18  ;;  %v1079_v23 = vpop.f32.mrb[2].mxu0  ;;  %v1039_v25 = vpop.f32.mrb[3].mxu1 }
 0x170   : > { %v1103_v24 = vmul.f32 %v1096_v12, %v1076_v16  ;;  %v1080_v26 = vpop.f32.mrb[3].mxu0 }
 0x171   : > { %v1104_v27 = vmul.f32 %v1100_v15, %v1078_v20 }
 0x172   : > { %v1117_v28 = vadd.f32 %v1110_v17, %v1103_v24 }
 0x173   : > { %v1118_v29 = vadd.f32 %v1114_v21, %v1104_v27 }
 0x174   : > { %1119 = vst [vmem:[%s590_s27] sm:$0xff] %v1117_v28 }
 0x175   : > { %1120 = vst [vmem:[%s590_s27 + $0x8] sm:$0xff] %v1118_v29 }
 0x176 PF: > { %s14_s19 = sadd.s32 1, %s1521_s19   ;;  %s1840_s15 = smov %s1509_s16 }
 0x177   : > { %p11_p10 = scmp.ge.s32.totalorder %s14_s19, 6   ;;  %s1841_s16 = smov %s1583_s23 }
 0x178   : > { %s1842_s17 = smov %s1517_s18  ;;  %s1843_s18 = smov %s1845_s20 }
 0x179   :  { %13 = sbr.rel (!%p11_p10) target bundleno = 3 (0x3), region = 126 }

</bundles_post_ra>
